<compile_context>
chip_gen: v7x
topology: tpu7x:2x2x1
jax: 0.10.0
libtpu: 0.0.40
codegen_flags: <defaults>
</compile_context>

<pallas_src>
import functools
import math

import jax
import jax.numpy as jnp
from jax.experimental import pallas as pl
from jax.experimental.pallas import tpu as pltpu


# ----------------------------------------------------------------------------
# Pallas kernels
# ----------------------------------------------------------------------------

def _conv_relu_pool_kernel(p_ref, w_ref, b_ref, o_ref, *, n_quads):
    """Fused conv (as im2col matmul) + bias + ReLU + 2x2 maxpool.

    p_ref: (1, Q, M, Kc) bf16   -- Q pool-phase patch matrices for one image
    w_ref: (Kc, OC)      bf16   -- conv weights in (kh, kw, c) x OC layout
    b_ref: (1, OC)       f32
    o_ref: (1, M, OC)    bf16   -- pooled (or plain, if Q==1) conv output
    """
    w = w_ref[...]
    bias = b_ref[...]
    res = None
    for q in range(n_quads):  # static unroll (Q is 1 or 4)
        acc = jnp.dot(p_ref[0, q], w, preferred_element_type=jnp.float32)
        acc = jnp.maximum(acc + bias, 0.0)
        res = acc if res is None else jnp.maximum(res, acc)
    o_ref[0] = res.astype(o_ref.dtype)


def _mlp_kernel(x_ref, *refs, n_layers):
    """All fully-connected layers fused: relu(x@W+b) ... @Wout + bout."""
    o_ref = refs[-1]
    h = x_ref[...]
    for i in range(n_layers):
        w = refs[2 * i][...]
        b = refs[2 * i + 1][...]
        h = jnp.dot(h.astype(w.dtype), w, preferred_element_type=jnp.float32) + b
        if i < n_layers - 1:
            h = jnp.maximum(h, 0.0)
    o_ref[...] = h.astype(o_ref.dtype)


# ----------------------------------------------------------------------------
# Wrappers
# ----------------------------------------------------------------------------

def conv_relu_pool(x_nhwc, wm, b, ksize, stride, padding, pool):
    """PyTorch-semantics Conv2d + bias + ReLU (+ fused MaxPool2d(2,2)).

    x_nhwc: (B, H, W, C) bf16; wm: (KH*KW*C, OC) bf16; b: (1, OC) f32.
    Returns NHWC output (pooled if `pool`).
    """
    B, H, W, C = x_nhwc.shape
    Kc, OC = wm.shape
    OH = (H + 2 * padding - ksize) // stride + 1
    OW = (W + 2 * padding - ksize) // stride + 1
    xp = jnp.pad(x_nhwc, ((0, 0), (padding, padding), (padding, padding), (0, 0)))

    if pool:
        phases = ((0, 0), (0, 1), (1, 0), (1, 1))   # the four 2x2 pool members
        oh, ow, step = OH // 2, OW // 2, 2 * stride
    else:
        phases = ((0, 0),)
        oh, ow, step = OH, OW, stride
    M = oh * ow
    Q = len(phases)

    # im2col glue (fuses into a couple of XLA ops under jit): one patch matrix
    # per pool phase, features ordered (kh, kw, c) to match the weight layout.
    mats = []
    for dh, dw in phases:
        taps = []
        for kh in range(ksize):
            for kw in range(ksize):
                r0 = dh * stride + kh
                c0 = dw * stride + kw
                taps.append(xp[:, r0:r0 + step * (oh - 1) + 1:step,
                                  c0:c0 + step * (ow - 1) + 1:step, :])
        mats.append(jnp.concatenate(taps, axis=-1).reshape(B, M, Kc))
    patches = jnp.stack(mats, axis=1)               # (B, Q, M, Kc) bf16

    flops = 2 * B * Q * M * Kc * OC
    bytes_acc = (patches.size * patches.dtype.itemsize
                 + wm.size * wm.dtype.itemsize + b.size * 4
                 + B * M * OC * 2)

    out = pl.pallas_call(
        functools.partial(_conv_relu_pool_kernel, n_quads=Q),
        out_shape=jax.ShapeDtypeStruct((B, M, OC), jnp.bfloat16),
        grid_spec=pltpu.PrefetchScalarGridSpec(
            num_scalar_prefetch=0,
            grid=(B,),                              # >=2 parallel steps for v7x
            in_specs=[
                pl.BlockSpec((1, Q, M, Kc), lambda i: (i, 0, 0, 0)),
                pl.BlockSpec((Kc, OC), lambda i: (0, 0)),
                pl.BlockSpec((1, OC), lambda i: (0, 0)),
            ],
            out_specs=pl.BlockSpec((1, M, OC), lambda i: (i, 0, 0)),
        ),
        compiler_params=pltpu.CompilerParams(dimension_semantics=("parallel",)),
        cost_estimate=pl.CostEstimate(flops=flops, transcendentals=0,
                                      bytes_accessed=bytes_acc),
    )(patches, wm, b)
    return out.reshape(B, oh, ow, OC)


def mlp(xf, fc_params, out_params):
    """All FC layers + output layer fused in a single pallas_call.

    xf: (B, F) bf16 (NHWC-flattened activations).
    """
    layers = list(fc_params) + [out_params]
    B, F = xf.shape
    N = layers[-1]["w"].shape[1]

    args = [xf]
    in_specs = [pl.BlockSpec((B, F), lambda i: (0, 0))]
    flops = 0
    bytes_acc = xf.size * xf.dtype.itemsize + B * N * 4
    fin = F
    for lp in layers:
        args.extend([lp["w"], lp["b"]])
        in_specs.append(pl.BlockSpec(lp["w"].shape, lambda i: (0, 0)))
        in_specs.append(pl.BlockSpec(lp["b"].shape, lambda i: (0, 0)))
        fout = lp["w"].shape[1]
        flops += 2 * B * fin * fout
        bytes_acc += lp["w"].size * lp["w"].dtype.itemsize + lp["b"].size * 4
        fin = fout

    # NOTE: for configs with a very large flattened size, add K-tiling here
    # (reduction grid axis + f32 VMEM accumulator); at this model size every
    # weight fits in VMEM comfortably on v5e/v6e/v7x.
    return pl.pallas_call(
        functools.partial(_mlp_kernel, n_layers=len(layers)),
        out_shape=jax.ShapeDtypeStruct((B, N), jnp.float32),
        grid_spec=pltpu.PrefetchScalarGridSpec(
            num_scalar_prefetch=0,
            grid=(1,),
            in_specs=in_specs,
            out_specs=pl.BlockSpec((B, N), lambda i: (0, 0)),
        ),
        cost_estimate=pl.CostEstimate(flops=flops, transcendentals=0,
                                      bytes_accessed=bytes_acc),
    )(*args)


# ----------------------------------------------------------------------------
# Model construction (deterministic init, PyTorch-style bounds)
# ----------------------------------------------------------------------------

def init_params(key, input_channels, conv_layers, fc_layers, output_size,
                use_pooling):
    params = {"conv": [], "fc": [], "out": None}
    in_c = input_channels
    h = w = 64  # the torch module sizes its flatten from a 64x64 dummy input
    for cfg in conv_layers:
        oc, ks, st, pd = (cfg["out_channels"], cfg["kernel_size"],
                          cfg["stride"], cfg["padding"])
        key, k1, k2 = jax.random.split(key, 3)
        bound = 1.0 / math.sqrt(in_c * ks * ks)
        w_oihw = jax.random.uniform(k1, (oc, in_c, ks, ks), jnp.float32,
                                    -bound, bound)
        bias = jax.random.uniform(k2, (oc,), jnp.float32, -bound, bound)
        # (OC, C, KH, KW) -> (KH*KW*C, OC): matches the (kh, kw, c) im2col order.
        wm = jnp.transpose(w_oihw, (2, 3, 1, 0)).reshape(ks * ks * in_c, oc)
        params["conv"].append({"w": wm.astype(jnp.bfloat16),
                               "b": bias.reshape(1, oc)})
        in_c = oc
        h = (h + 2 * pd - ks) // st + 1
        w = (w + 2 * pd - ks) // st + 1
        if use_pooling:
            h, w = h // 2, w // 2

    flattened = in_c * h * w
    linear_dims = list(fc_layers) + [output_size]
    in_f = flattened
    linears = []
    for li, units in enumerate(linear_dims):
        key, k1, k2 = jax.random.split(key, 3)
        bound = 1.0 / math.sqrt(in_f)
        wgt = jax.random.uniform(k1, (in_f, units), jnp.float32, -bound, bound)
        bias = jax.random.uniform(k2, (units,), jnp.float32, -bound, bound)
        if li == 0:
            # The torch module flattens NCHW; we flatten NHWC. Permute the first
            # linear layer's input rows once at init (free, preserves semantics).
            wgt = (wgt.reshape(in_c, h, w, units)
                      .transpose(1, 2, 0, 3)
                      .reshape(in_f, units))
        linears.append({"w": wgt, "b": bias.reshape(1, units)})
        in_f = units

    # Hidden FC weights feed the MXU in bf16; keep the output layer in f32.
    for lp in linears[:-1]:
        lp["w"] = lp["w"].astype(jnp.bfloat16)
    params["fc"] = linears[:-1]
    params["out"] = linears[-1]
    return params


def build_forward(conv_cfgs, use_pooling):
    static_cfgs = tuple((c["kernel_size"], c["stride"], c["padding"])
                        for c in conv_cfgs)

    @jax.jit
    def forward(params, x_nchw):
        # NCHW (PyTorch) -> NHWC bf16 for the conv stack.
        x = jnp.transpose(x_nchw, (0, 2, 3, 1)).astype(jnp.bfloat16)
        for (ks, st, pd), layer in zip(static_cfgs, params["conv"]):
            x = conv_relu_pool(x, layer["w"], layer["b"], ks, st, pd, use_pooling)
        # NHWC flatten (first FC weight was permuted at init to match torch).
        xf = x.reshape(x.shape[0], -1)
        return mlp(xf, params["fc"], params["out"])

    return forward


# ----------------------------------------------------------------------------
# Main
# ----------------------------------------------------------------------------

if __name__ == "__main__":
    input_channels = 4
    conv_layers = (
        {"out_channels": 8, "kernel_size": 3, "stride": 1, "padding": 1},
        {"out_channels": 16, "kernel_size": 3, "stride": 1, "padding": 1},
    )
    fc_layers = (32,)
    output_size = 10
    batch_size = 2
    use_pooling = True

    key = jax.random.PRNGKey(0)
    key, pkey, xkey = jax.random.split(key, 3)
    params = init_params(pkey, input_channels, conv_layers, fc_layers,
                         output_size, use_pooling)
    forward = build_forward(conv_layers, use_pooling)

    # The torch module sizes its flatten from a 64x64 dummy, so inputs are 64x64.
    x = jax.random.normal(xkey, (batch_size, input_channels, 64, 64), jnp.float32)

    out = jax.block_until_ready(forward(params, x))
    assert out.shape == (batch_size, output_size), out.shape
    assert bool(jnp.all(jnp.isfinite(out)))
    print("KERNEL_OK")
</pallas_src>

<mosaic_0001>
module attributes {stable_mosaic.version = 11 : i64} {
  func.func @_conv_relu_pool_kernel(%arg0: i32, %arg1: memref<1x4x1024x36xbf16, #tpu.memory_space<vmem>>, %arg2: memref<36x8xbf16, #tpu.memory_space<vmem>>, %arg3: memref<1x8xf32, #tpu.memory_space<vmem>>, %arg4: memref<1x1024x8xbf16, #tpu.memory_space<vmem>>) attributes {dimension_semantics = [#tpu.dimension_semantics<parallel>], iteration_bounds = array<i64: 2>, scalar_prefetch = 0 : i64, scratch_operands = 0 : i64, tpu.core_type = #tpu.core_type<tc>, window_params = [{transform_indices = @transform_0, window_bounds = array<i64: 1, 4, 1024, 36>}, {pipeline_mode = #tpu.pipeline_mode<synchronous>, transform_indices = @transform_1, window_bounds = array<i64: 36, 8>}, {pipeline_mode = #tpu.pipeline_mode<synchronous>, transform_indices = @transform_2, window_bounds = array<i64: 1, 8>}, {transform_indices = @transform_3, window_bounds = array<i64: 1, 1024, 8>}]} {
    %c0 = arith.constant 0 : index
    %c0_0 = arith.constant 0 : index
    %0 = vector.load %arg2[%c0, %c0_0] : memref<36x8xbf16, #tpu.memory_space<vmem>>, vector<36x8xbf16>
    %c0_1 = arith.constant 0 : index
    %c0_2 = arith.constant 0 : index
    %1 = vector.load %arg3[%c0_1, %c0_2] : memref<1x8xf32, #tpu.memory_space<vmem>>, vector<1x8xf32>
    %c0_3 = arith.constant 0 : index
    %c0_4 = arith.constant 0 : index
    %c0_5 = arith.constant 0 : index
    %c0_6 = arith.constant 0 : index
    %2 = vector.load %arg1[%c0_3, %c0_4, %c0_5, %c0_6] : memref<1x4x1024x36xbf16, #tpu.memory_space<vmem>>, vector<1x1x1024x36xbf16>
    %3 = vector.shape_cast %2 : vector<1x1x1024x36xbf16> to vector<1024x36xbf16>
    %cst = arith.constant dense<0.000000e+00> : vector<1024x8xf32>
    %4 = tpu.matmul %3, %0, %cst {dimension_numbers = #tpu.dot_dimension_numbers<[1], [0], [0], [1], [0, 0, 1, 1], [], []>} : vector<1024x36xbf16>, vector<36x8xbf16>, vector<1024x8xf32> -> vector<1024x8xf32>
    %5 = vector.broadcast %1 : vector<1x8xf32> to vector<1024x8xf32>
    %6 = arith.addf %4, %5 : vector<1024x8xf32>
    %cst_7 = arith.constant 0.000000e+00 : f32
    %7 = vector.broadcast %cst_7 : f32 to vector<1024x8xf32>
    %8 = arith.maximumf %6, %7 : vector<1024x8xf32>
    %c0_8 = arith.constant 0 : index
    %c1 = arith.constant 1 : index
    %c0_9 = arith.constant 0 : index
    %c0_10 = arith.constant 0 : index
    %9 = vector.load %arg1[%c0_8, %c1, %c0_9, %c0_10] : memref<1x4x1024x36xbf16, #tpu.memory_space<vmem>>, vector<1x1x1024x36xbf16>
    %10 = vector.shape_cast %9 : vector<1x1x1024x36xbf16> to vector<1024x36xbf16>
    %cst_11 = arith.constant dense<0.000000e+00> : vector<1024x8xf32>
    %11 = tpu.matmul %10, %0, %cst_11 {dimension_numbers = #tpu.dot_dimension_numbers<[1], [0], [0], [1], [0, 0, 1, 1], [], []>} : vector<1024x36xbf16>, vector<36x8xbf16>, vector<1024x8xf32> -> vector<1024x8xf32>
    %12 = vector.broadcast %1 : vector<1x8xf32> to vector<1024x8xf32>
    %13 = arith.addf %11, %12 : vector<1024x8xf32>
    %cst_12 = arith.constant 0.000000e+00 : f32
    %14 = vector.broadcast %cst_12 : f32 to vector<1024x8xf32>
    %15 = arith.maximumf %13, %14 : vector<1024x8xf32>
    %16 = arith.maximumf %8, %15 : vector<1024x8xf32>
    %c0_13 = arith.constant 0 : index
    %c2 = arith.constant 2 : index
    %c0_14 = arith.constant 0 : index
    %c0_15 = arith.constant 0 : index
    %17 = vector.load %arg1[%c0_13, %c2, %c0_14, %c0_15] : memref<1x4x1024x36xbf16, #tpu.memory_space<vmem>>, vector<1x1x1024x36xbf16>
    %18 = vector.shape_cast %17 : vector<1x1x1024x36xbf16> to vector<1024x36xbf16>
    %cst_16 = arith.constant dense<0.000000e+00> : vector<1024x8xf32>
    %19 = tpu.matmul %18, %0, %cst_16 {dimension_numbers = #tpu.dot_dimension_numbers<[1], [0], [0], [1], [0, 0, 1, 1], [], []>} : vector<1024x36xbf16>, vector<36x8xbf16>, vector<1024x8xf32> -> vector<1024x8xf32>
    %20 = vector.broadcast %1 : vector<1x8xf32> to vector<1024x8xf32>
    %21 = arith.addf %19, %20 : vector<1024x8xf32>
    %cst_17 = arith.constant 0.000000e+00 : f32
    %22 = vector.broadcast %cst_17 : f32 to vector<1024x8xf32>
    %23 = arith.maximumf %21, %22 : vector<1024x8xf32>
    %24 = arith.maximumf %16, %23 : vector<1024x8xf32>
    %c0_18 = arith.constant 0 : index
    %c3 = arith.constant 3 : index
    %c0_19 = arith.constant 0 : index
    %c0_20 = arith.constant 0 : index
    %25 = vector.load %arg1[%c0_18, %c3, %c0_19, %c0_20] : memref<1x4x1024x36xbf16, #tpu.memory_space<vmem>>, vector<1x1x1024x36xbf16>
    %26 = vector.shape_cast %25 : vector<1x1x1024x36xbf16> to vector<1024x36xbf16>
    %cst_21 = arith.constant dense<0.000000e+00> : vector<1024x8xf32>
    %27 = tpu.matmul %26, %0, %cst_21 {dimension_numbers = #tpu.dot_dimension_numbers<[1], [0], [0], [1], [0, 0, 1, 1], [], []>} : vector<1024x36xbf16>, vector<36x8xbf16>, vector<1024x8xf32> -> vector<1024x8xf32>
    %28 = vector.broadcast %1 : vector<1x8xf32> to vector<1024x8xf32>
    %29 = arith.addf %27, %28 : vector<1024x8xf32>
    %cst_22 = arith.constant 0.000000e+00 : f32
    %30 = vector.broadcast %cst_22 : f32 to vector<1024x8xf32>
    %31 = arith.maximumf %29, %30 : vector<1024x8xf32>
    %32 = arith.maximumf %24, %31 : vector<1024x8xf32>
    %33 = arith.truncf %32 : vector<1024x8xf32> to vector<1024x8xbf16>
    %c0_23 = arith.constant 0 : index
    %c0_24 = arith.constant 0 : index
    %c0_25 = arith.constant 0 : index
    %34 = vector.load %arg4[%c0_23, %c0_24, %c0_25] : memref<1x1024x8xbf16, #tpu.memory_space<vmem>>, vector<1x1024x8xbf16>
    %35 = vector.shape_cast %34 : vector<1x1024x8xbf16> to vector<1024x8xbf16>
    %36 = vector.shape_cast %33 : vector<1024x8xbf16> to vector<1x1024x8xbf16>
    tpu.vector_store %arg4[%c0_23, %c0_24, %c0_25], %36 {strides = array<i32>} : memref<1x1024x8xbf16, #tpu.memory_space<vmem>>, vector<1x1024x8xbf16>,
    return
  }
  func.func @transform_0(%arg0: i32) -> (i32, i32, i32, i32) {
    %c0_i32 = arith.constant 0 : i32
    %c0_i32_0 = arith.constant 0 : i32
    %c0_i32_1 = arith.constant 0 : i32
    %c0_i32_2 = arith.constant 0 : i32
    return %arg0, %c0_i32, %c0_i32_0, %c0_i32_1 : i32, i32, i32, i32
  }
  func.func @transform_1(%arg0: i32) -> (i32, i32) {
    %c0_i32 = arith.constant 0 : i32
    %c0_i32_0 = arith.constant 0 : i32
    %c0_i32_1 = arith.constant 0 : i32
    return %c0_i32, %c0_i32_0 : i32, i32
  }
  func.func @transform_2(%arg0: i32) -> (i32, i32) {
    %c0_i32 = arith.constant 0 : i32
    %c0_i32_0 = arith.constant 0 : i32
    %c0_i32_1 = arith.constant 0 : i32
    return %c0_i32, %c0_i32_0 : i32, i32
  }
  func.func @transform_3(%arg0: i32) -> (i32, i32, i32) {
    %c0_i32 = arith.constant 0 : i32
    %c0_i32_0 = arith.constant 0 : i32
    %c0_i32_1 = arith.constant 0 : i32
    return %arg0, %c0_i32, %c0_i32_0 : i32, i32, i32
  }
}

module attributes {stable_mosaic.version = 11 : i64} {
  func.func @_conv_relu_pool_kernel(%arg0: i32, %arg1: memref<1x4x256x72xbf16, #tpu.memory_space<vmem>>, %arg2: memref<72x16xbf16, #tpu.memory_space<vmem>>, %arg3: memref<1x16xf32, #tpu.memory_space<vmem>>, %arg4: memref<1x256x16xbf16, #tpu.memory_space<vmem>>) attributes {dimension_semantics = [#tpu.dimension_semantics<parallel>], iteration_bounds = array<i64: 2>, scalar_prefetch = 0 : i64, scratch_operands = 0 : i64, tpu.core_type = #tpu.core_type<tc>, window_params = [{transform_indices = @transform_0, window_bounds = array<i64: 1, 4, 256, 72>}, {pipeline_mode = #tpu.pipeline_mode<synchronous>, transform_indices = @transform_1, window_bounds = array<i64: 72, 16>}, {pipeline_mode = #tpu.pipeline_mode<synchronous>, transform_indices = @transform_2, window_bounds = array<i64: 1, 16>}, {transform_indices = @transform_3, window_bounds = array<i64: 1, 256, 16>}]} {
    %c0 = arith.constant 0 : index
    %c0_0 = arith.constant 0 : index
    %0 = vector.load %arg2[%c0, %c0_0] : memref<72x16xbf16, #tpu.memory_space<vmem>>, vector<72x16xbf16>
    %c0_1 = arith.constant 0 : index
    %c0_2 = arith.constant 0 : index
    %1 = vector.load %arg3[%c0_1, %c0_2] : memref<1x16xf32, #tpu.memory_space<vmem>>, vector<1x16xf32>
    %c0_3 = arith.constant 0 : index
    %c0_4 = arith.constant 0 : index
    %c0_5 = arith.constant 0 : index
    %c0_6 = arith.constant 0 : index
    %2 = vector.load %arg1[%c0_3, %c0_4, %c0_5, %c0_6] : memref<1x4x256x72xbf16, #tpu.memory_space<vmem>>, vector<1x1x256x72xbf16>
    %3 = vector.shape_cast %2 : vector<1x1x256x72xbf16> to vector<256x72xbf16>
    %cst = arith.constant dense<0.000000e+00> : vector<256x16xf32>
    %4 = tpu.matmul %3, %0, %cst {dimension_numbers = #tpu.dot_dimension_numbers<[1], [0], [0], [1], [0, 0, 1, 1], [], []>} : vector<256x72xbf16>, vector<72x16xbf16>, vector<256x16xf32> -> vector<256x16xf32>
    %5 = vector.broadcast %1 : vector<1x16xf32> to vector<256x16xf32>
    %6 = arith.addf %4, %5 : vector<256x16xf32>
    %cst_7 = arith.constant 0.000000e+00 : f32
    %7 = vector.broadcast %cst_7 : f32 to vector<256x16xf32>
    %8 = arith.maximumf %6, %7 : vector<256x16xf32>
    %c0_8 = arith.constant 0 : index
    %c1 = arith.constant 1 : index
    %c0_9 = arith.constant 0 : index
    %c0_10 = arith.constant 0 : index
    %9 = vector.load %arg1[%c0_8, %c1, %c0_9, %c0_10] : memref<1x4x256x72xbf16, #tpu.memory_space<vmem>>, vector<1x1x256x72xbf16>
    %10 = vector.shape_cast %9 : vector<1x1x256x72xbf16> to vector<256x72xbf16>
    %cst_11 = arith.constant dense<0.000000e+00> : vector<256x16xf32>
    %11 = tpu.matmul %10, %0, %cst_11 {dimension_numbers = #tpu.dot_dimension_numbers<[1], [0], [0], [1], [0, 0, 1, 1], [], []>} : vector<256x72xbf16>, vector<72x16xbf16>, vector<256x16xf32> -> vector<256x16xf32>
    %12 = vector.broadcast %1 : vector<1x16xf32> to vector<256x16xf32>
    %13 = arith.addf %11, %12 : vector<256x16xf32>
    %cst_12 = arith.constant 0.000000e+00 : f32
    %14 = vector.broadcast %cst_12 : f32 to vector<256x16xf32>
    %15 = arith.maximumf %13, %14 : vector<256x16xf32>
    %16 = arith.maximumf %8, %15 : vector<256x16xf32>
    %c0_13 = arith.constant 0 : index
    %c2 = arith.constant 2 : index
    %c0_14 = arith.constant 0 : index
    %c0_15 = arith.constant 0 : index
    %17 = vector.load %arg1[%c0_13, %c2, %c0_14, %c0_15] : memref<1x4x256x72xbf16, #tpu.memory_space<vmem>>, vector<1x1x256x72xbf16>
    %18 = vector.shape_cast %17 : vector<1x1x256x72xbf16> to vector<256x72xbf16>
    %cst_16 = arith.constant dense<0.000000e+00> : vector<256x16xf32>
    %19 = tpu.matmul %18, %0, %cst_16 {dimension_numbers = #tpu.dot_dimension_numbers<[1], [0], [0], [1], [0, 0, 1, 1], [], []>} : vector<256x72xbf16>, vector<72x16xbf16>, vector<256x16xf32> -> vector<256x16xf32>
    %20 = vector.broadcast %1 : vector<1x16xf32> to vector<256x16xf32>
    %21 = arith.addf %19, %20 : vector<256x16xf32>
    %cst_17 = arith.constant 0.000000e+00 : f32
    %22 = vector.broadcast %cst_17 : f32 to vector<256x16xf32>
    %23 = arith.maximumf %21, %22 : vector<256x16xf32>
    %24 = arith.maximumf %16, %23 : vector<256x16xf32>
    %c0_18 = arith.constant 0 : index
    %c3 = arith.constant 3 : index
    %c0_19 = arith.constant 0 : index
    %c0_20 = arith.constant 0 : index
    %25 = vector.load %arg1[%c0_18, %c3, %c0_19, %c0_20] : memref<1x4x256x72xbf16, #tpu.memory_space<vmem>>, vector<1x1x256x72xbf16>
    %26 = vector.shape_cast %25 : vector<1x1x256x72xbf16> to vector<256x72xbf16>
    %cst_21 = arith.constant dense<0.000000e+00> : vector<256x16xf32>
    %27 = tpu.matmul %26, %0, %cst_21 {dimension_numbers = #tpu.dot_dimension_numbers<[1], [0], [0], [1], [0, 0, 1, 1], [], []>} : vector<256x72xbf16>, vector<72x16xbf16>, vector<256x16xf32> -> vector<256x16xf32>
    %28 = vector.broadcast %1 : vector<1x16xf32> to vector<256x16xf32>
    %29 = arith.addf %27, %28 : vector<256x16xf32>
    %cst_22 = arith.constant 0.000000e+00 : f32
    %30 = vector.broadcast %cst_22 : f32 to vector<256x16xf32>
    %31 = arith.maximumf %29, %30 : vector<256x16xf32>
    %32 = arith.maximumf %24, %31 : vector<256x16xf32>
    %33 = arith.truncf %32 : vector<256x16xf32> to vector<256x16xbf16>
    %c0_23 = arith.constant 0 : index
    %c0_24 = arith.constant 0 : index
    %c0_25 = arith.constant 0 : index
    %34 = vector.load %arg4[%c0_23, %c0_24, %c0_25] : memref<1x256x16xbf16, #tpu.memory_space<vmem>>, vector<1x256x16xbf16>
    %35 = vector.shape_cast %34 : vector<1x256x16xbf16> to vector<256x16xbf16>
    %36 = vector.shape_cast %33 : vector<256x16xbf16> to vector<1x256x16xbf16>
    tpu.vector_store %arg4[%c0_23, %c0_24, %c0_25], %36 {strides = array<i32>} : memref<1x256x16xbf16, #tpu.memory_space<vmem>>, vector<1x256x16xbf16>,
    return
  }
  func.func @transform_0(%arg0: i32) -> (i32, i32, i32, i32) {
    %c0_i32 = arith.constant 0 : i32
    %c0_i32_0 = arith.constant 0 : i32
    %c0_i32_1 = arith.constant 0 : i32
    %c0_i32_2 = arith.constant 0 : i32
    return %arg0, %c0_i32, %c0_i32_0, %c0_i32_1 : i32, i32, i32, i32
  }
  func.func @transform_1(%arg0: i32) -> (i32, i32) {
    %c0_i32 = arith.constant 0 : i32
    %c0_i32_0 = arith.constant 0 : i32
    %c0_i32_1 = arith.constant 0 : i32
    return %c0_i32, %c0_i32_0 : i32, i32
  }
  func.func @transform_2(%arg0: i32) -> (i32, i32) {
    %c0_i32 = arith.constant 0 : i32
    %c0_i32_0 = arith.constant 0 : i32
    %c0_i32_1 = arith.constant 0 : i32
    return %c0_i32, %c0_i32_0 : i32, i32
  }
  func.func @transform_3(%arg0: i32) -> (i32, i32, i32) {
    %c0_i32 = arith.constant 0 : i32
    %c0_i32_0 = arith.constant 0 : i32
    %c0_i32_1 = arith.constant 0 : i32
    return %arg0, %c0_i32, %c0_i32_0 : i32, i32, i32
  }
}

module attributes {stable_mosaic.version = 11 : i64} {
  func.func @_mlp_kernel(%arg0: i32, %arg1: memref<2x4096xbf16, #tpu.memory_space<vmem>>, %arg2: memref<4096x32xbf16, #tpu.memory_space<vmem>>, %arg3: memref<1x32xf32, #tpu.memory_space<vmem>>, %arg4: memref<32x10xf32, #tpu.memory_space<vmem>>, %arg5: memref<1x10xf32, #tpu.memory_space<vmem>>, %arg6: memref<2x10xf32, #tpu.memory_space<vmem>>) attributes {dimension_semantics = [#tpu.dimension_semantics<arbitrary>], iteration_bounds = array<i64: 1>, scalar_prefetch = 0 : i64, scratch_operands = 0 : i64, tpu.core_type = #tpu.core_type<tc>, window_params = [{pipeline_mode = #tpu.pipeline_mode<synchronous>, transform_indices = @transform_0, window_bounds = array<i64: 2, 4096>}, {pipeline_mode = #tpu.pipeline_mode<synchronous>, transform_indices = @transform_1, window_bounds = array<i64: 4096, 32>}, {pipeline_mode = #tpu.pipeline_mode<synchronous>, transform_indices = @transform_2, window_bounds = array<i64: 1, 32>}, {pipeline_mode = #tpu.pipeline_mode<synchronous>, transform_indices = @transform_3, window_bounds = array<i64: 32, 10>}, {pipeline_mode = #tpu.pipeline_mode<synchronous>, transform_indices = @transform_4, window_bounds = array<i64: 1, 10>}, {pipeline_mode = #tpu.pipeline_mode<synchronous>, transform_indices = @transform_5, window_bounds = array<i64: 2, 10>}]} {
    %c0 = arith.constant 0 : index
    %c0_0 = arith.constant 0 : index
    %0 = vector.load %arg1[%c0, %c0_0] : memref<2x4096xbf16, #tpu.memory_space<vmem>>, vector<2x4096xbf16>
    %c0_1 = arith.constant 0 : index
    %c0_2 = arith.constant 0 : index
    %1 = vector.load %arg2[%c0_1, %c0_2] : memref<4096x32xbf16, #tpu.memory_space<vmem>>, vector<4096x32xbf16>
    %c0_3 = arith.constant 0 : index
    %c0_4 = arith.constant 0 : index
    %2 = vector.load %arg3[%c0_3, %c0_4] : memref<1x32xf32, #tpu.memory_space<vmem>>, vector<1x32xf32>
    %cst = arith.constant dense<0.000000e+00> : vector<2x32xf32>
    %3 = tpu.matmul %0, %1, %cst {dimension_numbers = #tpu.dot_dimension_numbers<[1], [0], [0], [1], [0, 0, 1, 1], [], []>} : vector<2x4096xbf16>, vector<4096x32xbf16>, vector<2x32xf32> -> vector<2x32xf32>
    %4 = vector.broadcast %2 : vector<1x32xf32> to vector<2x32xf32>
    %5 = arith.addf %3, %4 : vector<2x32xf32>
    %cst_5 = arith.constant 0.000000e+00 : f32
    %6 = vector.broadcast %cst_5 : f32 to vector<2x32xf32>
    %7 = arith.maximumf %5, %6 : vector<2x32xf32>
    %c0_6 = arith.constant 0 : index
    %c0_7 = arith.constant 0 : index
    %8 = vector.load %arg4[%c0_6, %c0_7] : memref<32x10xf32, #tpu.memory_space<vmem>>, vector<32x10xf32>
    %c0_8 = arith.constant 0 : index
    %c0_9 = arith.constant 0 : index
    %9 = vector.load %arg5[%c0_8, %c0_9] : memref<1x10xf32, #tpu.memory_space<vmem>>, vector<1x10xf32>
    %cst_10 = arith.constant dense<0.000000e+00> : vector<2x10xf32>
    %10 = tpu.matmul %7, %8, %cst_10 {dimension_numbers = #tpu.dot_dimension_numbers<[1], [0], [0], [1], [0, 0, 1, 1], [], []>} : vector<2x32xf32>, vector<32x10xf32>, vector<2x10xf32> -> vector<2x10xf32>
    %11 = vector.broadcast %9 : vector<1x10xf32> to vector<2x10xf32>
    %12 = arith.addf %10, %11 : vector<2x10xf32>
    %c0_11 = arith.constant 0 : index
    %c0_12 = arith.constant 0 : index
    %13 = vector.load %arg6[%c0_11, %c0_12] : memref<2x10xf32, #tpu.memory_space<vmem>>, vector<2x10xf32>
    tpu.vector_store %arg6[%c0_11, %c0_12], %12 {strides = array<i32>} : memref<2x10xf32, #tpu.memory_space<vmem>>, vector<2x10xf32>,
    return
  }
  func.func @transform_0(%arg0: i32) -> (i32, i32) {
    %c0_i32 = arith.constant 0 : i32
    %c0_i32_0 = arith.constant 0 : i32
    %c0_i32_1 = arith.constant 0 : i32
    return %c0_i32, %c0_i32_0 : i32, i32
  }
  func.func @transform_1(%arg0: i32) -> (i32, i32) {
    %c0_i32 = arith.constant 0 : i32
    %c0_i32_0 = arith.constant 0 : i32
    %c0_i32_1 = arith.constant 0 : i32
    return %c0_i32, %c0_i32_0 : i32, i32
  }
  func.func @transform_2(%arg0: i32) -> (i32, i32) {
    %c0_i32 = arith.constant 0 : i32
    %c0_i32_0 = arith.constant 0 : i32
    %c0_i32_1 = arith.constant 0 : i32
    return %c0_i32, %c0_i32_0 : i32, i32
  }
  func.func @transform_3(%arg0: i32) -> (i32, i32) {
    %c0_i32 = arith.constant 0 : i32
    %c0_i32_0 = arith.constant 0 : i32
    %c0_i32_1 = arith.constant 0 : i32
    return %c0_i32, %c0_i32_0 : i32, i32
  }
  func.func @transform_4(%arg0: i32) -> (i32, i32) {
    %c0_i32 = arith.constant 0 : i32
    %c0_i32_0 = arith.constant 0 : i32
    %c0_i32_1 = arith.constant 0 : i32
    return %c0_i32, %c0_i32_0 : i32, i32
  }
  func.func @transform_5(%arg0: i32) -> (i32, i32) {
    %c0_i32 = arith.constant 0 : i32
    %c0_i32_0 = arith.constant 0 : i32
    %c0_i32_1 = arith.constant 0 : i32
    return %c0_i32, %c0_i32_0 : i32, i32
  }
}

</mosaic_0001>

<bundles_post_ra>
// kernel: forward.3
= control target key start
LH: loop header
LB: loop body
LE: loop exit
PB: predicated region body
PF: predicated region fallthrough
CT: control target
= control target key end

     0   :  { %s8815_s12 = smov 0   ;;  %s10543_s0 = inlined_call_operand.vmem [shape: bf16[2,4,1024,36], index: 0, kind: input, shape index: {}]   ;;  %s10544_s1 = inlined_call_operand.vmem [shape: bf16[36,8], index: 1, kind: input, shape index: {}]   ;;  %s10545_s2 = inlined_call_operand.vmem [shape: f32[1,8], index: 2, kind: input, shape index: {}]   ;;  %s10546_s3 = inlined_call_operand.vmem [shape: bf16[2,1024,8], index: 3, kind: output, shape index: {}]  }
   0x1 LB: > { %s6539_s13 = sadd.s32 4294967295, %s8793_s12   ;;  %p6543_p0 = scmp.ge.s32.totalorder %s8793_s12, 1  ;;  %s8793_s12 = sphi %s8815_s12, %s13_s12  }
   0x2   : > { %p137_p1 = scmp.lt.s32.totalorder %s8793_s12, 3 }
   0x4   : > { %p138_p2 = pnand %p6543_p0, %p137_p1 }
   0x6   : > { %141 = sbr.rel (%p138_p2) target bundleno = 757 (0x2f5), region = 32 }
   0xd   : > { %v8524_v0 = vld [vmem:[%s10544_s1] sm:$0xff]   ;;  %v8525_v1 = vld [vmem:[%s10544_s1 + $0x8] sm:$0xff]   ;;  %p161_p3 = scmp.lt.s32.totalorder %s6539_s13, 1  ;;  %v8526_v2 = vld [vmem:[%s10544_s1 + $0x10] ss:$0 sps:$4 sm:$0x33]  }
   0xe   : > { %7976 = vmatprep.subr.bf16.mxu0 %v8524_v0  ;;  %8110 = vmatprep.subr.bf16.mxu1 %v8524_v0  ;;  %vm840_vm0 = vcmask 1041408   ;;  %vm647_vm1 = vcmask 293888   ;;  %vm6355_vm2 = vcmask 60416  }
   0xf   : > { %7977 = vmatpush3.bf16.msra.mxu0 %v8524_v0  ;;  %8111 = vmatpush3.bf16.msra.mxu1 %v8524_v0  ;;  %s10722_s13 = smov (!%p161_p3, %s6539_s13), 1  ;;  %v842_v4 = vsel %vm840_vm0, %v8526_v2, 0 }
  0x10   : > { %7978 = vmatprep.subr.bf16.mxu0 %v8525_v1  ;;  %8112 = vmatprep.subr.bf16.mxu1 %v8525_v1  ;;  %s7578_s20 = sshll.u32 %s10722_s13, 11  ;;  %s7579_s30 = sshll.u32 %s10722_s13, 9 }
  0x11   : > { %s8838_s23 = scalar_lea.vmem %s10543_s0, %s7578_s20  ;;  %s9871_s6 = scalar_lea.vmem %s10546_s3, %s7579_s30 }
  0x12   : > { %v8527_v3 = vld [vmem:[%s8838_s23] sm:$0xff]   ;;  %v8529_v6 = vld [vmem:[%s8838_s23 + $0x8] sm:$0xff]   ;;  %v8531_v8 = vld [vmem:[%s8838_s23 + $0x10] sm:$0xff]  }
  0x13   : > { %7979 = vmatpush3.bf16.msra.mxu0 %v8525_v1  ;;  %8113 = vmatpush3.bf16.msra.mxu1 %v8525_v1  ;;  %v8528_v5 = vld [vmem:[%s8838_s23 + $0x200] sm:$0xff]   ;;  %v8530_v7 = vld [vmem:[%s8838_s23 + $0x208] sm:$0xff]   ;;  %v8532_v9 = vld [vmem:[%s8838_s23 + $0x210] sm:$0xff]  }
  0x14   : > { %8512 = vmatprep.subr.msk.bf16.mxu0 %vm840_vm0, %v8526_v2  ;;  %8513 = vmatprep.subr.msk.bf16.mxu1 %vm840_vm0, %v8526_v2  ;;  %v8533_v10 = vld [vmem:[%s8838_s23 + $0x18] sm:$0xff]   ;;  %v8535_v12 = vld [vmem:[%s8838_s23 + $0x20] sm:$0xff]   ;;  %v8537_v14 = vld [vmem:[%s8838_s23 + $0x28] sm:$0xff]  }
  0x15   : > { %7982 = vmatprep.mubr.msk.bf16.mxu0 %vm647_vm1, %v8527_v3  ;;  %8116 = vmatprep.mubr.msk.bf16.mxu1 %vm647_vm1, %v8528_v5  ;;  %v8534_v11 = vld [vmem:[%s8838_s23 + $0x218] sm:$0xff]   ;;  %v8536_v13 = vld [vmem:[%s8838_s23 + $0x220] sm:$0xff]   ;;  %v8538_v15 = vld [vmem:[%s8838_s23 + $0x228] sm:$0xff]  }
  0x16   : > { %v8539_v16 = vld [vmem:[%s8838_s23 + $0x30] sm:$0xff]   ;;  %v8541_v18 = vld [vmem:[%s8838_s23 + $0x38] sm:$0xff]   ;;  %v8543_v20 = vld [vmem:[%s8838_s23 + $0x40] sm:$0xff]  }
  0x17   : > { %7981 = vmatpush3.bf16.msra.mxu0 %v842_v4  ;;  %8115 = vmatpush3.bf16.msra.mxu1 %v842_v4  ;;  %v8540_v17 = vld [vmem:[%s8838_s23 + $0x230] sm:$0xff]   ;;  %v8542_v19 = vld [vmem:[%s8838_s23 + $0x238] sm:$0xff]   ;;  %v8544_v21 = vld [vmem:[%s8838_s23 + $0x240] sm:$0xff]  }
  0x18   : > { %8244 = vmatprep.subr.bf16.mxu0 %v8524_v0  ;;  %8378 = vmatprep.subr.bf16.mxu1 %v8524_v0  ;;  %v8545_v22 = vld [vmem:[%s8838_s23 + $0x48] sm:$0xff]   ;;  %v8547_v24 = vld [vmem:[%s8838_s23 + $0x50] sm:$0xff]   ;;  %v8549_v26 = vld [vmem:[%s8838_s23 + $0x58] sm:$0xff]  }
  0x19   : > { %v8546_v23 = vld [vmem:[%s8838_s23 + $0x248] sm:$0xff]   ;;  %v8548_v25 = vld [vmem:[%s8838_s23 + $0x250] sm:$0xff]   ;;  %v8550_v27 = vld [vmem:[%s8838_s23 + $0x258] sm:$0xff]  }
  0x1a   : > { %7983 = vmatmul.mubr.msk.bf16.vlgmr.msra.gmra.mrb[0].mxu0 %vm647_vm1, %v8529_v6  ;;  %8117 = vmatmul.mubr.msk.bf16.vlgmr.msra.gmra.mrb[0].mxu1 %vm647_vm1, %v8530_v7  ;;  %v8551_v28 = vld [vmem:[%s8838_s23 + $0x60] sm:$0xff]   ;;  %v8553_v30 = vld [vmem:[%s8838_s23 + $0x68] sm:$0xff]   ;;  %v8555_v32 = vld [vmem:[%s8838_s23 + $0x70] sm:$0xff]  }
  0x1b   : > { %8245 = vmatpush3.bf16.msra.mxu0 %v8524_v0  ;;  %8379 = vmatpush3.bf16.msra.mxu1 %v8524_v0  ;;  %v8552_v29 = vld [vmem:[%s8838_s23 + $0x260] sm:$0xff]   ;;  %v8554_v31 = vld [vmem:[%s8838_s23 + $0x268] sm:$0xff]   ;;  %v8556_v33 = vld [vmem:[%s8838_s23 + $0x270] sm:$0xff]  }
  0x1c   : > { %7986 = vmatprep.mubr.msk.bf16.mxu0 %vm647_vm1, %v8531_v8  ;;  %8120 = vmatprep.mubr.msk.bf16.mxu1 %vm647_vm1, %v8532_v9  ;;  %v8557_v34 = vld [vmem:[%s8838_s23 + $0x78] sm:$0xff]   ;;  %v8559_v36 = vld [vmem:[%s8838_s23 + $0x80] sm:$0xff]   ;;  %v8561_v38 = vld [vmem:[%s8838_s23 + $0x88] sm:$0xff]  }
  0x1d   : > { %8246 = vmatprep.subr.bf16.mxu0 %v8525_v1  ;;  %8380 = vmatprep.subr.bf16.mxu1 %v8525_v1  ;;  %v8558_v35 = vld [vmem:[%s8838_s23 + $0x278] sm:$0xff]   ;;  %v8560_v37 = vld [vmem:[%s8838_s23 + $0x280] sm:$0xff]   ;;  %v8562_v39 = vld [vmem:[%s8838_s23 + $0x288] sm:$0xff]  }
  0x1e   : > { %v8563_v40 = vld [vmem:[%s8838_s23 + $0x90] sm:$0xff]   ;;  %v8565_v42 = vld [vmem:[%s8838_s23 + $0x98] sm:$0xff]   ;;  %v8567_v44 = vld [vmem:[%s8838_s23 + $0xa0] sm:$0xff]  }
  0x1f   : > { %8247 = vmatpush3.bf16.msra.mxu0 %v8525_v1  ;;  %8381 = vmatpush3.bf16.msra.mxu1 %v8525_v1  ;;  %v8564_v41 = vld [vmem:[%s8838_s23 + $0x290] sm:$0xff]   ;;  %v8566_v43 = vld [vmem:[%s8838_s23 + $0x298] sm:$0xff]   ;;  %v8568_v45 = vld [vmem:[%s8838_s23 + $0x2a0] sm:$0xff]  }
  0x20   : > { %8514 = vmatprep.subr.msk.bf16.mxu0 %vm840_vm0, %v8526_v2  ;;  %8515 = vmatprep.subr.msk.bf16.mxu1 %vm840_vm0, %v8526_v2  ;;  %v8569_v46 = vld [vmem:[%s8838_s23 + $0xa8] sm:$0xff]   ;;  %v8571_v48 = vld [vmem:[%s8838_s23 + $0xb0] sm:$0xff]   ;;  %v8573_v50 = vld [vmem:[%s8838_s23 + $0xb8] sm:$0xff]  }
  0x21   : > { %v8570_v47 = vld [vmem:[%s8838_s23 + $0x2a8] sm:$0xff]   ;;  %v8572_v49 = vld [vmem:[%s8838_s23 + $0x2b0] sm:$0xff]   ;;  %v8574_v51 = vld [vmem:[%s8838_s23 + $0x2b8] sm:$0xff]  }
  0x22   : > { %7987 = vmatmul.mubr.msk.bf16.gmra.mrb[4].mxu0 %vm647_vm1, %v8533_v10  ;;  %8121 = vmatmul.mubr.msk.bf16.gmra.mrb[4].mxu1 %vm647_vm1, %v8534_v11  ;;  %v8575_v52 = vld [vmem:[%s8838_s23 + $0xc0] sm:$0xff]   ;;  %v8577_v54 = vld [vmem:[%s8838_s23 + $0xc8] sm:$0xff]   ;;  %v8579_v56 = vld [vmem:[%s8838_s23 + $0xd0] sm:$0xff]  }
  0x23   : > { %7990 = vmatprep.mubr.msk.bf16.mxu0 %vm647_vm1, %v8535_v12  ;;  %8124 = vmatprep.mubr.msk.bf16.mxu1 %vm647_vm1, %v8536_v13  ;;  %v8576_v53 = vld [vmem:[%s8838_s23 + $0x2c0] sm:$0xff]   ;;  %v8578_v55 = vld [vmem:[%s8838_s23 + $0x2c8] sm:$0xff]   ;;  %v8580_v57 = vld [vmem:[%s8838_s23 + $0x2d0] sm:$0xff]  }
  0x24   : > { %8249 = vmatpush3.bf16.msra.mxu0 %v842_v4  ;;  %8383 = vmatpush3.bf16.msra.mxu1 %v842_v4  ;;  %v8581_v58 = vld [vmem:[%s8838_s23 + $0xd8] sm:$0xff]   ;;  %v8583_v60 = vld [vmem:[%s8838_s23 + $0xe0] sm:$0xff]   ;;  %v8585_v62 = vld [vmem:[%s8838_s23 + $0xe8] sm:$0xff]  }
  0x25   : > { %v8582_v59 = vld [vmem:[%s8838_s23 + $0x2d8] sm:$0xff]   ;;  %v8584_v61 = vld [vmem:[%s8838_s23 + $0x2e0] sm:$0xff]   ;;  %v8586_v63 = vld [vmem:[%s8838_s23 + $0x2e8] sm:$0xff]  }
  0x26   : > { %v8587_v0 = vld [vmem:[%s8838_s23 + $0xf0] sm:$0xff]   ;;  %v8589_v2 = vld [vmem:[%s8838_s23 + $0xf8] sm:$0xff]   ;;  %v8591_v4 = vld [vmem:[%s8838_s23 + $0x100] sm:$0xff]  }
  0x27   : > { %v8588_v1 = vld [vmem:[%s8838_s23 + $0x2f0] sm:$0xff]   ;;  %v8590_v3 = vld [vmem:[%s8838_s23 + $0x2f8] sm:$0xff]   ;;  %v8592_v5 = vld [vmem:[%s8838_s23 + $0x300] sm:$0xff]  }
  0x28   : > { %v8593_v6 = vld [vmem:[%s8838_s23 + $0x108] sm:$0xff]   ;;  %v8595_v8 = vld [vmem:[%s8838_s23 + $0x110] sm:$0xff]   ;;  %v8597_v10 = vld [vmem:[%s8838_s23 + $0x118] sm:$0xff]  }
  0x29   : > { %v8594_v7 = vld [vmem:[%s8838_s23 + $0x308] sm:$0xff]   ;;  %v8596_v9 = vld [vmem:[%s8838_s23 + $0x310] sm:$0xff]   ;;  %v8598_v11 = vld [vmem:[%s8838_s23 + $0x318] sm:$0xff]  }
  0x2a   : > { %7991 = vmatmul.mubr.msk.bf16.gmra.mrb[8].mxu0 %vm647_vm1, %v8537_v14  ;;  %8125 = vmatmul.mubr.msk.bf16.gmra.mrb[8].mxu1 %vm647_vm1, %v8538_v15  ;;  %v8599_v12 = vld [vmem:[%s8838_s23 + $0x120] sm:$0xff]   ;;  %v8601_v14 = vld [vmem:[%s8838_s23 + $0x128] sm:$0xff]  }
  0x2b   : > { %7994 = vmatprep.mubr.msk.bf16.mxu0 %vm647_vm1, %v8539_v16  ;;  %8128 = vmatprep.mubr.msk.bf16.mxu1 %vm647_vm1, %v8540_v17  ;;  %v8600_v13 = vld [vmem:[%s8838_s23 + $0x320] sm:$0xff]   ;;  %v8602_v15 = vld [vmem:[%s8838_s23 + $0x328] sm:$0xff]   ;;  %v8603_v16 = vld [vmem:[%s8838_s23 + $0x130] sm:$0xff]  }
  0x2c   : > { %v8604_v17 = vld [vmem:[%s8838_s23 + $0x330] sm:$0xff]  }
  0x32   : > { %7995 = vmatmul.mubr.msk.bf16.gmra.mrb[12].mxu0 %vm647_vm1, %v8541_v18  ;;  %8129 = vmatmul.mubr.msk.bf16.gmra.mrb[12].mxu1 %vm647_vm1, %v8542_v19  ;;  %v8605_v18 = vld [vmem:[%s8838_s23 + $0x138] sm:$0xff]  }
  0x33   : > { %7998 = vmatprep.mubr.msk.bf16.mxu0 %vm647_vm1, %v8543_v20  ;;  %8132 = vmatprep.mubr.msk.bf16.mxu1 %vm647_vm1, %v8544_v21  ;;  %v8606_v19 = vld [vmem:[%s8838_s23 + $0x338] sm:$0xff]   ;;  %v8607_v20 = vld [vmem:[%s8838_s23 + $0x140] sm:$0xff]  }
  0x34   : > { %v8608_v21 = vld [vmem:[%s8838_s23 + $0x340] sm:$0xff]  }
  0x3a   : > { %7999 = vmatmul.mubr.msk.bf16.gmra.mrb[16].mxu0 %vm647_vm1, %v8545_v22  ;;  %8133 = vmatmul.mubr.msk.bf16.gmra.mrb[16].mxu1 %vm647_vm1, %v8546_v23  ;;  %v8609_v22 = vld [vmem:[%s8838_s23 + $0x148] sm:$0xff]  }
  0x3b   : > { %8002 = vmatprep.mubr.msk.bf16.mxu0 %vm647_vm1, %v8547_v24  ;;  %8136 = vmatprep.mubr.msk.bf16.mxu1 %vm647_vm1, %v8548_v25  ;;  %v8610_v23 = vld [vmem:[%s8838_s23 + $0x348] sm:$0xff]   ;;  %v8611_v24 = vld [vmem:[%s8838_s23 + $0x150] sm:$0xff]  }
  0x3c   : > { %v8612_v25 = vld [vmem:[%s8838_s23 + $0x350] sm:$0xff]  }
  0x42   : > { %8003 = vmatmul.mubr.msk.bf16.gmra.mrb[20].mxu0 %vm647_vm1, %v8549_v26  ;;  %8137 = vmatmul.mubr.msk.bf16.gmra.mrb[20].mxu1 %vm647_vm1, %v8550_v27  ;;  %v8613_v26 = vld [vmem:[%s8838_s23 + $0x158] sm:$0xff]  }
  0x43   : > { %8006 = vmatprep.mubr.msk.bf16.mxu0 %vm647_vm1, %v8551_v28  ;;  %8140 = vmatprep.mubr.msk.bf16.mxu1 %vm647_vm1, %v8552_v29  ;;  %v8614_v27 = vld [vmem:[%s8838_s23 + $0x358] sm:$0xff]   ;;  %v8615_v28 = vld [vmem:[%s8838_s23 + $0x160] sm:$0xff]  }
  0x44   : > { %v8616_v29 = vld [vmem:[%s8838_s23 + $0x360] sm:$0xff]  }
  0x4a   : > { %8007 = vmatmul.mubr.msk.bf16.gmra.mrb[24].mxu0 %vm647_vm1, %v8553_v30  ;;  %8141 = vmatmul.mubr.msk.bf16.gmra.mrb[24].mxu1 %vm647_vm1, %v8554_v31  ;;  %v8617_v30 = vld [vmem:[%s8838_s23 + $0x168] sm:$0xff]  }
  0x4b   : > { %8010 = vmatprep.mubr.msk.bf16.mxu0 %vm647_vm1, %v8555_v32  ;;  %8144 = vmatprep.mubr.msk.bf16.mxu1 %vm647_vm1, %v8556_v33  ;;  %v8618_v31 = vld [vmem:[%s8838_s23 + $0x368] sm:$0xff]   ;;  %v8619_v32 = vld [vmem:[%s8838_s23 + $0x170] sm:$0xff]  }
  0x4c   : > { %v8620_v33 = vld [vmem:[%s8838_s23 + $0x370] sm:$0xff]  }
  0x52   : > { %8011 = vmatmul.mubr.msk.bf16.gmra.mrb[28].mxu0 %vm647_vm1, %v8557_v34  ;;  %8145 = vmatmul.mubr.msk.bf16.gmra.mrb[28].mxu1 %vm647_vm1, %v8558_v35  ;;  %v8621_v34 = vld [vmem:[%s8838_s23 + $0x178] sm:$0xff]  }
  0x53   : > { %8014 = vmatprep.mubr.msk.bf16.mxu0 %vm647_vm1, %v8559_v36  ;;  %8148 = vmatprep.mubr.msk.bf16.mxu1 %vm647_vm1, %v8560_v37  ;;  %v8622_v35 = vld [vmem:[%s8838_s23 + $0x378] sm:$0xff]   ;;  %v8623_v36 = vld [vmem:[%s8838_s23 + $0x180] sm:$0xff]  }
  0x54   : > { %v8624_v37 = vld [vmem:[%s8838_s23 + $0x380] sm:$0xff]  }
  0x5a   : > { %8015 = vmatmul.mubr.msk.bf16.gmra.mrb[32].mxu0 %vm647_vm1, %v8561_v38  ;;  %8149 = vmatmul.mubr.msk.bf16.gmra.mrb[32].mxu1 %vm647_vm1, %v8562_v39  ;;  %v8625_v38 = vld [vmem:[%s8838_s23 + $0x188] sm:$0xff]  }
  0x5b   : > { %8018 = vmatprep.mubr.msk.bf16.mxu0 %vm647_vm1, %v8563_v40  ;;  %8152 = vmatprep.mubr.msk.bf16.mxu1 %vm647_vm1, %v8564_v41  ;;  %v8626_v39 = vld [vmem:[%s8838_s23 + $0x388] sm:$0xff]   ;;  %v8627_v40 = vld [vmem:[%s8838_s23 + $0x190] sm:$0xff]  }
  0x5c   : > { %v8628_v41 = vld [vmem:[%s8838_s23 + $0x390] sm:$0xff]  }
  0x62   : > { %8019 = vmatmul.mubr.msk.bf16.gmra.mrb[36].mxu0 %vm647_vm1, %v8565_v42  ;;  %8153 = vmatmul.mubr.msk.bf16.gmra.mrb[36].mxu1 %vm647_vm1, %v8566_v43  ;;  %v8629_v42 = vld [vmem:[%s8838_s23 + $0x198] sm:$0xff]  }
  0x63   : > { %8022 = vmatprep.mubr.msk.bf16.mxu0 %vm647_vm1, %v8567_v44  ;;  %8156 = vmatprep.mubr.msk.bf16.mxu1 %vm647_vm1, %v8568_v45  ;;  %v8630_v43 = vld [vmem:[%s8838_s23 + $0x398] sm:$0xff]   ;;  %v8631_v44 = vld [vmem:[%s8838_s23 + $0x1a0] sm:$0xff]  }
  0x64   : > { %v8632_v45 = vld [vmem:[%s8838_s23 + $0x3a0] sm:$0xff]  }
  0x6a   : > { %8023 = vmatmul.mubr.msk.bf16.gmra.mrb[40].mxu0 %vm647_vm1, %v8569_v46  ;;  %8157 = vmatmul.mubr.msk.bf16.gmra.mrb[40].mxu1 %vm647_vm1, %v8570_v47  ;;  %v8633_v46 = vld [vmem:[%s8838_s23 + $0x1a8] sm:$0xff]  }
  0x6b   : > { %8026 = vmatprep.mubr.msk.bf16.mxu0 %vm647_vm1, %v8571_v48  ;;  %8160 = vmatprep.mubr.msk.bf16.mxu1 %vm647_vm1, %v8572_v49  ;;  %v8634_v47 = vld [vmem:[%s8838_s23 + $0x3a8] sm:$0xff]   ;;  %v8635_v48 = vld [vmem:[%s8838_s23 + $0x1b0] sm:$0xff]  }
  0x6c   : > { %v8636_v49 = vld [vmem:[%s8838_s23 + $0x3b0] sm:$0xff]  }
  0x72   : > { %8027 = vmatmul.mubr.msk.bf16.gmra.mrb[44].mxu0 %vm647_vm1, %v8573_v50  ;;  %8161 = vmatmul.mubr.msk.bf16.gmra.mrb[44].mxu1 %vm647_vm1, %v8574_v51  ;;  %v9064_v50 = vld [vmem:[%s10545_s2] ss:$0 sm:$0xff]  ;;  %v8637_v51 = vld [vmem:[%s8838_s23 + $0x1b8] sm:$0xff]  }
  0x73   : > { %8030 = vmatprep.mubr.msk.bf16.mxu0 %vm647_vm1, %v8575_v52  ;;  %8164 = vmatprep.mubr.msk.bf16.mxu1 %vm647_vm1, %v8576_v53  ;;  %v8638_v52 = vld [vmem:[%s8838_s23 + $0x3b8] sm:$0xff]  }
  0x7a   : > { %8031 = vmatmul.mubr.msk.bf16.gmra.mrb[48].mxu0 %vm647_vm1, %v8577_v54  ;;  %8165 = vmatmul.mubr.msk.bf16.gmra.mrb[48].mxu1 %vm647_vm1, %v8578_v55 }
  0x7b   : > { %8034 = vmatprep.mubr.msk.bf16.mxu0 %vm647_vm1, %v8579_v56  ;;  %8168 = vmatprep.mubr.msk.bf16.mxu1 %vm647_vm1, %v8580_v57 }
  0x82   : > { %8035 = vmatmul.mubr.msk.bf16.gmra.mrb[52].mxu0 %vm647_vm1, %v8581_v58  ;;  %8169 = vmatmul.mubr.msk.bf16.gmra.mrb[52].mxu1 %vm647_vm1, %v8582_v59 }
  0x83   : > { %8038 = vmatprep.mubr.msk.bf16.mxu0 %vm647_vm1, %v8583_v60  ;;  %8172 = vmatprep.mubr.msk.bf16.mxu1 %vm647_vm1, %v8584_v61 }
  0x8a   : > { %8039 = vmatmul.mubr.msk.bf16.gmra.mrb[56].mxu0 %vm647_vm1, %v8585_v62  ;;  %8173 = vmatmul.mubr.msk.bf16.gmra.mrb[56].mxu1 %vm647_vm1, %v8586_v63  ;;  %v8639_v63 = vld [vmem:[%s8838_s23 + $0x1c0] sm:$0xff]  }
  0x8b   : > { %8042 = vmatprep.mubr.msk.bf16.mxu0 %vm647_vm1, %v8587_v0  ;;  %8176 = vmatprep.mubr.msk.bf16.mxu1 %vm647_vm1, %v8588_v1  ;;  %v8640_v0 = vld [vmem:[%s8838_s23 + $0x3c0] sm:$0xff]  }
  0x92   : > { %8043 = vmatmul.mubr.msk.bf16.gmra.mrb[60].mxu0 %vm647_vm1, %v8589_v2  ;;  %8177 = vmatmul.mubr.msk.bf16.gmra.mrb[60].mxu1 %vm647_vm1, %v8590_v3 }
  0x93   : > { %8046 = vmatprep.mubr.msk.bf16.mxu0 %vm647_vm1, %v8591_v4  ;;  %8180 = vmatprep.mubr.msk.bf16.mxu1 %vm647_vm1, %v8592_v5 }
  0x9a   : > { %8047 = vmatmul.mubr.msk.bf16.gmra.mrb[64].mxu0 %vm647_vm1, %v8593_v6  ;;  %8181 = vmatmul.mubr.msk.bf16.gmra.mrb[64].mxu1 %vm647_vm1, %v8594_v7 }
  0x9b   : > { %8050 = vmatprep.mubr.msk.bf16.mxu0 %vm647_vm1, %v8595_v8  ;;  %8184 = vmatprep.mubr.msk.bf16.mxu1 %vm647_vm1, %v8596_v9 }
  0xa2   : > { %8051 = vmatmul.mubr.msk.bf16.gmra.mrb[68].mxu0 %vm647_vm1, %v8597_v10  ;;  %8185 = vmatmul.mubr.msk.bf16.gmra.mrb[68].mxu1 %vm647_vm1, %v8598_v11 }
  0xa3   : > { %8054 = vmatprep.mubr.msk.bf16.mxu0 %vm647_vm1, %v8599_v12  ;;  %8188 = vmatprep.mubr.msk.bf16.mxu1 %vm647_vm1, %v8600_v13 }
  0xaa   : > { %8055 = vmatmul.mubr.msk.bf16.gmra.mrb[72].mxu0 %vm647_vm1, %v8601_v14  ;;  %8189 = vmatmul.mubr.msk.bf16.gmra.mrb[72].mxu1 %vm647_vm1, %v8602_v15 }
  0xab   : > { %8058 = vmatprep.mubr.msk.bf16.mxu0 %vm647_vm1, %v8603_v16  ;;  %8192 = vmatprep.mubr.msk.bf16.mxu1 %vm647_vm1, %v8604_v17 }
  0xb2   : > { %8059 = vmatmul.mubr.msk.bf16.gmra.mrb[76].mxu0 %vm647_vm1, %v8605_v18  ;;  %8193 = vmatmul.mubr.msk.bf16.gmra.mrb[76].mxu1 %vm647_vm1, %v8606_v19  ;;  %v8641_v18 = vld [vmem:[%s8838_s23 + $0x1c8] sm:$0xff]  }
  0xb3   : > { %8062 = vmatprep.mubr.msk.bf16.mxu0 %vm647_vm1, %v8607_v20  ;;  %8196 = vmatprep.mubr.msk.bf16.mxu1 %vm647_vm1, %v8608_v21  ;;  %v8642_v19 = vld [vmem:[%s8838_s23 + $0x3c8] sm:$0xff]  }
  0xba   : > { %8063 = vmatmul.mubr.msk.bf16.gmra.mrb[80].mxu0 %vm647_vm1, %v8609_v22  ;;  %8197 = vmatmul.mubr.msk.bf16.gmra.mrb[80].mxu1 %vm647_vm1, %v8610_v23 }
  0xbb   : > { %8066 = vmatprep.mubr.msk.bf16.mxu0 %vm647_vm1, %v8611_v24  ;;  %8200 = vmatprep.mubr.msk.bf16.mxu1 %vm647_vm1, %v8612_v25 }
  0xc2   : > { %8067 = vmatmul.mubr.msk.bf16.gmra.mrb[84].mxu0 %vm647_vm1, %v8613_v26  ;;  %8201 = vmatmul.mubr.msk.bf16.gmra.mrb[84].mxu1 %vm647_vm1, %v8614_v27 }
  0xc3   : > { %8070 = vmatprep.mubr.msk.bf16.mxu0 %vm647_vm1, %v8615_v28  ;;  %8204 = vmatprep.mubr.msk.bf16.mxu1 %vm647_vm1, %v8616_v29 }
  0xca   : > { %8071 = vmatmul.mubr.msk.bf16.gmra.mrb[88].mxu0 %vm647_vm1, %v8617_v30  ;;  %8205 = vmatmul.mubr.msk.bf16.gmra.mrb[88].mxu1 %vm647_vm1, %v8618_v31  ;;  %v8643_v31 = vld [vmem:[%s8838_s23 + $0x1d0] sm:$0xff]  }
  0xcb   : > { %8074 = vmatprep.mubr.msk.bf16.mxu0 %vm647_vm1, %v8619_v32  ;;  %8208 = vmatprep.mubr.msk.bf16.mxu1 %vm647_vm1, %v8620_v33  ;;  %v8644_v32 = vld [vmem:[%s8838_s23 + $0x3d0] sm:$0xff]  }
  0xd2   : > { %8075 = vmatmul.mubr.msk.bf16.gmra.mrb[92].mxu0 %vm647_vm1, %v8621_v34  ;;  %8209 = vmatmul.mubr.msk.bf16.gmra.mrb[92].mxu1 %vm647_vm1, %v8622_v35 }
  0xd3   : > { %8078 = vmatprep.mubr.msk.bf16.mxu0 %vm647_vm1, %v8623_v36  ;;  %8212 = vmatprep.mubr.msk.bf16.mxu1 %vm647_vm1, %v8624_v37 }
  0xda   : > { %8079 = vmatmul.mubr.msk.bf16.gmra.mrb[96].mxu0 %vm647_vm1, %v8625_v38  ;;  %8213 = vmatmul.mubr.msk.bf16.gmra.mrb[96].mxu1 %vm647_vm1, %v8626_v39 }
  0xdb   : > { %8082 = vmatprep.mubr.msk.bf16.mxu0 %vm647_vm1, %v8627_v40  ;;  %8216 = vmatprep.mubr.msk.bf16.mxu1 %vm647_vm1, %v8628_v41 }
  0xe2   : > { %8083 = vmatmul.mubr.msk.bf16.gmra.mrb[100].mxu0 %vm647_vm1, %v8629_v42  ;;  %8217 = vmatmul.mubr.msk.bf16.gmra.mrb[100].mxu1 %vm647_vm1, %v8630_v43 }
  0xe3   : > { %8086 = vmatprep.mubr.msk.bf16.mxu0 %vm647_vm1, %v8631_v44  ;;  %8220 = vmatprep.mubr.msk.bf16.mxu1 %vm647_vm1, %v8632_v45 }
  0xea   : > { %8087 = vmatmul.mubr.msk.bf16.gmra.mrb[104].mxu0 %vm647_vm1, %v8633_v46  ;;  %8221 = vmatmul.mubr.msk.bf16.gmra.mrb[104].mxu1 %vm647_vm1, %v8634_v47 }
  0xeb   : > { %8090 = vmatprep.mubr.msk.bf16.mxu0 %vm647_vm1, %v8635_v48  ;;  %8224 = vmatprep.mubr.msk.bf16.mxu1 %vm647_vm1, %v8636_v49 }
  0xed   : > { %v7984_v53 = vpop.f32.mrb[0].mxu0  ;;  %v8118_v54 = vpop.f32.mrb[0].mxu1 }
  0xee   : > { %v887_v55 = vadd.f32 %v7984_v53, %v9064_v50  ;;  %v2201_v56 = vadd.f32 %v8118_v54, %v9064_v50  ;;  %v878_v57 = vpop.f32.mrb[1].mxu0  ;;  %v2192_v58 = vpop.f32.mrb[1].mxu1 }
  0xef   : > { %v879_v59 = vadd.f32 %v9064_v50, %v878_v57  ;;  %v2193_v60 = vadd.f32 %v9064_v50, %v2192_v58  ;;  %v7985_v61 = vpop.f32.mrb[2].mxu0  ;;  %v8119_v62 = vpop.f32.mrb[2].mxu1  ;;  %v8645_v58 = vld [vmem:[%s8838_s23 + $0x1d8] sm:$0xff]  }
  0xf0   : > { %v1391_v1 = vmax.f32 %v887_v55, 0.0  ;;  %v2705_v2 = vmax.f32 %v2201_v56, 0.0  ;;  %v890_v3 = vadd.f32 %v7985_v61, %v9064_v50  ;;  %v2204_v4 = vadd.f32 %v8119_v62, %v9064_v50  ;;  %v881_v5 = vpop.f32.mrb[3].mxu0  ;;  %v2195_v6 = vpop.f32.mrb[3].mxu1 }
  0xf1   : > { %v1389_v7 = vmax.f32 %v879_v59, 0.0  ;;  %v2703_v8 = vmax.f32 %v2193_v60, 0.0  ;;  %v882_v9 = vadd.f32 %v9064_v50, %v881_v5  ;;  %v2196_v10 = vadd.f32 %v9064_v50, %v2195_v6  ;;  %v8646_v59 = vld [vmem:[%s8838_s23 + $0x3d8] sm:$0xff]  }
  0xf2   : > { %v9082_v11 = vmax.f32 %v1391_v1, %v2705_v2  ;;  %v1392_v12 = vmax.f32 %v890_v3, 0.0  ;;  %v2706_v13 = vmax.f32 %v2204_v4, 0.0  ;;  %8091 = vmatmul.mubr.msk.bf16.gmra.mrb[108].mxu0 %vm647_vm1, %v8637_v51  ;;  %8225 = vmatmul.mubr.msk.bf16.gmra.mrb[108].mxu1 %vm647_vm1, %v8638_v52  ;;  %v8648_v1 = vld [vmem:[%s8838_s23 + $0x3e0] sm:$0xff]  }
  0xf3   : > { %v9086_v14 = vmax.f32 %v1389_v7, %v2703_v8  ;;  %v1390_v15 = vmax.f32 %v882_v9, 0.0  ;;  %v2704_v16 = vmax.f32 %v2196_v10, 0.0  ;;  %8094 = vmatprep.mubr.msk.bf16.mxu0 %vm647_vm1, %v8639_v63  ;;  %8228 = vmatprep.mubr.msk.bf16.mxu1 %vm647_vm1, %v8640_v0  ;;  %v8647_v0 = vld [vmem:[%s8838_s23 + $0x1e0] sm:$0xff]  }
  0xf4   : > { %v9090_v17 = vmax.f32 %v1392_v12, %v2706_v13 }
  0xf5   : > { %v9094_v20 = vmax.f32 %v1390_v15, %v2704_v16  ;;  %v7988_v21 = vpop.f32.mrb[4].mxu0  ;;  %v8122_v22 = vpop.f32.mrb[4].mxu1 }
  0xf6   : > { %v903_v23 = vadd.f32 %v7988_v21, %v9064_v50  ;;  %v2217_v24 = vadd.f32 %v8122_v22, %v9064_v50  ;;  %v894_v25 = vpop.f32.mrb[5].mxu0  ;;  %v2208_v26 = vpop.f32.mrb[5].mxu1 }
  0xf7   : > { %v895_v27 = vadd.f32 %v9064_v50, %v894_v25  ;;  %v2209_v28 = vadd.f32 %v9064_v50, %v2208_v26  ;;  %v7989_v29 = vpop.f32.mrb[6].mxu0  ;;  %v8123_v30 = vpop.f32.mrb[6].mxu1 }
  0xf8   : > { %v1395_v33 = vmax.f32 %v903_v23, 0.0  ;;  %v2709_v34 = vmax.f32 %v2217_v24, 0.0  ;;  %v906_v35 = vadd.f32 %v7989_v29, %v9064_v50  ;;  %v2220_v36 = vadd.f32 %v8123_v30, %v9064_v50  ;;  %v897_v37 = vpop.f32.mrb[7].mxu0  ;;  %v2211_v38 = vpop.f32.mrb[7].mxu1  ;;  %v8649_v30 = vld [vmem:[%s8838_s23 + $0x1e8] sm:$0xff]  }
  0xf9   : > { %v1393_v39 = vmax.f32 %v895_v27, 0.0  ;;  %v2707_v40 = vmax.f32 %v2209_v28, 0.0  ;;  %v898_v41 = vadd.f32 %v9064_v50, %v897_v37  ;;  %v2212_v42 = vadd.f32 %v9064_v50, %v2211_v38  ;;  %v8652_v37 = vld [vmem:[%s8838_s23 + $0x3f0] sm:$0xff]  }
  0xfa   : > { %v9106_v43 = vmax.f32 %v1395_v33, %v2709_v34  ;;  %v1396_v44 = vmax.f32 %v906_v35, 0.0  ;;  %v2710_v45 = vmax.f32 %v2220_v36, 0.0  ;;  %8095 = vmatmul.mubr.msk.bf16.gmra.mrb[112].mxu0 %vm647_vm1, %v8641_v18  ;;  %8229 = vmatmul.mubr.msk.bf16.gmra.mrb[112].mxu1 %vm647_vm1, %v8642_v19  ;;  %v8651_v36 = vld [vmem:[%s8838_s23 + $0x1f0] sm:$0xff]  }
  0xfb   : > { %v9110_v46 = vmax.f32 %v1393_v39, %v2707_v40  ;;  %v1394_v47 = vmax.f32 %v898_v41, 0.0  ;;  %v2708_v48 = vmax.f32 %v2212_v42, 0.0  ;;  %8098 = vmatprep.mubr.msk.bf16.mxu0 %vm647_vm1, %v8643_v31  ;;  %8232 = vmatprep.mubr.msk.bf16.mxu1 %vm647_vm1, %v8644_v32  ;;  %v8650_v31 = vld [vmem:[%s8838_s23 + $0x3e8] sm:$0xff]  }
  0xfc   : > { %v9114_v49 = vmax.f32 %v1396_v44, %v2710_v45 }
  0xfd   : > { %v9116_v51 = vmax.f32 %v1394_v47, %v2708_v48  ;;  %v7992_v52 = vpop.f32.mrb[8].mxu0  ;;  %v8126_v53 = vpop.f32.mrb[8].mxu1 }
  0xfe   : > { %v919_v54 = vadd.f32 %v7992_v52, %v9064_v50  ;;  %v2233_v55 = vadd.f32 %v8126_v53, %v9064_v50  ;;  %v910_v56 = vpop.f32.mrb[9].mxu0  ;;  %v2224_v57 = vpop.f32.mrb[9].mxu1 }
  0xff   : > { %v911_v60 = vadd.f32 %v9064_v50, %v910_v56  ;;  %v2225_v61 = vadd.f32 %v9064_v50, %v2224_v57  ;;  %v7993_v62 = vpop.f32.mrb[10].mxu0  ;;  %v8127_v63 = vpop.f32.mrb[10].mxu1 }
 0x100   : > { %v1399_v2 = vmax.f32 %v919_v54, 0.0  ;;  %v2713_v3 = vmax.f32 %v2233_v55, 0.0  ;;  %v922_v4 = vadd.f32 %v7993_v62, %v9064_v50  ;;  %v2236_v5 = vadd.f32 %v8127_v63, %v9064_v50  ;;  %v913_v6 = vpop.f32.mrb[11].mxu0  ;;  %v2227_v7 = vpop.f32.mrb[11].mxu1 }
 0x101   : > { %v1397_v8 = vmax.f32 %v911_v60, 0.0  ;;  %v2711_v9 = vmax.f32 %v2225_v61, 0.0  ;;  %v914_v10 = vadd.f32 %v9064_v50, %v913_v6  ;;  %v2228_v12 = vadd.f32 %v9064_v50, %v2227_v7 }
 0x102   : > { %v9130_v13 = vmax.f32 %v1399_v2, %v2713_v3  ;;  %v1400_v15 = vmax.f32 %v922_v4, 0.0  ;;  %v2714_v16 = vmax.f32 %v2236_v5, 0.0  ;;  %8099 = vmatmul.mubr.msk.bf16.gmra.mrb[116].mxu0 %vm647_vm1, %v8645_v58  ;;  %8233 = vmatmul.mubr.msk.bf16.gmra.mrb[116].mxu1 %vm647_vm1, %v8646_v59  ;;  %v8653_v3 = vld [vmem:[%s8838_s23 + $0x1f8] sm:$0xff]  }
 0x103   : > { %v9134_v18 = vmax.f32 %v1397_v8, %v2711_v9  ;;  %v1398_v19 = vmax.f32 %v914_v10, 0.0  ;;  %v2712_v21 = vmax.f32 %v2228_v12, 0.0  ;;  %8102 = vmatprep.mubr.msk.bf16.mxu0 %vm647_vm1, %v8647_v0  ;;  %8236 = vmatprep.mubr.msk.bf16.mxu1 %vm647_vm1, %v8648_v1  ;;  %v8654_v4 = vld [vmem:[%s8838_s23 + $0x3f8] sm:$0xff]   ;;  %v8655_v9 = vld [vmem:[%s8838_s23 + $0x400] sm:$0xff]  }
 0x104   : > { %v9138_v22 = vmax.f32 %v1400_v15, %v2714_v16  ;;  %v8656_v10 = vld [vmem:[%s8838_s23 + $0x600] sm:$0xff]  }
 0x105   : > { %v9140_v23 = vmax.f32 %v1398_v19, %v2712_v21  ;;  %v7996_v24 = vpop.f32.mrb[12].mxu0  ;;  %v8130_v25 = vpop.f32.mrb[12].mxu1 }
 0x106   : > { %v935_v26 = vadd.f32 %v7996_v24, %v9064_v50  ;;  %v2249_v27 = vadd.f32 %v8130_v25, %v9064_v50  ;;  %v926_v28 = vpop.f32.mrb[13].mxu0  ;;  %v2240_v29 = vpop.f32.mrb[13].mxu1 }
 0x107   : > { %v927_v32 = vadd.f32 %v9064_v50, %v926_v28  ;;  %v2241_v33 = vadd.f32 %v9064_v50, %v2240_v29  ;;  %v7997_v34 = vpop.f32.mrb[14].mxu0  ;;  %v8131_v35 = vpop.f32.mrb[14].mxu1 }
 0x108   : > { %v1403_v38 = vmax.f32 %v935_v26, 0.0  ;;  %v2717_v39 = vmax.f32 %v2249_v27, 0.0  ;;  %v938_v40 = vadd.f32 %v7997_v34, %v9064_v50  ;;  %v2252_v41 = vadd.f32 %v8131_v35, %v9064_v50  ;;  %v929_v42 = vpop.f32.mrb[15].mxu0  ;;  %v2243_v44 = vpop.f32.mrb[15].mxu1 }
 0x109   : > { %v1401_v45 = vmax.f32 %v927_v32, 0.0  ;;  %v2715_v47 = vmax.f32 %v2241_v33, 0.0  ;;  %v930_v48 = vadd.f32 %v9064_v50, %v929_v42  ;;  %v2244_v52 = vadd.f32 %v9064_v50, %v2243_v44  ;;  %v8657_v44 = vld [vmem:[%s8838_s23 + $0x408] sm:$0xff]  }
 0x10a   : > { %v9154_v53 = vmax.f32 %v1403_v38, %v2717_v39  ;;  %v1404_v54 = vmax.f32 %v938_v40, 0.0  ;;  %v2718_v55 = vmax.f32 %v2252_v41, 0.0  ;;  %8103 = vmatmul.mubr.msk.bf16.gmra.mrb[120].mxu0 %vm647_vm1, %v8649_v30  ;;  %8237 = vmatmul.mubr.msk.bf16.gmra.mrb[120].mxu1 %vm647_vm1, %v8650_v31 }
 0x10b   : > { %v9158_v56 = vmax.f32 %v1401_v45, %v2715_v47  ;;  %v1402_v57 = vmax.f32 %v930_v48, 0.0  ;;  %v2716_v58 = vmax.f32 %v2244_v52, 0.0  ;;  %8106 = vmatprep.mubr.msk.bf16.mxu0 %vm647_vm1, %v8651_v36  ;;  %8240 = vmatprep.mubr.msk.bf16.mxu1 %vm647_vm1, %v8652_v37  ;;  %v8658_v45 = vld [vmem:[%s8838_s23 + $0x608] sm:$0xff]  }
 0x10c   : > { %v9162_v59 = vmax.f32 %v1404_v54, %v2718_v55  ;;  %v8659_v55 = vld [vmem:[%s8838_s23 + $0x410] sm:$0xff]  }
 0x10d   : > { %v9164_v60 = vmax.f32 %v1402_v57, %v2716_v58  ;;  %v8000_v61 = vpop.f32.mrb[16].mxu0  ;;  %v8134_v62 = vpop.f32.mrb[16].mxu1  ;;  %v8660_v57 = vld [vmem:[%s8838_s23 + $0x610] sm:$0xff]  }
 0x10e   : > { %v951_v63 = vadd.f32 %v8000_v61, %v9064_v50  ;;  %v2265_v0 = vadd.f32 %v8134_v62, %v9064_v50  ;;  %v942_v1 = vpop.f32.mrb[17].mxu0  ;;  %v2256_v2 = vpop.f32.mrb[17].mxu1 }
 0x10f   : > { %v943_v5 = vadd.f32 %v9064_v50, %v942_v1  ;;  %v2257_v6 = vadd.f32 %v9064_v50, %v2256_v2  ;;  %v8001_v7 = vpop.f32.mrb[18].mxu0  ;;  %v8135_v8 = vpop.f32.mrb[18].mxu1 }
 0x110   : > { %v1407_v12 = vmax.f32 %v951_v63, 0.0  ;;  %v2721_v15 = vmax.f32 %v2265_v0, 0.0  ;;  %v954_v16 = vadd.f32 %v8001_v7, %v9064_v50  ;;  %v2268_v19 = vadd.f32 %v8135_v8, %v9064_v50  ;;  %v945_v21 = vpop.f32.mrb[19].mxu0  ;;  %v2259_v24 = vpop.f32.mrb[19].mxu1 }
 0x111   : > { %v1405_v25 = vmax.f32 %v943_v5, 0.0  ;;  %v2719_v26 = vmax.f32 %v2257_v6, 0.0  ;;  %v946_v27 = vadd.f32 %v9064_v50, %v945_v21  ;;  %v2260_v28 = vadd.f32 %v9064_v50, %v2259_v24 }
 0x112   : > { %v9178_v29 = vmax.f32 %v1407_v12, %v2721_v15  ;;  %v1408_v30 = vmax.f32 %v954_v16, 0.0  ;;  %v2722_v31 = vmax.f32 %v2268_v19, 0.0  ;;  %8107 = vmatmul.mubr.msk.bf16.gmra.mrb[124].mxu0 %vm647_vm1, %v8653_v3  ;;  %8241 = vmatmul.mubr.msk.bf16.gmra.mrb[124].mxu1 %vm647_vm1, %v8654_v4 }
 0x113   : > { %v9182_v32 = vmax.f32 %v1405_v25, %v2719_v26  ;;  %v1406_v33 = vmax.f32 %v946_v27, 0.0  ;;  %v2720_v34 = vmax.f32 %v2260_v28, 0.0  ;;  %8250 = vmatprep.mubr.msk.bf16.mxu0 %vm647_vm1, %v8655_v9  ;;  %8384 = vmatprep.mubr.msk.bf16.mxu1 %vm647_vm1, %v8656_v10  ;;  %v8661_v28 = vld [vmem:[%s8838_s23 + $0x418] sm:$0xff]  }
 0x114   : > { %v9186_v35 = vmax.f32 %v1408_v30, %v2722_v31  ;;  %v8662_v30 = vld [vmem:[%s8838_s23 + $0x618] sm:$0xff]  }
 0x115   : > { %v9188_v36 = vmax.f32 %v1406_v33, %v2720_v34  ;;  %v8004_v37 = vpop.f32.mrb[20].mxu0  ;;  %v8138_v38 = vpop.f32.mrb[20].mxu1 }
 0x116   : > { %v967_v39 = vadd.f32 %v8004_v37, %v9064_v50  ;;  %v2281_v40 = vadd.f32 %v8138_v38, %v9064_v50  ;;  %v958_v41 = vpop.f32.mrb[21].mxu0  ;;  %v2272_v42 = vpop.f32.mrb[21].mxu1  ;;  %v8663_v38 = vld [vmem:[%s8838_s23 + $0x420] sm:$0xff]  }
 0x117   : > { %v959_v47 = vadd.f32 %v9064_v50, %v958_v41  ;;  %v2273_v48 = vadd.f32 %v9064_v50, %v2272_v42  ;;  %v8005_v52 = vpop.f32.mrb[22].mxu0  ;;  %v8139_v54 = vpop.f32.mrb[22].mxu1 }
 0x118   : > { %v1411_v58 = vmax.f32 %v967_v39, 0.0  ;;  %v2725_v61 = vmax.f32 %v2281_v40, 0.0  ;;  %v970_v62 = vadd.f32 %v8005_v52, %v9064_v50  ;;  %v2284_v63 = vadd.f32 %v8139_v54, %v9064_v50  ;;  %v961_v0 = vpop.f32.mrb[23].mxu0  ;;  %v2275_v1 = vpop.f32.mrb[23].mxu1  ;;  %v8664_v39 = vld [vmem:[%s8838_s23 + $0x620] sm:$0xff]  }
 0x119   : > { %v1409_v2 = vmax.f32 %v959_v47, 0.0  ;;  %v2723_v3 = vmax.f32 %v2273_v48, 0.0  ;;  %v962_v4 = vadd.f32 %v9064_v50, %v961_v0  ;;  %v2276_v5 = vadd.f32 %v9064_v50, %v2275_v1 }
 0x11a   : > { %v9202_v6 = vmax.f32 %v1411_v58, %v2725_v61  ;;  %v1412_v7 = vmax.f32 %v970_v62, 0.0  ;;  %v2726_v8 = vmax.f32 %v2284_v63, 0.0  ;;  %8251 = vmatmul.mubr.msk.bf16.vlgmr.msra.gmra.mrb[128].mxu0 %vm647_vm1, %v8657_v44  ;;  %8385 = vmatmul.mubr.msk.bf16.vlgmr.msra.gmra.mrb[128].mxu1 %vm647_vm1, %v8658_v45 }
 0x11b   : > { %v9206_v9 = vmax.f32 %v1409_v2, %v2723_v3  ;;  %v1410_v10 = vmax.f32 %v962_v4, 0.0  ;;  %v2724_v12 = vmax.f32 %v2276_v5, 0.0  ;;  %8254 = vmatprep.mubr.msk.bf16.mxu0 %vm647_vm1, %v8659_v55  ;;  %8388 = vmatprep.mubr.msk.bf16.mxu1 %vm647_vm1, %v8660_v57 }
 0x11c   : > { %v9210_v15 = vmax.f32 %v1412_v7, %v2726_v8 }
 0x11d   : > { %v9212_v16 = vmax.f32 %v1410_v10, %v2724_v12  ;;  %v8008_v19 = vpop.f32.mrb[24].mxu0  ;;  %v8142_v21 = vpop.f32.mrb[24].mxu1  ;;  %v8665_v12 = vld [vmem:[%s8838_s23 + $0x428] sm:$0xff]  }
 0x11e   : > { %v983_v24 = vadd.f32 %v8008_v19, %v9064_v50  ;;  %v2297_v25 = vadd.f32 %v8142_v21, %v9064_v50  ;;  %v974_v26 = vpop.f32.mrb[25].mxu0  ;;  %v2288_v27 = vpop.f32.mrb[25].mxu1  ;;  %v8666_v19 = vld [vmem:[%s8838_s23 + $0x628] sm:$0xff]  }
 0x11f   : > { %v975_v31 = vadd.f32 %v9064_v50, %v974_v26  ;;  %v2289_v33 = vadd.f32 %v9064_v50, %v2288_v27  ;;  %v8009_v34 = vpop.f32.mrb[26].mxu0  ;;  %v8143_v37 = vpop.f32.mrb[26].mxu1  ;;  %v8667_v27 = vld [vmem:[%s8838_s23 + $0x430] sm:$0xff]  }
 0x120   : > { %v1415_v40 = vmax.f32 %v983_v24, 0.0  ;;  %v2729_v41 = vmax.f32 %v2297_v25, 0.0  ;;  %v986_v42 = vadd.f32 %v8009_v34, %v9064_v50  ;;  %v2300_v44 = vadd.f32 %v8143_v37, %v9064_v50  ;;  %v977_v45 = vpop.f32.mrb[27].mxu0  ;;  %v2291_v47 = vpop.f32.mrb[27].mxu1 }
 0x121   : > { %v1413_v48 = vmax.f32 %v975_v31, 0.0  ;;  %v2727_v52 = vmax.f32 %v2289_v33, 0.0  ;;  %v978_v54 = vadd.f32 %v9064_v50, %v977_v45  ;;  %v2292_v55 = vadd.f32 %v9064_v50, %v2291_v47 }
 0x122   : > { %v9226_v57 = vmax.f32 %v1415_v40, %v2729_v41  ;;  %v1416_v58 = vmax.f32 %v986_v42, 0.0  ;;  %v2730_v61 = vmax.f32 %v2300_v44, 0.0  ;;  %8255 = vmatmul.mubr.msk.bf16.gmra.mrb[132].mxu0 %vm647_vm1, %v8661_v28  ;;  %8389 = vmatmul.mubr.msk.bf16.gmra.mrb[132].mxu1 %vm647_vm1, %v8662_v30  ;;  %v8668_v28 = vld [vmem:[%s8838_s23 + $0x630] sm:$0xff]  }
 0x123   : > { %v9230_v62 = vmax.f32 %v1413_v48, %v2727_v52  ;;  %v1414_v63 = vmax.f32 %v978_v54, 0.0  ;;  %v2728_v0 = vmax.f32 %v2292_v55, 0.0  ;;  %8258 = vmatprep.mubr.msk.bf16.mxu0 %vm647_vm1, %v8663_v38  ;;  %8392 = vmatprep.mubr.msk.bf16.mxu1 %vm647_vm1, %v8664_v39 }
 0x124   : > { %v9234_v1 = vmax.f32 %v1416_v58, %v2730_v61 }
 0x125   : > { %v9236_v2 = vmax.f32 %v1414_v63, %v2728_v0  ;;  %v8012_v3 = vpop.f32.mrb[28].mxu0  ;;  %v8146_v4 = vpop.f32.mrb[28].mxu1 }
 0x126   : > { %v999_v5 = vadd.f32 %v8012_v3, %v9064_v50  ;;  %v2313_v7 = vadd.f32 %v8146_v4, %v9064_v50  ;;  %v990_v8 = vpop.f32.mrb[29].mxu0  ;;  %v2304_v10 = vpop.f32.mrb[29].mxu1 }
 0x127   : > { %v991_v21 = vadd.f32 %v9064_v50, %v990_v8  ;;  %v2305_v24 = vadd.f32 %v9064_v50, %v2304_v10  ;;  %v8013_v25 = vpop.f32.mrb[30].mxu0  ;;  %v8147_v26 = vpop.f32.mrb[30].mxu1  ;;  %v8670_v8 = vld [vmem:[%s8838_s23 + $0x638] sm:$0xff]  }
 0x128   : > { %v1419_v30 = vmax.f32 %v999_v5, 0.0  ;;  %v2733_v31 = vmax.f32 %v2313_v7, 0.0  ;;  %v1002_v33 = vadd.f32 %v8013_v25, %v9064_v50  ;;  %v2316_v34 = vadd.f32 %v8147_v26, %v9064_v50  ;;  %v993_v37 = vpop.f32.mrb[31].mxu0  ;;  %v2307_v38 = vpop.f32.mrb[31].mxu1  ;;  %v8669_v7 = vld [vmem:[%s8838_s23 + $0x438] sm:$0xff]   ;;  %v8672_v25 = vld [vmem:[%s8838_s23 + $0x640] sm:$0xff]  }
 0x129   : > { %v1417_v39 = vmax.f32 %v991_v21, 0.0  ;;  %v2731_v40 = vmax.f32 %v2305_v24, 0.0  ;;  %v994_v41 = vadd.f32 %v9064_v50, %v993_v37  ;;  %v2308_v42 = vadd.f32 %v9064_v50, %v2307_v38  ;;  %v8671_v24 = vld [vmem:[%s8838_s23 + $0x440] sm:$0xff]  }
 0x12a   : > { %v9250_v44 = vmax.f32 %v1419_v30, %v2733_v31  ;;  %v1420_v45 = vmax.f32 %v1002_v33, 0.0  ;;  %v2734_v47 = vmax.f32 %v2316_v34, 0.0  ;;  %8259 = vmatmul.mubr.msk.bf16.gmra.mrb[136].mxu0 %vm647_vm1, %v8665_v12  ;;  %8393 = vmatmul.mubr.msk.bf16.gmra.mrb[136].mxu1 %vm647_vm1, %v8666_v19 }
 0x12b   : > { %v9254_v48 = vmax.f32 %v1417_v39, %v2731_v40  ;;  %v1418_v52 = vmax.f32 %v994_v41, 0.0  ;;  %v2732_v54 = vmax.f32 %v2308_v42, 0.0  ;;  %8262 = vmatprep.mubr.msk.bf16.mxu0 %vm647_vm1, %v8667_v27  ;;  %8396 = vmatprep.mubr.msk.bf16.mxu1 %vm647_vm1, %v8668_v28 }
 0x12c   : > { %v9258_v55 = vmax.f32 %v1420_v45, %v2734_v47 }
 0x12d   : > { %v9260_v58 = vmax.f32 %v1418_v52, %v2732_v54  ;;  %v8016_v61 = vpop.f32.mrb[32].mxu0  ;;  %v8150_v63 = vpop.f32.mrb[32].mxu1 }
 0x12e   : > { %v1015_v0 = vadd.f32 %v8016_v61, %v9064_v50  ;;  %v2329_v3 = vadd.f32 %v8150_v63, %v9064_v50  ;;  %v1006_v4 = vpop.f32.mrb[33].mxu0  ;;  %v2320_v5 = vpop.f32.mrb[33].mxu1 }
 0x12f   : > { %v1007_v10 = vadd.f32 %v9064_v50, %v1006_v4  ;;  %v2321_v12 = vadd.f32 %v9064_v50, %v2320_v5  ;;  %v8017_v19 = vpop.f32.mrb[34].mxu0  ;;  %v8151_v21 = vpop.f32.mrb[34].mxu1 }
 0x130   : > { %v1423_v26 = vmax.f32 %v1015_v0, 0.0  ;;  %v2737_v27 = vmax.f32 %v2329_v3, 0.0  ;;  %v1018_v28 = vadd.f32 %v8017_v19, %v9064_v50  ;;  %v2332_v30 = vadd.f32 %v8151_v21, %v9064_v50  ;;  %v1009_v31 = vpop.f32.mrb[35].mxu0  ;;  %v2323_v33 = vpop.f32.mrb[35].mxu1 }
 0x131   : > { %v1421_v34 = vmax.f32 %v1007_v10, 0.0  ;;  %v2735_v37 = vmax.f32 %v2321_v12, 0.0  ;;  %v1010_v38 = vadd.f32 %v9064_v50, %v1009_v31  ;;  %v2324_v39 = vadd.f32 %v9064_v50, %v2323_v33  ;;  %v8674_v10 = vld [vmem:[%s8838_s23 + $0x648] sm:$0xff]  }
 0x132   : > { %v9274_v40 = vmax.f32 %v1423_v26, %v2737_v27  ;;  %v1424_v41 = vmax.f32 %v1018_v28, 0.0  ;;  %v2738_v42 = vmax.f32 %v2332_v30, 0.0  ;;  %8263 = vmatmul.mubr.msk.bf16.gmra.mrb[140].mxu0 %vm647_vm1, %v8669_v7  ;;  %8397 = vmatmul.mubr.msk.bf16.gmra.mrb[140].mxu1 %vm647_vm1, %v8670_v8  ;;  %v8673_v8 = vld [vmem:[%s8838_s23 + $0x448] sm:$0xff]   ;;  %v8676_v26 = vld [vmem:[%s8838_s23 + $0x650] sm:$0xff]  }
 0x133   : > { %v9278_v45 = vmax.f32 %v1421_v34, %v2735_v37  ;;  %v1422_v47 = vmax.f32 %v1010_v38, 0.0  ;;  %v2736_v52 = vmax.f32 %v2324_v39, 0.0  ;;  %8266 = vmatprep.mubr.msk.bf16.mxu0 %vm647_vm1, %v8671_v24  ;;  %8400 = vmatprep.mubr.msk.bf16.mxu1 %vm647_vm1, %v8672_v25  ;;  %v8675_v25 = vld [vmem:[%s8838_s23 + $0x450] sm:$0xff]  }
 0x134   : > { %v9282_v54 = vmax.f32 %v1424_v41, %v2738_v42 }
 0x135   : > { %v9284_v61 = vmax.f32 %v1422_v47, %v2736_v52  ;;  %v8020_v63 = vpop.f32.mrb[36].mxu0  ;;  %v8154_v0 = vpop.f32.mrb[36].mxu1 }
 0x136   : > { %v1031_v3 = vadd.f32 %v8020_v63, %v9064_v50  ;;  %v2345_v4 = vadd.f32 %v8154_v0, %v9064_v50  ;;  %v1022_v5 = vpop.f32.mrb[37].mxu0  ;;  %v2336_v7 = vpop.f32.mrb[37].mxu1 }
 0x137   : > { %v1023_v12 = vadd.f32 %v9064_v50, %v1022_v5  ;;  %v2337_v19 = vadd.f32 %v9064_v50, %v2336_v7  ;;  %v8021_v21 = vpop.f32.mrb[38].mxu0  ;;  %v8155_v24 = vpop.f32.mrb[38].mxu1 }
 0x138   : > { %v1427_v27 = vmax.f32 %v1031_v3, 0.0  ;;  %v2741_v28 = vmax.f32 %v2345_v4, 0.0  ;;  %v1034_v30 = vadd.f32 %v8021_v21, %v9064_v50  ;;  %v2348_v31 = vadd.f32 %v8155_v24, %v9064_v50  ;;  %v1025_v33 = vpop.f32.mrb[39].mxu0  ;;  %v2339_v34 = vpop.f32.mrb[39].mxu1  ;;  %v8677_v24 = vld [vmem:[%s8838_s23 + $0x458] sm:$0xff]  }
 0x139   : > { %v1425_v37 = vmax.f32 %v1023_v12, 0.0  ;;  %v2739_v38 = vmax.f32 %v2337_v19, 0.0  ;;  %v1026_v39 = vadd.f32 %v9064_v50, %v1025_v33  ;;  %v2340_v41 = vadd.f32 %v9064_v50, %v2339_v34  ;;  %v8680_v33 = vld [vmem:[%s8838_s23 + $0x660] sm:$0xff]  }
 0x13a   : > { %v9298_v42 = vmax.f32 %v1427_v27, %v2741_v28  ;;  %v1428_v47 = vmax.f32 %v1034_v30, 0.0  ;;  %v2742_v52 = vmax.f32 %v2348_v31, 0.0  ;;  %8267 = vmatmul.mubr.msk.bf16.gmra.mrb[144].mxu0 %vm647_vm1, %v8673_v8  ;;  %8401 = vmatmul.mubr.msk.bf16.gmra.mrb[144].mxu1 %vm647_vm1, %v8674_v10  ;;  %v8678_v27 = vld [vmem:[%s8838_s23 + $0x658] sm:$0xff]   ;;  %v8679_v31 = vld [vmem:[%s8838_s23 + $0x460] sm:$0xff]  }
 0x13b   : > { %v9302_v63 = vmax.f32 %v1425_v37, %v2739_v38  ;;  %v1426_v0 = vmax.f32 %v1026_v39, 0.0  ;;  %v2740_v3 = vmax.f32 %v2340_v41, 0.0  ;;  %8270 = vmatprep.mubr.msk.bf16.mxu0 %vm647_vm1, %v8675_v25  ;;  %8404 = vmatprep.mubr.msk.bf16.mxu1 %vm647_vm1, %v8676_v26 }
 0x13c   : > { %v9306_v4 = vmax.f32 %v1428_v47, %v2742_v52 }
 0x13d   : > { %v9308_v5 = vmax.f32 %v1426_v0, %v2740_v3  ;;  %v8024_v7 = vpop.f32.mrb[40].mxu0  ;;  %v8158_v12 = vpop.f32.mrb[40].mxu1 }
 0x13e   : > { %v1047_v8 = vadd.f32 %v8024_v7, %v9064_v50  ;;  %v2361_v10 = vadd.f32 %v8158_v12, %v9064_v50  ;;  %v1038_v19 = vpop.f32.mrb[41].mxu0  ;;  %v2352_v21 = vpop.f32.mrb[41].mxu1 }
 0x13f   : > { %v1039_v25 = vadd.f32 %v9064_v50, %v1038_v19  ;;  %v2353_v28 = vadd.f32 %v9064_v50, %v2352_v21  ;;  %v8025_v26 = vpop.f32.mrb[42].mxu0  ;;  %v8159_v30 = vpop.f32.mrb[42].mxu1 }
 0x140   : > { %v1431_v34 = vmax.f32 %v1047_v8, 0.0  ;;  %v2745_v37 = vmax.f32 %v2361_v10, 0.0  ;;  %v1050_v38 = vadd.f32 %v8025_v26, %v9064_v50  ;;  %v2364_v39 = vadd.f32 %v8159_v30, %v9064_v50  ;;  %v1041_v41 = vpop.f32.mrb[43].mxu0  ;;  %v2355_v47 = vpop.f32.mrb[43].mxu1 }
 0x141   : > { %v1429_v52 = vmax.f32 %v1039_v25, 0.0  ;;  %v2743_v0 = vmax.f32 %v2353_v28, 0.0  ;;  %v1042_v3 = vadd.f32 %v9064_v50, %v1041_v41  ;;  %v2356_v7 = vadd.f32 %v9064_v50, %v2355_v47  ;;  %v8682_v41 = vld [vmem:[%s8838_s23 + $0x668] sm:$0xff]  }
 0x142   : > { %v9322_v12 = vmax.f32 %v1431_v34, %v2745_v37  ;;  %v1432_v19 = vmax.f32 %v1050_v38, 0.0  ;;  %v2746_v21 = vmax.f32 %v2364_v39, 0.0  ;;  %8271 = vmatmul.mubr.msk.bf16.gmra.mrb[148].mxu0 %vm647_vm1, %v8677_v24  ;;  %8405 = vmatmul.mubr.msk.bf16.gmra.mrb[148].mxu1 %vm647_vm1, %v8678_v27  ;;  %v8681_v39 = vld [vmem:[%s8838_s23 + $0x468] sm:$0xff]  }
 0x143   : > { %v9326_v8 = vmax.f32 %v1429_v52, %v2743_v0  ;;  %v1430_v10 = vmax.f32 %v1042_v3, 0.0  ;;  %v2744_v26 = vmax.f32 %v2356_v7, 0.0  ;;  %8274 = vmatprep.mubr.msk.bf16.mxu0 %vm647_vm1, %v8679_v31  ;;  %8408 = vmatprep.mubr.msk.bf16.mxu1 %vm647_vm1, %v8680_v33  ;;  %v8683_v0 = vld [vmem:[%s8838_s23 + $0x470] sm:$0xff]  }
 0x144   : > { %10547 = vst [vmem:[#allocation2_spill] sm:$0xff] %v9322_v12  ;;  %v9330_v25 = vmax.f32 %v1432_v19, %v2746_v21  ;;  %v8684_v3 = vld [vmem:[%s8838_s23 + $0x670] sm:$0xff]  }
 0x145   : > { %10548 = vst [vmem:[#allocation3_spill] sm:$0xff] %v9326_v8  ;;  %v9332_v28 = vmax.f32 %v1430_v10, %v2744_v26  ;;  %v8028_v30 = vpop.f32.mrb[44].mxu0  ;;  %v8162_v34 = vpop.f32.mrb[44].mxu1 }
 0x146   : > { %10549 = vst [vmem:[#allocation4_spill] sm:$0xff] %v9330_v25  ;;  %v1063_v24 = vadd.f32 %v8028_v30, %v9064_v50  ;;  %v2377_v27 = vadd.f32 %v8162_v34, %v9064_v50  ;;  %v1054_v37 = vpop.f32.mrb[45].mxu0  ;;  %v2368_v38 = vpop.f32.mrb[45].mxu1 }
 0x147   : > { %10550 = vst [vmem:[#allocation5_spill] sm:$0xff] %v9332_v28  ;;  %v1055_v31 = vadd.f32 %v9064_v50, %v1054_v37  ;;  %v2369_v47 = vadd.f32 %v9064_v50, %v2368_v38  ;;  %v8029_v33 = vpop.f32.mrb[46].mxu0  ;;  %v8163_v52 = vpop.f32.mrb[46].mxu1 }
 0x148   : > { %v1435_v7 = vmax.f32 %v1063_v24, 0.0  ;;  %v2749_v19 = vmax.f32 %v2377_v27, 0.0  ;;  %v1066_v21 = vadd.f32 %v8029_v33, %v9064_v50  ;;  %v2380_v10 = vadd.f32 %v8163_v52, %v9064_v50  ;;  %v1057_v26 = vpop.f32.mrb[47].mxu0  ;;  %v2371_v30 = vpop.f32.mrb[47].mxu1 }
 0x149   : > { %v1433_v34 = vmax.f32 %v1055_v31, 0.0  ;;  %v2747_v28 = vmax.f32 %v2369_v47, 0.0  ;;  %v1058_v25 = vadd.f32 %v9064_v50, %v1057_v26  ;;  %v2372_v37 = vadd.f32 %v9064_v50, %v2371_v30  ;;  %v8688_v30 = vld [vmem:[%s8838_s23 + $0x680] sm:$0xff]  }
 0x14a   : > { %v9346_v8 = vmax.f32 %v1435_v7, %v2749_v19  ;;  %v1436_v38 = vmax.f32 %v1066_v21, 0.0  ;;  %v2750_v12 = vmax.f32 %v2380_v10, 0.0  ;;  %8275 = vmatmul.mubr.msk.bf16.gmra.mrb[152].mxu0 %vm647_vm1, %v8681_v39  ;;  %8409 = vmatmul.mubr.msk.bf16.gmra.mrb[152].mxu1 %vm647_vm1, %v8682_v41  ;;  %v8686_v21 = vld [vmem:[%s8838_s23 + $0x678] sm:$0xff]  }
 0x14b   : > { %v9350_v24 = vmax.f32 %v1433_v34, %v2747_v28  ;;  %v1434_v27 = vmax.f32 %v1058_v25, 0.0  ;;  %v2748_v33 = vmax.f32 %v2372_v37, 0.0  ;;  %8278 = vmatprep.mubr.msk.bf16.mxu0 %vm647_vm1, %v8683_v0  ;;  %8412 = vmatprep.mubr.msk.bf16.mxu1 %vm647_vm1, %v8684_v3  ;;  %v8685_v25 = vld [vmem:[%s8838_s23 + $0x478] sm:$0xff]  }
 0x14c   : > { %10551 = vst [vmem:[#allocation6_spill] sm:$0xff] %v9346_v8  ;;  %v9354_v31 = vmax.f32 %v1436_v38, %v2750_v12  ;;  %v8687_v12 = vld [vmem:[%s8838_s23 + $0x480] sm:$0xff]  }
 0x14d   : > { %10552 = vst [vmem:[#allocation7_spill] sm:$0xff] %v9350_v24  ;;  %v9356_v47 = vmax.f32 %v1434_v27, %v2748_v33  ;;  %v8032_v52 = vpop.f32.mrb[48].mxu0  ;;  %v8166_v7 = vpop.f32.mrb[48].mxu1 }
 0x14e   : > { %10553 = vst [vmem:[#allocation8_spill] sm:$0xff] %v9354_v31  ;;  %v1079_v39 = vadd.f32 %v8032_v52, %v9064_v50  ;;  %v2393_v41 = vadd.f32 %v8166_v7, %v9064_v50  ;;  %v1070_v28 = vpop.f32.mrb[49].mxu0  ;;  %v2384_v19 = vpop.f32.mrb[49].mxu1 }
 0x14f   : > { %10554 = vst [vmem:[#allocation9_spill] sm:$0xff] %v9356_v47  ;;  %v1071_v0 = vadd.f32 %v9064_v50, %v1070_v28  ;;  %v2385_v10 = vadd.f32 %v9064_v50, %v2384_v19  ;;  %v8033_v3 = vpop.f32.mrb[50].mxu0  ;;  %v8167_v26 = vpop.f32.mrb[50].mxu1 }
 0x150   : > { %v1439_v34 = vmax.f32 %v1079_v39, 0.0  ;;  %v2753_v37 = vmax.f32 %v2393_v41, 0.0  ;;  %v1082_v38 = vadd.f32 %v8033_v3, %v9064_v50  ;;  %v2396_v27 = vadd.f32 %v8167_v26, %v9064_v50  ;;  %v1073_v33 = vpop.f32.mrb[51].mxu0  ;;  %v2387_v52 = vpop.f32.mrb[51].mxu1 }
 0x151   : > { %v1437_v7 = vmax.f32 %v1071_v0, 0.0  ;;  %v2751_v47 = vmax.f32 %v2385_v10, 0.0  ;;  %v1074_v31 = vadd.f32 %v9064_v50, %v1073_v33  ;;  %v2388_v28 = vadd.f32 %v9064_v50, %v2387_v52  ;;  %v8691_v33 = vld [vmem:[%s8838_s23 + $0x490] sm:$0xff]  }
 0x152   : > { %v9370_v24 = vmax.f32 %v1439_v34, %v2753_v37  ;;  %v1440_v19 = vmax.f32 %v1082_v38, 0.0  ;;  %v2754_v8 = vmax.f32 %v2396_v27, 0.0  ;;  %8279 = vmatmul.mubr.msk.bf16.gmra.mrb[156].mxu0 %vm647_vm1, %v8685_v25  ;;  %8413 = vmatmul.mubr.msk.bf16.gmra.mrb[156].mxu1 %vm647_vm1, %v8686_v21  ;;  %v9385_v21 = vld [vmem:[%s10545_s2] ss:$0 sm:$0xff]  ;;  %v8690_v34 = vld [vmem:[%s8838_s23 + $0x688] sm:$0xff]   ;;  %v8692_v52 = vld [vmem:[%s8838_s23 + $0x690] sm:$0xff]  }
 0x153   : > { %v9374_v39 = vmax.f32 %v1437_v7, %v2751_v47  ;;  %v1438_v41 = vmax.f32 %v1074_v31, 0.0  ;;  %v2752_v3 = vmax.f32 %v2388_v28, 0.0  ;;  %8282 = vmatprep.mubr.msk.bf16.mxu0 %vm647_vm1, %v8687_v12  ;;  %8416 = vmatprep.mubr.msk.bf16.mxu1 %vm647_vm1, %v8688_v30  ;;  %v8689_v30 = vld [vmem:[%s8838_s23 + $0x488] sm:$0xff]  }
 0x154   : > { %10555 = vst [vmem:[#allocation10_spill] sm:$0xff] %v9370_v24  ;;  %v9378_v50 = vmax.f32 %v1440_v19, %v2754_v8 }
 0x155   : > { %10556 = vst [vmem:[#allocation11_spill] sm:$0xff] %v9374_v39  ;;  %v9380_v0 = vmax.f32 %v1438_v41, %v2752_v3  ;;  %v8036_v10 = vpop.f32.mrb[52].mxu0  ;;  %v8170_v25 = vpop.f32.mrb[52].mxu1 }
 0x156   : > { %10557 = vst [vmem:[#allocation12_spill] sm:$0xff] %v9378_v50  ;;  %v1095_v31 = vadd.f32 %v9385_v21, %v8036_v10  ;;  %v2409_v47 = vadd.f32 %v9385_v21, %v8170_v25  ;;  %v1086_v26 = vpop.f32.mrb[53].mxu0  ;;  %v2400_v12 = vpop.f32.mrb[53].mxu1 }
 0x157   : > { %10558 = vst [vmem:[#allocation13_spill] sm:$0xff] %v9380_v0  ;;  %v1087_v8 = vadd.f32 %v9385_v21, %v1086_v26  ;;  %v2401_v37 = vadd.f32 %v9385_v21, %v2400_v12  ;;  %v8037_v38 = vpop.f32.mrb[54].mxu0  ;;  %v8171_v27 = vpop.f32.mrb[54].mxu1 }
 0x158   : > { %v1443_v7 = vmax.f32 %v1095_v31, 0.0  ;;  %v2757_v28 = vmax.f32 %v2409_v47, 0.0  ;;  %v1098_v19 = vadd.f32 %v9385_v21, %v8037_v38  ;;  %v2412_v41 = vadd.f32 %v9385_v21, %v8171_v27  ;;  %v1089_v3 = vpop.f32.mrb[55].mxu0  ;;  %v2403_v10 = vpop.f32.mrb[55].mxu1 }
 0x159   : > { %v1441_v25 = vmax.f32 %v1087_v8, 0.0  ;;  %v2755_v0 = vmax.f32 %v2401_v37, 0.0  ;;  %v1090_v50 = vadd.f32 %v9385_v21, %v1089_v3  ;;  %v2404_v26 = vadd.f32 %v9385_v21, %v2403_v10  ;;  %v8696_v10 = vld [vmem:[%s8838_s23 + $0x6a0] sm:$0xff]  }
 0x15a   : > { %v9399_v39 = vmax.f32 %v1443_v7, %v2757_v28  ;;  %v1444_v12 = vmax.f32 %v1098_v19, 0.0  ;;  %v2758_v24 = vmax.f32 %v2412_v41, 0.0  ;;  %8283 = vmatmul.mubr.msk.bf16.gmra.mrb[160].mxu0 %vm647_vm1, %v8689_v30  ;;  %8417 = vmatmul.mubr.msk.bf16.gmra.mrb[160].mxu1 %vm647_vm1, %v8690_v34  ;;  %v8694_v19 = vld [vmem:[%s8838_s23 + $0x698] sm:$0xff]  }
 0x15b   : > { %v9403_v31 = vmax.f32 %v1441_v25, %v2755_v0  ;;  %v1442_v47 = vmax.f32 %v1090_v50, 0.0  ;;  %v2756_v38 = vmax.f32 %v2404_v26, 0.0  ;;  %8286 = vmatprep.mubr.msk.bf16.mxu0 %vm647_vm1, %v8691_v33  ;;  %8420 = vmatprep.mubr.msk.bf16.mxu1 %vm647_vm1, %v8692_v52  ;;  %v8693_v50 = vld [vmem:[%s8838_s23 + $0x498] sm:$0xff]  }
 0x15c   : > { %10559 = vst [vmem:[#allocation14_spill] sm:$0xff] %v9399_v39  ;;  %v9407_v8 = vmax.f32 %v1444_v12, %v2758_v24  ;;  %v8695_v24 = vld [vmem:[%s8838_s23 + $0x4a0] sm:$0xff]  }
 0x15d   : > { %10560 = vst [vmem:[#allocation15_spill] sm:$0xff] %v9403_v31  ;;  %v9409_v37 = vmax.f32 %v1442_v47, %v2756_v38  ;;  %v8040_v27 = vpop.f32.mrb[56].mxu0  ;;  %v8174_v7 = vpop.f32.mrb[56].mxu1 }
 0x15e   : > { %10561 = vst [vmem:[#allocation16_spill] sm:$0xff] %v9407_v8  ;;  %v1111_v30 = vadd.f32 %v9385_v21, %v8040_v27  ;;  %v2425_v34 = vadd.f32 %v9385_v21, %v8174_v7  ;;  %v1102_v0 = vpop.f32.mrb[57].mxu0  ;;  %v2416_v28 = vpop.f32.mrb[57].mxu1 }
 0x15f   : > { %10562 = vst [vmem:[#allocation17_spill] sm:$0xff] %v9409_v37  ;;  %v1103_v33 = vadd.f32 %v9385_v21, %v1102_v0  ;;  %v2417_v41 = vadd.f32 %v9385_v21, %v2416_v28  ;;  %v8041_v52 = vpop.f32.mrb[58].mxu0  ;;  %v8175_v3 = vpop.f32.mrb[58].mxu1 }
 0x160   : > { %v1447_v25 = vmax.f32 %v1111_v30, 0.0  ;;  %v2761_v26 = vmax.f32 %v2425_v34, 0.0  ;;  %v1114_v12 = vadd.f32 %v9385_v21, %v8041_v52  ;;  %v2428_v47 = vadd.f32 %v9385_v21, %v8175_v3  ;;  %v1105_v38 = vpop.f32.mrb[59].mxu0  ;;  %v2419_v27 = vpop.f32.mrb[59].mxu1 }
 0x161   : > { %v1445_v7 = vmax.f32 %v1103_v33, 0.0  ;;  %v2759_v37 = vmax.f32 %v2417_v41, 0.0  ;;  %v1106_v8 = vadd.f32 %v9385_v21, %v1105_v38  ;;  %v2420_v0 = vadd.f32 %v9385_v21, %v2419_v27  ;;  %v8700_v27 = vld [vmem:[%s8838_s23 + $0x6b0] sm:$0xff]  }
 0x162   : > { %v9423_v31 = vmax.f32 %v1447_v25, %v2761_v26  ;;  %v1448_v28 = vmax.f32 %v1114_v12, 0.0  ;;  %v2762_v39 = vmax.f32 %v2428_v47, 0.0  ;;  %8287 = vmatmul.mubr.msk.bf16.gmra.mrb[164].mxu0 %vm647_vm1, %v8693_v50  ;;  %8421 = vmatmul.mubr.msk.bf16.gmra.mrb[164].mxu1 %vm647_vm1, %v8694_v19  ;;  %v8698_v12 = vld [vmem:[%s8838_s23 + $0x6a8] sm:$0xff]  }
 0x163   : > { %v9427_v30 = vmax.f32 %v1445_v7, %v2759_v37  ;;  %v1446_v34 = vmax.f32 %v1106_v8, 0.0  ;;  %v2760_v52 = vmax.f32 %v2420_v0, 0.0  ;;  %8290 = vmatprep.mubr.msk.bf16.mxu0 %vm647_vm1, %v8695_v24  ;;  %8424 = vmatprep.mubr.msk.bf16.mxu1 %vm647_vm1, %v8696_v10  ;;  %v8697_v8 = vld [vmem:[%s8838_s23 + $0x4a8] sm:$0xff]  }
 0x164   : > { %10563 = vst [vmem:[#allocation18_spill] sm:$0xff] %v9423_v31  ;;  %v9431_v33 = vmax.f32 %v1448_v28, %v2762_v39  ;;  %v8699_v39 = vld [vmem:[%s8838_s23 + $0x4b0] sm:$0xff]  }
 0x165   : > { %10564 = vst [vmem:[#allocation19_spill] sm:$0xff] %v9427_v30  ;;  %v9433_v41 = vmax.f32 %v1446_v34, %v2760_v52  ;;  %v8044_v3 = vpop.f32.mrb[60].mxu0  ;;  %v8178_v25 = vpop.f32.mrb[60].mxu1 }
 0x166   : > { %10565 = vst [vmem:[#allocation20_spill] sm:$0xff] %v9431_v33  ;;  %v1127_v50 = vadd.f32 %v9385_v21, %v8044_v3  ;;  %v2441_v19 = vadd.f32 %v9385_v21, %v8178_v25  ;;  %v1118_v37 = vpop.f32.mrb[61].mxu0  ;;  %v2432_v26 = vpop.f32.mrb[61].mxu1 }
 0x167   : > { %10566 = vst [vmem:[#allocation21_spill] sm:$0xff] %v9433_v41  ;;  %v1119_v24 = vadd.f32 %v9385_v21, %v1118_v37  ;;  %v2433_v47 = vadd.f32 %v9385_v21, %v2432_v26  ;;  %v8045_v10 = vpop.f32.mrb[62].mxu0  ;;  %v8179_v38 = vpop.f32.mrb[62].mxu1 }
 0x168   : > { %v1451_v7 = vmax.f32 %v1127_v50, 0.0  ;;  %v2765_v0 = vmax.f32 %v2441_v19, 0.0  ;;  %v1130_v28 = vadd.f32 %v9385_v21, %v8045_v10  ;;  %v2444_v34 = vadd.f32 %v9385_v21, %v8179_v38  ;;  %v1121_v52 = vpop.f32.mrb[63].mxu0  ;;  %v2435_v3 = vpop.f32.mrb[63].mxu1 }
 0x169   : > { %v1449_v25 = vmax.f32 %v1119_v24, 0.0  ;;  %v2763_v41 = vmax.f32 %v2433_v47, 0.0  ;;  %v1122_v33 = vadd.f32 %v9385_v21, %v1121_v52  ;;  %v2436_v37 = vadd.f32 %v9385_v21, %v2435_v3  ;;  %v8704_v3 = vld [vmem:[%s8838_s23 + $0x6c0] sm:$0xff]  }
 0x16a   : > { %v9447_v30 = vmax.f32 %v1451_v7, %v2765_v0  ;;  %v1452_v26 = vmax.f32 %v1130_v28, 0.0  ;;  %v2766_v31 = vmax.f32 %v2444_v34, 0.0  ;;  %8291 = vmatmul.mubr.msk.bf16.gmra.mrb[168].mxu0 %vm647_vm1, %v8697_v8  ;;  %8425 = vmatmul.mubr.msk.bf16.gmra.mrb[168].mxu1 %vm647_vm1, %v8698_v12  ;;  %v8702_v28 = vld [vmem:[%s8838_s23 + $0x6b8] sm:$0xff]  }
 0x16b   : > { %v9451_v50 = vmax.f32 %v1449_v25, %v2763_v41  ;;  %v1450_v19 = vmax.f32 %v1122_v33, 0.0  ;;  %v2764_v10 = vmax.f32 %v2436_v37, 0.0  ;;  %8294 = vmatprep.mubr.msk.bf16.mxu0 %vm647_vm1, %v8699_v39  ;;  %8428 = vmatprep.mubr.msk.bf16.mxu1 %vm647_vm1, %v8700_v27  ;;  %v8701_v33 = vld [vmem:[%s8838_s23 + $0x4b8] sm:$0xff]  }
 0x16c   : > { %10567 = vst [vmem:[#allocation22_spill] sm:$0xff] %v9447_v30  ;;  %v9455_v24 = vmax.f32 %v1452_v26, %v2766_v31  ;;  %v8703_v31 = vld [vmem:[%s8838_s23 + $0x4c0] sm:$0xff]  }
 0x16d   : > { %10568 = vst [vmem:[#allocation23_spill] sm:$0xff] %v9451_v50  ;;  %v9457_v47 = vmax.f32 %v1450_v19, %v2764_v10  ;;  %v8048_v38 = vpop.f32.mrb[64].mxu0  ;;  %v8182_v7 = vpop.f32.mrb[64].mxu1 }
 0x16e   : > { %10569 = vst [vmem:[#allocation24_spill] sm:$0xff] %v9455_v24  ;;  %v1143_v8 = vadd.f32 %v9385_v21, %v8048_v38  ;;  %v2457_v12 = vadd.f32 %v9385_v21, %v8182_v7  ;;  %v1134_v41 = vpop.f32.mrb[65].mxu0  ;;  %v2448_v0 = vpop.f32.mrb[65].mxu1 }
 0x16f   : > { %10570 = vst [vmem:[#allocation25_spill] sm:$0xff] %v9457_v47  ;;  %v1135_v39 = vadd.f32 %v9385_v21, %v1134_v41  ;;  %v2449_v34 = vadd.f32 %v9385_v21, %v2448_v0  ;;  %v8049_v27 = vpop.f32.mrb[66].mxu0  ;;  %v8183_v52 = vpop.f32.mrb[66].mxu1 }
 0x170   : > { %v1455_v25 = vmax.f32 %v1143_v8, 0.0  ;;  %v2769_v37 = vmax.f32 %v2457_v12, 0.0  ;;  %v1146_v26 = vadd.f32 %v9385_v21, %v8049_v27  ;;  %v2460_v19 = vadd.f32 %v9385_v21, %v8183_v52  ;;  %v1137_v10 = vpop.f32.mrb[67].mxu0  ;;  %v2451_v38 = vpop.f32.mrb[67].mxu1 }
 0x171   : > { %v1453_v7 = vmax.f32 %v1135_v39, 0.0  ;;  %v2767_v47 = vmax.f32 %v2449_v34, 0.0  ;;  %v1138_v24 = vadd.f32 %v9385_v21, %v1137_v10  ;;  %v2452_v41 = vadd.f32 %v9385_v21, %v2451_v38  ;;  %v8708_v38 = vld [vmem:[%s8838_s23 + $0x6d0] sm:$0xff]  }
 0x172   : > { %v9471_v50 = vmax.f32 %v1455_v25, %v2769_v37  ;;  %v1456_v0 = vmax.f32 %v1146_v26, 0.0  ;;  %v2770_v30 = vmax.f32 %v2460_v19, 0.0  ;;  %8295 = vmatmul.mubr.msk.bf16.gmra.mrb[172].mxu0 %vm647_vm1, %v8701_v33  ;;  %8429 = vmatmul.mubr.msk.bf16.gmra.mrb[172].mxu1 %vm647_vm1, %v8702_v28  ;;  %v8706_v26 = vld [vmem:[%s8838_s23 + $0x6c8] sm:$0xff]  }
 0x173   : > { %v9475_v8 = vmax.f32 %v1453_v7, %v2767_v47  ;;  %v1454_v12 = vmax.f32 %v1138_v24, 0.0  ;;  %v2768_v27 = vmax.f32 %v2452_v41, 0.0  ;;  %8298 = vmatprep.mubr.msk.bf16.mxu0 %vm647_vm1, %v8703_v31  ;;  %8432 = vmatprep.mubr.msk.bf16.mxu1 %vm647_vm1, %v8704_v3  ;;  %v8705_v24 = vld [vmem:[%s8838_s23 + $0x4c8] sm:$0xff]  }
 0x174   : > { %10571 = vst [vmem:[#allocation26_spill] sm:$0xff] %v9471_v50  ;;  %v9479_v39 = vmax.f32 %v1456_v0, %v2770_v30  ;;  %v8707_v30 = vld [vmem:[%s8838_s23 + $0x4d0] sm:$0xff]  }
 0x175   : > { %10572 = vst [vmem:[#allocation27_spill] sm:$0xff] %v9475_v8  ;;  %v9481_v34 = vmax.f32 %v1454_v12, %v2768_v27  ;;  %v8052_v52 = vpop.f32.mrb[68].mxu0  ;;  %v8186_v25 = vpop.f32.mrb[68].mxu1 }
 0x176   : > { %10573 = vst [vmem:[#allocation28_spill] sm:$0xff] %v9479_v39  ;;  %v1159_v33 = vadd.f32 %v9385_v21, %v8052_v52  ;;  %v2473_v28 = vadd.f32 %v9385_v21, %v8186_v25  ;;  %v1150_v47 = vpop.f32.mrb[69].mxu0  ;;  %v2464_v37 = vpop.f32.mrb[69].mxu1 }
 0x177   : > { %10574 = vst [vmem:[#allocation29_spill] sm:$0xff] %v9481_v34  ;;  %v1151_v31 = vadd.f32 %v9385_v21, %v1150_v47  ;;  %v2465_v19 = vadd.f32 %v9385_v21, %v2464_v37  ;;  %v8053_v3 = vpop.f32.mrb[70].mxu0  ;;  %v8187_v10 = vpop.f32.mrb[70].mxu1 }
 0x178   : > { %v1459_v7 = vmax.f32 %v1159_v33, 0.0  ;;  %v2773_v41 = vmax.f32 %v2473_v28, 0.0  ;;  %v1162_v0 = vadd.f32 %v9385_v21, %v8053_v3  ;;  %v2476_v12 = vadd.f32 %v9385_v21, %v8187_v10  ;;  %v1153_v27 = vpop.f32.mrb[71].mxu0  ;;  %v2467_v52 = vpop.f32.mrb[71].mxu1 }
 0x179   : > { %v1457_v25 = vmax.f32 %v1151_v31, 0.0  ;;  %v2771_v34 = vmax.f32 %v2465_v19, 0.0  ;;  %v1154_v39 = vadd.f32 %v9385_v21, %v1153_v27  ;;  %v2468_v47 = vadd.f32 %v9385_v21, %v2467_v52  ;;  %v8712_v52 = vld [vmem:[%s8838_s23 + $0x6e0] sm:$0xff]  }
 0x17a   : > { %v9495_v8 = vmax.f32 %v1459_v7, %v2773_v41  ;;  %v1460_v37 = vmax.f32 %v1162_v0, 0.0  ;;  %v2774_v50 = vmax.f32 %v2476_v12, 0.0  ;;  %8299 = vmatmul.mubr.msk.bf16.gmra.mrb[176].mxu0 %vm647_vm1, %v8705_v24  ;;  %8433 = vmatmul.mubr.msk.bf16.gmra.mrb[176].mxu1 %vm647_vm1, %v8706_v26  ;;  %v8710_v0 = vld [vmem:[%s8838_s23 + $0x6d8] sm:$0xff]  }
 0x17b   : > { %v9499_v33 = vmax.f32 %v1457_v25, %v2771_v34  ;;  %v1458_v28 = vmax.f32 %v1154_v39, 0.0  ;;  %v2772_v3 = vmax.f32 %v2468_v47, 0.0  ;;  %8302 = vmatprep.mubr.msk.bf16.mxu0 %vm647_vm1, %v8707_v30  ;;  %8436 = vmatprep.mubr.msk.bf16.mxu1 %vm647_vm1, %v8708_v38  ;;  %v8709_v39 = vld [vmem:[%s8838_s23 + $0x4d8] sm:$0xff]  }
 0x17c   : > { %10575 = vst [vmem:[#allocation30_spill] sm:$0xff] %v9495_v8  ;;  %v9503_v31 = vmax.f32 %v1460_v37, %v2774_v50  ;;  %v8711_v50 = vld [vmem:[%s8838_s23 + $0x4e0] sm:$0xff]  }
 0x17d   : > { %10576 = vst [vmem:[#allocation31_spill] sm:$0xff] %v9499_v33  ;;  %v9505_v19 = vmax.f32 %v1458_v28, %v2772_v3  ;;  %v8056_v10 = vpop.f32.mrb[72].mxu0  ;;  %v8190_v7 = vpop.f32.mrb[72].mxu1 }
 0x17e   : > { %10577 = vst [vmem:[#allocation32_spill] sm:$0xff] %v9503_v31  ;;  %v1175_v24 = vadd.f32 %v9385_v21, %v8056_v10  ;;  %v2489_v26 = vadd.f32 %v9385_v21, %v8190_v7  ;;  %v1166_v34 = vpop.f32.mrb[73].mxu0  ;;  %v2480_v41 = vpop.f32.mrb[73].mxu1 }
 0x17f   : > { %10578 = vst [vmem:[#allocation33_spill] sm:$0xff] %v9505_v19  ;;  %v1167_v30 = vadd.f32 %v9385_v21, %v1166_v34  ;;  %v2481_v12 = vadd.f32 %v9385_v21, %v2480_v41  ;;  %v8057_v38 = vpop.f32.mrb[74].mxu0  ;;  %v8191_v27 = vpop.f32.mrb[74].mxu1 }
 0x180   : > { %v1463_v25 = vmax.f32 %v1175_v24, 0.0  ;;  %v2777_v47 = vmax.f32 %v2489_v26, 0.0  ;;  %v1178_v37 = vadd.f32 %v9385_v21, %v8057_v38  ;;  %v2492_v28 = vadd.f32 %v9385_v21, %v8191_v27  ;;  %v1169_v3 = vpop.f32.mrb[75].mxu0  ;;  %v2483_v10 = vpop.f32.mrb[75].mxu1 }
 0x181   : > { %v1461_v7 = vmax.f32 %v1167_v30, 0.0  ;;  %v2775_v19 = vmax.f32 %v2481_v12, 0.0  ;;  %v1170_v31 = vadd.f32 %v9385_v21, %v1169_v3  ;;  %v2484_v34 = vadd.f32 %v9385_v21, %v2483_v10  ;;  %v8716_v10 = vld [vmem:[%s8838_s23 + $0x6f0] sm:$0xff]  }
 0x182   : > { %v9519_v33 = vmax.f32 %v1463_v25, %v2777_v47  ;;  %v1464_v41 = vmax.f32 %v1178_v37, 0.0  ;;  %v2778_v8 = vmax.f32 %v2492_v28, 0.0  ;;  %8303 = vmatmul.mubr.msk.bf16.gmra.mrb[180].mxu0 %vm647_vm1, %v8709_v39  ;;  %8437 = vmatmul.mubr.msk.bf16.gmra.mrb[180].mxu1 %vm647_vm1, %v8710_v0  ;;  %v8714_v37 = vld [vmem:[%s8838_s23 + $0x6e8] sm:$0xff]  }
 0x183   : > { %v9523_v24 = vmax.f32 %v1461_v7, %v2775_v19  ;;  %v1462_v26 = vmax.f32 %v1170_v31, 0.0  ;;  %v2776_v38 = vmax.f32 %v2484_v34, 0.0  ;;  %8306 = vmatprep.mubr.msk.bf16.mxu0 %vm647_vm1, %v8711_v50  ;;  %8440 = vmatprep.mubr.msk.bf16.mxu1 %vm647_vm1, %v8712_v52  ;;  %v8713_v31 = vld [vmem:[%s8838_s23 + $0x4e8] sm:$0xff]  }
 0x184   : > { %10579 = vst [vmem:[#allocation34_spill] sm:$0xff] %v9519_v33  ;;  %v9527_v30 = vmax.f32 %v1464_v41, %v2778_v8  ;;  %v8715_v8 = vld [vmem:[%s8838_s23 + $0x4f0] sm:$0xff]  }
 0x185   : > { %10580 = vst [vmem:[#allocation35_spill] sm:$0xff] %v9523_v24  ;;  %v9529_v12 = vmax.f32 %v1462_v26, %v2776_v38  ;;  %v8060_v27 = vpop.f32.mrb[76].mxu0  ;;  %v8194_v25 = vpop.f32.mrb[76].mxu1 }
 0x186   : > { %10581 = vst [vmem:[#allocation36_spill] sm:$0xff] %v9527_v30  ;;  %v1191_v39 = vadd.f32 %v9385_v21, %v8060_v27  ;;  %v2505_v0 = vadd.f32 %v9385_v21, %v8194_v25  ;;  %v1182_v19 = vpop.f32.mrb[77].mxu0  ;;  %v2496_v47 = vpop.f32.mrb[77].mxu1 }
 0x187   : > { %10582 = vst [vmem:[#allocation37_spill] sm:$0xff] %v9529_v12  ;;  %v1183_v50 = vadd.f32 %v9385_v21, %v1182_v19  ;;  %v2497_v28 = vadd.f32 %v9385_v21, %v2496_v47  ;;  %v8061_v52 = vpop.f32.mrb[78].mxu0  ;;  %v8195_v3 = vpop.f32.mrb[78].mxu1 }
 0x188   : > { %v1467_v7 = vmax.f32 %v1191_v39, 0.0  ;;  %v2781_v34 = vmax.f32 %v2505_v0, 0.0  ;;  %v1194_v41 = vadd.f32 %v9385_v21, %v8061_v52  ;;  %v2508_v26 = vadd.f32 %v9385_v21, %v8195_v3  ;;  %v1185_v38 = vpop.f32.mrb[79].mxu0  ;;  %v2499_v27 = vpop.f32.mrb[79].mxu1 }
 0x189   : > { %v1465_v25 = vmax.f32 %v1183_v50, 0.0  ;;  %v2779_v12 = vmax.f32 %v2497_v28, 0.0  ;;  %v1186_v30 = vadd.f32 %v9385_v21, %v1185_v38  ;;  %v2500_v19 = vadd.f32 %v9385_v21, %v2499_v27  ;;  %v8720_v27 = vld [vmem:[%s8838_s23 + $0x700] sm:$0xff]  }
 0x18a   : > { %v9543_v24 = vmax.f32 %v1467_v7, %v2781_v34  ;;  %v1468_v47 = vmax.f32 %v1194_v41, 0.0  ;;  %v2782_v33 = vmax.f32 %v2508_v26, 0.0  ;;  %8307 = vmatmul.mubr.msk.bf16.gmra.mrb[184].mxu0 %vm647_vm1, %v8713_v31  ;;  %8441 = vmatmul.mubr.msk.bf16.gmra.mrb[184].mxu1 %vm647_vm1, %v8714_v37  ;;  %v8718_v41 = vld [vmem:[%s8838_s23 + $0x6f8] sm:$0xff]  }
 0x18b   : > { %v9547_v39 = vmax.f32 %v1465_v25, %v2779_v12  ;;  %v1466_v0 = vmax.f32 %v1186_v30, 0.0  ;;  %v2780_v52 = vmax.f32 %v2500_v19, 0.0  ;;  %8310 = vmatprep.mubr.msk.bf16.mxu0 %vm647_vm1, %v8715_v8  ;;  %8444 = vmatprep.mubr.msk.bf16.mxu1 %vm647_vm1, %v8716_v10  ;;  %v8717_v30 = vld [vmem:[%s8838_s23 + $0x4f8] sm:$0xff]  }
 0x18c   : > { %10583 = vst [vmem:[#allocation38_spill] sm:$0xff] %v9543_v24  ;;  %v9551_v50 = vmax.f32 %v1468_v47, %v2782_v33  ;;  %v8719_v33 = vld [vmem:[%s8838_s23 + $0x500] sm:$0xff]  }
 0x18d   : > { %10584 = vst [vmem:[#allocation39_spill] sm:$0xff] %v9547_v39  ;;  %v9553_v28 = vmax.f32 %v1466_v0, %v2780_v52  ;;  %v8064_v3 = vpop.f32.mrb[80].mxu0  ;;  %v8198_v7 = vpop.f32.mrb[80].mxu1 }
 0x18e   : > { %10585 = vst [vmem:[#allocation40_spill] sm:$0xff] %v9551_v50  ;;  %v1207_v31 = vadd.f32 %v9385_v21, %v8064_v3  ;;  %v2521_v37 = vadd.f32 %v9385_v21, %v8198_v7  ;;  %v1198_v12 = vpop.f32.mrb[81].mxu0  ;;  %v2512_v34 = vpop.f32.mrb[81].mxu1 }
 0x18f   : > { %10586 = vst [vmem:[#allocation41_spill] sm:$0xff] %v9553_v28  ;;  %v1199_v8 = vadd.f32 %v9385_v21, %v1198_v12  ;;  %v2513_v26 = vadd.f32 %v9385_v21, %v2512_v34  ;;  %v8065_v10 = vpop.f32.mrb[82].mxu0  ;;  %v8199_v38 = vpop.f32.mrb[82].mxu1 }
 0x190   : > { %v1471_v25 = vmax.f32 %v1207_v31, 0.0  ;;  %v2785_v19 = vmax.f32 %v2521_v37, 0.0  ;;  %v1210_v47 = vadd.f32 %v9385_v21, %v8065_v10  ;;  %v2524_v0 = vadd.f32 %v9385_v21, %v8199_v38  ;;  %v1201_v52 = vpop.f32.mrb[83].mxu0  ;;  %v2515_v3 = vpop.f32.mrb[83].mxu1 }
 0x191   : > { %v1469_v7 = vmax.f32 %v1199_v8, 0.0  ;;  %v2783_v28 = vmax.f32 %v2513_v26, 0.0  ;;  %v1202_v50 = vadd.f32 %v9385_v21, %v1201_v52  ;;  %v2516_v12 = vadd.f32 %v9385_v21, %v2515_v3  ;;  %v8724_v3 = vld [vmem:[%s8838_s23 + $0x710] sm:$0xff]  }
 0x192   : > { %v9567_v39 = vmax.f32 %v1471_v25, %v2785_v19  ;;  %v1472_v34 = vmax.f32 %v1210_v47, 0.0  ;;  %v2786_v24 = vmax.f32 %v2524_v0, 0.0  ;;  %8311 = vmatmul.mubr.msk.bf16.gmra.mrb[188].mxu0 %vm647_vm1, %v8717_v30  ;;  %8445 = vmatmul.mubr.msk.bf16.gmra.mrb[188].mxu1 %vm647_vm1, %v8718_v41  ;;  %v8722_v47 = vld [vmem:[%s8838_s23 + $0x708] sm:$0xff]  }
 0x193   : > { %v9571_v31 = vmax.f32 %v1469_v7, %v2783_v28  ;;  %v1470_v37 = vmax.f32 %v1202_v50, 0.0  ;;  %v2784_v10 = vmax.f32 %v2516_v12, 0.0  ;;  %8314 = vmatprep.mubr.msk.bf16.mxu0 %vm647_vm1, %v8719_v33  ;;  %8448 = vmatprep.mubr.msk.bf16.mxu1 %vm647_vm1, %v8720_v27  ;;  %v8721_v50 = vld [vmem:[%s8838_s23 + $0x508] sm:$0xff]  }
 0x194   : > { %10587 = vst [vmem:[#allocation42_spill] sm:$0xff] %v9567_v39  ;;  %v9575_v8 = vmax.f32 %v1472_v34, %v2786_v24  ;;  %v8723_v24 = vld [vmem:[%s8838_s23 + $0x510] sm:$0xff]  }
 0x195   : > { %10588 = vst [vmem:[#allocation43_spill] sm:$0xff] %v9571_v31  ;;  %v9577_v26 = vmax.f32 %v1470_v37, %v2784_v10  ;;  %v8068_v38 = vpop.f32.mrb[84].mxu0  ;;  %v8202_v25 = vpop.f32.mrb[84].mxu1 }
 0x196   : > { %10589 = vst [vmem:[#allocation44_spill] sm:$0xff] %v9575_v8  ;;  %v1223_v30 = vadd.f32 %v9385_v21, %v8068_v38  ;;  %v2537_v41 = vadd.f32 %v9385_v21, %v8202_v25  ;;  %v1214_v28 = vpop.f32.mrb[85].mxu0  ;;  %v2528_v19 = vpop.f32.mrb[85].mxu1 }
 0x197   : > { %10590 = vst [vmem:[#allocation45_spill] sm:$0xff] %v9577_v26  ;;  %v1215_v33 = vadd.f32 %v9385_v21, %v1214_v28  ;;  %v2529_v0 = vadd.f32 %v9385_v21, %v2528_v19  ;;  %v8069_v27 = vpop.f32.mrb[86].mxu0  ;;  %v8203_v52 = vpop.f32.mrb[86].mxu1 }
 0x198   : > { %v1475_v7 = vmax.f32 %v1223_v30, 0.0  ;;  %v2789_v12 = vmax.f32 %v2537_v41, 0.0  ;;  %v1226_v34 = vadd.f32 %v9385_v21, %v8069_v27  ;;  %v2540_v37 = vadd.f32 %v9385_v21, %v8203_v52  ;;  %v1217_v10 = vpop.f32.mrb[87].mxu0  ;;  %v2531_v38 = vpop.f32.mrb[87].mxu1 }
 0x199   : > { %v1473_v25 = vmax.f32 %v1215_v33, 0.0  ;;  %v2787_v26 = vmax.f32 %v2529_v0, 0.0  ;;  %v1218_v8 = vadd.f32 %v9385_v21, %v1217_v10  ;;  %v2532_v28 = vadd.f32 %v9385_v21, %v2531_v38  ;;  %v8728_v38 = vld [vmem:[%s8838_s23 + $0x720] sm:$0xff]  }
 0x19a   : > { %v9591_v31 = vmax.f32 %v1475_v7, %v2789_v12  ;;  %v1476_v19 = vmax.f32 %v1226_v34, 0.0  ;;  %v2790_v39 = vmax.f32 %v2540_v37, 0.0  ;;  %8315 = vmatmul.mubr.msk.bf16.gmra.mrb[192].mxu0 %vm647_vm1, %v8721_v50  ;;  %8449 = vmatmul.mubr.msk.bf16.gmra.mrb[192].mxu1 %vm647_vm1, %v8722_v47  ;;  %v8726_v34 = vld [vmem:[%s8838_s23 + $0x718] sm:$0xff]  }
 0x19b   : > { %v9595_v30 = vmax.f32 %v1473_v25, %v2787_v26  ;;  %v1474_v41 = vmax.f32 %v1218_v8, 0.0  ;;  %v2788_v27 = vmax.f32 %v2532_v28, 0.0  ;;  %8318 = vmatprep.mubr.msk.bf16.mxu0 %vm647_vm1, %v8723_v24  ;;  %8452 = vmatprep.mubr.msk.bf16.mxu1 %vm647_vm1, %v8724_v3  ;;  %v8725_v8 = vld [vmem:[%s8838_s23 + $0x518] sm:$0xff]  }
 0x19c   : > { %10591 = vst [vmem:[#allocation46_spill] sm:$0xff] %v9591_v31  ;;  %v9599_v33 = vmax.f32 %v1476_v19, %v2790_v39  ;;  %v8727_v39 = vld [vmem:[%s8838_s23 + $0x520] sm:$0xff]  }
 0x19d   : > { %10592 = vst [vmem:[#allocation47_spill] sm:$0xff] %v9595_v30  ;;  %v9601_v0 = vmax.f32 %v1474_v41, %v2788_v27  ;;  %v8072_v52 = vpop.f32.mrb[88].mxu0  ;;  %v8206_v7 = vpop.f32.mrb[88].mxu1 }
 0x19e   : > { %10593 = vst [vmem:[#allocation48_spill] sm:$0xff] %v9599_v33  ;;  %v1239_v50 = vadd.f32 %v9385_v21, %v8072_v52  ;;  %v2553_v47 = vadd.f32 %v9385_v21, %v8206_v7  ;;  %v1230_v26 = vpop.f32.mrb[89].mxu0  ;;  %v2544_v12 = vpop.f32.mrb[89].mxu1 }
 0x19f   : > { %10594 = vst [vmem:[#allocation49_spill] sm:$0xff] %v9601_v0  ;;  %v1231_v24 = vadd.f32 %v9385_v21, %v1230_v26  ;;  %v2545_v37 = vadd.f32 %v9385_v21, %v2544_v12  ;;  %v8073_v3 = vpop.f32.mrb[90].mxu0  ;;  %v8207_v10 = vpop.f32.mrb[90].mxu1 }
 0x1a0   : > { %v1479_v25 = vmax.f32 %v1239_v50, 0.0  ;;  %v2793_v28 = vmax.f32 %v2553_v47, 0.0  ;;  %v1242_v19 = vadd.f32 %v9385_v21, %v8073_v3  ;;  %v2556_v41 = vadd.f32 %v9385_v21, %v8207_v10  ;;  %v1233_v27 = vpop.f32.mrb[91].mxu0  ;;  %v2547_v52 = vpop.f32.mrb[91].mxu1 }
 0x1a1   : > { %v1477_v7 = vmax.f32 %v1231_v24, 0.0  ;;  %v2791_v0 = vmax.f32 %v2545_v37, 0.0  ;;  %v1234_v33 = vadd.f32 %v9385_v21, %v1233_v27  ;;  %v2548_v26 = vadd.f32 %v9385_v21, %v2547_v52  ;;  %v8732_v52 = vld [vmem:[%s8838_s23 + $0x730] sm:$0xff]  }
 0x1a2   : > { %v9615_v30 = vmax.f32 %v1479_v25, %v2793_v28  ;;  %v1480_v12 = vmax.f32 %v1242_v19, 0.0  ;;  %v2794_v31 = vmax.f32 %v2556_v41, 0.0  ;;  %8319 = vmatmul.mubr.msk.bf16.gmra.mrb[196].mxu0 %vm647_vm1, %v8725_v8  ;;  %8453 = vmatmul.mubr.msk.bf16.gmra.mrb[196].mxu1 %vm647_vm1, %v8726_v34  ;;  %v8730_v19 = vld [vmem:[%s8838_s23 + $0x728] sm:$0xff]  }
 0x1a3   : > { %v9619_v50 = vmax.f32 %v1477_v7, %v2791_v0  ;;  %v1478_v47 = vmax.f32 %v1234_v33, 0.0  ;;  %v2792_v3 = vmax.f32 %v2548_v26, 0.0  ;;  %8322 = vmatprep.mubr.msk.bf16.mxu0 %vm647_vm1, %v8727_v39  ;;  %8456 = vmatprep.mubr.msk.bf16.mxu1 %vm647_vm1, %v8728_v38  ;;  %v8729_v33 = vld [vmem:[%s8838_s23 + $0x528] sm:$0xff]  }
 0x1a4   : > { %10595 = vst [vmem:[#allocation50_spill] sm:$0xff] %v9615_v30  ;;  %v9623_v24 = vmax.f32 %v1480_v12, %v2794_v31  ;;  %v8731_v31 = vld [vmem:[%s8838_s23 + $0x530] sm:$0xff]  }
 0x1a5   : > { %10596 = vst [vmem:[#allocation51_spill] sm:$0xff] %v9619_v50  ;;  %v9625_v37 = vmax.f32 %v1478_v47, %v2792_v3  ;;  %v8076_v10 = vpop.f32.mrb[92].mxu0  ;;  %v8210_v25 = vpop.f32.mrb[92].mxu1 }
 0x1a6   : > { %10597 = vst [vmem:[#allocation52_spill] sm:$0xff] %v9623_v24  ;;  %v1255_v8 = vadd.f32 %v9385_v21, %v8076_v10  ;;  %v2569_v34 = vadd.f32 %v9385_v21, %v8210_v25  ;;  %v1246_v0 = vpop.f32.mrb[93].mxu0  ;;  %v2560_v28 = vpop.f32.mrb[93].mxu1 }
 0x1a7   : > { %10598 = vst [vmem:[#allocation53_spill] sm:$0xff] %v9625_v37  ;;  %v1247_v39 = vadd.f32 %v9385_v21, %v1246_v0  ;;  %v2561_v41 = vadd.f32 %v9385_v21, %v2560_v28  ;;  %v8077_v38 = vpop.f32.mrb[94].mxu0  ;;  %v8211_v27 = vpop.f32.mrb[94].mxu1 }
 0x1a8   : > { %v1483_v7 = vmax.f32 %v1255_v8, 0.0  ;;  %v2797_v26 = vmax.f32 %v2569_v34, 0.0  ;;  %v1258_v12 = vadd.f32 %v9385_v21, %v8077_v38  ;;  %v2572_v47 = vadd.f32 %v9385_v21, %v8211_v27  ;;  %v1249_v3 = vpop.f32.mrb[95].mxu0  ;;  %v2563_v10 = vpop.f32.mrb[95].mxu1 }
 0x1a9   : > { %v1481_v25 = vmax.f32 %v1247_v39, 0.0  ;;  %v2795_v37 = vmax.f32 %v2561_v41, 0.0  ;;  %v1250_v24 = vadd.f32 %v9385_v21, %v1249_v3  ;;  %v2564_v0 = vadd.f32 %v9385_v21, %v2563_v10  ;;  %v8736_v10 = vld [vmem:[%s8838_s23 + $0x740] sm:$0xff]  }
 0x1aa   : > { %v9639_v50 = vmax.f32 %v1483_v7, %v2797_v26  ;;  %v1484_v28 = vmax.f32 %v1258_v12, 0.0  ;;  %v2798_v30 = vmax.f32 %v2572_v47, 0.0  ;;  %8323 = vmatmul.mubr.msk.bf16.gmra.mrb[200].mxu0 %vm647_vm1, %v8729_v33  ;;  %8457 = vmatmul.mubr.msk.bf16.gmra.mrb[200].mxu1 %vm647_vm1, %v8730_v19  ;;  %v8734_v12 = vld [vmem:[%s8838_s23 + $0x738] sm:$0xff]  }
 0x1ab   : > { %v9643_v8 = vmax.f32 %v1481_v25, %v2795_v37  ;;  %v1482_v34 = vmax.f32 %v1250_v24, 0.0  ;;  %v2796_v38 = vmax.f32 %v2564_v0, 0.0  ;;  %8326 = vmatprep.mubr.msk.bf16.mxu0 %vm647_vm1, %v8731_v31  ;;  %8460 = vmatprep.mubr.msk.bf16.mxu1 %vm647_vm1, %v8732_v52  ;;  %v8733_v24 = vld [vmem:[%s8838_s23 + $0x538] sm:$0xff]  }
 0x1ac   : > { %10599 = vst [vmem:[#allocation54_spill] sm:$0xff] %v9639_v50  ;;  %v9647_v39 = vmax.f32 %v1484_v28, %v2798_v30  ;;  %v8735_v30 = vld [vmem:[%s8838_s23 + $0x540] sm:$0xff]  }
 0x1ad   : > { %10600 = vst [vmem:[#allocation55_spill] sm:$0xff] %v9643_v8  ;;  %v9649_v41 = vmax.f32 %v1482_v34, %v2796_v38  ;;  %v8080_v27 = vpop.f32.mrb[96].mxu0  ;;  %v8214_v7 = vpop.f32.mrb[96].mxu1 }
 0x1ae   : > { %10601 = vst [vmem:[#allocation56_spill] sm:$0xff] %v9647_v39  ;;  %v1271_v33 = vadd.f32 %v9385_v21, %v8080_v27  ;;  %v2585_v19 = vadd.f32 %v9385_v21, %v8214_v7  ;;  %v1262_v37 = vpop.f32.mrb[97].mxu0  ;;  %v2576_v26 = vpop.f32.mrb[97].mxu1 }
 0x1af   : > { %10602 = vst [vmem:[#allocation57_spill] sm:$0xff] %v9649_v41  ;;  %v1263_v31 = vadd.f32 %v9385_v21, %v1262_v37  ;;  %v2577_v47 = vadd.f32 %v9385_v21, %v2576_v26  ;;  %v8081_v52 = vpop.f32.mrb[98].mxu0  ;;  %v8215_v3 = vpop.f32.mrb[98].mxu1 }
 0x1b0   : > { %v1487_v25 = vmax.f32 %v1271_v33, 0.0  ;;  %v2801_v0 = vmax.f32 %v2585_v19, 0.0  ;;  %v1274_v28 = vadd.f32 %v9385_v21, %v8081_v52  ;;  %v2588_v34 = vadd.f32 %v9385_v21, %v8215_v3  ;;  %v1265_v38 = vpop.f32.mrb[99].mxu0  ;;  %v2579_v27 = vpop.f32.mrb[99].mxu1 }
 0x1b1   : > { %v1485_v7 = vmax.f32 %v1263_v31, 0.0  ;;  %v2799_v41 = vmax.f32 %v2577_v47, 0.0  ;;  %v1266_v39 = vadd.f32 %v9385_v21, %v1265_v38  ;;  %v2580_v37 = vadd.f32 %v9385_v21, %v2579_v27  ;;  %v8740_v27 = vld [vmem:[%s8838_s23 + $0x750] sm:$0xff]  }
 0x1b2   : > { %v9663_v8 = vmax.f32 %v1487_v25, %v2801_v0  ;;  %v1488_v26 = vmax.f32 %v1274_v28, 0.0  ;;  %v2802_v50 = vmax.f32 %v2588_v34, 0.0  ;;  %8327 = vmatmul.mubr.msk.bf16.gmra.mrb[204].mxu0 %vm647_vm1, %v8733_v24  ;;  %8461 = vmatmul.mubr.msk.bf16.gmra.mrb[204].mxu1 %vm647_vm1, %v8734_v12  ;;  %v8738_v28 = vld [vmem:[%s8838_s23 + $0x748] sm:$0xff]  }
 0x1b3   : > { %v9667_v33 = vmax.f32 %v1485_v7, %v2799_v41  ;;  %v1486_v19 = vmax.f32 %v1266_v39, 0.0  ;;  %v2800_v52 = vmax.f32 %v2580_v37, 0.0  ;;  %8330 = vmatprep.mubr.msk.bf16.mxu0 %vm647_vm1, %v8735_v30  ;;  %8464 = vmatprep.mubr.msk.bf16.mxu1 %vm647_vm1, %v8736_v10  ;;  %v8737_v39 = vld [vmem:[%s8838_s23 + $0x548] sm:$0xff]  }
 0x1b4   : > { %10603 = vst [vmem:[#allocation58_spill] sm:$0xff] %v9663_v8  ;;  %v9671_v31 = vmax.f32 %v1488_v26, %v2802_v50  ;;  %v8739_v50 = vld [vmem:[%s8838_s23 + $0x550] sm:$0xff]  }
 0x1b5   : > { %10604 = vst [vmem:[#allocation59_spill] sm:$0xff] %v9667_v33  ;;  %v9673_v47 = vmax.f32 %v1486_v19, %v2800_v52  ;;  %v8084_v3 = vpop.f32.mrb[100].mxu0  ;;  %v8218_v25 = vpop.f32.mrb[100].mxu1 }
 0x1b6   : > { %10605 = vst [vmem:[#allocation60_spill] sm:$0xff] %v9671_v31  ;;  %v1287_v24 = vadd.f32 %v9385_v21, %v8084_v3  ;;  %v2601_v12 = vadd.f32 %v9385_v21, %v8218_v25  ;;  %v1278_v41 = vpop.f32.mrb[101].mxu0  ;;  %v2592_v0 = vpop.f32.mrb[101].mxu1 }
 0x1b7   : > { %10606 = vst [vmem:[#allocation61_spill] sm:$0xff] %v9673_v47  ;;  %v1279_v30 = vadd.f32 %v9385_v21, %v1278_v41  ;;  %v2593_v34 = vadd.f32 %v9385_v21, %v2592_v0  ;;  %v8085_v10 = vpop.f32.mrb[102].mxu0  ;;  %v8219_v38 = vpop.f32.mrb[102].mxu1 }
 0x1b8   : > { %v1491_v7 = vmax.f32 %v1287_v24, 0.0  ;;  %v2805_v37 = vmax.f32 %v2601_v12, 0.0  ;;  %v1290_v26 = vadd.f32 %v9385_v21, %v8085_v10  ;;  %v2604_v19 = vadd.f32 %v9385_v21, %v8219_v38  ;;  %v1281_v52 = vpop.f32.mrb[103].mxu0  ;;  %v2595_v3 = vpop.f32.mrb[103].mxu1 }
 0x1b9   : > { %v1489_v25 = vmax.f32 %v1279_v30, 0.0  ;;  %v2803_v47 = vmax.f32 %v2593_v34, 0.0  ;;  %v1282_v31 = vadd.f32 %v9385_v21, %v1281_v52  ;;  %v2596_v41 = vadd.f32 %v9385_v21, %v2595_v3  ;;  %v8744_v3 = vld [vmem:[%s8838_s23 + $0x760] sm:$0xff]  }
 0x1ba   : > { %v9687_v33 = vmax.f32 %v1491_v7, %v2805_v37  ;;  %v1492_v0 = vmax.f32 %v1290_v26, 0.0  ;;  %v2806_v8 = vmax.f32 %v2604_v19, 0.0  ;;  %8331 = vmatmul.mubr.msk.bf16.gmra.mrb[208].mxu0 %vm647_vm1, %v8737_v39  ;;  %8465 = vmatmul.mubr.msk.bf16.gmra.mrb[208].mxu1 %vm647_vm1, %v8738_v28  ;;  %v8742_v26 = vld [vmem:[%s8838_s23 + $0x758] sm:$0xff]  }
 0x1bb   : > { %v9691_v24 = vmax.f32 %v1489_v25, %v2803_v47  ;;  %v1490_v12 = vmax.f32 %v1282_v31, 0.0  ;;  %v2804_v10 = vmax.f32 %v2596_v41, 0.0  ;;  %8334 = vmatprep.mubr.msk.bf16.mxu0 %vm647_vm1, %v8739_v50  ;;  %8468 = vmatprep.mubr.msk.bf16.mxu1 %vm647_vm1, %v8740_v27  ;;  %v8741_v31 = vld [vmem:[%s8838_s23 + $0x558] sm:$0xff]  }
 0x1bc   : > { %10607 = vst [vmem:[#allocation62_spill] sm:$0xff] %v9687_v33  ;;  %v9695_v30 = vmax.f32 %v1492_v0, %v2806_v8  ;;  %v8743_v8 = vld [vmem:[%s8838_s23 + $0x560] sm:$0xff]  }
 0x1bd   : > { %10608 = vst [vmem:[#allocation63_spill] sm:$0xff] %v9691_v24  ;;  %v9697_v34 = vmax.f32 %v1490_v12, %v2804_v10  ;;  %v8088_v38 = vpop.f32.mrb[104].mxu0  ;;  %v8222_v7 = vpop.f32.mrb[104].mxu1 }
 0x1be   : > { %10609 = vst [vmem:[#allocation64_spill] sm:$0xff] %v9695_v30  ;;  %v1303_v39 = vadd.f32 %v9385_v21, %v8088_v38  ;;  %v2617_v28 = vadd.f32 %v9385_v21, %v8222_v7  ;;  %v1294_v47 = vpop.f32.mrb[105].mxu0  ;;  %v2608_v37 = vpop.f32.mrb[105].mxu1 }
 0x1bf   : > { %10610 = vst [vmem:[#allocation65_spill] sm:$0xff] %v9697_v34  ;;  %v1295_v50 = vadd.f32 %v9385_v21, %v1294_v47  ;;  %v2609_v19 = vadd.f32 %v9385_v21, %v2608_v37  ;;  %v8089_v27 = vpop.f32.mrb[106].mxu0  ;;  %v8223_v52 = vpop.f32.mrb[106].mxu1 }
 0x1c0   : > { %v1495_v25 = vmax.f32 %v1303_v39, 0.0  ;;  %v2809_v41 = vmax.f32 %v2617_v28, 0.0  ;;  %v1306_v0 = vadd.f32 %v9385_v21, %v8089_v27  ;;  %v2620_v12 = vadd.f32 %v9385_v21, %v8223_v52  ;;  %v1297_v10 = vpop.f32.mrb[107].mxu0  ;;  %v2611_v38 = vpop.f32.mrb[107].mxu1 }
 0x1c1   : > { %v1493_v7 = vmax.f32 %v1295_v50, 0.0  ;;  %v2807_v34 = vmax.f32 %v2609_v19, 0.0  ;;  %v1298_v30 = vadd.f32 %v9385_v21, %v1297_v10  ;;  %v2612_v47 = vadd.f32 %v9385_v21, %v2611_v38  ;;  %v8748_v38 = vld [vmem:[%s8838_s23 + $0x770] sm:$0xff]  }
 0x1c2   : > { %v9711_v24 = vmax.f32 %v1495_v25, %v2809_v41  ;;  %v1496_v37 = vmax.f32 %v1306_v0, 0.0  ;;  %v2810_v33 = vmax.f32 %v2620_v12, 0.0  ;;  %8335 = vmatmul.mubr.msk.bf16.gmra.mrb[212].mxu0 %vm647_vm1, %v8741_v31  ;;  %8469 = vmatmul.mubr.msk.bf16.gmra.mrb[212].mxu1 %vm647_vm1, %v8742_v26  ;;  %v8746_v0 = vld [vmem:[%s8838_s23 + $0x768] sm:$0xff]  }
 0x1c3   : > { %v9715_v39 = vmax.f32 %v1493_v7, %v2807_v34  ;;  %v1494_v28 = vmax.f32 %v1298_v30, 0.0  ;;  %v2808_v27 = vmax.f32 %v2612_v47, 0.0  ;;  %8338 = vmatprep.mubr.msk.bf16.mxu0 %vm647_vm1, %v8743_v8  ;;  %8472 = vmatprep.mubr.msk.bf16.mxu1 %vm647_vm1, %v8744_v3  ;;  %v8745_v30 = vld [vmem:[%s8838_s23 + $0x568] sm:$0xff]  }
 0x1c4   : > { %10611 = vst [vmem:[#allocation66_spill] sm:$0xff] %v9711_v24  ;;  %v9719_v50 = vmax.f32 %v1496_v37, %v2810_v33  ;;  %v8747_v33 = vld [vmem:[%s8838_s23 + $0x570] sm:$0xff]   ;;  %v9734_v37 = vld [vmem:[%s10545_s2] ss:$0 sm:$0xff] }
 0x1c5   : > { %10612 = vst [vmem:[#allocation67_spill] sm:$0xff] %v9715_v39  ;;  %v9721_v19 = vmax.f32 %v1494_v28, %v2808_v27  ;;  %v8092_v52 = vpop.f32.mrb[108].mxu0  ;;  %v8226_v25 = vpop.f32.mrb[108].mxu1 }
 0x1c6   : > { %10613 = vst [vmem:[#allocation68_spill] sm:$0xff] %v9719_v50  ;;  %v1319_v31 = vadd.f32 %v9385_v21, %v8092_v52  ;;  %v2633_v26 = vadd.f32 %v9385_v21, %v8226_v25  ;;  %v1310_v34 = vpop.f32.mrb[109].mxu0  ;;  %v2624_v41 = vpop.f32.mrb[109].mxu1 }
 0x1c7   : > { %10614 = vst [vmem:[#allocation69_spill] sm:$0xff] %v9721_v19  ;;  %v1311_v8 = vadd.f32 %v9385_v21, %v1310_v34  ;;  %v2625_v12 = vadd.f32 %v9385_v21, %v2624_v41  ;;  %v8093_v3 = vpop.f32.mrb[110].mxu0  ;;  %v8227_v10 = vpop.f32.mrb[110].mxu1 }
 0x1c8   : > { %v1499_v7 = vmax.f32 %v1319_v31, 0.0  ;;  %v2813_v47 = vmax.f32 %v2633_v26, 0.0  ;;  %v1322_v28 = vadd.f32 %v9734_v37, %v8093_v3  ;;  %v2636_v27 = vadd.f32 %v9734_v37, %v8227_v10  ;;  %v1313_v52 = vpop.f32.mrb[111].mxu0  ;;  %v2627_v25 = vpop.f32.mrb[111].mxu1 }
 0x1c9   : > { %v1497_v34 = vmax.f32 %v1311_v8, 0.0  ;;  %v2811_v19 = vmax.f32 %v2625_v12, 0.0  ;;  %v1314_v21 = vadd.f32 %v9734_v37, %v1313_v52  ;;  %v2628_v41 = vadd.f32 %v9734_v37, %v2627_v25  ;;  %v8750_v52 = vld [vmem:[%s8838_s23 + $0x778] sm:$0xff]  }
 0x1ca   : > { %v9740_v50 = vmax.f32 %v1499_v7, %v2813_v47  ;;  %v1500_v31 = vmax.f32 %v1322_v28, 0.0  ;;  %v2814_v26 = vmax.f32 %v2636_v27, 0.0  ;;  %8339 = vmatmul.mubr.msk.bf16.gmra.mrb[216].mxu0 %vm647_vm1, %v8745_v30  ;;  %8473 = vmatmul.mubr.msk.bf16.gmra.mrb[216].mxu1 %vm647_vm1, %v8746_v0  ;;  %v8749_v27 = vld [vmem:[%s8838_s23 + $0x578] sm:$0xff]  }
 0x1cb   : > { %v9744_v3 = vmax.f32 %v1497_v34, %v2811_v19  ;;  %v1498_v10 = vmax.f32 %v1314_v21, 0.0  ;;  %v2812_v39 = vmax.f32 %v2628_v41, 0.0  ;;  %8342 = vmatprep.mubr.msk.bf16.mxu0 %vm647_vm1, %v8747_v33  ;;  %8476 = vmatprep.mubr.msk.bf16.mxu1 %vm647_vm1, %v8748_v38  ;;  %v8751_v21 = vld [vmem:[%s8838_s23 + $0x580] sm:$0xff]  }
 0x1cc   : > { %10615 = vst [vmem:[#allocation70_spill] sm:$0xff] %v9740_v50  ;;  %v9748_v8 = vmax.f32 %v1500_v31, %v2814_v26  ;;  %v8752_v41 = vld [vmem:[%s8838_s23 + $0x780] sm:$0xff]  }
 0x1cd   : > { %10616 = vst [vmem:[#allocation71_spill] sm:$0xff] %v9744_v3  ;;  %v9750_v12 = vmax.f32 %v1498_v10, %v2812_v39  ;;  %v8096_v7 = vpop.f32.mrb[112].mxu0  ;;  %v8230_v47 = vpop.f32.mrb[112].mxu1 }
 0x1ce   : > { %10617 = vst [vmem:[#allocation72_spill] sm:$0xff] %v9748_v8  ;;  %v1335_v30 = vadd.f32 %v9734_v37, %v8096_v7  ;;  %v2649_v0 = vadd.f32 %v9734_v37, %v8230_v47  ;;  %v1326_v19 = vpop.f32.mrb[113].mxu0  ;;  %v2640_v28 = vpop.f32.mrb[113].mxu1 }
 0x1cf   : > { %10618 = vst [vmem:[#allocation73_spill] sm:$0xff] %v9750_v12  ;;  %v1327_v33 = vadd.f32 %v9734_v37, %v1326_v19  ;;  %v2641_v25 = vadd.f32 %v9734_v37, %v2640_v28  ;;  %v8097_v38 = vpop.f32.mrb[114].mxu0  ;;  %v8231_v34 = vpop.f32.mrb[114].mxu1 }
 0x1d0   : > { %v1503_v39 = vmax.f32 %v1335_v30, 0.0  ;;  %v2817_v31 = vmax.f32 %v2649_v0, 0.0  ;;  %v1338_v26 = vadd.f32 %v9734_v37, %v8097_v38  ;;  %v2652_v10 = vadd.f32 %v9734_v37, %v8231_v34  ;;  %v1329_v7 = vpop.f32.mrb[115].mxu0  ;;  %v2643_v47 = vpop.f32.mrb[115].mxu1 }
 0x1d1   : > { %v1501_v12 = vmax.f32 %v1327_v33, 0.0  ;;  %v2815_v8 = vmax.f32 %v2641_v25, 0.0  ;;  %v1330_v3 = vadd.f32 %v9734_v37, %v1329_v7  ;;  %v2644_v19 = vadd.f32 %v9734_v37, %v2643_v47  ;;  %v8756_v7 = vld [vmem:[%s8838_s23 + $0x790] sm:$0xff]  }
 0x1d2   : > { %v9764_v50 = vmax.f32 %v1503_v39, %v2817_v31  ;;  %v1504_v28 = vmax.f32 %v1338_v26, 0.0  ;;  %v2818_v24 = vmax.f32 %v2652_v10, 0.0  ;;  %8343 = vmatmul.mubr.msk.bf16.gmra.mrb[220].mxu0 %vm647_vm1, %v8749_v27  ;;  %8477 = vmatmul.mubr.msk.bf16.gmra.mrb[220].mxu1 %vm647_vm1, %v8750_v52  ;;  %v8754_v31 = vld [vmem:[%s8838_s23 + $0x788] sm:$0xff]  }
 0x1d3   : > { %v9768_v30 = vmax.f32 %v1501_v12, %v2815_v8  ;;  %v1502_v0 = vmax.f32 %v1330_v3, 0.0  ;;  %v2816_v38 = vmax.f32 %v2644_v19, 0.0  ;;  %8346 = vmatprep.mubr.msk.bf16.mxu0 %vm647_vm1, %v8751_v21  ;;  %8480 = vmatprep.mubr.msk.bf16.mxu1 %vm647_vm1, %v8752_v41  ;;  %v8753_v3 = vld [vmem:[%s8838_s23 + $0x588] sm:$0xff]  }
 0x1d4   : > { %10619 = vst [vmem:[#allocation74_spill] sm:$0xff] %v9764_v50  ;;  %v9772_v33 = vmax.f32 %v1504_v28, %v2818_v24  ;;  %v8755_v24 = vld [vmem:[%s8838_s23 + $0x590] sm:$0xff]  }
 0x1d5   : > { %10620 = vst [vmem:[#allocation75_spill] sm:$0xff] %v9768_v30  ;;  %v9774_v25 = vmax.f32 %v1502_v0, %v2816_v38  ;;  %v8100_v34 = vpop.f32.mrb[116].mxu0  ;;  %v8234_v39 = vpop.f32.mrb[116].mxu1 }
 0x1d6   : > { %10621 = vst [vmem:[#allocation76_spill] sm:$0xff] %v9772_v33  ;;  %v1351_v27 = vadd.f32 %v9734_v37, %v8100_v34  ;;  %v2665_v52 = vadd.f32 %v9734_v37, %v8234_v39  ;;  %v1342_v8 = vpop.f32.mrb[117].mxu0  ;;  %v2656_v12 = vpop.f32.mrb[117].mxu1 }
 0x1d7   : > { %10622 = vst [vmem:[#allocation77_spill] sm:$0xff] %v9774_v25  ;;  %v1343_v21 = vadd.f32 %v9734_v37, %v1342_v8  ;;  %v2657_v26 = vadd.f32 %v9734_v37, %v2656_v12  ;;  %v8101_v41 = vpop.f32.mrb[118].mxu0  ;;  %v8235_v10 = vpop.f32.mrb[118].mxu1 }
 0x1d8   : > { %v1507_v47 = vmax.f32 %v1351_v27, 0.0  ;;  %v2821_v19 = vmax.f32 %v2665_v52, 0.0  ;;  %v1354_v28 = vadd.f32 %v9734_v37, %v8101_v41  ;;  %v2668_v0 = vadd.f32 %v9734_v37, %v8235_v10  ;;  %v1345_v38 = vpop.f32.mrb[119].mxu0  ;;  %v2659_v34 = vpop.f32.mrb[119].mxu1 }
 0x1d9   : > { %v1505_v39 = vmax.f32 %v1343_v21, 0.0  ;;  %v2819_v25 = vmax.f32 %v2657_v26, 0.0  ;;  %v1346_v33 = vadd.f32 %v9734_v37, %v1345_v38  ;;  %v2660_v8 = vadd.f32 %v9734_v37, %v2659_v34  ;;  %v8760_v34 = vld [vmem:[%s8838_s23 + $0x7a0] sm:$0xff]  }
 0x1da   : > { %v9788_v30 = vmax.f32 %v1507_v47, %v2821_v19  ;;  %v1508_v12 = vmax.f32 %v1354_v28, 0.0  ;;  %v2822_v50 = vmax.f32 %v2668_v0, 0.0  ;;  %8347 = vmatmul.mubr.msk.bf16.gmra.mrb[224].mxu0 %vm647_vm1, %v8753_v3  ;;  %8481 = vmatmul.mubr.msk.bf16.gmra.mrb[224].mxu1 %vm647_vm1, %v8754_v31  ;;  %v8758_v28 = vld [vmem:[%s8838_s23 + $0x798] sm:$0xff]  }
 0x1db   : > { %v9792_v27 = vmax.f32 %v1505_v39, %v2819_v25  ;;  %v1506_v52 = vmax.f32 %v1346_v33, 0.0  ;;  %v2820_v41 = vmax.f32 %v2660_v8, 0.0  ;;  %8350 = vmatprep.mubr.msk.bf16.mxu0 %vm647_vm1, %v8755_v24  ;;  %8484 = vmatprep.mubr.msk.bf16.mxu1 %vm647_vm1, %v8756_v7  ;;  %v8757_v33 = vld [vmem:[%s8838_s23 + $0x598] sm:$0xff]  }
 0x1dc   : > { %10623 = vst [vmem:[#allocation78_spill] sm:$0xff] %v9788_v30  ;;  %v9796_v21 = vmax.f32 %v1508_v12, %v2822_v50  ;;  %v8759_v50 = vld [vmem:[%s8838_s23 + $0x5a0] sm:$0xff]  }
 0x1dd   : > { %10624 = vst [vmem:[#allocation79_spill] sm:$0xff] %v9792_v27  ;;  %v9798_v26 = vmax.f32 %v1506_v52, %v2820_v41  ;;  %v8104_v10 = vpop.f32.mrb[120].mxu0  ;;  %v8238_v47 = vpop.f32.mrb[120].mxu1 }
 0x1de   : > { %10625 = vst [vmem:[#allocation80_spill] sm:$0xff] %v9796_v21  ;;  %v1367_v3 = vadd.f32 %v9734_v37, %v8104_v10  ;;  %v2681_v31 = vadd.f32 %v9734_v37, %v8238_v47  ;;  %v1358_v25 = vpop.f32.mrb[121].mxu0  ;;  %v2672_v19 = vpop.f32.mrb[121].mxu1 }
 0x1df   : > { %10626 = vst [vmem:[#allocation81_spill] sm:$0xff] %v9798_v26  ;;  %v1359_v24 = vadd.f32 %v9734_v37, %v1358_v25  ;;  %v2673_v0 = vadd.f32 %v9734_v37, %v2672_v19  ;;  %v8105_v7 = vpop.f32.mrb[122].mxu0  ;;  %v8239_v38 = vpop.f32.mrb[122].mxu1 }
 0x1e0   : > { %v1511_v39 = vmax.f32 %v1367_v3, 0.0  ;;  %v2825_v8 = vmax.f32 %v2681_v31, 0.0  ;;  %v1370_v12 = vadd.f32 %v9734_v37, %v8105_v7  ;;  %v2684_v52 = vadd.f32 %v9734_v37, %v8239_v38  ;;  %v1361_v41 = vpop.f32.mrb[123].mxu0  ;;  %v2675_v10 = vpop.f32.mrb[123].mxu1 }
 0x1e1   : > { %v1509_v47 = vmax.f32 %v1359_v24, 0.0  ;;  %v2823_v26 = vmax.f32 %v2673_v0, 0.0  ;;  %v1362_v21 = vadd.f32 %v9734_v37, %v1361_v41  ;;  %v2676_v25 = vadd.f32 %v9734_v37, %v2675_v10  ;;  %v8764_v10 = vld [vmem:[%s8838_s23 + $0x7b0] sm:$0xff]  }
 0x1e2   : > { %v9812_v27 = vmax.f32 %v1511_v39, %v2825_v8  ;;  %v1512_v19 = vmax.f32 %v1370_v12, 0.0  ;;  %v2826_v30 = vmax.f32 %v2684_v52, 0.0  ;;  %8351 = vmatmul.mubr.msk.bf16.gmra.mrb[228].mxu0 %vm647_vm1, %v8757_v33  ;;  %8485 = vmatmul.mubr.msk.bf16.gmra.mrb[228].mxu1 %vm647_vm1, %v8758_v28  ;;  %v8762_v12 = vld [vmem:[%s8838_s23 + $0x7a8] sm:$0xff]  }
 0x1e3   : > { %v9816_v3 = vmax.f32 %v1509_v47, %v2823_v26  ;;  %v1510_v31 = vmax.f32 %v1362_v21, 0.0  ;;  %v2824_v7 = vmax.f32 %v2676_v25, 0.0  ;;  %8354 = vmatprep.mubr.msk.bf16.mxu0 %vm647_vm1, %v8759_v50  ;;  %8488 = vmatprep.mubr.msk.bf16.mxu1 %vm647_vm1, %v8760_v34  ;;  %v8761_v21 = vld [vmem:[%s8838_s23 + $0x5a8] sm:$0xff]  }
 0x1e4   : > { %10627 = vst [vmem:[#allocation82_spill] sm:$0xff] %v9812_v27  ;;  %v9820_v24 = vmax.f32 %v1512_v19, %v2826_v30  ;;  %v8763_v30 = vld [vmem:[%s8838_s23 + $0x5b0] sm:$0xff]  }
 0x1e5   : > { %10628 = vst [vmem:[#allocation83_spill] sm:$0xff] %v9816_v3  ;;  %v9822_v0 = vmax.f32 %v1510_v31, %v2824_v7  ;;  %v8108_v38 = vpop.f32.mrb[124].mxu0  ;;  %v8242_v39 = vpop.f32.mrb[124].mxu1 }
 0x1e6   : > { %10629 = vst [vmem:[#allocation84_spill] sm:$0xff] %v9820_v24  ;;  %v1383_v33 = vadd.f32 %v9734_v37, %v8108_v38  ;;  %v2697_v28 = vadd.f32 %v9734_v37, %v8242_v39  ;;  %v1374_v26 = vpop.f32.mrb[125].mxu0  ;;  %v2688_v8 = vpop.f32.mrb[125].mxu1 }
 0x1e7   : > { %10630 = vst [vmem:[#allocation85_spill] sm:$0xff] %v9822_v0  ;;  %v1375_v50 = vadd.f32 %v9734_v37, %v1374_v26  ;;  %v2689_v52 = vadd.f32 %v9734_v37, %v2688_v8  ;;  %v8109_v34 = vpop.f32.mrb[126].mxu0  ;;  %v8243_v41 = vpop.f32.mrb[126].mxu1 }
 0x1e8   : > { %v1515_v47 = vmax.f32 %v1383_v33, 0.0  ;;  %v2829_v25 = vmax.f32 %v2697_v28, 0.0  ;;  %v1386_v19 = vadd.f32 %v9734_v37, %v8109_v34  ;;  %v2700_v31 = vadd.f32 %v9734_v37, %v8243_v41  ;;  %v1377_v7 = vpop.f32.mrb[127].mxu0  ;;  %v2691_v38 = vpop.f32.mrb[127].mxu1 }
 0x1e9   : > { %v1513_v39 = vmax.f32 %v1375_v50, 0.0  ;;  %v2827_v0 = vmax.f32 %v2689_v52, 0.0  ;;  %v1378_v24 = vadd.f32 %v9734_v37, %v1377_v7  ;;  %v2692_v26 = vadd.f32 %v9734_v37, %v2691_v38  ;;  %v8767_v7 = vld [vmem:[%s8838_s23 + $0x5c0] sm:$0xff]  }
 0x1ea   : > { %v9836_v3 = vmax.f32 %v1515_v47, %v2829_v25  ;;  %v1516_v8 = vmax.f32 %v1386_v19, 0.0  ;;  %v2830_v27 = vmax.f32 %v2700_v31, 0.0  ;;  %8355 = vmatmul.mubr.msk.bf16.gmra.mrb[232].mxu0 %vm647_vm1, %v8761_v21  ;;  %8489 = vmatmul.mubr.msk.bf16.gmra.mrb[232].mxu1 %vm647_vm1, %v8762_v12  ;;  %v8766_v19 = vld [vmem:[%s8838_s23 + $0x7b8] sm:$0xff]   ;;  %v8768_v38 = vld [vmem:[%s8838_s23 + $0x7c0] sm:$0xff]  }
 0x1eb   : > { %v9840_v33 = vmax.f32 %v1513_v39, %v2827_v0  ;;  %v1514_v28 = vmax.f32 %v1378_v24, 0.0  ;;  %v2828_v34 = vmax.f32 %v2692_v26, 0.0  ;;  %8358 = vmatprep.mubr.msk.bf16.mxu0 %vm647_vm1, %v8763_v30  ;;  %8492 = vmatprep.mubr.msk.bf16.mxu1 %vm647_vm1, %v8764_v10  ;;  %v8765_v24 = vld [vmem:[%s8838_s23 + $0x5b8] sm:$0xff]  }
 0x1ec   : > { %v9844_v50 = vmax.f32 %v1516_v8, %v2830_v27 }
 0x1ed   : > { %10631 = vst [vmem:[#allocation86_spill] sm:$0xff] %v9840_v33  ;;  %v9846_v52 = vmax.f32 %v1514_v28, %v2828_v34  ;;  %v8252_v41 = vpop.f32.mrb[128].mxu0  ;;  %v8386_v47 = vpop.f32.mrb[128].mxu1 }
 0x1ee   : > { %10632 = vst [vmem:[#allocation87_spill] sm:$0xff] %v9844_v50  ;;  %v3643_v21 = vadd.f32 %v9734_v37, %v8252_v41  ;;  %v5085_v12 = vadd.f32 %v9734_v37, %v8386_v47  ;;  %v3634_v0 = vpop.f32.mrb[129].mxu0  ;;  %v5076_v25 = vpop.f32.mrb[129].mxu1 }
 0x1ef   : > { %10633 = vst [vmem:[#allocation88_spill] sm:$0xff] %v9846_v52  ;;  %v3635_v30 = vadd.f32 %v9734_v37, %v3634_v0  ;;  %v5077_v31 = vadd.f32 %v9734_v37, %v5076_v25  ;;  %v8253_v10 = vpop.f32.mrb[130].mxu0  ;;  %v8387_v27 = vpop.f32.mrb[130].mxu1 }
 0x1f0   : > { %v4147_v39 = vmax.f32 %v3643_v21, 0.0  ;;  %v5589_v26 = vmax.f32 %v5085_v12, 0.0  ;;  %v3646_v8 = vadd.f32 %v9734_v37, %v8253_v10  ;;  %v5088_v28 = vadd.f32 %v9734_v37, %v8387_v27  ;;  %v3637_v34 = vpop.f32.mrb[131].mxu0  ;;  %v5079_v41 = vpop.f32.mrb[131].mxu1 }
 0x1f1   : > { %v4145_v47 = vmax.f32 %v3635_v30, 0.0  ;;  %v5587_v52 = vmax.f32 %v5077_v31, 0.0  ;;  %v3638_v50 = vadd.f32 %v9734_v37, %v3637_v34  ;;  %v5080_v0 = vadd.f32 %v9734_v37, %v5079_v41 }
 0x1f2   : > { %v4275_v25 = vmax.f32 %v9082_v11, %v4147_v39  ;;  %v4148_v33 = vmax.f32 %v3646_v8, 0.0  ;;  %8359 = vmatmul.mubr.msk.bf16.gmra.mrb[236].mxu0 %vm647_vm1, %v8765_v24  ;;  %8493 = vmatmul.mubr.msk.bf16.gmra.mrb[236].mxu1 %vm647_vm1, %v8766_v19  ;;  %v5590_v10 = vmax.f32 %v5088_v28, 0.0  ;;  %v8770_v8 = vld [vmem:[%s8838_s23 + $0x7c8] sm:$0xff]  }
 0x1f3   : > { %v4273_v21 = vmax.f32 %v9086_v14, %v4145_v47  ;;  %v4146_v12 = vmax.f32 %v3638_v50, 0.0  ;;  %8362 = vmatprep.mubr.msk.bf16.mxu0 %vm647_vm1, %v8767_v7  ;;  %8496 = vmatprep.mubr.msk.bf16.mxu1 %vm647_vm1, %v8768_v38  ;;  %v5588_v50 = vmax.f32 %v5080_v0, 0.0  ;;  %v8771_v0 = vld [vmem:[%s8838_s23 + $0x5d0] sm:$0xff]  }
 0x1f4   : > { %v5717_v30 = vmax.f32 %v4275_v25, %v5589_v26  ;;  %v4276_v31 = vmax.f32 %v9090_v17, %v4148_v33  ;;  %v8769_v26 = vld [vmem:[%s8838_s23 + $0x5c8] sm:$0xff]   ;;  %v8772_v25 = vld [vmem:[%s8838_s23 + $0x7d0] sm:$0xff]  }
 0x1f5   : > { %v5715_v11 = vmax.f32 %v4273_v21, %v5587_v52  ;;  %v4274_v14 = vmax.f32 %v9094_v20, %v4146_v12  ;;  %v8256_v24 = vpop.f32.mrb[132].mxu0  ;;  %v8390_v19 = vpop.f32.mrb[132].mxu1 }
 0x1f6   : > { %v7582_v27 = vpack.c.bf16 %v5717_v30, %v5717_v30  ;;  %v5718_v7 = vmax.f32 %v4276_v31, %v5590_v10  ;;  %v3659_v17 = vadd.f32 %v9734_v37, %v8256_v24  ;;  %v5101_v33 = vadd.f32 %v9734_v37, %v8390_v19  ;;  %v3650_v38 = vpop.f32.mrb[133].mxu0  ;;  %v5092_v39 = vpop.f32.mrb[133].mxu1 }
 0x1f7   : > { %v7580_v52 = vpack.c.bf16 %v5715_v11, %v5715_v11  ;;  %v5716_v28 = vmax.f32 %v4274_v14, %v5588_v50  ;;  %v3651_v20 = vadd.f32 %v9734_v37, %v3650_v38  ;;  %v5093_v34 = vadd.f32 %v9734_v37, %v5092_v39  ;;  %v8257_v41 = vpop.f32.mrb[134].mxu0  ;;  %v8391_v47 = vpop.f32.mrb[134].mxu1 }
 0x1f8   : > { %6358 = vst.msk [vmem:[%s9871_s6 + $0x8] sm:$0xf] %vm6355_vm2, %v7582_v27  ;;  %v7583_v21 = vpack.c.bf16 %v5718_v7, %v5718_v7  ;;  %v4151_v12 = vmax.f32 %v3659_v17, 0.0  ;;  %v5593_v30 = vmax.f32 %v5101_v33, 0.0  ;;  %v3662_v31 = vadd.f32 %v9734_v37, %v8257_v41  ;;  %v3653_v10 = vpop.f32.mrb[135].mxu0  ;;  %v5095_v11 = vpop.f32.mrb[135].mxu1 }
 0x1f9   : > { %6356 = vst.msk [vmem:[%s9871_s6] sm:$0xf] %vm6355_vm2, %v7580_v52  ;;  %v7581_v14 = vpack.c.bf16 %v5716_v28, %v5716_v28  ;;  %v4149_v50 = vmax.f32 %v3651_v20, 0.0  ;;  %v5591_v24 = vmax.f32 %v5093_v34, 0.0  ;;  %v5104_v19 = vadd.f32 %v9734_v37, %v8391_v47 }
 0x1fa   : > { %6359 = vst.msk [vmem:[%s9871_s6 + $0xc] sm:$0xf] %vm6355_vm2, %v7583_v21  ;;  %v4279_v38 = vmax.f32 %v9106_v43, %v4151_v12  ;;  %v4152_v27 = vmax.f32 %v3662_v31, 0.0  ;;  %v3654_v7 = vadd.f32 %v9734_v37, %v3653_v10  ;;  %v5096_v17 = vadd.f32 %v9734_v37, %v5095_v11  ;;  %8363 = vmatmul.mubr.msk.bf16.gmra.mrb[240].mxu0 %vm647_vm1, %v8769_v26  ;;  %v8773_v12 = vld [vmem:[%s8838_s23 + $0x5d8] sm:$0xff]  }
 0x1fb   : > { %8497 = vmatmul.mubr.msk.bf16.gmra.mrb[240].mxu1 %vm647_vm1, %v8770_v8  ;;  %6357 = vst.msk [vmem:[%s9871_s6 + $0x4] sm:$0xf] %vm6355_vm2, %v7581_v14  ;;  %v4277_v33 = vmax.f32 %v9110_v46, %v4149_v50  ;;  %8366 = vmatprep.mubr.msk.bf16.mxu0 %vm647_vm1, %v8771_v0  ;;  %v5594_v52 = vmax.f32 %v5104_v19, 0.0  ;;  %v8776_v19 = vld [vmem:[%s8838_s23 + $0x7e0] sm:$0xff]  }
 0x1fc   : > { %8500 = vmatprep.mubr.msk.bf16.mxu1 %vm647_vm1, %v8772_v25  ;;  %v5721_v43 = vmax.f32 %v4279_v38, %v5593_v30  ;;  %v4280_v39 = vmax.f32 %v9114_v49, %v4152_v27  ;;  %v4150_v28 = vmax.f32 %v3654_v7, 0.0  ;;  %v5592_v34 = vmax.f32 %v5096_v17, 0.0  ;;  %v8774_v30 = vld [vmem:[%s8838_s23 + $0x7d8] sm:$0xff]  }
 0x1fd   : > { %v5719_v20 = vmax.f32 %v4277_v33, %v5591_v24  ;;  %v8260_v26 = vpop.f32.mrb[136].mxu0  ;;  %v8394_v8 = vpop.f32.mrb[136].mxu1  ;;  %v8775_v24 = vld [vmem:[%s8838_s23 + $0x5e0] sm:$0xff]  }
 0x1fe   : > { %v7586_v41 = vpack.c.bf16 %v5721_v43, %v5721_v43  ;;  %v5722_v46 = vmax.f32 %v4280_v39, %v5594_v52  ;;  %v4278_v47 = vmax.f32 %v9116_v51, %v4150_v28  ;;  %v3675_v0 = vadd.f32 %v9734_v37, %v8260_v26  ;;  %v3666_v25 = vpop.f32.mrb[137].mxu0  ;;  %v5108_v21 = vpop.f32.mrb[137].mxu1 }
 0x1ff   : > { %v7584_v49 = vpack.c.bf16 %v5719_v20, %v5719_v20  ;;  %v5117_v31 = vadd.f32 %v9734_v37, %v8394_v8  ;;  %v3667_v10 = vadd.f32 %v9734_v37, %v3666_v25  ;;  %v5109_v11 = vadd.f32 %v9734_v37, %v5108_v21  ;;  %v8261_v14 = vpop.f32.mrb[138].mxu0  ;;  %v8395_v50 = vpop.f32.mrb[138].mxu1 }
 0x200   : > { %6362 = vst.msk [vmem:[%s9871_s6 + $0x18] sm:$0xf] %vm6355_vm2, %v7586_v41  ;;  %v7587_v51 = vpack.c.bf16 %v5722_v46, %v5722_v46  ;;  %v5720_v38 = vmax.f32 %v4278_v47, %v5592_v34  ;;  %v4155_v27 = vmax.f32 %v3675_v0, 0.0  ;;  %v3678_v7 = vadd.f32 %v9734_v37, %v8261_v14  ;;  %v3669_v17 = vpop.f32.mrb[139].mxu0  ;;  %v5111_v33 = vpop.f32.mrb[139].mxu1 }
 0x201   : > { %6360 = vst.msk [vmem:[%s9871_s6 + $0x10] sm:$0xf] %vm6355_vm2, %v7584_v49  ;;  %v5597_v43 = vmax.f32 %v5117_v31, 0.0  ;;  %v4153_v39 = vmax.f32 %v3667_v10, 0.0  ;;  %v5595_v52 = vmax.f32 %v5109_v11, 0.0  ;;  %v5120_v28 = vadd.f32 %v9734_v37, %v8395_v50 }
 0x202   : > { %6363 = vst.msk [vmem:[%s9871_s6 + $0x1c] sm:$0xf] %vm6355_vm2, %v7587_v51  ;;  %v7585_v20 = vpack.c.bf16 %v5720_v38, %v5720_v38  ;;  %v4283_v26 = vmax.f32 %v9130_v13, %v4155_v27  ;;  %v4156_v8 = vmax.f32 %v3678_v7, 0.0  ;;  %v3670_v34 = vadd.f32 %v9734_v37, %v3669_v17  ;;  %8367 = vmatmul.mubr.msk.bf16.gmra.mrb[244].mxu0 %vm647_vm1, %v8773_v12 }
 0x203   : > { %8501 = vmatmul.mubr.msk.bf16.gmra.mrb[244].mxu1 %vm647_vm1, %v8774_v30  ;;  %v4281_v41 = vmax.f32 %v9134_v18, %v4153_v39  ;;  %v5112_v46 = vadd.f32 %v9734_v37, %v5111_v33  ;;  %8370 = vmatprep.mubr.msk.bf16.mxu0 %vm647_vm1, %v8775_v24  ;;  %v5598_v0 = vmax.f32 %v5120_v28, 0.0  ;;  %v8777_v24 = vld [vmem:[%s8838_s23 + $0x5e8] sm:$0xff]   ;;  %v8779_v33 = vld [vmem:[%s8838_s23 + $0x5f0] sm:$0xff]  }
 0x204   : > { %8504 = vmatprep.mubr.msk.bf16.mxu1 %vm647_vm1, %v8776_v19  ;;  %6361 = vst.msk [vmem:[%s9871_s6 + $0x14] sm:$0xf] %vm6355_vm2, %v7585_v20  ;;  %v5725_v13 = vmax.f32 %v4283_v26, %v5597_v43  ;;  %v4284_v47 = vmax.f32 %v9138_v22, %v4156_v8  ;;  %v4154_v25 = vmax.f32 %v3670_v34, 0.0  ;;  %v8778_v19 = vld [vmem:[%s8838_s23 + $0x7e8] sm:$0xff]   ;;  %v8780_v43 = vld [vmem:[%s8838_s23 + $0x7f0] sm:$0xff]  }
 0x205   : > { %v5723_v21 = vmax.f32 %v4281_v41, %v5595_v52  ;;  %v5596_v12 = vmax.f32 %v5112_v46, 0.0  ;;  %v8264_v30 = vpop.f32.mrb[140].mxu0  ;;  %v8398_v18 = vpop.f32.mrb[140].mxu1 }
 0x206   : > { %v7590_v49 = vpack.c.bf16 %v5725_v13, %v5725_v13  ;;  %v5726_v31 = vmax.f32 %v4284_v47, %v5598_v0  ;;  %v4282_v10 = vmax.f32 %v9140_v23, %v4154_v25  ;;  %v3691_v11 = vadd.f32 %v9734_v37, %v8264_v30  ;;  %v3682_v14 = vpop.f32.mrb[141].mxu0  ;;  %v5124_v50 = vpop.f32.mrb[141].mxu1 }
 0x207   : > { %v7588_v22 = vpack.c.bf16 %v5723_v21, %v5723_v21  ;;  %v5133_v51 = vadd.f32 %v9734_v37, %v8398_v18  ;;  %v3683_v38 = vadd.f32 %v9734_v37, %v3682_v14  ;;  %v5125_v27 = vadd.f32 %v9734_v37, %v5124_v50  ;;  %v8265_v7 = vpop.f32.mrb[142].mxu0  ;;  %v8399_v17 = vpop.f32.mrb[142].mxu1 }
 0x208   : > { %6366 = vst.msk [vmem:[%s9871_s6 + $0x28] sm:$0xf] %vm6355_vm2, %v7590_v49  ;;  %v7591_v23 = vpack.c.bf16 %v5726_v31, %v5726_v31  ;;  %v5724_v39 = vmax.f32 %v4282_v10, %v5596_v12  ;;  %v4159_v52 = vmax.f32 %v3691_v11, 0.0  ;;  %v3694_v28 = vadd.f32 %v9734_v37, %v8265_v7  ;;  %v3685_v20 = vpop.f32.mrb[143].mxu0  ;;  %v5127_v26 = vpop.f32.mrb[143].mxu1 }
 0x209   : > { %6364 = vst.msk [vmem:[%s9871_s6 + $0x20] sm:$0xf] %vm6355_vm2, %v7588_v22  ;;  %v5601_v8 = vmax.f32 %v5133_v51, 0.0  ;;  %v4157_v34 = vmax.f32 %v3683_v38, 0.0  ;;  %v5599_v41 = vmax.f32 %v5125_v27, 0.0  ;;  %v5136_v46 = vadd.f32 %v9734_v37, %v8399_v17  ;;  %v8781_v38 = vld [vmem:[%s8838_s23 + $0x5f8] sm:$0xff]  }
 0x20a   : > { %6367 = vst.msk [vmem:[%s9871_s6 + $0x2c] sm:$0xf] %vm6355_vm2, %v7591_v23  ;;  %v7589_v13 = vpack.c.bf16 %v5724_v39, %v5724_v39  ;;  %v4287_v47 = vmax.f32 %v9154_v53, %v4159_v52  ;;  %v4160_v0 = vmax.f32 %v3694_v28, 0.0  ;;  %v3686_v25 = vadd.f32 %v9734_v37, %v3685_v20  ;;  %8371 = vmatmul.mubr.msk.bf16.gmra.mrb[248].mxu0 %vm647_vm1, %v8777_v24  ;;  %v8782_v27 = vld [vmem:[%s8838_s23 + $0x7f8] sm:$0xff]  }
 0x20b   : > { %8505 = vmatmul.mubr.msk.bf16.gmra.mrb[248].mxu1 %vm647_vm1, %v8778_v19  ;;  %v4285_v21 = vmax.f32 %v9158_v56, %v4157_v34  ;;  %v5128_v12 = vadd.f32 %v9734_v37, %v5127_v26  ;;  %8374 = vmatprep.mubr.msk.bf16.mxu0 %vm647_vm1, %v8779_v33  ;;  %v5602_v18 = vmax.f32 %v5136_v46, 0.0 }
 0x20c   : > { %8508 = vmatprep.mubr.msk.bf16.mxu1 %vm647_vm1, %v8780_v43  ;;  %6365 = vst.msk [vmem:[%s9871_s6 + $0x24] sm:$0xf] %vm6355_vm2, %v7589_v13  ;;  %v5729_v53 = vmax.f32 %v4287_v47, %v5601_v8  ;;  %v4288_v30 = vmax.f32 %v9162_v59, %v4160_v0  ;;  %v4158_v49 = vmax.f32 %v3686_v25, 0.0 }
 0x20d   : > { %v5727_v31 = vmax.f32 %v4285_v21, %v5599_v41  ;;  %v5600_v10 = vmax.f32 %v5128_v12, 0.0  ;;  %v8268_v11 = vpop.f32.mrb[144].mxu0  ;;  %v8402_v56 = vpop.f32.mrb[144].mxu1 }
 0x20e   : > { %v7594_v14 = vpack.c.bf16 %v5729_v53, %v5729_v53  ;;  %v5730_v50 = vmax.f32 %v4288_v30, %v5602_v18  ;;  %v4286_v24 = vmax.f32 %v9164_v60, %v4158_v49  ;;  %v3707_v19 = vadd.f32 %v9734_v37, %v8268_v11  ;;  %v3698_v22 = vpop.f32.mrb[145].mxu0  ;;  %v5140_v51 = vpop.f32.mrb[145].mxu1 }
 0x20f   : > { %v7592_v7 = vpack.c.bf16 %v5727_v31, %v5727_v31  ;;  %v5149_v59 = vadd.f32 %v9734_v37, %v8402_v56  ;;  %v3699_v17 = vadd.f32 %v9734_v37, %v3698_v22  ;;  %v5141_v33 = vadd.f32 %v9734_v37, %v5140_v51  ;;  %v8269_v43 = vpop.f32.mrb[146].mxu0  ;;  %v8403_v23 = vpop.f32.mrb[146].mxu1 }
 0x210   : > { %6370 = vst.msk [vmem:[%s9871_s6 + $0x38] sm:$0xf] %vm6355_vm2, %v7594_v14  ;;  %v7595_v60 = vpack.c.bf16 %v5730_v50, %v5730_v50  ;;  %v5728_v39 = vmax.f32 %v4286_v24, %v5600_v10  ;;  %v4163_v52 = vmax.f32 %v3707_v19, 0.0  ;;  %v3710_v28 = vadd.f32 %v9734_v37, %v8269_v43  ;;  %v3701_v20 = vpop.f32.mrb[147].mxu0  ;;  %v5143_v26 = vpop.f32.mrb[147].mxu1 }
 0x211   : > { %6368 = vst.msk [vmem:[%s9871_s6 + $0x30] sm:$0xf] %vm6355_vm2, %v7592_v7  ;;  %v5605_v8 = vmax.f32 %v5149_v59, 0.0  ;;  %v4161_v34 = vmax.f32 %v3699_v17, 0.0  ;;  %v5603_v41 = vmax.f32 %v5141_v33, 0.0  ;;  %v5152_v46 = vadd.f32 %v9734_v37, %v8403_v23 }
 0x212   : > { %6371 = vst.msk [vmem:[%s9871_s6 + $0x3c] sm:$0xf] %vm6355_vm2, %v7595_v60  ;;  %v7593_v13 = vpack.c.bf16 %v5728_v39, %v5728_v39  ;;  %v4291_v47 = vmax.f32 %v9178_v29, %v4163_v52  ;;  %v4164_v0 = vmax.f32 %v3710_v28, 0.0  ;;  %v3702_v25 = vadd.f32 %v9734_v37, %v3701_v20  ;;  %8375 = vmatmul.mubr.msk.bf16.gmra.mrb[252].mxu0 %vm647_vm1, %v8781_v38 }
 0x213   : > { %8509 = vmatmul.mubr.msk.bf16.gmra.mrb[252].mxu1 %vm647_vm1, %v8782_v27  ;;  %v4289_v21 = vmax.f32 %v9182_v32, %v4161_v34  ;;  %v5144_v12 = vadd.f32 %v9734_v37, %v5143_v26  ;;  %v5606_v18 = vmax.f32 %v5152_v46, 0.0 }
 0x214   : > { %6369 = vst.msk [vmem:[%s9871_s6 + $0x34] sm:$0xf] %vm6355_vm2, %v7593_v13  ;;  %v5733_v53 = vmax.f32 %v4291_v47, %v5605_v8  ;;  %v4292_v30 = vmax.f32 %v9186_v35, %v4164_v0  ;;  %v4162_v49 = vmax.f32 %v3702_v25, 0.0 }
 0x215   : > { %v5731_v31 = vmax.f32 %v4289_v21, %v5603_v41  ;;  %v5604_v29 = vmax.f32 %v5144_v12, 0.0  ;;  %v8272_v10 = vpop.f32.mrb[148].mxu0  ;;  %v8406_v11 = vpop.f32.mrb[148].mxu1 }
 0x216   : > { %v7598_v56 = vpack.c.bf16 %v5733_v53, %v5733_v53  ;;  %v5734_v14 = vmax.f32 %v4292_v30, %v5606_v18  ;;  %v4290_v50 = vmax.f32 %v9188_v36, %v4162_v49  ;;  %v3723_v32 = vadd.f32 %v9734_v37, %v8272_v10  ;;  %v3714_v24 = vpop.f32.mrb[149].mxu0  ;;  %v5156_v19 = vpop.f32.mrb[149].mxu1 }
 0x217   : > { %v7596_v22 = vpack.c.bf16 %v5731_v31, %v5731_v31  ;;  %v5165_v51 = vadd.f32 %v9734_v37, %v8406_v11  ;;  %v3715_v35 = vadd.f32 %v9734_v37, %v3714_v24  ;;  %v5157_v38 = vadd.f32 %v9734_v37, %v5156_v19  ;;  %v8273_v27 = vpop.f32.mrb[150].mxu0  ;;  %v8407_v7 = vpop.f32.mrb[150].mxu1 }
 0x218   : > { %6374 = vst.msk [vmem:[%s9871_s6 + $0x48] sm:$0xf] %vm6355_vm2, %v7598_v56  ;;  %v7599_v59 = vpack.c.bf16 %v5734_v14, %v5734_v14  ;;  %v5732_v17 = vmax.f32 %v4290_v50, %v5604_v29  ;;  %v4167_v36 = vmax.f32 %v3723_v32, 0.0  ;;  %v3726_v33 = vadd.f32 %v9734_v37, %v8273_v27  ;;  %v3717_v43 = vpop.f32.mrb[151].mxu0  ;;  %v5159_v23 = vpop.f32.mrb[151].mxu1 }
 0x219   : > { %6372 = vst.msk [vmem:[%s9871_s6 + $0x40] sm:$0xf] %vm6355_vm2, %v7596_v22  ;;  %v5609_v60 = vmax.f32 %v5165_v51, 0.0  ;;  %v4165_v39 = vmax.f32 %v3715_v35, 0.0  ;;  %v5607_v52 = vmax.f32 %v5157_v38, 0.0  ;;  %v5168_v28 = vadd.f32 %v9734_v37, %v8407_v7 }
 0x21a   : > { %6375 = vst.msk [vmem:[%s9871_s6 + $0x4c] sm:$0xf] %vm6355_vm2, %v7599_v59  ;;  %v7597_v20 = vpack.c.bf16 %v5732_v17, %v5732_v17  ;;  %v4295_v26 = vmax.f32 %v9202_v6, %v4167_v36  ;;  %v4168_v8 = vmax.f32 %v3726_v33, 0.0  ;;  %v3718_v34 = vadd.f32 %v9734_v37, %v3717_v43 }
 0x21b   : > { %v4293_v41 = vmax.f32 %v9206_v9, %v4165_v39  ;;  %v5160_v46 = vadd.f32 %v9734_v37, %v5159_v23  ;;  %v5610_v0 = vmax.f32 %v5168_v28, 0.0 }
 0x21c   : > { %6373 = vst.msk [vmem:[%s9871_s6 + $0x44] sm:$0xf] %vm6355_vm2, %v7597_v20  ;;  %v5737_v13 = vmax.f32 %v4295_v26, %v5609_v60  ;;  %v4296_v47 = vmax.f32 %v9210_v15, %v4168_v8  ;;  %v4166_v25 = vmax.f32 %v3718_v34, 0.0 }
 0x21d   : > { %v5735_v21 = vmax.f32 %v4293_v41, %v5607_v52  ;;  %v5608_v12 = vmax.f32 %v5160_v46, 0.0  ;;  %v8276_v53 = vpop.f32.mrb[152].mxu0  ;;  %v8410_v30 = vpop.f32.mrb[152].mxu1 }
 0x21e   : > { %v7602_v6 = vpack.c.bf16 %v5737_v13, %v5737_v13  ;;  %v5738_v18 = vmax.f32 %v4296_v47, %v5610_v0  ;;  %v4294_v49 = vmax.f32 %v9212_v16, %v4166_v25  ;;  %v3739_v9 = vadd.f32 %v9734_v37, %v8276_v53  ;;  %v3730_v31 = vpop.f32.mrb[153].mxu0  ;;  %v5172_v29 = vpop.f32.mrb[153].mxu1 }
 0x21f   : > { %v7600_v10 = vpack.c.bf16 %v5735_v21, %v5735_v21  ;;  %v5181_v11 = vadd.f32 %v9734_v37, %v8410_v30  ;;  %v3731_v15 = vadd.f32 %v9734_v37, %v3730_v31  ;;  %v5173_v56 = vadd.f32 %v9734_v37, %v5172_v29  ;;  %v8277_v14 = vpop.f32.mrb[154].mxu0  ;;  %v8411_v50 = vpop.f32.mrb[154].mxu1 }
 0x220   : > { %6378 = vst.msk [vmem:[%s9871_s6 + $0x58] sm:$0xf] %vm6355_vm2, %v7602_v6  ;;  %v7603_v32 = vpack.c.bf16 %v5738_v18, %v5738_v18  ;;  %v5736_v24 = vmax.f32 %v4294_v49, %v5608_v12  ;;  %v4171_v16 = vmax.f32 %v3739_v9, 0.0  ;;  %v3742_v19 = vadd.f32 %v9734_v37, %v8277_v14  ;;  %v3733_v22 = vpop.f32.mrb[155].mxu0  ;;  %v5175_v51 = vpop.f32.mrb[155].mxu1 }
 0x221   : > { %6376 = vst.msk [vmem:[%s9871_s6 + $0x50] sm:$0xf] %vm6355_vm2, %v7600_v10  ;;  %v5613_v35 = vmax.f32 %v5181_v11, 0.0  ;;  %v4169_v38 = vmax.f32 %v3731_v15, 0.0  ;;  %v5611_v27 = vmax.f32 %v5173_v56, 0.0  ;;  %v5184_v7 = vadd.f32 %v9734_v37, %v8411_v50 }
 0x222   : > { %6379 = vst.msk [vmem:[%s9871_s6 + $0x5c] sm:$0xf] %vm6355_vm2, %v7603_v32  ;;  %v7601_v59 = vpack.c.bf16 %v5736_v24, %v5736_v24  ;;  %v4299_v17 = vmax.f32 %v9226_v57, %v4171_v16  ;;  %v4172_v36 = vmax.f32 %v3742_v19, 0.0  ;;  %v3734_v33 = vadd.f32 %v9734_v37, %v3733_v22 }
 0x223   : > { %v4297_v43 = vmax.f32 %v9230_v62, %v4169_v38  ;;  %v5176_v23 = vadd.f32 %v9734_v37, %v5175_v51  ;;  %v5614_v52 = vmax.f32 %v5184_v7, 0.0 }
 0x224   : > { %6377 = vst.msk [vmem:[%s9871_s6 + $0x54] sm:$0xf] %vm6355_vm2, %v7601_v59  ;;  %v5741_v60 = vmax.f32 %v4299_v17, %v5613_v35  ;;  %v4300_v39 = vmax.f32 %v9234_v1, %v4172_v36  ;;  %v4170_v28 = vmax.f32 %v3734_v33, 0.0 }
 0x225   : > { %v5739_v20 = vmax.f32 %v4297_v43, %v5611_v27  ;;  %v5612_v26 = vmax.f32 %v5176_v23, 0.0  ;;  %v8280_v8 = vpop.f32.mrb[156].mxu0  ;;  %v8414_v34 = vpop.f32.mrb[156].mxu1 }
 0x226   : > { %v7606_v57 = vpack.c.bf16 %v5741_v60, %v5741_v60  ;;  %v5742_v41 = vmax.f32 %v4300_v39, %v5614_v52  ;;  %v4298_v46 = vmax.f32 %v9236_v2, %v4170_v28  ;;  %v3755_v62 = vadd.f32 %v9734_v37, %v8280_v8  ;;  %v3746_v13 = vpop.f32.mrb[157].mxu0  ;;  %v5188_v47 = vpop.f32.mrb[157].mxu1 }
 0x227   : > { %v7604_v0 = vpack.c.bf16 %v5739_v20, %v5739_v20  ;;  %v5197_v25 = vadd.f32 %v9734_v37, %v8414_v34  ;;  %v3747_v1 = vadd.f32 %v9734_v37, %v3746_v13  ;;  %v5189_v21 = vadd.f32 %v9734_v37, %v5188_v47  ;;  %v8281_v12 = vpop.f32.mrb[158].mxu0  ;;  %v8415_v53 = vpop.f32.mrb[158].mxu1 }
 0x228   : > { %6382 = vst.msk [vmem:[%s9871_s6 + $0x68] sm:$0xf] %vm6355_vm2, %v7606_v57  ;;  %v7607_v30 = vpack.c.bf16 %v5742_v41, %v5742_v41  ;;  %v5740_v6 = vmax.f32 %v4298_v46, %v5612_v26  ;;  %v4175_v2 = vmax.f32 %v3755_v62, 0.0  ;;  %v3758_v18 = vadd.f32 %v9734_v37, %v8281_v12  ;;  %v3749_v49 = vpop.f32.mrb[159].mxu0  ;;  %v5191_v9 = vpop.f32.mrb[159].mxu1 }
 0x229   : > { %6380 = vst.msk [vmem:[%s9871_s6 + $0x60] sm:$0xf] %vm6355_vm2, %v7604_v0  ;;  %v5617_v31 = vmax.f32 %v5197_v25, 0.0  ;;  %v4173_v29 = vmax.f32 %v3747_v1, 0.0  ;;  %v5615_v10 = vmax.f32 %v5189_v21, 0.0  ;;  %v5200_v11 = vadd.f32 %v9734_v37, %v8415_v53 }
 0x22a   : > { %6383 = vst.msk [vmem:[%s9871_s6 + $0x6c] sm:$0xf] %vm6355_vm2, %v7607_v30  ;;  %v7605_v15 = vpack.c.bf16 %v5740_v6, %v5740_v6  ;;  %v4303_v56 = vmax.f32 %v9250_v44, %v4175_v2  ;;  %v4176_v14 = vmax.f32 %v3758_v18, 0.0  ;;  %v3750_v50 = vadd.f32 %v9734_v37, %v3749_v49 }
 0x22b   : > { %v4301_v32 = vmax.f32 %v9254_v48, %v4173_v29  ;;  %v5192_v24 = vadd.f32 %v9734_v37, %v5191_v9  ;;  %v5618_v22 = vmax.f32 %v5200_v11, 0.0  ;;  %v10045_v48 = vld [vmem:[%s10545_s2] ss:$0 sm:$0xff] }
 0x22c   : > { %6381 = vst.msk [vmem:[%s9871_s6 + $0x64] sm:$0xf] %vm6355_vm2, %v7605_v15  ;;  %v5745_v16 = vmax.f32 %v4303_v56, %v5617_v31  ;;  %v4304_v19 = vmax.f32 %v9258_v55, %v4176_v14  ;;  %v4174_v51 = vmax.f32 %v3750_v50, 0.0 }
 0x22d   : > { %v5743_v35 = vmax.f32 %v4301_v32, %v5615_v10  ;;  %v5616_v38 = vmax.f32 %v5192_v24, 0.0  ;;  %v8284_v27 = vpop.f32.mrb[160].mxu0  ;;  %v8418_v7 = vpop.f32.mrb[160].mxu1 }
 0x22e   : > { %v7610_v44 = vpack.c.bf16 %v5745_v16, %v5745_v16  ;;  %v5746_v59 = vmax.f32 %v4304_v19, %v5618_v22  ;;  %v4302_v17 = vmax.f32 %v9260_v58, %v4174_v51  ;;  %v3771_v37 = vadd.f32 %v10045_v48, %v8284_v27  ;;  %v3762_v55 = vpop.f32.mrb[161].mxu0  ;;  %v5204_v36 = vpop.f32.mrb[161].mxu1 }
 0x22f   : > { %v7608_v33 = vpack.c.bf16 %v5743_v35, %v5743_v35  ;;  %v5213_v43 = vadd.f32 %v10045_v48, %v8418_v7  ;;  %v3763_v23 = vadd.f32 %v10045_v48, %v3762_v55  ;;  %v5205_v60 = vadd.f32 %v10045_v48, %v5204_v36  ;;  %v8285_v39 = vpop.f32.mrb[162].mxu0  ;;  %v8419_v58 = vpop.f32.mrb[162].mxu1 }
 0x230   : > { %6386 = vst.msk [vmem:[%s9871_s6 + $0x78] sm:$0xf] %vm6355_vm2, %v7610_v44  ;;  %v7611_v52 = vpack.c.bf16 %v5746_v59, %v5746_v59  ;;  %v5744_v28 = vmax.f32 %v4302_v17, %v5616_v38  ;;  %v4179_v20 = vmax.f32 %v3771_v37, 0.0  ;;  %v3774_v26 = vadd.f32 %v10045_v48, %v8285_v39  ;;  %v3765_v8 = vpop.f32.mrb[163].mxu0  ;;  %v5207_v34 = vpop.f32.mrb[163].mxu1 }
 0x231   : > { %6384 = vst.msk [vmem:[%s9871_s6 + $0x70] sm:$0xf] %vm6355_vm2, %v7608_v33  ;;  %v5621_v57 = vmax.f32 %v5213_v43, 0.0  ;;  %v4177_v41 = vmax.f32 %v3763_v23, 0.0  ;;  %v5619_v46 = vmax.f32 %v5205_v60, 0.0  ;;  %v5216_v62 = vadd.f32 %v10045_v48, %v8419_v58 }
 0x232   : > { %6387 = vst.msk [vmem:[%s9871_s6 + $0x7c] sm:$0xf] %vm6355_vm2, %v7611_v52  ;;  %v7609_v13 = vpack.c.bf16 %v5744_v28, %v5744_v28  ;;  %v4307_v47 = vmax.f32 %v9274_v40, %v4179_v20  ;;  %v4180_v0 = vmax.f32 %v3774_v26, 0.0  ;;  %v3766_v25 = vadd.f32 %v10045_v48, %v3765_v8 }
 0x233   : > { %v4305_v1 = vmax.f32 %v9278_v45, %v4177_v41  ;;  %v5208_v21 = vadd.f32 %v10045_v48, %v5207_v34  ;;  %v5622_v30 = vmax.f32 %v5216_v62, 0.0 }
 0x234   : > { %6385 = vst.msk [vmem:[%s9871_s6 + $0x74] sm:$0xf] %vm6355_vm2, %v7609_v13  ;;  %v5749_v12 = vmax.f32 %v4307_v47, %v5621_v57  ;;  %v4308_v53 = vmax.f32 %v9282_v54, %v4180_v0  ;;  %v4178_v6 = vmax.f32 %v3766_v25, 0.0 }
 0x235   : > { %v5747_v2 = vmax.f32 %v4305_v1, %v5619_v46  ;;  %v5620_v18 = vmax.f32 %v5208_v21, 0.0  ;;  %v8288_v49 = vpop.f32.mrb[164].mxu0  ;;  %v8422_v9 = vpop.f32.mrb[164].mxu1 }
 0x236   : > { %v7614_v40 = vpack.c.bf16 %v5749_v12, %v5749_v12  ;;  %v5750_v31 = vmax.f32 %v4308_v53, %v5622_v30  ;;  %v4306_v29 = vmax.f32 %v9284_v61, %v4178_v6  ;;  %v3787_v45 = vadd.f32 %v10045_v48, %v8288_v49  ;;  %v3778_v10 = vpop.f32.mrb[165].mxu0  ;;  %v5220_v11 = vpop.f32.mrb[165].mxu1 }
 0x237   : > { %v7612_v15 = vpack.c.bf16 %v5747_v2, %v5747_v2  ;;  %v5229_v56 = vadd.f32 %v10045_v48, %v8422_v9  ;;  %v3779_v54 = vadd.f32 %v10045_v48, %v3778_v10  ;;  %v5221_v14 = vadd.f32 %v10045_v48, %v5220_v11  ;;  %v8289_v50 = vpop.f32.mrb[166].mxu0  ;;  %v8423_v32 = vpop.f32.mrb[166].mxu1  ;;  %v10636_v11 = vld [vmem:[#allocation4_spill] sm:$0xff] }
 0x238   : > { %6390 = vst.msk [vmem:[%s9871_s6 + $0x88] sm:$0xf] %vm6355_vm2, %v7614_v40  ;;  %v7615_v24 = vpack.c.bf16 %v5750_v31, %v5750_v31  ;;  %v5748_v16 = vmax.f32 %v4306_v29, %v5620_v18  ;;  %v4183_v61 = vmax.f32 %v3787_v45, 0.0  ;;  %v3790_v19 = vadd.f32 %v10045_v48, %v8289_v50  ;;  %v3781_v22 = vpop.f32.mrb[167].mxu0  ;;  %v5223_v51 = vpop.f32.mrb[167].mxu1  ;;  %v10634_v18 = vld [vmem:[#allocation2_spill] sm:$0xff] }
 0x239   : > { %6388 = vst.msk [vmem:[%s9871_s6 + $0x80] sm:$0xf] %vm6355_vm2, %v7612_v15  ;;  %v5625_v35 = vmax.f32 %v5229_v56, 0.0  ;;  %v4181_v38 = vmax.f32 %v3779_v54, 0.0  ;;  %v5623_v27 = vmax.f32 %v5221_v14, 0.0  ;;  %v5232_v7 = vadd.f32 %v10045_v48, %v8423_v32  ;;  %v10635_v31 = vld [vmem:[#allocation3_spill] sm:$0xff] }
 0x23a   : > { %6391 = vst.msk [vmem:[%s9871_s6 + $0x8c] sm:$0xf] %vm6355_vm2, %v7615_v24  ;;  %v7613_v44 = vpack.c.bf16 %v5748_v16, %v5748_v16  ;;  %v4311_v59 = vmax.f32 %v9298_v42, %v4183_v61  ;;  %v4184_v17 = vmax.f32 %v3790_v19, 0.0  ;;  %v3782_v37 = vadd.f32 %v10045_v48, %v3781_v22  ;;  %v10637_v19 = vld [vmem:[#allocation5_spill] sm:$0xff] }
 0x23b   : > { %v4309_v55 = vmax.f32 %v9302_v63, %v4181_v38  ;;  %v5224_v36 = vadd.f32 %v10045_v48, %v5223_v51  ;;  %v5626_v23 = vmax.f32 %v5232_v7, 0.0 }
 0x23c   : > { %6389 = vst.msk [vmem:[%s9871_s6 + $0x84] sm:$0xf] %vm6355_vm2, %v7613_v44  ;;  %v5753_v33 = vmax.f32 %v4311_v59, %v5625_v35  ;;  %v4312_v43 = vmax.f32 %v9306_v4, %v4184_v17  ;;  %v4182_v60 = vmax.f32 %v3782_v37, 0.0 }
 0x23d   : > { %v5751_v39 = vmax.f32 %v4309_v55, %v5623_v27  ;;  %v5624_v58 = vmax.f32 %v5224_v36, 0.0  ;;  %v8292_v52 = vpop.f32.mrb[168].mxu0  ;;  %v8426_v28 = vpop.f32.mrb[168].mxu1 }
 0x23e   : > { %v7618_v42 = vpack.c.bf16 %v5753_v33, %v5753_v33  ;;  %v5754_v20 = vmax.f32 %v4312_v43, %v5626_v23  ;;  %v4310_v26 = vmax.f32 %v9308_v5, %v4182_v60  ;;  %v3803_v63 = vadd.f32 %v10045_v48, %v8292_v52  ;;  %v3794_v8 = vpop.f32.mrb[169].mxu0  ;;  %v5236_v34 = vpop.f32.mrb[169].mxu1 }
 0x23f   : > { %v7616_v57 = vpack.c.bf16 %v5751_v39, %v5751_v39  ;;  %v5245_v41 = vadd.f32 %v10045_v48, %v8426_v28  ;;  %v3795_v4 = vadd.f32 %v10045_v48, %v3794_v8  ;;  %v5237_v46 = vadd.f32 %v10045_v48, %v5236_v34  ;;  %v8293_v62 = vpop.f32.mrb[170].mxu0  ;;  %v8427_v13 = vpop.f32.mrb[170].mxu1  ;;  %v10639_v34 = vld [vmem:[#allocation7_spill] sm:$0xff] }
 0x240   : > { %6394 = vst.msk [vmem:[%s9871_s6 + $0x98] sm:$0xf] %vm6355_vm2, %v7618_v42  ;;  %v7619_v47 = vpack.c.bf16 %v5754_v20, %v5754_v20  ;;  %v5752_v0 = vmax.f32 %v4310_v26, %v5624_v58  ;;  %v4187_v5 = vmax.f32 %v3803_v63, 0.0  ;;  %v3806_v25 = vadd.f32 %v10045_v48, %v8293_v62  ;;  %v3797_v1 = vpop.f32.mrb[171].mxu0  ;;  %v5239_v21 = vpop.f32.mrb[171].mxu1  ;;  %v10638_v20 = vld [vmem:[#allocation6_spill] sm:$0xff] }
 0x241   : > { %6392 = vst.msk [vmem:[%s9871_s6 + $0x90] sm:$0xf] %vm6355_vm2, %v7616_v57  ;;  %v5629_v12 = vmax.f32 %v5245_v41, 0.0  ;;  %v4185_v53 = vmax.f32 %v3795_v4, 0.0  ;;  %v5627_v30 = vmax.f32 %v5237_v46, 0.0  ;;  %v5248_v6 = vadd.f32 %v10045_v48, %v8427_v13  ;;  %v10640_v46 = vld [vmem:[#allocation8_spill] sm:$0xff] }
 0x242   : > { %6395 = vst.msk [vmem:[%s9871_s6 + $0x9c] sm:$0xf] %vm6355_vm2, %v7619_v47  ;;  %v7617_v2 = vpack.c.bf16 %v5752_v0, %v5752_v0  ;;  %v4315_v49 = vmax.f32 %v10634_v18, %v4187_v5  ;;  %v4188_v9 = vmax.f32 %v3806_v25, 0.0  ;;  %v3798_v40 = vadd.f32 %v10045_v48, %v3797_v1 }
 0x243   : > { %v4313_v29 = vmax.f32 %v10635_v31, %v4185_v53  ;;  %v5240_v45 = vadd.f32 %v10045_v48, %v5239_v21  ;;  %v5630_v56 = vmax.f32 %v5248_v6, 0.0  ;;  %v10641_v53 = vld [vmem:[#allocation9_spill] sm:$0xff] }
 0x244   : > { %6393 = vst.msk [vmem:[%s9871_s6 + $0x94] sm:$0xf] %vm6355_vm2, %v7617_v2  ;;  %v5757_v10 = vmax.f32 %v4315_v49, %v5629_v12  ;;  %v4316_v15 = vmax.f32 %v10636_v11, %v4188_v9  ;;  %v4186_v54 = vmax.f32 %v3798_v40, 0.0 }
 0x245   : > { %v5755_v14 = vmax.f32 %v4313_v29, %v5627_v30  ;;  %v5628_v50 = vmax.f32 %v5240_v45, 0.0  ;;  %v8296_v32 = vpop.f32.mrb[172].mxu0  ;;  %v8430_v24 = vpop.f32.mrb[172].mxu1 }
 0x246   : > { %v7622_v16 = vpack.c.bf16 %v5757_v10, %v5757_v10  ;;  %v5758_v61 = vmax.f32 %v4316_v15, %v5630_v56  ;;  %v4314_v22 = vmax.f32 %v10637_v19, %v4186_v54  ;;  %v3819_v51 = vadd.f32 %v10045_v48, %v8296_v32  ;;  %v3810_v35 = vpop.f32.mrb[173].mxu0  ;;  %v5252_v38 = vpop.f32.mrb[173].mxu1  ;;  %v10642_v19 = vld [vmem:[#allocation10_spill] sm:$0xff] }
 0x247   : > { %v7620_v27 = vpack.c.bf16 %v5755_v14, %v5755_v14  ;;  %v5261_v7 = vadd.f32 %v10045_v48, %v8430_v24  ;;  %v3811_v44 = vadd.f32 %v10045_v48, %v3810_v35  ;;  %v5253_v59 = vadd.f32 %v10045_v48, %v5252_v38  ;;  %v8297_v17 = vpop.f32.mrb[174].mxu0  ;;  %v8431_v37 = vpop.f32.mrb[174].mxu1  ;;  %v10643_v38 = vld [vmem:[#allocation11_spill] sm:$0xff] }
 0x248   : > { %6398 = vst.msk [vmem:[%s9871_s6 + $0xa8] sm:$0xf] %vm6355_vm2, %v7622_v16  ;;  %v7623_v55 = vpack.c.bf16 %v5758_v61, %v5758_v61  ;;  %v5756_v36 = vmax.f32 %v4314_v22, %v5628_v50  ;;  %v4191_v33 = vmax.f32 %v3819_v51, 0.0  ;;  %v3822_v43 = vadd.f32 %v10045_v48, %v8297_v17  ;;  %v3813_v23 = vpop.f32.mrb[175].mxu0  ;;  %v5255_v60 = vpop.f32.mrb[175].mxu1 }
 0x249   : > { %6396 = vst.msk [vmem:[%s9871_s6 + $0xa0] sm:$0xf] %vm6355_vm2, %v7620_v27  ;;  %v5633_v39 = vmax.f32 %v5261_v7, 0.0  ;;  %v4189_v58 = vmax.f32 %v3811_v44, 0.0  ;;  %v5631_v52 = vmax.f32 %v5253_v59, 0.0  ;;  %v5264_v28 = vadd.f32 %v10045_v48, %v8431_v37  ;;  %v10644_v59 = vld [vmem:[#allocation12_spill] sm:$0xff] }
 0x24a   : > { %6399 = vst.msk [vmem:[%s9871_s6 + $0xac] sm:$0xf] %vm6355_vm2, %v7623_v55  ;;  %v7621_v42 = vpack.c.bf16 %v5756_v36, %v5756_v36  ;;  %v4319_v26 = vmax.f32 %v10638_v20, %v4191_v33  ;;  %v4192_v63 = vmax.f32 %v3822_v43, 0.0  ;;  %v3814_v8 = vadd.f32 %v10045_v48, %v3813_v23 }
 0x24b   : > { %v4317_v57 = vmax.f32 %v10639_v34, %v4189_v58  ;;  %v5256_v41 = vadd.f32 %v10045_v48, %v5255_v60  ;;  %v5634_v13 = vmax.f32 %v5264_v28, 0.0  ;;  %v10645_v58 = vld [vmem:[#allocation13_spill] sm:$0xff] }
 0x24c   : > { %6397 = vst.msk [vmem:[%s9871_s6 + $0xa4] sm:$0xf] %vm6355_vm2, %v7621_v42  ;;  %v5761_v4 = vmax.f32 %v4319_v26, %v5633_v39  ;;  %v4320_v62 = vmax.f32 %v10640_v46, %v4192_v63  ;;  %v4190_v47 = vmax.f32 %v3814_v8, 0.0 }
 0x24d   : > { %v5759_v0 = vmax.f32 %v4317_v57, %v5631_v52  ;;  %v5632_v5 = vmax.f32 %v5256_v41, 0.0  ;;  %v8300_v25 = vpop.f32.mrb[176].mxu0  ;;  %v8434_v1 = vpop.f32.mrb[176].mxu1 }
 0x24e   : > { %v7626_v21 = vpack.c.bf16 %v5761_v4, %v5761_v4  ;;  %v5762_v12 = vmax.f32 %v4320_v62, %v5634_v13  ;;  %v4318_v30 = vmax.f32 %v10641_v53, %v4190_v47  ;;  %v3835_v6 = vadd.f32 %v10045_v48, %v8300_v25  ;;  %v3826_v2 = vpop.f32.mrb[177].mxu0  ;;  %v5268_v18 = vpop.f32.mrb[177].mxu1  ;;  %v10646_v53 = vld [vmem:[#allocation14_spill] sm:$0xff] }
 0x24f   : > { %v7624_v49 = vpack.c.bf16 %v5759_v0, %v5759_v0  ;;  %v5277_v9 = vadd.f32 %v10045_v48, %v8434_v1  ;;  %v3827_v40 = vadd.f32 %v10045_v48, %v3826_v2  ;;  %v5269_v31 = vadd.f32 %v10045_v48, %v5268_v18  ;;  %v8301_v29 = vpop.f32.mrb[178].mxu0  ;;  %v8435_v45 = vpop.f32.mrb[178].mxu1  ;;  %v10647_v18 = vld [vmem:[#allocation15_spill] sm:$0xff] }
 0x250   : > { %6402 = vst.msk [vmem:[%s9871_s6 + $0xb8] sm:$0xf] %vm6355_vm2, %v7626_v21  ;;  %v7627_v10 = vpack.c.bf16 %v5762_v12, %v5762_v12  ;;  %v5760_v11 = vmax.f32 %v4318_v30, %v5632_v5  ;;  %v4195_v15 = vmax.f32 %v3835_v6, 0.0  ;;  %v3838_v56 = vadd.f32 %v10045_v48, %v8301_v29  ;;  %v3829_v54 = vpop.f32.mrb[179].mxu0  ;;  %v5271_v14 = vpop.f32.mrb[179].mxu1 }
 0x251   : > { %6400 = vst.msk [vmem:[%s9871_s6 + $0xb0] sm:$0xf] %vm6355_vm2, %v7624_v49  ;;  %v5637_v50 = vmax.f32 %v5277_v9, 0.0  ;;  %v4193_v32 = vmax.f32 %v3827_v40, 0.0  ;;  %v5635_v24 = vmax.f32 %v5269_v31, 0.0  ;;  %v5280_v16 = vadd.f32 %v10045_v48, %v8435_v45  ;;  %v10648_v31 = vld [vmem:[#allocation16_spill] sm:$0xff] }
 0x252   : > { %6403 = vst.msk [vmem:[%s9871_s6 + $0xbc] sm:$0xf] %vm6355_vm2, %v7627_v10  ;;  %v7625_v61 = vpack.c.bf16 %v5760_v11, %v5760_v11  ;;  %v4323_v22 = vmax.f32 %v10642_v19, %v4195_v15  ;;  %v4196_v51 = vmax.f32 %v3838_v56, 0.0  ;;  %v3830_v35 = vadd.f32 %v10045_v48, %v3829_v54 }
 0x253   : > { %v4321_v27 = vmax.f32 %v10643_v38, %v4193_v32  ;;  %v5272_v7 = vadd.f32 %v10045_v48, %v5271_v14  ;;  %v5638_v37 = vmax.f32 %v5280_v16, 0.0  ;;  %v10649_v32 = vld [vmem:[#allocation17_spill] sm:$0xff] }
 0x254   : > { %6401 = vst.msk [vmem:[%s9871_s6 + $0xb4] sm:$0xf] %vm6355_vm2, %v7625_v61  ;;  %v5765_v44 = vmax.f32 %v4323_v22, %v5637_v50  ;;  %v4324_v17 = vmax.f32 %v10644_v59, %v4196_v51  ;;  %v4194_v55 = vmax.f32 %v3830_v35, 0.0 }
 0x255   : > { %v5763_v36 = vmax.f32 %v4321_v27, %v5635_v24  ;;  %v5636_v33 = vmax.f32 %v5272_v7, 0.0  ;;  %v8304_v43 = vpop.f32.mrb[180].mxu0  ;;  %v8438_v23 = vpop.f32.mrb[180].mxu1 }
 0x256   : > { %v7630_v60 = vpack.c.bf16 %v5765_v44, %v5765_v44  ;;  %v5766_v39 = vmax.f32 %v4324_v17, %v5638_v37  ;;  %v4322_v52 = vmax.f32 %v10645_v58, %v4194_v55  ;;  %v3851_v28 = vadd.f32 %v10045_v48, %v8304_v43  ;;  %v3842_v42 = vpop.f32.mrb[181].mxu0  ;;  %v5284_v20 = vpop.f32.mrb[181].mxu1  ;;  %v10650_v58 = vld [vmem:[#allocation18_spill] sm:$0xff] }
 0x257   : > { %v7628_v26 = vpack.c.bf16 %v5763_v36, %v5763_v36  ;;  %v5293_v63 = vadd.f32 %v10045_v48, %v8438_v23  ;;  %v3843_v8 = vadd.f32 %v10045_v48, %v3842_v42  ;;  %v5285_v34 = vadd.f32 %v10045_v48, %v5284_v20  ;;  %v8305_v57 = vpop.f32.mrb[182].mxu0  ;;  %v8439_v41 = vpop.f32.mrb[182].mxu1  ;;  %v10651_v20 = vld [vmem:[#allocation19_spill] sm:$0xff] }
 0x258   : > { %6406 = vst.msk [vmem:[%s9871_s6 + $0xc8] sm:$0xf] %vm6355_vm2, %v7630_v60  ;;  %v7631_v4 = vpack.c.bf16 %v5766_v39, %v5766_v39  ;;  %v5764_v46 = vmax.f32 %v4322_v52, %v5636_v33  ;;  %v4199_v62 = vmax.f32 %v3851_v28, 0.0  ;;  %v3854_v13 = vadd.f32 %v10045_v48, %v8305_v57  ;;  %v3845_v47 = vpop.f32.mrb[183].mxu0  ;;  %v5287_v0 = vpop.f32.mrb[183].mxu1 }
 0x259   : > { %6404 = vst.msk [vmem:[%s9871_s6 + $0xc0] sm:$0xf] %vm6355_vm2, %v7628_v26  ;;  %v5641_v5 = vmax.f32 %v5293_v63, 0.0  ;;  %v4197_v25 = vmax.f32 %v3843_v8, 0.0  ;;  %v5639_v1 = vmax.f32 %v5285_v34, 0.0  ;;  %v5296_v21 = vadd.f32 %v10045_v48, %v8439_v41  ;;  %v10652_v34 = vld [vmem:[#allocation20_spill] sm:$0xff] }
 0x25a   : > { %6407 = vst.msk [vmem:[%s9871_s6 + $0xcc] sm:$0xf] %vm6355_vm2, %v7631_v4  ;;  %v7629_v12 = vpack.c.bf16 %v5764_v46, %v5764_v46  ;;  %v4327_v30 = vmax.f32 %v10646_v53, %v4199_v62  ;;  %v4200_v6 = vmax.f32 %v3854_v13, 0.0  ;;  %v3846_v2 = vadd.f32 %v10045_v48, %v3845_v47 }
 0x25b   : > { %v4325_v49 = vmax.f32 %v10647_v18, %v4197_v25  ;;  %v5288_v9 = vadd.f32 %v10045_v48, %v5287_v0  ;;  %v5642_v45 = vmax.f32 %v5296_v21, 0.0  ;;  %v10653_v25 = vld [vmem:[#allocation21_spill] sm:$0xff] }
 0x25c   : > { %6405 = vst.msk [vmem:[%s9871_s6 + $0xc4] sm:$0xf] %vm6355_vm2, %v7629_v12  ;;  %v5769_v40 = vmax.f32 %v4327_v30, %v5641_v5  ;;  %v4328_v29 = vmax.f32 %v10648_v31, %v4200_v6  ;;  %v4198_v10 = vmax.f32 %v3846_v2, 0.0 }
 0x25d   : > { %v5767_v11 = vmax.f32 %v4325_v49, %v5639_v1  ;;  %v5640_v15 = vmax.f32 %v5288_v9, 0.0  ;;  %v8308_v56 = vpop.f32.mrb[184].mxu0  ;;  %v8442_v54 = vpop.f32.mrb[184].mxu1 }
 0x25e   : > { %v7634_v14 = vpack.c.bf16 %v5769_v40, %v5769_v40  ;;  %v5770_v50 = vmax.f32 %v4328_v29, %v5642_v45  ;;  %v4326_v24 = vmax.f32 %v10649_v32, %v4198_v10  ;;  %v3867_v16 = vadd.f32 %v10045_v48, %v8308_v56  ;;  %v3858_v61 = vpop.f32.mrb[185].mxu0  ;;  %v5300_v19 = vpop.f32.mrb[185].mxu1  ;;  %v10654_v32 = vld [vmem:[#allocation22_spill] sm:$0xff] }
 0x25f   : > { %v7632_v22 = vpack.c.bf16 %v5767_v11, %v5767_v11  ;;  %v5309_v51 = vadd.f32 %v10045_v48, %v8442_v54  ;;  %v3859_v35 = vadd.f32 %v10045_v48, %v3858_v61  ;;  %v5301_v38 = vadd.f32 %v10045_v48, %v5300_v19  ;;  %v8309_v27 = vpop.f32.mrb[186].mxu0  ;;  %v8443_v7 = vpop.f32.mrb[186].mxu1  ;;  %v10655_v19 = vld [vmem:[#allocation23_spill] sm:$0xff] }
 0x260   : > { %6410 = vst.msk [vmem:[%s9871_s6 + $0xd8] sm:$0xf] %vm6355_vm2, %v7634_v14  ;;  %v7635_v44 = vpack.c.bf16 %v5770_v50, %v5770_v50  ;;  %v5768_v59 = vmax.f32 %v4326_v24, %v5640_v15  ;;  %v4203_v17 = vmax.f32 %v3867_v16, 0.0  ;;  %v3870_v37 = vadd.f32 %v10045_v48, %v8309_v27  ;;  %v3861_v55 = vpop.f32.mrb[187].mxu0  ;;  %v5303_v36 = vpop.f32.mrb[187].mxu1 }
 0x261   : > { %6408 = vst.msk [vmem:[%s9871_s6 + $0xd0] sm:$0xf] %vm6355_vm2, %v7632_v22  ;;  %v5645_v33 = vmax.f32 %v5309_v51, 0.0  ;;  %v4201_v43 = vmax.f32 %v3859_v35, 0.0  ;;  %v5643_v23 = vmax.f32 %v5301_v38, 0.0  ;;  %v5312_v60 = vadd.f32 %v10045_v48, %v8443_v7  ;;  %v10656_v38 = vld [vmem:[#allocation24_spill] sm:$0xff] }
 0x262   : > { %6411 = vst.msk [vmem:[%s9871_s6 + $0xdc] sm:$0xf] %vm6355_vm2, %v7635_v44  ;;  %v7633_v39 = vpack.c.bf16 %v5768_v59, %v5768_v59  ;;  %v4331_v52 = vmax.f32 %v10650_v58, %v4203_v17  ;;  %v4204_v28 = vmax.f32 %v3870_v37, 0.0  ;;  %v3862_v42 = vadd.f32 %v10045_v48, %v3861_v55 }
 0x263   : > { %v4329_v26 = vmax.f32 %v10651_v20, %v4201_v43  ;;  %v5304_v63 = vadd.f32 %v10045_v48, %v5303_v36  ;;  %v5646_v41 = vmax.f32 %v5312_v60, 0.0  ;;  %v10657_v43 = vld [vmem:[#allocation25_spill] sm:$0xff] }
 0x264   : > { %6409 = vst.msk [vmem:[%s9871_s6 + $0xd4] sm:$0xf] %vm6355_vm2, %v7633_v39  ;;  %v5773_v8 = vmax.f32 %v4331_v52, %v5645_v33  ;;  %v4332_v57 = vmax.f32 %v10652_v34, %v4204_v28  ;;  %v4202_v4 = vmax.f32 %v3862_v42, 0.0 }
 0x265   : > { %v5771_v46 = vmax.f32 %v4329_v26, %v5643_v23  ;;  %v5644_v62 = vmax.f32 %v5304_v63, 0.0  ;;  %v8312_v13 = vpop.f32.mrb[188].mxu0  ;;  %v8446_v47 = vpop.f32.mrb[188].mxu1 }
 0x266   : > { %v7638_v0 = vpack.c.bf16 %v5773_v8, %v5773_v8  ;;  %v5774_v5 = vmax.f32 %v4332_v57, %v5646_v41  ;;  %v4330_v1 = vmax.f32 %v10653_v25, %v4202_v4  ;;  %v3883_v21 = vadd.f32 %v10045_v48, %v8312_v13  ;;  %v3874_v12 = vpop.f32.mrb[189].mxu0  ;;  %v5316_v53 = vpop.f32.mrb[189].mxu1  ;;  %v10658_v25 = vld [vmem:[#allocation26_spill] sm:$0xff] }
 0x267   : > { %v7636_v30 = vpack.c.bf16 %v5771_v46, %v5771_v46  ;;  %v5325_v6 = vadd.f32 %v10045_v48, %v8446_v47  ;;  %v3875_v2 = vadd.f32 %v10045_v48, %v3874_v12  ;;  %v5317_v18 = vadd.f32 %v10045_v48, %v5316_v53  ;;  %v8313_v49 = vpop.f32.mrb[190].mxu0  ;;  %v8447_v9 = vpop.f32.mrb[190].mxu1  ;;  %v10659_v53 = vld [vmem:[#allocation27_spill] sm:$0xff] }
 0x268   : > { %6414 = vst.msk [vmem:[%s9871_s6 + $0xe8] sm:$0xf] %vm6355_vm2, %v7638_v0  ;;  %v7639_v40 = vpack.c.bf16 %v5774_v5, %v5774_v5  ;;  %v5772_v31 = vmax.f32 %v4330_v1, %v5644_v62  ;;  %v4207_v29 = vmax.f32 %v3883_v21, 0.0  ;;  %v3886_v45 = vadd.f32 %v10045_v48, %v8313_v49  ;;  %v3877_v10 = vpop.f32.mrb[191].mxu0  ;;  %v5319_v11 = vpop.f32.mrb[191].mxu1 }
 0x269   : > { %6412 = vst.msk [vmem:[%s9871_s6 + $0xe0] sm:$0xf] %vm6355_vm2, %v7636_v30  ;;  %v5649_v15 = vmax.f32 %v5325_v6, 0.0  ;;  %v4205_v56 = vmax.f32 %v3875_v2, 0.0  ;;  %v5647_v54 = vmax.f32 %v5317_v18, 0.0  ;;  %v5328_v14 = vadd.f32 %v10045_v48, %v8447_v9  ;;  %v10660_v18 = vld [vmem:[#allocation28_spill] sm:$0xff] }
 0x26a   : > { %6415 = vst.msk [vmem:[%s9871_s6 + $0xec] sm:$0xf] %vm6355_vm2, %v7639_v40  ;;  %v7637_v50 = vpack.c.bf16 %v5772_v31, %v5772_v31  ;;  %v4335_v24 = vmax.f32 %v10654_v32, %v4207_v29  ;;  %v4208_v16 = vmax.f32 %v3886_v45, 0.0  ;;  %v3878_v61 = vadd.f32 %v10045_v48, %v3877_v10 }
 0x26b   : > { %v4333_v22 = vmax.f32 %v10655_v19, %v4205_v56  ;;  %v5320_v51 = vadd.f32 %v10045_v48, %v5319_v11  ;;  %v5650_v7 = vmax.f32 %v5328_v14, 0.0  ;;  %v10661_v56 = vld [vmem:[#allocation29_spill] sm:$0xff] }
 0x26c   : > { %6413 = vst.msk [vmem:[%s9871_s6 + $0xe4] sm:$0xf] %vm6355_vm2, %v7637_v50  ;;  %v5777_v35 = vmax.f32 %v4335_v24, %v5649_v15  ;;  %v4336_v27 = vmax.f32 %v10656_v38, %v4208_v16  ;;  %v4206_v44 = vmax.f32 %v3878_v61, 0.0 }
 0x26d   : > { %v5775_v59 = vmax.f32 %v4333_v22, %v5647_v54  ;;  %v5648_v17 = vmax.f32 %v5320_v51, 0.0  ;;  %v8316_v37 = vpop.f32.mrb[192].mxu0  ;;  %v8450_v55 = vpop.f32.mrb[192].mxu1 }
 0x26e   : > { %v7642_v36 = vpack.c.bf16 %v5777_v35, %v5777_v35  ;;  %v5778_v33 = vmax.f32 %v4336_v27, %v5650_v7  ;;  %v4334_v23 = vmax.f32 %v10657_v43, %v4206_v44  ;;  %v3899_v60 = vadd.f32 %v10045_v48, %v8316_v37  ;;  %v3890_v39 = vpop.f32.mrb[193].mxu0  ;;  %v5332_v58 = vpop.f32.mrb[193].mxu1  ;;  %v10662_v43 = vld [vmem:[#allocation30_spill] sm:$0xff] }
 0x26f   : > { %v7640_v52 = vpack.c.bf16 %v5775_v59, %v5775_v59  ;;  %v5341_v28 = vadd.f32 %v10045_v48, %v8450_v55  ;;  %v3891_v42 = vadd.f32 %v10045_v48, %v3890_v39  ;;  %v5333_v20 = vadd.f32 %v10045_v48, %v5332_v58  ;;  %v8317_v26 = vpop.f32.mrb[194].mxu0  ;;  %v8451_v63 = vpop.f32.mrb[194].mxu1  ;;  %v10663_v58 = vld [vmem:[#allocation31_spill] sm:$0xff] }
 0x270   : > { %6418 = vst.msk [vmem:[%s9871_s6 + $0xf8] sm:$0xf] %vm6355_vm2, %v7642_v36  ;;  %v7643_v8 = vpack.c.bf16 %v5778_v33, %v5778_v33  ;;  %v5776_v34 = vmax.f32 %v4334_v23, %v5648_v17  ;;  %v4211_v57 = vmax.f32 %v3899_v60, 0.0  ;;  %v3902_v41 = vadd.f32 %v10045_v48, %v8317_v26  ;;  %v3893_v4 = vpop.f32.mrb[195].mxu0  ;;  %v5335_v46 = vpop.f32.mrb[195].mxu1 }
 0x271   : > { %6416 = vst.msk [vmem:[%s9871_s6 + $0xf0] sm:$0xf] %vm6355_vm2, %v7640_v52  ;;  %v5653_v62 = vmax.f32 %v5341_v28, 0.0  ;;  %v4209_v13 = vmax.f32 %v3891_v42, 0.0  ;;  %v5651_v47 = vmax.f32 %v5333_v20, 0.0  ;;  %v5344_v0 = vadd.f32 %v10045_v48, %v8451_v63  ;;  %v10664_v20 = vld [vmem:[#allocation32_spill] sm:$0xff] }
 0x272   : > { %6419 = vst.msk [vmem:[%s9871_s6 + $0xfc] sm:$0xf] %vm6355_vm2, %v7643_v8  ;;  %v7641_v5 = vpack.c.bf16 %v5776_v34, %v5776_v34  ;;  %v4339_v1 = vmax.f32 %v10658_v25, %v4211_v57  ;;  %v4212_v21 = vmax.f32 %v3902_v41, 0.0  ;;  %v3894_v12 = vadd.f32 %v10045_v48, %v3893_v4 }
 0x273   : > { %v4337_v30 = vmax.f32 %v10659_v53, %v4209_v13  ;;  %v5336_v6 = vadd.f32 %v10045_v48, %v5335_v46  ;;  %v5654_v9 = vmax.f32 %v5344_v0, 0.0  ;;  %v10665_v13 = vld [vmem:[#allocation33_spill] sm:$0xff] }
 0x274   : > { %6417 = vst.msk [vmem:[%s9871_s6 + $0xf4] sm:$0xf] %vm6355_vm2, %v7641_v5  ;;  %v5781_v2 = vmax.f32 %v4339_v1, %v5653_v62  ;;  %v4340_v49 = vmax.f32 %v10660_v18, %v4212_v21  ;;  %v4210_v40 = vmax.f32 %v3894_v12, 0.0 }
 0x275   : > { %v5779_v31 = vmax.f32 %v4337_v30, %v5651_v47  ;;  %v5652_v29 = vmax.f32 %v5336_v6, 0.0  ;;  %v8320_v45 = vpop.f32.mrb[196].mxu0  ;;  %v8454_v10 = vpop.f32.mrb[196].mxu1 }
 0x276   : > { %v7646_v11 = vpack.c.bf16 %v5781_v2, %v5781_v2  ;;  %v5782_v15 = vmax.f32 %v4340_v49, %v5654_v9  ;;  %v4338_v54 = vmax.f32 %v10661_v56, %v4210_v40  ;;  %v3915_v14 = vadd.f32 %v10045_v48, %v8320_v45  ;;  %v3906_v50 = vpop.f32.mrb[197].mxu0  ;;  %v5348_v32 = vpop.f32.mrb[197].mxu1  ;;  %v10666_v56 = vld [vmem:[#allocation34_spill] sm:$0xff] }
 0x277   : > { %v7644_v24 = vpack.c.bf16 %v5779_v31, %v5779_v31  ;;  %v5357_v16 = vadd.f32 %v10045_v48, %v8454_v10  ;;  %v3907_v61 = vadd.f32 %v10045_v48, %v3906_v50  ;;  %v5349_v19 = vadd.f32 %v10045_v48, %v5348_v32  ;;  %v8321_v22 = vpop.f32.mrb[198].mxu0  ;;  %v8455_v51 = vpop.f32.mrb[198].mxu1  ;;  %v10667_v32 = vld [vmem:[#allocation35_spill] sm:$0xff] }
 0x278   : > { %6422 = vst.msk [vmem:[%s9871_s6 + $0x108] sm:$0xf] %vm6355_vm2, %v7646_v11  ;;  %v7647_v35 = vpack.c.bf16 %v5782_v15, %v5782_v15  ;;  %v5780_v38 = vmax.f32 %v4338_v54, %v5652_v29  ;;  %v4215_v27 = vmax.f32 %v3915_v14, 0.0  ;;  %v3918_v7 = vadd.f32 %v10045_v48, %v8321_v22  ;;  %v3909_v44 = vpop.f32.mrb[199].mxu0  ;;  %v5351_v59 = vpop.f32.mrb[199].mxu1 }
 0x279   : > { %6420 = vst.msk [vmem:[%s9871_s6 + $0x100] sm:$0xf] %vm6355_vm2, %v7644_v24  ;;  %v5657_v17 = vmax.f32 %v5357_v16, 0.0  ;;  %v4213_v37 = vmax.f32 %v3907_v61, 0.0  ;;  %v5655_v55 = vmax.f32 %v5349_v19, 0.0  ;;  %v5360_v36 = vadd.f32 %v10045_v48, %v8455_v51  ;;  %v10668_v19 = vld [vmem:[#allocation36_spill] sm:$0xff] }
 0x27a   : > { %6423 = vst.msk [vmem:[%s9871_s6 + $0x10c] sm:$0xf] %vm6355_vm2, %v7647_v35  ;;  %v7645_v33 = vpack.c.bf16 %v5780_v38, %v5780_v38  ;;  %v4343_v23 = vmax.f32 %v10662_v43, %v4215_v27  ;;  %v4216_v60 = vmax.f32 %v3918_v7, 0.0  ;;  %v3910_v39 = vadd.f32 %v10045_v48, %v3909_v44 }
 0x27b   : > { %v4341_v52 = vmax.f32 %v10663_v58, %v4213_v37  ;;  %v5352_v28 = vadd.f32 %v10045_v48, %v5351_v59  ;;  %v5658_v63 = vmax.f32 %v5360_v36, 0.0  ;;  %v10669_v37 = vld [vmem:[#allocation37_spill] sm:$0xff] }
 0x27c   : > { %6421 = vst.msk [vmem:[%s9871_s6 + $0x104] sm:$0xf] %vm6355_vm2, %v7645_v33  ;;  %v5785_v42 = vmax.f32 %v4343_v23, %v5657_v17  ;;  %v4344_v26 = vmax.f32 %v10664_v20, %v4216_v60  ;;  %v4214_v8 = vmax.f32 %v3910_v39, 0.0 }
 0x27d   : > { %v5783_v34 = vmax.f32 %v4341_v52, %v5655_v55  ;;  %v5656_v57 = vmax.f32 %v5352_v28, 0.0  ;;  %v8324_v41 = vpop.f32.mrb[200].mxu0  ;;  %v8458_v4 = vpop.f32.mrb[200].mxu1 }
 0x27e   : > { %v7650_v46 = vpack.c.bf16 %v5785_v42, %v5785_v42  ;;  %v5786_v62 = vmax.f32 %v4344_v26, %v5658_v63  ;;  %v4342_v47 = vmax.f32 %v10665_v13, %v4214_v8  ;;  %v3931_v0 = vadd.f32 %v10045_v48, %v8324_v41  ;;  %v3922_v5 = vpop.f32.mrb[201].mxu0  ;;  %v5364_v25 = vpop.f32.mrb[201].mxu1  ;;  %v10670_v13 = vld [vmem:[#allocation38_spill] sm:$0xff] }
 0x27f   : > { %v7648_v1 = vpack.c.bf16 %v5783_v34, %v5783_v34  ;;  %v5373_v21 = vadd.f32 %v10045_v48, %v8458_v4  ;;  %v3923_v12 = vadd.f32 %v10045_v48, %v3922_v5  ;;  %v5365_v53 = vadd.f32 %v10045_v48, %v5364_v25  ;;  %v8325_v30 = vpop.f32.mrb[202].mxu0  ;;  %v8459_v6 = vpop.f32.mrb[202].mxu1  ;;  %v10671_v25 = vld [vmem:[#allocation39_spill] sm:$0xff] }
 0x280   : > { %6426 = vst.msk [vmem:[%s9871_s6 + $0x118] sm:$0xf] %vm6355_vm2, %v7650_v46  ;;  %v7651_v2 = vpack.c.bf16 %v5786_v62, %v5786_v62  ;;  %v5784_v18 = vmax.f32 %v4342_v47, %v5656_v57  ;;  %v4219_v49 = vmax.f32 %v3931_v0, 0.0  ;;  %v3934_v9 = vadd.f32 %v10045_v48, %v8325_v30  ;;  %v3925_v40 = vpop.f32.mrb[203].mxu0  ;;  %v5367_v31 = vpop.f32.mrb[203].mxu1 }
 0x281   : > { %6424 = vst.msk [vmem:[%s9871_s6 + $0x110] sm:$0xf] %vm6355_vm2, %v7648_v1  ;;  %v5661_v29 = vmax.f32 %v5373_v21, 0.0  ;;  %v4217_v45 = vmax.f32 %v3923_v12, 0.0  ;;  %v5659_v10 = vmax.f32 %v5365_v53, 0.0  ;;  %v5376_v11 = vadd.f32 %v10045_v48, %v8459_v6  ;;  %v10672_v53 = vld [vmem:[#allocation40_spill] sm:$0xff] }
 0x282   : > { %6427 = vst.msk [vmem:[%s9871_s6 + $0x11c] sm:$0xf] %vm6355_vm2, %v7651_v2  ;;  %v7649_v15 = vpack.c.bf16 %v5784_v18, %v5784_v18  ;;  %v4347_v54 = vmax.f32 %v10666_v56, %v4219_v49  ;;  %v4220_v14 = vmax.f32 %v3934_v9, 0.0  ;;  %v3926_v50 = vadd.f32 %v10045_v48, %v3925_v40 }
 0x283   : > { %v4345_v24 = vmax.f32 %v10667_v32, %v4217_v45  ;;  %v5368_v16 = vadd.f32 %v10045_v48, %v5367_v31  ;;  %v5662_v51 = vmax.f32 %v5376_v11, 0.0  ;;  %v10673_v45 = vld [vmem:[#allocation41_spill] sm:$0xff] }
 0x284   : > { %6425 = vst.msk [vmem:[%s9871_s6 + $0x114] sm:$0xf] %vm6355_vm2, %v7649_v15  ;;  %v5789_v61 = vmax.f32 %v4347_v54, %v5661_v29  ;;  %v4348_v22 = vmax.f32 %v10668_v19, %v4220_v14  ;;  %v4218_v35 = vmax.f32 %v3926_v50, 0.0 }
 0x285   : > { %v5787_v38 = vmax.f32 %v4345_v24, %v5659_v10  ;;  %v5660_v27 = vmax.f32 %v5368_v16, 0.0  ;;  %v8328_v7 = vpop.f32.mrb[204].mxu0  ;;  %v8462_v44 = vpop.f32.mrb[204].mxu1 }
 0x286   : > { %v7654_v59 = vpack.c.bf16 %v5789_v61, %v5789_v61  ;;  %v5790_v17 = vmax.f32 %v4348_v22, %v5662_v51  ;;  %v4346_v55 = vmax.f32 %v10669_v37, %v4218_v35  ;;  %v3947_v36 = vadd.f32 %v10045_v48, %v8328_v7  ;;  %v3938_v33 = vpop.f32.mrb[205].mxu0  ;;  %v5380_v43 = vpop.f32.mrb[205].mxu1  ;;  %v10674_v37 = vld [vmem:[#allocation42_spill] sm:$0xff] }
 0x287   : > { %v7652_v23 = vpack.c.bf16 %v5787_v38, %v5787_v38  ;;  %v5389_v60 = vadd.f32 %v10045_v48, %v8462_v44  ;;  %v3939_v39 = vadd.f32 %v10045_v48, %v3938_v33  ;;  %v5381_v58 = vadd.f32 %v10045_v48, %v5380_v43  ;;  %v8329_v52 = vpop.f32.mrb[206].mxu0  ;;  %v8463_v28 = vpop.f32.mrb[206].mxu1  ;;  %v10675_v43 = vld [vmem:[#allocation43_spill] sm:$0xff] }
 0x288   : > { %6430 = vst.msk [vmem:[%s9871_s6 + $0x128] sm:$0xf] %vm6355_vm2, %v7654_v59  ;;  %v7655_v42 = vpack.c.bf16 %v5790_v17, %v5790_v17  ;;  %v5788_v20 = vmax.f32 %v4346_v55, %v5660_v27  ;;  %v4223_v26 = vmax.f32 %v3947_v36, 0.0  ;;  %v3950_v63 = vadd.f32 %v10045_v48, %v8329_v52  ;;  %v3941_v8 = vpop.f32.mrb[207].mxu0  ;;  %v5383_v34 = vpop.f32.mrb[207].mxu1 }
 0x289   : > { %6428 = vst.msk [vmem:[%s9871_s6 + $0x120] sm:$0xf] %vm6355_vm2, %v7652_v23  ;;  %v5665_v57 = vmax.f32 %v5389_v60, 0.0  ;;  %v4221_v41 = vmax.f32 %v3939_v39, 0.0  ;;  %v5663_v4 = vmax.f32 %v5381_v58, 0.0  ;;  %v5392_v46 = vadd.f32 %v10045_v48, %v8463_v28  ;;  %v10676_v58 = vld [vmem:[#allocation44_spill] sm:$0xff] }
 0x28a   : > { %6431 = vst.msk [vmem:[%s9871_s6 + $0x12c] sm:$0xf] %vm6355_vm2, %v7655_v42  ;;  %v7653_v62 = vpack.c.bf16 %v5788_v20, %v5788_v20  ;;  %v4351_v47 = vmax.f32 %v10670_v13, %v4223_v26  ;;  %v4224_v0 = vmax.f32 %v3950_v63, 0.0  ;;  %v3942_v5 = vadd.f32 %v10045_v48, %v3941_v8 }
 0x28b   : > { %v4349_v1 = vmax.f32 %v10671_v25, %v4221_v41  ;;  %v5384_v21 = vadd.f32 %v10045_v48, %v5383_v34  ;;  %v5666_v6 = vmax.f32 %v5392_v46, 0.0  ;;  %v10677_v41 = vld [vmem:[#allocation45_spill] sm:$0xff] }
 0x28c   : > { %6429 = vst.msk [vmem:[%s9871_s6 + $0x124] sm:$0xf] %vm6355_vm2, %v7653_v62  ;;  %v5793_v12 = vmax.f32 %v4351_v47, %v5665_v57  ;;  %v4352_v30 = vmax.f32 %v10672_v53, %v4224_v0  ;;  %v4222_v2 = vmax.f32 %v3942_v5, 0.0 }
 0x28d   : > { %v5791_v18 = vmax.f32 %v4349_v1, %v5663_v4  ;;  %v5664_v49 = vmax.f32 %v5384_v21, 0.0  ;;  %v8332_v9 = vpop.f32.mrb[208].mxu0  ;;  %v8466_v40 = vpop.f32.mrb[208].mxu1 }
 0x28e   : > { %v7658_v31 = vpack.c.bf16 %v5793_v12, %v5793_v12  ;;  %v5794_v29 = vmax.f32 %v4352_v30, %v5666_v6  ;;  %v4350_v10 = vmax.f32 %v10673_v45, %v4222_v2  ;;  %v3963_v11 = vadd.f32 %v10045_v48, %v8332_v9  ;;  %v3954_v15 = vpop.f32.mrb[209].mxu0  ;;  %v5396_v56 = vpop.f32.mrb[209].mxu1  ;;  %v10678_v45 = vld [vmem:[#allocation46_spill] sm:$0xff] }
 0x28f   : > { %v7656_v54 = vpack.c.bf16 %v5791_v18, %v5791_v18  ;;  %v5405_v14 = vadd.f32 %v10045_v48, %v8466_v40  ;;  %v3955_v50 = vadd.f32 %v10045_v48, %v3954_v15  ;;  %v5397_v32 = vadd.f32 %v10045_v48, %v5396_v56  ;;  %v8333_v24 = vpop.f32.mrb[210].mxu0  ;;  %v8467_v16 = vpop.f32.mrb[210].mxu1  ;;  %v10679_v56 = vld [vmem:[#allocation47_spill] sm:$0xff] }
 0x290   : > { %6434 = vst.msk [vmem:[%s9871_s6 + $0x138] sm:$0xf] %vm6355_vm2, %v7658_v31  ;;  %v7659_v61 = vpack.c.bf16 %v5794_v29, %v5794_v29  ;;  %v5792_v19 = vmax.f32 %v4350_v10, %v5664_v49  ;;  %v4227_v22 = vmax.f32 %v3963_v11, 0.0  ;;  %v3966_v51 = vadd.f32 %v10045_v48, %v8333_v24  ;;  %v3957_v35 = vpop.f32.mrb[211].mxu0  ;;  %v5399_v38 = vpop.f32.mrb[211].mxu1 }
 0x291   : > { %6432 = vst.msk [vmem:[%s9871_s6 + $0x130] sm:$0xf] %vm6355_vm2, %v7656_v54  ;;  %v5669_v27 = vmax.f32 %v5405_v14, 0.0  ;;  %v4225_v7 = vmax.f32 %v3955_v50, 0.0  ;;  %v5667_v44 = vmax.f32 %v5397_v32, 0.0  ;;  %v5408_v59 = vadd.f32 %v10045_v48, %v8467_v16  ;;  %v10680_v32 = vld [vmem:[#allocation48_spill] sm:$0xff] }
 0x292   : > { %6435 = vst.msk [vmem:[%s9871_s6 + $0x13c] sm:$0xf] %vm6355_vm2, %v7659_v61  ;;  %v7657_v17 = vpack.c.bf16 %v5792_v19, %v5792_v19  ;;  %v4355_v55 = vmax.f32 %v10674_v37, %v4227_v22  ;;  %v4228_v36 = vmax.f32 %v3966_v51, 0.0  ;;  %v3958_v33 = vadd.f32 %v10045_v48, %v3957_v35 }
 0x293   : > { %v4353_v23 = vmax.f32 %v10675_v43, %v4225_v7  ;;  %v5400_v60 = vadd.f32 %v10045_v48, %v5399_v38  ;;  %v5670_v28 = vmax.f32 %v5408_v59, 0.0  ;;  %v10310_v48 = vld [vmem:[%s10545_s2] ss:$0 sm:$0xff]  ;;  %v10681_v7 = vld [vmem:[#allocation49_spill] sm:$0xff] }
 0x294   : > { %6433 = vst.msk [vmem:[%s9871_s6 + $0x134] sm:$0xf] %vm6355_vm2, %v7657_v17  ;;  %v5797_v39 = vmax.f32 %v4355_v55, %v5669_v27  ;;  %v4356_v52 = vmax.f32 %v10676_v58, %v4228_v36  ;;  %v4226_v42 = vmax.f32 %v3958_v33, 0.0 }
 0x295   : > { %v5795_v20 = vmax.f32 %v4353_v23, %v5667_v44  ;;  %v5668_v26 = vmax.f32 %v5400_v60, 0.0  ;;  %v8336_v63 = vpop.f32.mrb[212].mxu0  ;;  %v8470_v8 = vpop.f32.mrb[212].mxu1 }
 0x296   : > { %v7662_v34 = vpack.c.bf16 %v5797_v39, %v5797_v39  ;;  %v5798_v57 = vmax.f32 %v4356_v52, %v5670_v28  ;;  %v4354_v4 = vmax.f32 %v10677_v41, %v4226_v42  ;;  %v3979_v46 = vadd.f32 %v10310_v48, %v8336_v63  ;;  %v3970_v62 = vpop.f32.mrb[213].mxu0  ;;  %v5412_v13 = vpop.f32.mrb[213].mxu1  ;;  %v10682_v41 = vld [vmem:[#allocation50_spill] sm:$0xff] }
 0x297   : > { %v7660_v47 = vpack.c.bf16 %v5795_v20, %v5795_v20  ;;  %v5421_v0 = vadd.f32 %v10310_v48, %v8470_v8  ;;  %v3971_v5 = vadd.f32 %v10310_v48, %v3970_v62  ;;  %v5413_v25 = vadd.f32 %v10310_v48, %v5412_v13  ;;  %v8337_v1 = vpop.f32.mrb[214].mxu0  ;;  %v8471_v21 = vpop.f32.mrb[214].mxu1  ;;  %v10683_v13 = vld [vmem:[#allocation51_spill] sm:$0xff] }
 0x298   : > { %6438 = vst.msk [vmem:[%s9871_s6 + $0x148] sm:$0xf] %vm6355_vm2, %v7662_v34  ;;  %v7663_v12 = vpack.c.bf16 %v5798_v57, %v5798_v57  ;;  %v5796_v53 = vmax.f32 %v4354_v4, %v5668_v26  ;;  %v4231_v30 = vmax.f32 %v3979_v46, 0.0  ;;  %v3982_v6 = vadd.f32 %v10310_v48, %v8337_v1  ;;  %v3973_v2 = vpop.f32.mrb[215].mxu0  ;;  %v5415_v18 = vpop.f32.mrb[215].mxu1 }
 0x299   : > { %6436 = vst.msk [vmem:[%s9871_s6 + $0x140] sm:$0xf] %vm6355_vm2, %v7660_v47  ;;  %v5673_v49 = vmax.f32 %v5421_v0, 0.0  ;;  %v4229_v9 = vmax.f32 %v3971_v5, 0.0  ;;  %v5671_v40 = vmax.f32 %v5413_v25, 0.0  ;;  %v5424_v31 = vadd.f32 %v10310_v48, %v8471_v21  ;;  %v10684_v25 = vld [vmem:[#allocation52_spill] sm:$0xff] }
 0x29a   : > { %6439 = vst.msk [vmem:[%s9871_s6 + $0x14c] sm:$0xf] %vm6355_vm2, %v7663_v12  ;;  %v7661_v29 = vpack.c.bf16 %v5796_v53, %v5796_v53  ;;  %v4359_v10 = vmax.f32 %v10678_v45, %v4231_v30  ;;  %v4232_v11 = vmax.f32 %v3982_v6, 0.0  ;;  %v3974_v15 = vadd.f32 %v10310_v48, %v3973_v2 }
 0x29b   : > { %v4357_v54 = vmax.f32 %v10679_v56, %v4229_v9  ;;  %v5416_v14 = vadd.f32 %v10310_v48, %v5415_v18  ;;  %v5674_v16 = vmax.f32 %v5424_v31, 0.0  ;;  %v10685_v9 = vld [vmem:[#allocation53_spill] sm:$0xff] }
 0x29c   : > { %6437 = vst.msk [vmem:[%s9871_s6 + $0x144] sm:$0xf] %vm6355_vm2, %v7661_v29  ;;  %v5801_v50 = vmax.f32 %v4359_v10, %v5673_v49  ;;  %v4360_v24 = vmax.f32 %v10680_v32, %v4232_v11  ;;  %v4230_v61 = vmax.f32 %v3974_v15, 0.0 }
 0x29d   : > { %v5799_v19 = vmax.f32 %v4357_v54, %v5671_v40  ;;  %v5672_v22 = vmax.f32 %v5416_v14, 0.0  ;;  %v8340_v51 = vpop.f32.mrb[216].mxu0  ;;  %v8474_v35 = vpop.f32.mrb[216].mxu1 }
 0x29e   : > { %v7666_v38 = vpack.c.bf16 %v5801_v50, %v5801_v50  ;;  %v5802_v27 = vmax.f32 %v4360_v24, %v5674_v16  ;;  %v4358_v44 = vmax.f32 %v10681_v7, %v4230_v61  ;;  %v3995_v59 = vadd.f32 %v10310_v48, %v8340_v51  ;;  %v3986_v17 = vpop.f32.mrb[217].mxu0  ;;  %v5428_v37 = vpop.f32.mrb[217].mxu1  ;;  %v10686_v7 = vld [vmem:[#allocation54_spill] sm:$0xff] }
 0x29f   : > { %v7664_v55 = vpack.c.bf16 %v5799_v19, %v5799_v19  ;;  %v5437_v36 = vadd.f32 %v10310_v48, %v8474_v35  ;;  %v3987_v33 = vadd.f32 %v10310_v48, %v3986_v17  ;;  %v5429_v43 = vadd.f32 %v10310_v48, %v5428_v37  ;;  %v8341_v23 = vpop.f32.mrb[218].mxu0  ;;  %v8475_v60 = vpop.f32.mrb[218].mxu1  ;;  %v10687_v37 = vld [vmem:[#allocation55_spill] sm:$0xff] }
 0x2a0   : > { %6442 = vst.msk [vmem:[%s9871_s6 + $0x158] sm:$0xf] %vm6355_vm2, %v7666_v38  ;;  %v7667_v39 = vpack.c.bf16 %v5802_v27, %v5802_v27  ;;  %v5800_v58 = vmax.f32 %v4358_v44, %v5672_v22  ;;  %v4235_v52 = vmax.f32 %v3995_v59, 0.0  ;;  %v3998_v28 = vadd.f32 %v10310_v48, %v8341_v23  ;;  %v3989_v42 = vpop.f32.mrb[219].mxu0  ;;  %v5431_v20 = vpop.f32.mrb[219].mxu1 }
 0x2a1   : > { %6440 = vst.msk [vmem:[%s9871_s6 + $0x150] sm:$0xf] %vm6355_vm2, %v7664_v55  ;;  %v5677_v26 = vmax.f32 %v5437_v36, 0.0  ;;  %v4233_v63 = vmax.f32 %v3987_v33, 0.0  ;;  %v5675_v8 = vmax.f32 %v5429_v43, 0.0  ;;  %v5440_v34 = vadd.f32 %v10310_v48, %v8475_v60  ;;  %v10688_v43 = vld [vmem:[#allocation56_spill] sm:$0xff] }
 0x2a2   : > { %6443 = vst.msk [vmem:[%s9871_s6 + $0x15c] sm:$0xf] %vm6355_vm2, %v7667_v39  ;;  %v7665_v57 = vpack.c.bf16 %v5800_v58, %v5800_v58  ;;  %v4363_v4 = vmax.f32 %v10682_v41, %v4235_v52  ;;  %v4236_v46 = vmax.f32 %v3998_v28, 0.0  ;;  %v3990_v62 = vadd.f32 %v10310_v48, %v3989_v42 }
 0x2a3   : > { %v4361_v47 = vmax.f32 %v10683_v13, %v4233_v63  ;;  %v5432_v0 = vadd.f32 %v10310_v48, %v5431_v20  ;;  %v5678_v21 = vmax.f32 %v5440_v34, 0.0  ;;  %v10689_v63 = vld [vmem:[#allocation57_spill] sm:$0xff] }
 0x2a4   : > { %6441 = vst.msk [vmem:[%s9871_s6 + $0x154] sm:$0xf] %vm6355_vm2, %v7665_v57  ;;  %v5805_v5 = vmax.f32 %v4363_v4, %v5677_v26  ;;  %v4364_v1 = vmax.f32 %v10684_v25, %v4236_v46  ;;  %v4234_v12 = vmax.f32 %v3990_v62, 0.0 }
 0x2a5   : > { %v5803_v53 = vmax.f32 %v4361_v47, %v5675_v8  ;;  %v5676_v30 = vmax.f32 %v5432_v0, 0.0  ;;  %v8344_v6 = vpop.f32.mrb[220].mxu0  ;;  %v8478_v2 = vpop.f32.mrb[220].mxu1 }
 0x2a6   : > { %v7670_v18 = vpack.c.bf16 %v5805_v5, %v5805_v5  ;;  %v5806_v49 = vmax.f32 %v4364_v1, %v5678_v21  ;;  %v4362_v40 = vmax.f32 %v10685_v9, %v4234_v12  ;;  %v4011_v31 = vadd.f32 %v10310_v48, %v8344_v6  ;;  %v4002_v29 = vpop.f32.mrb[221].mxu0  ;;  %v5444_v45 = vpop.f32.mrb[221].mxu1  ;;  %v10690_v9 = vld [vmem:[#allocation58_spill] sm:$0xff] }
 0x2a7   : > { %v7668_v10 = vpack.c.bf16 %v5803_v53, %v5803_v53  ;;  %v5453_v11 = vadd.f32 %v10310_v48, %v8478_v2  ;;  %v4003_v15 = vadd.f32 %v10310_v48, %v4002_v29  ;;  %v5445_v56 = vadd.f32 %v10310_v48, %v5444_v45  ;;  %v8345_v54 = vpop.f32.mrb[222].mxu0  ;;  %v8479_v14 = vpop.f32.mrb[222].mxu1  ;;  %v10691_v45 = vld [vmem:[#allocation59_spill] sm:$0xff] }
 0x2a8   : > { %6446 = vst.msk [vmem:[%s9871_s6 + $0x168] sm:$0xf] %vm6355_vm2, %v7670_v18  ;;  %v7671_v50 = vpack.c.bf16 %v5806_v49, %v5806_v49  ;;  %v5804_v32 = vmax.f32 %v4362_v40, %v5676_v30  ;;  %v4239_v24 = vmax.f32 %v4011_v31, 0.0  ;;  %v4014_v16 = vadd.f32 %v10310_v48, %v8345_v54  ;;  %v4005_v61 = vpop.f32.mrb[223].mxu0  ;;  %v5447_v19 = vpop.f32.mrb[223].mxu1 }
 0x2a9   : > { %6444 = vst.msk [vmem:[%s9871_s6 + $0x160] sm:$0xf] %vm6355_vm2, %v7668_v10  ;;  %v5681_v22 = vmax.f32 %v5453_v11, 0.0  ;;  %v4237_v51 = vmax.f32 %v4003_v15, 0.0  ;;  %v5679_v35 = vmax.f32 %v5445_v56, 0.0  ;;  %v5456_v38 = vadd.f32 %v10310_v48, %v8479_v14  ;;  %v10692_v56 = vld [vmem:[#allocation60_spill] sm:$0xff] }
 0x2aa   : > { %6447 = vst.msk [vmem:[%s9871_s6 + $0x16c] sm:$0xf] %vm6355_vm2, %v7671_v50  ;;  %v7669_v27 = vpack.c.bf16 %v5804_v32, %v5804_v32  ;;  %v4367_v44 = vmax.f32 %v10686_v7, %v4239_v24  ;;  %v4240_v59 = vmax.f32 %v4014_v16, 0.0  ;;  %v4006_v17 = vadd.f32 %v10310_v48, %v4005_v61 }
 0x2ab   : > { %v4365_v55 = vmax.f32 %v10687_v37, %v4237_v51  ;;  %v5448_v36 = vadd.f32 %v10310_v48, %v5447_v19  ;;  %v5682_v60 = vmax.f32 %v5456_v38, 0.0  ;;  %v10693_v51 = vld [vmem:[#allocation61_spill] sm:$0xff] }
 0x2ac   : > { %6445 = vst.msk [vmem:[%s9871_s6 + $0x164] sm:$0xf] %vm6355_vm2, %v7669_v27  ;;  %v5809_v33 = vmax.f32 %v4367_v44, %v5681_v22  ;;  %v4368_v23 = vmax.f32 %v10688_v43, %v4240_v59  ;;  %v4238_v39 = vmax.f32 %v4006_v17, 0.0 }
 0x2ad   : > { %v5807_v58 = vmax.f32 %v4365_v55, %v5679_v35  ;;  %v5680_v52 = vmax.f32 %v5448_v36, 0.0  ;;  %v8348_v28 = vpop.f32.mrb[224].mxu0  ;;  %v8482_v42 = vpop.f32.mrb[224].mxu1 }
 0x2ae   : > { %v7674_v20 = vpack.c.bf16 %v5809_v33, %v5809_v33  ;;  %v5810_v26 = vmax.f32 %v4368_v23, %v5682_v60  ;;  %v4366_v8 = vmax.f32 %v10689_v63, %v4238_v39  ;;  %v4027_v34 = vadd.f32 %v10310_v48, %v8348_v28  ;;  %v4018_v57 = vpop.f32.mrb[225].mxu0  ;;  %v5460_v41 = vpop.f32.mrb[225].mxu1  ;;  %v10694_v63 = vld [vmem:[#allocation62_spill] sm:$0xff] }
 0x2af   : > { %v7672_v4 = vpack.c.bf16 %v5807_v58, %v5807_v58  ;;  %v5469_v46 = vadd.f32 %v10310_v48, %v8482_v42  ;;  %v4019_v62 = vadd.f32 %v10310_v48, %v4018_v57  ;;  %v5461_v13 = vadd.f32 %v10310_v48, %v5460_v41  ;;  %v8349_v47 = vpop.f32.mrb[226].mxu0  ;;  %v8483_v0 = vpop.f32.mrb[226].mxu1  ;;  %v10695_v41 = vld [vmem:[#allocation63_spill] sm:$0xff] }
 0x2b0   : > { %6450 = vst.msk [vmem:[%s9871_s6 + $0x178] sm:$0xf] %vm6355_vm2, %v7674_v20  ;;  %v7675_v5 = vpack.c.bf16 %v5810_v26, %v5810_v26  ;;  %v5808_v25 = vmax.f32 %v4366_v8, %v5680_v52  ;;  %v4243_v1 = vmax.f32 %v4027_v34, 0.0  ;;  %v4030_v21 = vadd.f32 %v10310_v48, %v8349_v47  ;;  %v4021_v12 = vpop.f32.mrb[227].mxu0  ;;  %v5463_v53 = vpop.f32.mrb[227].mxu1 }
 0x2b1   : > { %6448 = vst.msk [vmem:[%s9871_s6 + $0x170] sm:$0xf] %vm6355_vm2, %v7672_v4  ;;  %v5685_v30 = vmax.f32 %v5469_v46, 0.0  ;;  %v4241_v6 = vmax.f32 %v4019_v62, 0.0  ;;  %v5683_v2 = vmax.f32 %v5461_v13, 0.0  ;;  %v5472_v18 = vadd.f32 %v10310_v48, %v8483_v0  ;;  %v10696_v13 = vld [vmem:[#allocation64_spill] sm:$0xff] }
 0x2b2   : > { %6451 = vst.msk [vmem:[%s9871_s6 + $0x17c] sm:$0xf] %vm6355_vm2, %v7675_v5  ;;  %v7673_v49 = vpack.c.bf16 %v5808_v25, %v5808_v25  ;;  %v4371_v40 = vmax.f32 %v10690_v9, %v4243_v1  ;;  %v4244_v31 = vmax.f32 %v4030_v21, 0.0  ;;  %v4022_v29 = vadd.f32 %v10310_v48, %v4021_v12 }
 0x2b3   : > { %v4369_v10 = vmax.f32 %v10691_v45, %v4241_v6  ;;  %v5464_v11 = vadd.f32 %v10310_v48, %v5463_v53  ;;  %v5686_v14 = vmax.f32 %v5472_v18, 0.0  ;;  %v10697_v6 = vld [vmem:[#allocation65_spill] sm:$0xff] }
 0x2b4   : > { %6449 = vst.msk [vmem:[%s9871_s6 + $0x174] sm:$0xf] %vm6355_vm2, %v7673_v49  ;;  %v5813_v15 = vmax.f32 %v4371_v40, %v5685_v30  ;;  %v4372_v54 = vmax.f32 %v10692_v56, %v4244_v31  ;;  %v4242_v50 = vmax.f32 %v4022_v29, 0.0 }
 0x2b5   : > { %v5811_v32 = vmax.f32 %v4369_v10, %v5683_v2  ;;  %v5684_v24 = vmax.f32 %v5464_v11, 0.0  ;;  %v8352_v16 = vpop.f32.mrb[228].mxu0  ;;  %v8486_v61 = vpop.f32.mrb[228].mxu1 }
 0x2b6   : > { %v7678_v19 = vpack.c.bf16 %v5813_v15, %v5813_v15  ;;  %v5814_v22 = vmax.f32 %v4372_v54, %v5686_v14  ;;  %v4370_v35 = vmax.f32 %v10693_v51, %v4242_v50  ;;  %v4043_v38 = vadd.f32 %v10310_v48, %v8352_v16  ;;  %v4034_v27 = vpop.f32.mrb[229].mxu0  ;;  %v5476_v7 = vpop.f32.mrb[229].mxu1  ;;  %v10698_v51 = vld [vmem:[#allocation66_spill] sm:$0xff] }
 0x2b7   : > { %v7676_v44 = vpack.c.bf16 %v5811_v32, %v5811_v32  ;;  %v5485_v59 = vadd.f32 %v10310_v48, %v8486_v61  ;;  %v4035_v17 = vadd.f32 %v10310_v48, %v4034_v27  ;;  %v5477_v37 = vadd.f32 %v10310_v48, %v5476_v7  ;;  %v8353_v55 = vpop.f32.mrb[230].mxu0  ;;  %v8487_v36 = vpop.f32.mrb[230].mxu1  ;;  %v10699_v7 = vld [vmem:[#allocation67_spill] sm:$0xff] }
 0x2b8   : > { %6454 = vst.msk [vmem:[%s9871_s6 + $0x188] sm:$0xf] %vm6355_vm2, %v7678_v19  ;;  %v7679_v33 = vpack.c.bf16 %v5814_v22, %v5814_v22  ;;  %v5812_v43 = vmax.f32 %v4370_v35, %v5684_v24  ;;  %v4247_v23 = vmax.f32 %v4043_v38, 0.0  ;;  %v4046_v60 = vadd.f32 %v10310_v48, %v8353_v55  ;;  %v4037_v39 = vpop.f32.mrb[231].mxu0  ;;  %v5479_v58 = vpop.f32.mrb[231].mxu1 }
 0x2b9   : > { %6452 = vst.msk [vmem:[%s9871_s6 + $0x180] sm:$0xf] %vm6355_vm2, %v7676_v44  ;;  %v5689_v52 = vmax.f32 %v5485_v59, 0.0  ;;  %v4245_v28 = vmax.f32 %v4035_v17, 0.0  ;;  %v5687_v42 = vmax.f32 %v5477_v37, 0.0  ;;  %v5488_v20 = vadd.f32 %v10310_v48, %v8487_v36  ;;  %v10700_v37 = vld [vmem:[#allocation68_spill] sm:$0xff] }
 0x2ba   : > { %6455 = vst.msk [vmem:[%s9871_s6 + $0x18c] sm:$0xf] %vm6355_vm2, %v7679_v33  ;;  %v7677_v26 = vpack.c.bf16 %v5812_v43, %v5812_v43  ;;  %v4375_v8 = vmax.f32 %v10694_v63, %v4247_v23  ;;  %v4248_v34 = vmax.f32 %v4046_v60, 0.0  ;;  %v4038_v57 = vadd.f32 %v10310_v48, %v4037_v39 }
 0x2bb   : > { %v4373_v4 = vmax.f32 %v10695_v41, %v4245_v28  ;;  %v5480_v46 = vadd.f32 %v10310_v48, %v5479_v58  ;;  %v5690_v0 = vmax.f32 %v5488_v20, 0.0  ;;  %v10701_v28 = vld [vmem:[#allocation69_spill] sm:$0xff] }
 0x2bc   : > { %6453 = vst.msk [vmem:[%s9871_s6 + $0x184] sm:$0xf] %vm6355_vm2, %v7677_v26  ;;  %v5817_v62 = vmax.f32 %v4375_v8, %v5689_v52  ;;  %v4376_v47 = vmax.f32 %v10696_v13, %v4248_v34  ;;  %v4246_v5 = vmax.f32 %v4038_v57, 0.0 }
 0x2bd   : > { %v5815_v25 = vmax.f32 %v4373_v4, %v5687_v42  ;;  %v5688_v1 = vmax.f32 %v5480_v46, 0.0  ;;  %v8356_v21 = vpop.f32.mrb[232].mxu0  ;;  %v8490_v12 = vpop.f32.mrb[232].mxu1 }
 0x2be   : > { %v7682_v53 = vpack.c.bf16 %v5817_v62, %v5817_v62  ;;  %v5818_v30 = vmax.f32 %v4376_v47, %v5690_v0  ;;  %v4374_v2 = vmax.f32 %v10697_v6, %v4246_v5  ;;  %v4059_v18 = vadd.f32 %v10310_v48, %v8356_v21  ;;  %v4050_v49 = vpop.f32.mrb[233].mxu0  ;;  %v5492_v9 = vpop.f32.mrb[233].mxu1  ;;  %v10702_v6 = vld [vmem:[#allocation70_spill] sm:$0xff] }
 0x2bf   : > { %v7680_v40 = vpack.c.bf16 %v5815_v25, %v5815_v25  ;;  %v5501_v31 = vadd.f32 %v10310_v48, %v8490_v12  ;;  %v4051_v29 = vadd.f32 %v10310_v48, %v4050_v49  ;;  %v5493_v45 = vadd.f32 %v10310_v48, %v5492_v9  ;;  %v8357_v10 = vpop.f32.mrb[234].mxu0  ;;  %v8491_v11 = vpop.f32.mrb[234].mxu1  ;;  %v10703_v9 = vld [vmem:[#allocation71_spill] sm:$0xff] }
 0x2c0   : > { %6458 = vst.msk [vmem:[%s9871_s6 + $0x198] sm:$0xf] %vm6355_vm2, %v7682_v53  ;;  %v7683_v15 = vpack.c.bf16 %v5818_v30, %v5818_v30  ;;  %v5816_v56 = vmax.f32 %v4374_v2, %v5688_v1  ;;  %v4251_v54 = vmax.f32 %v4059_v18, 0.0  ;;  %v4062_v14 = vadd.f32 %v10310_v48, %v8357_v10  ;;  %v4053_v50 = vpop.f32.mrb[235].mxu0  ;;  %v5495_v32 = vpop.f32.mrb[235].mxu1 }
 0x2c1   : > { %6456 = vst.msk [vmem:[%s9871_s6 + $0x190] sm:$0xf] %vm6355_vm2, %v7680_v40  ;;  %v5693_v24 = vmax.f32 %v5501_v31, 0.0  ;;  %v4249_v16 = vmax.f32 %v4051_v29, 0.0  ;;  %v5691_v61 = vmax.f32 %v5493_v45, 0.0  ;;  %v5504_v19 = vadd.f32 %v10310_v48, %v8491_v11  ;;  %v10704_v45 = vld [vmem:[#allocation72_spill] sm:$0xff] }
 0x2c2   : > { %6459 = vst.msk [vmem:[%s9871_s6 + $0x19c] sm:$0xf] %vm6355_vm2, %v7683_v15  ;;  %v7681_v22 = vpack.c.bf16 %v5816_v56, %v5816_v56  ;;  %v4379_v35 = vmax.f32 %v10698_v51, %v4251_v54  ;;  %v4252_v38 = vmax.f32 %v4062_v14, 0.0  ;;  %v4054_v27 = vadd.f32 %v10310_v48, %v4053_v50 }
 0x2c3   : > { %v4377_v44 = vmax.f32 %v10699_v7, %v4249_v16  ;;  %v5496_v59 = vadd.f32 %v10310_v48, %v5495_v32  ;;  %v5694_v36 = vmax.f32 %v5504_v19, 0.0  ;;  %v10705_v16 = vld [vmem:[#allocation73_spill] sm:$0xff] }
 0x2c4   : > { %6457 = vst.msk [vmem:[%s9871_s6 + $0x194] sm:$0xf] %vm6355_vm2, %v7681_v22  ;;  %v5821_v17 = vmax.f32 %v4379_v35, %v5693_v24  ;;  %v4380_v55 = vmax.f32 %v10700_v37, %v4252_v38  ;;  %v4250_v33 = vmax.f32 %v4054_v27, 0.0 }
 0x2c5   : > { %v5819_v43 = vmax.f32 %v4377_v44, %v5691_v61  ;;  %v5692_v23 = vmax.f32 %v5496_v59, 0.0  ;;  %v8360_v60 = vpop.f32.mrb[236].mxu0  ;;  %v8494_v39 = vpop.f32.mrb[236].mxu1 }
 0x2c6   : > { %v7686_v58 = vpack.c.bf16 %v5821_v17, %v5821_v17  ;;  %v5822_v52 = vmax.f32 %v4380_v55, %v5694_v36  ;;  %v4378_v42 = vmax.f32 %v10701_v28, %v4250_v33  ;;  %v4075_v20 = vadd.f32 %v10310_v48, %v8360_v60  ;;  %v4066_v26 = vpop.f32.mrb[237].mxu0  ;;  %v5508_v63 = vpop.f32.mrb[237].mxu1  ;;  %v10706_v28 = vld [vmem:[#allocation74_spill] sm:$0xff] }
 0x2c7   : > { %v7684_v8 = vpack.c.bf16 %v5819_v43, %v5819_v43  ;;  %v5517_v34 = vadd.f32 %v10310_v48, %v8494_v39  ;;  %v4067_v57 = vadd.f32 %v10310_v48, %v4066_v26  ;;  %v5509_v41 = vadd.f32 %v10310_v48, %v5508_v63  ;;  %v8361_v4 = vpop.f32.mrb[238].mxu0  ;;  %v8495_v46 = vpop.f32.mrb[238].mxu1  ;;  %v10707_v63 = vld [vmem:[#allocation75_spill] sm:$0xff] }
 0x2c8   : > { %6462 = vst.msk [vmem:[%s9871_s6 + $0x1a8] sm:$0xf] %vm6355_vm2, %v7686_v58  ;;  %v7687_v62 = vpack.c.bf16 %v5822_v52, %v5822_v52  ;;  %v5820_v13 = vmax.f32 %v4378_v42, %v5692_v23  ;;  %v4255_v47 = vmax.f32 %v4075_v20, 0.0  ;;  %v4078_v0 = vadd.f32 %v10310_v48, %v8361_v4  ;;  %v4069_v5 = vpop.f32.mrb[239].mxu0  ;;  %v5511_v25 = vpop.f32.mrb[239].mxu1 }
 0x2c9   : > { %6460 = vst.msk [vmem:[%s9871_s6 + $0x1a0] sm:$0xf] %vm6355_vm2, %v7684_v8  ;;  %v5697_v1 = vmax.f32 %v5517_v34, 0.0  ;;  %v4253_v21 = vmax.f32 %v4067_v57, 0.0  ;;  %v5695_v12 = vmax.f32 %v5509_v41, 0.0  ;;  %v5520_v53 = vadd.f32 %v10310_v48, %v8495_v46  ;;  %v10708_v41 = vld [vmem:[#allocation76_spill] sm:$0xff] }
 0x2ca   : > { %6463 = vst.msk [vmem:[%s9871_s6 + $0x1ac] sm:$0xf] %vm6355_vm2, %v7687_v62  ;;  %v7685_v30 = vpack.c.bf16 %v5820_v13, %v5820_v13  ;;  %v4383_v2 = vmax.f32 %v10702_v6, %v4255_v47  ;;  %v4256_v18 = vmax.f32 %v4078_v0, 0.0  ;;  %v4070_v49 = vadd.f32 %v10310_v48, %v4069_v5 }
 0x2cb   : > { %v4381_v40 = vmax.f32 %v10703_v9, %v4253_v21  ;;  %v5512_v31 = vadd.f32 %v10310_v48, %v5511_v25  ;;  %v5698_v11 = vmax.f32 %v5520_v53, 0.0  ;;  %v10709_v21 = vld [vmem:[#allocation77_spill] sm:$0xff] }
 0x2cc   : > { %6461 = vst.msk [vmem:[%s9871_s6 + $0x1a4] sm:$0xf] %vm6355_vm2, %v7685_v30  ;;  %v5825_v29 = vmax.f32 %v4383_v2, %v5697_v1  ;;  %v4384_v10 = vmax.f32 %v10704_v45, %v4256_v18  ;;  %v4254_v15 = vmax.f32 %v4070_v49, 0.0 }
 0x2cd   : > { %v5823_v56 = vmax.f32 %v4381_v40, %v5695_v12  ;;  %v5696_v54 = vmax.f32 %v5512_v31, 0.0  ;;  %v8364_v14 = vpop.f32.mrb[240].mxu0 }
 0x2ce   : > { %v8498_v50 = vpop.f32.mrb[240].mxu1  ;;  %v7690_v32 = vpack.c.bf16 %v5825_v29, %v5825_v29  ;;  %v5826_v24 = vmax.f32 %v4384_v10, %v5698_v11  ;;  %v4382_v61 = vmax.f32 %v10705_v16, %v4254_v15  ;;  %v4091_v19 = vadd.f32 %v10310_v48, %v8364_v14  ;;  %v4082_v22 = vpop.f32.mrb[241].mxu0  ;;  %v10710_v16 = vld [vmem:[#allocation78_spill] sm:$0xff] }
 0x2cf   : > { %v5524_v51 = vpop.f32.mrb[241].mxu1  ;;  %v7688_v35 = vpack.c.bf16 %v5823_v56, %v5823_v56  ;;  %v5533_v38 = vadd.f32 %v10310_v48, %v8498_v50  ;;  %v4083_v27 = vadd.f32 %v10310_v48, %v4082_v22  ;;  %v8365_v44 = vpop.f32.mrb[242].mxu0 }
 0x2d0   : > { %v5525_v7 = vadd.f32 %v10310_v48, %v5524_v51  ;;  %v8499_v59 = vpop.f32.mrb[242].mxu1  ;;  %6466 = vst.msk [vmem:[%s9871_s6 + $0x1b8] sm:$0xf] %vm6355_vm2, %v7690_v32  ;;  %v7691_v17 = vpack.c.bf16 %v5826_v24, %v5826_v24  ;;  %v5824_v37 = vmax.f32 %v4382_v61, %v5696_v54  ;;  %v4259_v55 = vmax.f32 %v4091_v19, 0.0  ;;  %v4085_v33 = vpop.f32.mrb[243].mxu0  ;;  %v10711_v51 = vld [vmem:[#allocation79_spill] sm:$0xff] }
 0x2d1   : > { %v4094_v36 = vadd.f32 %v10310_v48, %v8365_v44  ;;  %v5527_v43 = vpop.f32.mrb[243].mxu1  ;;  %6464 = vst.msk [vmem:[%s9871_s6 + $0x1b0] sm:$0xf] %vm6355_vm2, %v7688_v35  ;;  %v5701_v23 = vmax.f32 %v5533_v38, 0.0  ;;  %v4257_v60 = vmax.f32 %v4083_v27, 0.0  ;;  %v5536_v58 = vadd.f32 %v10310_v48, %v8499_v59 }
 0x2d2   : > { %v5699_v39 = vmax.f32 %v5525_v7, 0.0  ;;  %6467 = vst.msk [vmem:[%s9871_s6 + $0x1bc] sm:$0xf] %vm6355_vm2, %v7691_v17  ;;  %v7689_v52 = vpack.c.bf16 %v5824_v37, %v5824_v37  ;;  %v4387_v42 = vmax.f32 %v10706_v28, %v4259_v55  ;;  %v4086_v26 = vadd.f32 %v10310_v48, %v4085_v33  ;;  %v10712_v7 = vld [vmem:[#allocation80_spill] sm:$0xff] }
 0x2d3   : > { %v4260_v20 = vmax.f32 %v4094_v36, 0.0  ;;  %v4385_v8 = vmax.f32 %v10707_v63, %v4257_v60  ;;  %v5528_v34 = vadd.f32 %v10310_v48, %v5527_v43  ;;  %v5702_v46 = vmax.f32 %v5536_v58, 0.0  ;;  %v10713_v60 = vld [vmem:[#allocation81_spill] sm:$0xff] }
 0x2d4   : > { %6465 = vst.msk [vmem:[%s9871_s6 + $0x1b4] sm:$0xf] %vm6355_vm2, %v7689_v52  ;;  %v5829_v57 = vmax.f32 %v4387_v42, %v5701_v23  ;;  %v4258_v62 = vmax.f32 %v4086_v26, 0.0 }
 0x2d5   : > { %v4388_v4 = vmax.f32 %v10708_v41, %v4260_v20  ;;  %v5827_v13 = vmax.f32 %v4385_v8, %v5699_v39  ;;  %v5700_v47 = vmax.f32 %v5528_v34, 0.0  ;;  %v8368_v0 = vpop.f32.mrb[244].mxu0 }
 0x2d6   : > { %v8502_v5 = vpop.f32.mrb[244].mxu1  ;;  %v7694_v25 = vpack.c.bf16 %v5829_v57, %v5829_v57  ;;  %v4386_v12 = vmax.f32 %v10709_v21, %v4258_v62  ;;  %v4107_v53 = vadd.f32 %v10310_v48, %v8368_v0  ;;  %v4098_v30 = vpop.f32.mrb[245].mxu0  ;;  %v10714_v21 = vld [vmem:[#allocation82_spill] sm:$0xff] }
 0x2d7   : > { %v5830_v1 = vmax.f32 %v4388_v4, %v5702_v46  ;;  %v5540_v6 = vpop.f32.mrb[245].mxu1  ;;  %v7692_v2 = vpack.c.bf16 %v5827_v13, %v5827_v13  ;;  %v5549_v18 = vadd.f32 %v10310_v48, %v8502_v5  ;;  %v4099_v49 = vadd.f32 %v10310_v48, %v4098_v30  ;;  %v8369_v40 = vpop.f32.mrb[246].mxu0 }
 0x2d8   : > { %v5541_v9 = vadd.f32 %v10310_v48, %v5540_v6  ;;  %v8503_v31 = vpop.f32.mrb[246].mxu1  ;;  %6470 = vst.msk [vmem:[%s9871_s6 + $0x1c8] sm:$0xf] %vm6355_vm2, %v7694_v25  ;;  %v5828_v45 = vmax.f32 %v4386_v12, %v5700_v47  ;;  %v4263_v10 = vmax.f32 %v4107_v53, 0.0  ;;  %v4110_v11 = vadd.f32 %v10310_v48, %v8369_v40  ;;  %v4101_v15 = vpop.f32.mrb[247].mxu0  ;;  %v10715_v6 = vld [vmem:[#allocation83_spill] sm:$0xff] }
 0x2d9   : > { %v7695_v29 = vpack.c.bf16 %v5830_v1, %v5830_v1  ;;  %v5543_v56 = vpop.f32.mrb[247].mxu1  ;;  %6468 = vst.msk [vmem:[%s9871_s6 + $0x1c0] sm:$0xf] %vm6355_vm2, %v7692_v2  ;;  %v5705_v54 = vmax.f32 %v5549_v18, 0.0  ;;  %v4261_v14 = vmax.f32 %v4099_v49, 0.0  ;;  %v5552_v32 = vadd.f32 %v10310_v48, %v8503_v31 }
 0x2da   : > { %v5703_v50 = vmax.f32 %v5541_v9, 0.0  ;;  %v7693_v24 = vpack.c.bf16 %v5828_v45, %v5828_v45  ;;  %v4391_v61 = vmax.f32 %v10710_v16, %v4263_v10  ;;  %v4264_v19 = vmax.f32 %v4110_v11, 0.0  ;;  %v10716_v9 = vld [vmem:[#allocation84_spill] sm:$0xff] }
 0x2db   : > { %6471 = vst.msk [vmem:[%s9871_s6 + $0x1cc] sm:$0xf] %vm6355_vm2, %v7695_v29  ;;  %v4102_v22 = vadd.f32 %v10310_v48, %v4101_v15  ;;  %v4389_v35 = vmax.f32 %v10711_v51, %v4261_v14  ;;  %v5544_v38 = vadd.f32 %v10310_v48, %v5543_v56  ;;  %v5706_v59 = vmax.f32 %v5552_v32, 0.0  ;;  %v10717_v14 = vld [vmem:[#allocation85_spill] sm:$0xff] }
 0x2dc   : > { %6469 = vst.msk [vmem:[%s9871_s6 + $0x1c4] sm:$0xf] %vm6355_vm2, %v7693_v24  ;;  %v5833_v27 = vmax.f32 %v4391_v61, %v5705_v54  ;;  %v4392_v44 = vmax.f32 %v10712_v7, %v4264_v19 }
 0x2dd   : > { %v4262_v17 = vmax.f32 %v4102_v22, 0.0  ;;  %v5831_v37 = vmax.f32 %v4389_v35, %v5703_v50  ;;  %v5704_v55 = vmax.f32 %v5544_v38, 0.0  ;;  %v8372_v36 = vpop.f32.mrb[248].mxu0 }
 0x2de   : > { %v8506_v33 = vpop.f32.mrb[248].mxu1  ;;  %v7698_v43 = vpack.c.bf16 %v5833_v27, %v5833_v27  ;;  %v5834_v23 = vmax.f32 %v4392_v44, %v5706_v59  ;;  %v4123_v58 = vadd.f32 %v10310_v48, %v8372_v36  ;;  %v4114_v52 = vpop.f32.mrb[249].mxu0 }
 0x2df   : > { %v4390_v39 = vmax.f32 %v10713_v60, %v4262_v17  ;;  %v5556_v28 = vpop.f32.mrb[249].mxu1  ;;  %v7696_v42 = vpack.c.bf16 %v5831_v37, %v5831_v37  ;;  %v5565_v20 = vadd.f32 %v10310_v48, %v8506_v33  ;;  %v4115_v26 = vadd.f32 %v10310_v48, %v4114_v52  ;;  %v8373_v8 = vpop.f32.mrb[250].mxu0  ;;  %v10718_v52 = vld [vmem:[#allocation86_spill] sm:$0xff] }
 0x2e0   : > { %v5557_v63 = vadd.f32 %v10310_v48, %v5556_v28  ;;  %v8507_v34 = vpop.f32.mrb[250].mxu1  ;;  %6474 = vst.msk [vmem:[%s9871_s6 + $0x1d8] sm:$0xf] %vm6355_vm2, %v7698_v43  ;;  %v7699_v57 = vpack.c.bf16 %v5834_v23, %v5834_v23  ;;  %v4267_v4 = vmax.f32 %v4123_v58, 0.0  ;;  %v4126_v46 = vadd.f32 %v10310_v48, %v8373_v8  ;;  %v4117_v62 = vpop.f32.mrb[251].mxu0 }
 0x2e1   : > { %v5832_v41 = vmax.f32 %v4390_v39, %v5704_v55  ;;  %v5559_v13 = vpop.f32.mrb[251].mxu1  ;;  %6472 = vst.msk [vmem:[%s9871_s6 + $0x1d0] sm:$0xf] %vm6355_vm2, %v7696_v42  ;;  %v5709_v47 = vmax.f32 %v5565_v20, 0.0  ;;  %v4265_v0 = vmax.f32 %v4115_v26, 0.0  ;;  %v5568_v25 = vadd.f32 %v10310_v48, %v8507_v34  ;;  %v10719_v26 = vld [vmem:[#allocation87_spill] sm:$0xff] }
 0x2e2   : > { %v5707_v5 = vmax.f32 %v5557_v63, 0.0  ;;  %6475 = vst.msk [vmem:[%s9871_s6 + $0x1dc] sm:$0xf] %vm6355_vm2, %v7699_v57  ;;  %v4395_v12 = vmax.f32 %v10714_v21, %v4267_v4  ;;  %v4268_v53 = vmax.f32 %v4126_v46, 0.0  ;;  %v4118_v30 = vadd.f32 %v10310_v48, %v4117_v62  ;;  %v10720_v4 = vld [vmem:[#allocation88_spill] sm:$0xff] }
 0x2e3   : > { %v7697_v1 = vpack.c.bf16 %v5832_v41, %v5832_v41  ;;  %v4393_v2 = vmax.f32 %v10715_v6, %v4265_v0  ;;  %v5560_v18 = vadd.f32 %v10310_v48, %v5559_v13  ;;  %v5710_v31 = vmax.f32 %v5568_v25, 0.0 }
 0x2e4   : > { %v5837_v49 = vmax.f32 %v4395_v12, %v5709_v47  ;;  %v4396_v40 = vmax.f32 %v10716_v9, %v4268_v53  ;;  %v4266_v29 = vmax.f32 %v4118_v30, 0.0 }
 0x2e5   : > { %6473 = vst.msk [vmem:[%s9871_s6 + $0x1d4] sm:$0xf] %vm6355_vm2, %v7697_v1  ;;  %v5835_v45 = vmax.f32 %v4393_v2, %v5707_v5  ;;  %v5708_v10 = vmax.f32 %v5560_v18, 0.0  ;;  %v8376_v11 = vpop.f32.mrb[252].mxu0 }
 0x2e6   : > { %v8510_v15 = vpop.f32.mrb[252].mxu1  ;;  %v7702_v56 = vpack.c.bf16 %v5837_v49, %v5837_v49  ;;  %v5838_v54 = vmax.f32 %v4396_v40, %v5710_v31  ;;  %v4394_v50 = vmax.f32 %v10717_v14, %v4266_v29  ;;  %v4139_v32 = vadd.f32 %v10310_v48, %v8376_v11  ;;  %v4130_v24 = vpop.f32.mrb[253].mxu0 }
 0x2e7   : > { %v5572_v16 = vpop.f32.mrb[253].mxu1  ;;  %v7700_v61 = vpack.c.bf16 %v5835_v45, %v5835_v45  ;;  %v5581_v19 = vadd.f32 %v10310_v48, %v8510_v15  ;;  %v4131_v22 = vadd.f32 %v10310_v48, %v4130_v24  ;;  %v8377_v35 = vpop.f32.mrb[254].mxu0 }
 0x2e8   : > { %v5573_v51 = vadd.f32 %v10310_v48, %v5572_v16  ;;  %v8511_v38 = vpop.f32.mrb[254].mxu1  ;;  %6478 = vst.msk [vmem:[%s9871_s6 + $0x1e8] sm:$0xf] %vm6355_vm2, %v7702_v56  ;;  %v7703_v27 = vpack.c.bf16 %v5838_v54, %v5838_v54  ;;  %v5836_v7 = vmax.f32 %v4394_v50, %v5708_v10  ;;  %v4271_v44 = vmax.f32 %v4139_v32, 0.0  ;;  %v4133_v17 = vpop.f32.mrb[255].mxu0 }
 0x2e9   : > { %v4142_v59 = vadd.f32 %v10310_v48, %v8377_v35  ;;  %v5575_v37 = vpop.f32.mrb[255].mxu1  ;;  %6476 = vst.msk [vmem:[%s9871_s6 + $0x1e0] sm:$0xf] %vm6355_vm2, %v7700_v61  ;;  %v5713_v55 = vmax.f32 %v5581_v19, 0.0  ;;  %v4269_v36 = vmax.f32 %v4131_v22, 0.0  ;;  %v5584_v43 = vadd.f32 %v10310_v48, %v8511_v38 }
 0x2ea   : > { %v5711_v33 = vmax.f32 %v5573_v51, 0.0  ;;  %6479 = vst.msk [vmem:[%s9871_s6 + $0x1ec] sm:$0xf] %vm6355_vm2, %v7703_v27  ;;  %v7701_v23 = vpack.c.bf16 %v5836_v7, %v5836_v7  ;;  %v4399_v60 = vmax.f32 %v9836_v3, %v4271_v44  ;;  %v4134_v58 = vadd.f32 %v10310_v48, %v4133_v17 }
 0x2eb   : > { %v4272_v39 = vmax.f32 %v4142_v59, 0.0  ;;  %v4397_v28 = vmax.f32 %v10718_v52, %v4269_v36  ;;  %v5576_v42 = vadd.f32 %v10310_v48, %v5575_v37  ;;  %v5714_v8 = vmax.f32 %v5584_v43, 0.0 }
 0x2ec   : > { %6477 = vst.msk [vmem:[%s9871_s6 + $0x1e4] sm:$0xf] %vm6355_vm2, %v7701_v23  ;;  %v5841_v20 = vmax.f32 %v4399_v60, %v5713_v55  ;;  %v4270_v34 = vmax.f32 %v4134_v58, 0.0 }
 0x2ed   : > { %v4400_v63 = vmax.f32 %v10719_v26, %v4272_v39  ;;  %v5839_v57 = vmax.f32 %v4397_v28, %v5711_v33  ;;  %v5712_v62 = vmax.f32 %v5576_v42, 0.0 }
 0x2ee   : > { %v7706_v3 = vpack.c.bf16 %v5841_v20, %v5841_v20  ;;  %v4398_v46 = vmax.f32 %v10720_v4, %v4270_v34 }
 0x2ef   : > { %v5842_v41 = vmax.f32 %v4400_v63, %v5714_v8  ;;  %v7704_v13 = vpack.c.bf16 %v5839_v57, %v5839_v57 }
 0x2f0   : > { %6482 = vst.msk [vmem:[%s9871_s6 + $0x1f8] sm:$0xf] %vm6355_vm2, %v7706_v3  ;;  %v5840_v48 = vmax.f32 %v4398_v46, %v5712_v62 }
 0x2f1   : > { %v7707_v47 = vpack.c.bf16 %v5842_v41, %v5842_v41  ;;  %6480 = vst.msk [vmem:[%s9871_s6 + $0x1f0] sm:$0xf] %vm6355_vm2, %v7704_v13 }
 0x2f2   : > { %v7705_v0 = vpack.c.bf16 %v5840_v48, %v5840_v48 }
 0x2f3   : > { %6483 = vst.msk [vmem:[%s9871_s6 + $0x1fc] sm:$0xf] %vm6355_vm2, %v7707_v47 }
 0x2f4   : > { %6481 = vst.msk [vmem:[%s9871_s6 + $0x1f4] sm:$0xf] %vm6355_vm2, %v7705_v0 }
 0x2f5 PF: > { %s13_s12 = sadd.s32 1, %s8793_s12  }
 0x2f6   : > { %p10_p4 = scmp.ge.s32.totalorder %s13_s12, 4  }
 0x2f8   :  { %12 = sbr.rel (!%p10_p4) target bundleno = 1 (0x1), region = 65 }

// kernel: forward.4
= control target key start
LH: loop header
LB: loop body
LE: loop exit
PB: predicated region body
PF: predicated region fallthrough
CT: control target
= control target key end

     0   :  { %s2616_s12 = smov 0   ;;  %s3081_s0 = inlined_call_operand.vmem [shape: bf16[2,4,256,72], index: 0, kind: input, shape index: {}]   ;;  %s3082_s1 = inlined_call_operand.vmem [shape: bf16[72,16], index: 1, kind: input, shape index: {}]   ;;  %s3083_s2 = inlined_call_operand.vmem [shape: f32[1,16], index: 2, kind: input, shape index: {}]   ;;  %s3084_s3 = inlined_call_operand.vmem [shape: bf16[2,256,16], index: 3, kind: output, shape index: {}]  }
   0x1 LB: > { %s1947_s13 = sadd.s32 4294967295, %s2594_s12   ;;  %p1951_p0 = scmp.ge.s32.totalorder %s2594_s12, 1  ;;  %s2594_s12 = sphi %s2616_s12, %s13_s12  }
   0x2   : > { %p137_p1 = scmp.lt.s32.totalorder %s2594_s12, 3 }
   0x4   : > { %p138_p2 = pnand %p1951_p0, %p137_p1 }
   0x5   : > { %v2518_v0 = vld [vmem:[%s3082_s1] sm:$0xff] (!%p138_p2)   ;;  %v2519_v1 = vld [vmem:[%s3082_s1 + $0x8] sm:$0xff] (!%p138_p2)   ;;  %p161_p3 = scmp.lt.s32.totalorder (!%p138_p2), %s1947_s13, 1  ;;  %v2520_v2 = vld [vmem:[%s3082_s1 + $0x10] sm:$0xff] (!%p138_p2)   ;;  %vm327_vm0 = vcmask (!%p138_p2), 588800   ;;  %vm376_vm1 = vcmask (!%p138_p2), 1043456  }
   0x6   : > { %141 = sbr.rel (%p138_p2) target bundleno = 373 (0x175), region = 32  ;;  %2338 = vmatprep.subr.bf16.mxu0 (!%p138_p2), %v2518_v0  ;;  %2380 = vmatprep.subr.bf16.mxu1 (!%p138_p2), %v2518_v0  ;;  %v2521_v3 = vld [vmem:[%s3082_s1 + $0x18] sm:$0xff] (!%p138_p2)   ;;  %v2522_v6 = vld [vmem:[%s3082_s1 + $0x20] ss:$0 sps:$4 sm:$0xff] (!%p138_p2)   ;;  %vm1859_vm2 = vcmask (!%p138_p2), 125952  }
   0x7   : > { %2339 = vmatpush3.bf16.msra.mxu0 (!%p138_p2), %v2518_v0  ;;  %2381 = vmatpush3.bf16.msra.mxu1 (!%p138_p2), %v2518_v0  ;;  %v378_v7 = vsel (!%p138_p2), %vm376_vm1, %v2522_v6, 0 }
   0x8   : > { %2340 = vmatprep.subr.bf16.mxu0 (!%p138_p2), %v2519_v1  ;;  %2382 = vmatprep.subr.bf16.mxu1 (!%p138_p2), %v2519_v1 }
   0xb   : > { %2341 = vmatpush3.bf16.msra.mxu0 (!%p138_p2), %v2519_v1  ;;  %2383 = vmatpush3.bf16.msra.mxu1 (!%p138_p2), %v2519_v1 }
   0xc   : > { %2342 = vmatprep.subr.bf16.mxu0 (!%p138_p2), %v2520_v2  ;;  %2384 = vmatprep.subr.bf16.mxu1 (!%p138_p2), %v2520_v2 }
   0xd   : > { %s3086_s13 = smov (!%p161_p3, %s1947_s13), 1 }
   0xe   : > { %s2220_s20 = sshll.u32 %s3086_s13, 9  ;;  %s2221_s30 = sshll.u32 %s3086_s13, 7 }
   0xf   : > { %s2642_s25 = scalar_lea.vmem %s3081_s0, %s2220_s20  ;;  %2343 = vmatpush3.bf16.msra.mxu0 %v2520_v2  ;;  %2385 = vmatpush3.bf16.msra.mxu1 %v2520_v2  ;;  %s2928_s6 = scalar_lea.vmem %s3084_s3, %s2221_s30 }
  0x10   : > { %v2523_v4 = vld [vmem:[%s2642_s25] sm:$0xff]   ;;  %2344 = vmatprep.subr.bf16.mxu0 %v2521_v3  ;;  %2386 = vmatprep.subr.bf16.mxu1 %v2521_v3  ;;  %v2525_v8 = vld [vmem:[%s2642_s25 + $0x8] sm:$0xff]   ;;  %v2527_v10 = vld [vmem:[%s2642_s25 + $0x10] sm:$0xff]  }
  0x11   : > { %v2524_v5 = vld [vmem:[%s2642_s25 + $0x80] sm:$0xff]   ;;  %2348 = vmatprep.mubr.msk.bf16.mxu0 %vm327_vm0, %v2523_v4  ;;  %v2526_v9 = vld [vmem:[%s2642_s25 + $0x88] sm:$0xff]   ;;  %v2528_v11 = vld [vmem:[%s2642_s25 + $0x90] sm:$0xff]  }
  0x12   : > { %2390 = vmatprep.mubr.msk.bf16.mxu1 %vm327_vm0, %v2524_v5  ;;  %v2529_v12 = vld [vmem:[%s2642_s25 + $0x18] sm:$0xff]   ;;  %v2531_v14 = vld [vmem:[%s2642_s25 + $0x20] sm:$0xff]   ;;  %v2533_v16 = vld [vmem:[%s2642_s25 + $0x28] sm:$0xff]  }
  0x13   : > { %2345 = vmatpush3.bf16.msra.mxu0 %v2521_v3  ;;  %2387 = vmatpush3.bf16.msra.mxu1 %v2521_v3  ;;  %v2530_v13 = vld [vmem:[%s2642_s25 + $0x98] sm:$0xff]   ;;  %v2532_v15 = vld [vmem:[%s2642_s25 + $0xa0] sm:$0xff]   ;;  %v2534_v17 = vld [vmem:[%s2642_s25 + $0xa8] sm:$0xff]  }
  0x14   : > { %2506 = vmatprep.subr.msk.bf16.mxu0 %vm376_vm1, %v2522_v6  ;;  %2507 = vmatprep.subr.msk.bf16.mxu1 %vm376_vm1, %v2522_v6  ;;  %v2535_v18 = vld [vmem:[%s2642_s25 + $0x30] sm:$0xff]   ;;  %v2537_v20 = vld [vmem:[%s2642_s25 + $0x38] sm:$0xff]   ;;  %v2539_v22 = vld [vmem:[%s2642_s25 + $0x40] sm:$0xff]  }
  0x15   : > { %v2536_v19 = vld [vmem:[%s2642_s25 + $0xb0] sm:$0xff]   ;;  %v2538_v21 = vld [vmem:[%s2642_s25 + $0xb8] sm:$0xff]   ;;  %v2540_v23 = vld [vmem:[%s2642_s25 + $0xc0] sm:$0xff]  }
  0x16   : > { %v2541_v24 = vld [vmem:[%s2642_s25 + $0x48] sm:$0xff]   ;;  %v2543_v26 = vld [vmem:[%s2642_s25 + $0x50] sm:$0xff]   ;;  %v2545_v28 = vld [vmem:[%s2642_s25 + $0x58] sm:$0xff]  }
  0x17   : > { %2347 = vmatpush3.bf16.msra.mxu0 %v378_v7  ;;  %2389 = vmatpush3.bf16.msra.mxu1 %v378_v7  ;;  %v2542_v25 = vld [vmem:[%s2642_s25 + $0xc8] sm:$0xff]   ;;  %v2544_v27 = vld [vmem:[%s2642_s25 + $0xd0] sm:$0xff]   ;;  %v2546_v29 = vld [vmem:[%s2642_s25 + $0xd8] sm:$0xff]  }
  0x18   : > { %2422 = vmatprep.subr.bf16.mxu0 %v2518_v0  ;;  %2464 = vmatprep.subr.bf16.mxu1 %v2518_v0  ;;  %v2547_v30 = vld [vmem:[%s2642_s25 + $0x60] sm:$0xff]   ;;  %v2549_v32 = vld [vmem:[%s2642_s25 + $0x68] sm:$0xff]   ;;  %v2551_v34 = vld [vmem:[%s2642_s25 + $0x70] sm:$0xff]  }
  0x19   : > { %v2548_v31 = vld [vmem:[%s2642_s25 + $0xe0] sm:$0xff]   ;;  %v2550_v33 = vld [vmem:[%s2642_s25 + $0xe8] sm:$0xff]   ;;  %v2552_v35 = vld [vmem:[%s2642_s25 + $0xf0] sm:$0xff]  }
  0x1a   : > { %2349 = vmatmul.mubr.msk.bf16.vlgmr.msra.gmra.mrb[0].mxu0 %vm327_vm0, %v2525_v8  ;;  %2391 = vmatmul.mubr.msk.bf16.vlgmr.msra.gmra.mrb[0].mxu1 %vm327_vm0, %v2526_v9  ;;  %v2553_v36 = vld [vmem:[%s2642_s25 + $0x78] sm:$0xff]   ;;  %v2555_v38 = vld [vmem:[%s2642_s25 + $0x100] sm:$0xff]   ;;  %v2557_v40 = vld [vmem:[%s2642_s25 + $0x108] sm:$0xff]  }
  0x1b   : > { %2423 = vmatpush3.bf16.msra.mxu0 %v2518_v0  ;;  %2465 = vmatpush3.bf16.msra.mxu1 %v2518_v0  ;;  %v2554_v37 = vld [vmem:[%s2642_s25 + $0xf8] sm:$0xff]   ;;  %v2556_v39 = vld [vmem:[%s2642_s25 + $0x180] sm:$0xff]   ;;  %v2558_v41 = vld [vmem:[%s2642_s25 + $0x188] sm:$0xff]  }
  0x1c   : > { %2352 = vmatprep.mubr.msk.bf16.mxu0 %vm327_vm0, %v2527_v10  ;;  %2394 = vmatprep.mubr.msk.bf16.mxu1 %vm327_vm0, %v2528_v11  ;;  %v2559_v42 = vld [vmem:[%s2642_s25 + $0x110] sm:$0xff]   ;;  %v2561_v44 = vld [vmem:[%s2642_s25 + $0x118] sm:$0xff]   ;;  %v2563_v46 = vld [vmem:[%s2642_s25 + $0x120] sm:$0xff]  }
  0x1d   : > { %2424 = vmatprep.subr.bf16.mxu0 %v2519_v1  ;;  %2466 = vmatprep.subr.bf16.mxu1 %v2519_v1  ;;  %v2560_v43 = vld [vmem:[%s2642_s25 + $0x190] sm:$0xff]   ;;  %v2562_v45 = vld [vmem:[%s2642_s25 + $0x198] sm:$0xff]   ;;  %v2564_v47 = vld [vmem:[%s2642_s25 + $0x1a0] sm:$0xff]  }
  0x1e   : > { %v2565_v48 = vld [vmem:[%s2642_s25 + $0x128] sm:$0xff]   ;;  %v2567_v50 = vld [vmem:[%s2642_s25 + $0x130] sm:$0xff]   ;;  %v2569_v52 = vld [vmem:[%s2642_s25 + $0x138] sm:$0xff]  }
  0x1f   : > { %2425 = vmatpush3.bf16.msra.mxu0 %v2519_v1  ;;  %2467 = vmatpush3.bf16.msra.mxu1 %v2519_v1  ;;  %v2566_v49 = vld [vmem:[%s2642_s25 + $0x1a8] sm:$0xff]   ;;  %v2568_v51 = vld [vmem:[%s2642_s25 + $0x1b0] sm:$0xff]   ;;  %v2570_v53 = vld [vmem:[%s2642_s25 + $0x1b8] sm:$0xff]  }
  0x20   : > { %2426 = vmatprep.subr.bf16.mxu0 %v2520_v2  ;;  %2468 = vmatprep.subr.bf16.mxu1 %v2520_v2  ;;  %v2571_v54 = vld [vmem:[%s2642_s25 + $0x140] sm:$0xff]   ;;  %v2573_v56 = vld [vmem:[%s2642_s25 + $0x148] sm:$0xff]   ;;  %v2575_v58 = vld [vmem:[%s2642_s25 + $0x150] sm:$0xff]  }
  0x21   : > { %v2572_v55 = vld [vmem:[%s2642_s25 + $0x1c0] sm:$0xff]   ;;  %v2574_v57 = vld [vmem:[%s2642_s25 + $0x1c8] sm:$0xff]   ;;  %v2576_v59 = vld [vmem:[%s2642_s25 + $0x1d0] sm:$0xff]  }
  0x22   : > { %2353 = vmatmul.mubr.msk.bf16.gmra.mrb[4].mxu0 %vm327_vm0, %v2529_v12  ;;  %2395 = vmatmul.mubr.msk.bf16.gmra.mrb[4].mxu1 %vm327_vm0, %v2530_v13  ;;  %v2577_v60 = vld [vmem:[%s2642_s25 + $0x158] sm:$0xff]   ;;  %v2579_v62 = vld [vmem:[%s2642_s25 + $0x160] sm:$0xff]   ;;  %v2581_v0 = vld [vmem:[%s2642_s25 + $0x168] sm:$0xff]  }
  0x23   : > { %2356 = vmatprep.mubr.msk.bf16.mxu0 %vm327_vm0, %v2531_v14  ;;  %2398 = vmatprep.mubr.msk.bf16.mxu1 %vm327_vm0, %v2532_v15  ;;  %v2578_v61 = vld [vmem:[%s2642_s25 + $0x1d8] sm:$0xff]   ;;  %v2580_v63 = vld [vmem:[%s2642_s25 + $0x1e0] sm:$0xff]   ;;  %v2582_v1 = vld [vmem:[%s2642_s25 + $0x1e8] sm:$0xff]  }
  0x24   : > { %2427 = vmatpush3.bf16.msra.mxu0 %v2520_v2  ;;  %2469 = vmatpush3.bf16.msra.mxu1 %v2520_v2  ;;  %v2583_v2 = vld [vmem:[%s2642_s25 + $0x170] sm:$0xff]   ;;  %v2585_v4 = vld [vmem:[%s2642_s25 + $0x178] sm:$0xff]  }
  0x25   : > { %2428 = vmatprep.subr.bf16.mxu0 %v2521_v3  ;;  %2470 = vmatprep.subr.bf16.mxu1 %v2521_v3  ;;  %v2586_v5 = vld [vmem:[%s2642_s25 + $0x1f8] sm:$0xff]  }
  0x28   : > { %2429 = vmatpush3.bf16.msra.mxu0 %v2521_v3  ;;  %2471 = vmatpush3.bf16.msra.mxu1 %v2521_v3  ;;  %v2584_v3 = vld [vmem:[%s2642_s25 + $0x1f0] sm:$0xff]  }
  0x29   : > { %2508 = vmatprep.subr.msk.bf16.mxu0 %vm376_vm1, %v2522_v6  ;;  %2509 = vmatprep.subr.msk.bf16.mxu1 %vm376_vm1, %v2522_v6  ;;  %v2783_v6 = vld [vmem:[%s3083_s2] ss:$0 sm:$0xff] }
  0x2a   : > { %2357 = vmatmul.mubr.msk.bf16.gmra.mrb[8].mxu0 %vm327_vm0, %v2533_v16  ;;  %2399 = vmatmul.mubr.msk.bf16.gmra.mrb[8].mxu1 %vm327_vm0, %v2534_v17 }
  0x2b   : > { %2360 = vmatprep.mubr.msk.bf16.mxu0 %vm327_vm0, %v2535_v18  ;;  %2402 = vmatprep.mubr.msk.bf16.mxu1 %vm327_vm0, %v2536_v19 }
  0x2c   : > { %2431 = vmatpush3.bf16.msra.mxu0 %v378_v7  ;;  %2473 = vmatpush3.bf16.msra.mxu1 %v378_v7 }
  0x32   : > { %2361 = vmatmul.mubr.msk.bf16.gmra.mrb[12].mxu0 %vm327_vm0, %v2537_v20  ;;  %2403 = vmatmul.mubr.msk.bf16.gmra.mrb[12].mxu1 %vm327_vm0, %v2538_v21 }
  0x33   : > { %2364 = vmatprep.mubr.msk.bf16.mxu0 %vm327_vm0, %v2539_v22  ;;  %2406 = vmatprep.mubr.msk.bf16.mxu1 %vm327_vm0, %v2540_v23 }
  0x3a   : > { %2365 = vmatmul.mubr.msk.bf16.gmra.mrb[16].mxu0 %vm327_vm0, %v2541_v24  ;;  %2407 = vmatmul.mubr.msk.bf16.gmra.mrb[16].mxu1 %vm327_vm0, %v2542_v25 }
  0x3b   : > { %2368 = vmatprep.mubr.msk.bf16.mxu0 %vm327_vm0, %v2543_v26  ;;  %2410 = vmatprep.mubr.msk.bf16.mxu1 %vm327_vm0, %v2544_v27 }
  0x42   : > { %2369 = vmatmul.mubr.msk.bf16.gmra.mrb[20].mxu0 %vm327_vm0, %v2545_v28  ;;  %2411 = vmatmul.mubr.msk.bf16.gmra.mrb[20].mxu1 %vm327_vm0, %v2546_v29 }
  0x43   : > { %2372 = vmatprep.mubr.msk.bf16.mxu0 %vm327_vm0, %v2547_v30  ;;  %2414 = vmatprep.mubr.msk.bf16.mxu1 %vm327_vm0, %v2548_v31 }
  0x4a   : > { %2373 = vmatmul.mubr.msk.bf16.gmra.mrb[24].mxu0 %vm327_vm0, %v2549_v32  ;;  %2415 = vmatmul.mubr.msk.bf16.gmra.mrb[24].mxu1 %vm327_vm0, %v2550_v33 }
  0x4b   : > { %2376 = vmatprep.mubr.msk.bf16.mxu0 %vm327_vm0, %v2551_v34  ;;  %2418 = vmatprep.mubr.msk.bf16.mxu1 %vm327_vm0, %v2552_v35 }
  0x52   : > { %2377 = vmatmul.mubr.msk.bf16.gmra.mrb[28].mxu0 %vm327_vm0, %v2553_v36  ;;  %2419 = vmatmul.mubr.msk.bf16.gmra.mrb[28].mxu1 %vm327_vm0, %v2554_v37 }
  0x53   : > { %2432 = vmatprep.mubr.msk.bf16.mxu0 %vm327_vm0, %v2555_v38  ;;  %2474 = vmatprep.mubr.msk.bf16.mxu1 %vm327_vm0, %v2556_v39 }
  0x5a   : > { %2433 = vmatmul.mubr.msk.bf16.vlgmr.msra.gmra.mrb[32].mxu0 %vm327_vm0, %v2557_v40  ;;  %2475 = vmatmul.mubr.msk.bf16.vlgmr.msra.gmra.mrb[32].mxu1 %vm327_vm0, %v2558_v41 }
  0x5b   : > { %2436 = vmatprep.mubr.msk.bf16.mxu0 %vm327_vm0, %v2559_v42  ;;  %2478 = vmatprep.mubr.msk.bf16.mxu1 %vm327_vm0, %v2560_v43 }
  0x62   : > { %2437 = vmatmul.mubr.msk.bf16.gmra.mrb[36].mxu0 %vm327_vm0, %v2561_v44  ;;  %2479 = vmatmul.mubr.msk.bf16.gmra.mrb[36].mxu1 %vm327_vm0, %v2562_v45 }
  0x63   : > { %2440 = vmatprep.mubr.msk.bf16.mxu0 %vm327_vm0, %v2563_v46  ;;  %2482 = vmatprep.mubr.msk.bf16.mxu1 %vm327_vm0, %v2564_v47 }
  0x6a   : > { %2441 = vmatmul.mubr.msk.bf16.gmra.mrb[40].mxu0 %vm327_vm0, %v2565_v48  ;;  %2483 = vmatmul.mubr.msk.bf16.gmra.mrb[40].mxu1 %vm327_vm0, %v2566_v49 }
  0x6b   : > { %2444 = vmatprep.mubr.msk.bf16.mxu0 %vm327_vm0, %v2567_v50  ;;  %2486 = vmatprep.mubr.msk.bf16.mxu1 %vm327_vm0, %v2568_v51 }
  0x72   : > { %2445 = vmatmul.mubr.msk.bf16.gmra.mrb[44].mxu0 %vm327_vm0, %v2569_v52  ;;  %2487 = vmatmul.mubr.msk.bf16.gmra.mrb[44].mxu1 %vm327_vm0, %v2570_v53 }
  0x73   : > { %2448 = vmatprep.mubr.msk.bf16.mxu0 %vm327_vm0, %v2571_v54  ;;  %2490 = vmatprep.mubr.msk.bf16.mxu1 %vm327_vm0, %v2572_v55 }
  0x7a   : > { %2449 = vmatmul.mubr.msk.bf16.gmra.mrb[48].mxu0 %vm327_vm0, %v2573_v56  ;;  %2491 = vmatmul.mubr.msk.bf16.gmra.mrb[48].mxu1 %vm327_vm0, %v2574_v57 }
  0x7b   : > { %2452 = vmatprep.mubr.msk.bf16.mxu0 %vm327_vm0, %v2575_v58  ;;  %2494 = vmatprep.mubr.msk.bf16.mxu1 %vm327_vm0, %v2576_v59 }
  0x82   : > { %2453 = vmatmul.mubr.msk.bf16.gmra.mrb[52].mxu0 %vm327_vm0, %v2577_v60  ;;  %2495 = vmatmul.mubr.msk.bf16.gmra.mrb[52].mxu1 %vm327_vm0, %v2578_v61 }
  0x83   : > { %2456 = vmatprep.mubr.msk.bf16.mxu0 %vm327_vm0, %v2579_v62  ;;  %2498 = vmatprep.mubr.msk.bf16.mxu1 %vm327_vm0, %v2580_v63 }
  0x8a   : > { %2457 = vmatmul.mubr.msk.bf16.gmra.mrb[56].mxu0 %vm327_vm0, %v2581_v0  ;;  %2499 = vmatmul.mubr.msk.bf16.gmra.mrb[56].mxu1 %vm327_vm0, %v2582_v1 }
  0x8b   : > { %2460 = vmatprep.mubr.msk.bf16.mxu0 %vm327_vm0, %v2583_v2  ;;  %2502 = vmatprep.mubr.msk.bf16.mxu1 %vm327_vm0, %v2584_v3 }
  0x92   : > { %2461 = vmatmul.mubr.msk.bf16.gmra.mrb[60].mxu0 %vm327_vm0, %v2585_v4  ;;  %2503 = vmatmul.mubr.msk.bf16.gmra.mrb[60].mxu1 %vm327_vm0, %v2586_v5 }
  0xed   : > { %v2350_v7 = vpop.f32.mrb[0].mxu0  ;;  %v2392_v8 = vpop.f32.mrb[0].mxu1 }
  0xee   : > { %v423_v9 = vadd.f32 %v2350_v7, %v2783_v6  ;;  %v777_v10 = vadd.f32 %v2392_v8, %v2783_v6  ;;  %v414_v11 = vpop.f32.mrb[1].mxu0  ;;  %v768_v12 = vpop.f32.mrb[1].mxu1 }
  0xef   : > { %v415_v13 = vadd.f32 %v2783_v6, %v414_v11  ;;  %v769_v14 = vadd.f32 %v2783_v6, %v768_v12  ;;  %v2351_v15 = vpop.f32.mrb[2].mxu0  ;;  %v2393_v16 = vpop.f32.mrb[2].mxu1 }
  0xf0   : > { %v543_v17 = vmax.f32 %v423_v9, 0.0  ;;  %v897_v18 = vmax.f32 %v777_v10, 0.0  ;;  %v426_v19 = vadd.f32 %v2351_v15, %v2783_v6  ;;  %v780_v20 = vadd.f32 %v2393_v16, %v2783_v6  ;;  %v417_v21 = vpop.f32.mrb[3].mxu0  ;;  %v771_v22 = vpop.f32.mrb[3].mxu1 }
  0xf1   : > { %v541_v23 = vmax.f32 %v415_v13, 0.0  ;;  %v895_v24 = vmax.f32 %v769_v14, 0.0  ;;  %v418_v25 = vadd.f32 %v2783_v6, %v417_v21  ;;  %v772_v26 = vadd.f32 %v2783_v6, %v771_v22 }
  0xf2   : > { %v2793_v27 = vmax.f32 %v543_v17, %v897_v18  ;;  %v544_v28 = vmax.f32 %v426_v19, 0.0  ;;  %v898_v29 = vmax.f32 %v780_v20, 0.0 }
  0xf3   : > { %v2795_v30 = vmax.f32 %v541_v23, %v895_v24  ;;  %v542_v31 = vmax.f32 %v418_v25, 0.0  ;;  %v896_v32 = vmax.f32 %v772_v26, 0.0 }
  0xf4   : > { %v2797_v33 = vmax.f32 %v544_v28, %v898_v29 }
  0xf5   : > { %v2799_v34 = vmax.f32 %v542_v31, %v896_v32  ;;  %v2354_v35 = vpop.f32.mrb[4].mxu0  ;;  %v2396_v36 = vpop.f32.mrb[4].mxu1 }
  0xf6   : > { %v439_v37 = vadd.f32 %v2354_v35, %v2783_v6  ;;  %v793_v38 = vadd.f32 %v2396_v36, %v2783_v6  ;;  %v430_v39 = vpop.f32.mrb[5].mxu0  ;;  %v784_v40 = vpop.f32.mrb[5].mxu1 }
  0xf7   : > { %v431_v41 = vadd.f32 %v2783_v6, %v430_v39  ;;  %v785_v42 = vadd.f32 %v2783_v6, %v784_v40  ;;  %v2355_v43 = vpop.f32.mrb[6].mxu0  ;;  %v2397_v44 = vpop.f32.mrb[6].mxu1 }
  0xf8   : > { %v547_v45 = vmax.f32 %v439_v37, 0.0  ;;  %v901_v46 = vmax.f32 %v793_v38, 0.0  ;;  %v442_v47 = vadd.f32 %v2355_v43, %v2783_v6  ;;  %v796_v48 = vadd.f32 %v2397_v44, %v2783_v6  ;;  %v433_v49 = vpop.f32.mrb[7].mxu0  ;;  %v787_v50 = vpop.f32.mrb[7].mxu1 }
  0xf9   : > { %v545_v51 = vmax.f32 %v431_v41, 0.0  ;;  %v899_v52 = vmax.f32 %v785_v42, 0.0  ;;  %v434_v53 = vadd.f32 %v2783_v6, %v433_v49  ;;  %v788_v54 = vadd.f32 %v2783_v6, %v787_v50 }
  0xfa   : > { %v2809_v55 = vmax.f32 %v547_v45, %v901_v46  ;;  %v548_v56 = vmax.f32 %v442_v47, 0.0  ;;  %v902_v57 = vmax.f32 %v796_v48, 0.0 }
  0xfb   : > { %v2811_v58 = vmax.f32 %v545_v51, %v899_v52  ;;  %v546_v59 = vmax.f32 %v434_v53, 0.0  ;;  %v900_v60 = vmax.f32 %v788_v54, 0.0 }
  0xfc   : > { %v2813_v61 = vmax.f32 %v548_v56, %v902_v57 }
  0xfd   : > { %v2815_v62 = vmax.f32 %v546_v59, %v900_v60  ;;  %v2358_v63 = vpop.f32.mrb[8].mxu0  ;;  %v2400_v0 = vpop.f32.mrb[8].mxu1 }
  0xfe   : > { %v455_v1 = vadd.f32 %v2358_v63, %v2783_v6  ;;  %v809_v2 = vadd.f32 %v2400_v0, %v2783_v6  ;;  %v446_v3 = vpop.f32.mrb[9].mxu0  ;;  %v800_v4 = vpop.f32.mrb[9].mxu1 }
  0xff   : > { %v447_v5 = vadd.f32 %v2783_v6, %v446_v3  ;;  %v801_v7 = vadd.f32 %v2783_v6, %v800_v4  ;;  %v2359_v8 = vpop.f32.mrb[10].mxu0  ;;  %v2401_v9 = vpop.f32.mrb[10].mxu1 }
 0x100   : > { %v551_v10 = vmax.f32 %v455_v1, 0.0  ;;  %v905_v11 = vmax.f32 %v809_v2, 0.0  ;;  %v458_v12 = vadd.f32 %v2359_v8, %v2783_v6  ;;  %v812_v13 = vadd.f32 %v2401_v9, %v2783_v6  ;;  %v449_v14 = vpop.f32.mrb[11].mxu0  ;;  %v803_v15 = vpop.f32.mrb[11].mxu1 }
 0x101   : > { %v549_v16 = vmax.f32 %v447_v5, 0.0  ;;  %v903_v17 = vmax.f32 %v801_v7, 0.0  ;;  %v450_v18 = vadd.f32 %v2783_v6, %v449_v14  ;;  %v804_v19 = vadd.f32 %v2783_v6, %v803_v15 }
 0x102   : > { %v2825_v20 = vmax.f32 %v551_v10, %v905_v11  ;;  %v552_v21 = vmax.f32 %v458_v12, 0.0  ;;  %v906_v22 = vmax.f32 %v812_v13, 0.0 }
 0x103   : > { %v2827_v23 = vmax.f32 %v549_v16, %v903_v17  ;;  %v550_v24 = vmax.f32 %v450_v18, 0.0  ;;  %v904_v25 = vmax.f32 %v804_v19, 0.0 }
 0x104   : > { %v2829_v26 = vmax.f32 %v552_v21, %v906_v22 }
 0x105   : > { %v2831_v28 = vmax.f32 %v550_v24, %v904_v25  ;;  %v2362_v29 = vpop.f32.mrb[12].mxu0  ;;  %v2404_v31 = vpop.f32.mrb[12].mxu1 }
 0x106   : > { %v471_v32 = vadd.f32 %v2362_v29, %v2783_v6  ;;  %v825_v35 = vadd.f32 %v2404_v31, %v2783_v6  ;;  %v462_v36 = vpop.f32.mrb[13].mxu0  ;;  %v816_v37 = vpop.f32.mrb[13].mxu1 }
 0x107   : > { %v463_v38 = vadd.f32 %v2783_v6, %v462_v36  ;;  %v817_v39 = vadd.f32 %v2783_v6, %v816_v37  ;;  %v2363_v40 = vpop.f32.mrb[14].mxu0  ;;  %v2405_v41 = vpop.f32.mrb[14].mxu1 }
 0x108   : > { %v555_v42 = vmax.f32 %v471_v32, 0.0  ;;  %v909_v43 = vmax.f32 %v825_v35, 0.0  ;;  %v474_v44 = vadd.f32 %v2363_v40, %v2783_v6  ;;  %v828_v45 = vadd.f32 %v2405_v41, %v2783_v6  ;;  %v465_v46 = vpop.f32.mrb[15].mxu0  ;;  %v819_v47 = vpop.f32.mrb[15].mxu1 }
 0x109   : > { %v553_v48 = vmax.f32 %v463_v38, 0.0  ;;  %v907_v49 = vmax.f32 %v817_v39, 0.0  ;;  %v466_v50 = vadd.f32 %v2783_v6, %v465_v46  ;;  %v820_v51 = vadd.f32 %v2783_v6, %v819_v47 }
 0x10a   : > { %v2841_v52 = vmax.f32 %v555_v42, %v909_v43  ;;  %v556_v53 = vmax.f32 %v474_v44, 0.0  ;;  %v910_v54 = vmax.f32 %v828_v45, 0.0 }
 0x10b   : > { %v2843_v56 = vmax.f32 %v553_v48, %v907_v49  ;;  %v554_v57 = vmax.f32 %v466_v50, 0.0  ;;  %v908_v59 = vmax.f32 %v820_v51, 0.0 }
 0x10c   : > { %v2845_v60 = vmax.f32 %v556_v53, %v910_v54 }
 0x10d   : > { %v2847_v63 = vmax.f32 %v554_v57, %v908_v59  ;;  %v2366_v0 = vpop.f32.mrb[16].mxu0  ;;  %v2408_v1 = vpop.f32.mrb[16].mxu1 }
 0x10e   : > { %v487_v2 = vadd.f32 %v2366_v0, %v2783_v6  ;;  %v841_v3 = vadd.f32 %v2408_v1, %v2783_v6  ;;  %v478_v4 = vpop.f32.mrb[17].mxu0  ;;  %v832_v5 = vpop.f32.mrb[17].mxu1 }
 0x10f   : > { %v479_v7 = vadd.f32 %v2783_v6, %v478_v4  ;;  %v833_v8 = vadd.f32 %v2783_v6, %v832_v5  ;;  %v2367_v9 = vpop.f32.mrb[18].mxu0  ;;  %v2409_v10 = vpop.f32.mrb[18].mxu1 }
 0x110   : > { %v559_v11 = vmax.f32 %v487_v2, 0.0  ;;  %v913_v12 = vmax.f32 %v841_v3, 0.0  ;;  %v490_v13 = vadd.f32 %v2367_v9, %v2783_v6  ;;  %v844_v14 = vadd.f32 %v2409_v10, %v2783_v6  ;;  %v481_v15 = vpop.f32.mrb[19].mxu0  ;;  %v835_v16 = vpop.f32.mrb[19].mxu1 }
 0x111   : > { %v557_v17 = vmax.f32 %v479_v7, 0.0  ;;  %v911_v18 = vmax.f32 %v833_v8, 0.0  ;;  %v482_v19 = vadd.f32 %v2783_v6, %v481_v15  ;;  %v836_v21 = vadd.f32 %v2783_v6, %v835_v16 }
 0x112   : > { %v2857_v22 = vmax.f32 %v559_v11, %v913_v12  ;;  %v560_v24 = vmax.f32 %v490_v13, 0.0  ;;  %v914_v25 = vmax.f32 %v844_v14, 0.0 }
 0x113   : > { %v2859_v29 = vmax.f32 %v557_v17, %v911_v18  ;;  %v558_v31 = vmax.f32 %v482_v19, 0.0  ;;  %v912_v32 = vmax.f32 %v836_v21, 0.0 }
 0x114   : > { %v2861_v35 = vmax.f32 %v560_v24, %v914_v25 }
 0x115   : > { %v2863_v36 = vmax.f32 %v558_v31, %v912_v32  ;;  %v2370_v37 = vpop.f32.mrb[20].mxu0  ;;  %v2412_v38 = vpop.f32.mrb[20].mxu1 }
 0x116   : > { %v503_v39 = vadd.f32 %v2370_v37, %v2783_v6  ;;  %v857_v40 = vadd.f32 %v2412_v38, %v2783_v6  ;;  %v494_v41 = vpop.f32.mrb[21].mxu0  ;;  %v848_v42 = vpop.f32.mrb[21].mxu1 }
 0x117   : > { %v495_v43 = vadd.f32 %v2783_v6, %v494_v41  ;;  %v849_v44 = vadd.f32 %v2783_v6, %v848_v42  ;;  %v2371_v45 = vpop.f32.mrb[22].mxu0  ;;  %v2413_v46 = vpop.f32.mrb[22].mxu1 }
 0x118   : > { %v563_v47 = vmax.f32 %v503_v39, 0.0  ;;  %v917_v48 = vmax.f32 %v857_v40, 0.0  ;;  %v506_v49 = vadd.f32 %v2371_v45, %v2783_v6  ;;  %v860_v50 = vadd.f32 %v2413_v46, %v2783_v6  ;;  %v497_v51 = vpop.f32.mrb[23].mxu0  ;;  %v851_v53 = vpop.f32.mrb[23].mxu1 }
 0x119   : > { %v561_v54 = vmax.f32 %v495_v43, 0.0  ;;  %v915_v57 = vmax.f32 %v849_v44, 0.0  ;;  %v498_v59 = vadd.f32 %v2783_v6, %v497_v51  ;;  %v852_v0 = vadd.f32 %v2783_v6, %v851_v53 }
 0x11a   : > { %v2873_v1 = vmax.f32 %v563_v47, %v917_v48  ;;  %v564_v2 = vmax.f32 %v506_v49, 0.0  ;;  %v918_v3 = vmax.f32 %v860_v50, 0.0 }
 0x11b   : > { %v2875_v4 = vmax.f32 %v561_v54, %v915_v57  ;;  %v562_v5 = vmax.f32 %v498_v59, 0.0  ;;  %v916_v7 = vmax.f32 %v852_v0, 0.0 }
 0x11c   : > { %v2877_v8 = vmax.f32 %v564_v2, %v918_v3 }
 0x11d   : > { %v2879_v9 = vmax.f32 %v562_v5, %v916_v7  ;;  %v2374_v10 = vpop.f32.mrb[24].mxu0  ;;  %v2416_v11 = vpop.f32.mrb[24].mxu1 }
 0x11e   : > { %v519_v12 = vadd.f32 %v2374_v10, %v2783_v6  ;;  %v873_v13 = vadd.f32 %v2416_v11, %v2783_v6  ;;  %v510_v14 = vpop.f32.mrb[25].mxu0  ;;  %v864_v15 = vpop.f32.mrb[25].mxu1 }
 0x11f   : > { %v511_v16 = vadd.f32 %v2783_v6, %v510_v14  ;;  %v865_v17 = vadd.f32 %v2783_v6, %v864_v15  ;;  %v2375_v18 = vpop.f32.mrb[26].mxu0  ;;  %v2417_v19 = vpop.f32.mrb[26].mxu1 }
 0x120   : > { %v567_v21 = vmax.f32 %v519_v12, 0.0  ;;  %v921_v24 = vmax.f32 %v873_v13, 0.0  ;;  %v522_v25 = vadd.f32 %v2375_v18, %v2783_v6  ;;  %v876_v31 = vadd.f32 %v2417_v19, %v2783_v6  ;;  %v513_v32 = vpop.f32.mrb[27].mxu0  ;;  %v867_v37 = vpop.f32.mrb[27].mxu1 }
 0x121   : > { %v565_v38 = vmax.f32 %v511_v16, 0.0  ;;  %v919_v39 = vmax.f32 %v865_v17, 0.0  ;;  %v514_v40 = vadd.f32 %v2783_v6, %v513_v32  ;;  %v868_v41 = vadd.f32 %v2783_v6, %v867_v37 }
 0x122   : > { %v2889_v42 = vmax.f32 %v567_v21, %v921_v24  ;;  %v568_v43 = vmax.f32 %v522_v25, 0.0  ;;  %v922_v44 = vmax.f32 %v876_v31, 0.0 }
 0x123   : > { %v2891_v45 = vmax.f32 %v565_v38, %v919_v39  ;;  %v566_v46 = vmax.f32 %v514_v40, 0.0  ;;  %v920_v47 = vmax.f32 %v868_v41, 0.0 }
 0x124   : > { %v2893_v48 = vmax.f32 %v568_v43, %v922_v44 }
 0x125   : > { %v2895_v49 = vmax.f32 %v566_v46, %v920_v47  ;;  %v2378_v50 = vpop.f32.mrb[28].mxu0  ;;  %v2420_v51 = vpop.f32.mrb[28].mxu1 }
 0x126   : > { %v535_v53 = vadd.f32 %v2378_v50, %v2783_v6  ;;  %v889_v54 = vadd.f32 %v2420_v51, %v2783_v6  ;;  %v526_v57 = vpop.f32.mrb[29].mxu0  ;;  %v880_v59 = vpop.f32.mrb[29].mxu1 }
 0x127   : > { %v527_v0 = vadd.f32 %v2783_v6, %v526_v57  ;;  %v881_v2 = vadd.f32 %v2783_v6, %v880_v59  ;;  %v2379_v3 = vpop.f32.mrb[30].mxu0  ;;  %v2421_v5 = vpop.f32.mrb[30].mxu1 }
 0x128   : > { %v571_v7 = vmax.f32 %v535_v53, 0.0  ;;  %v925_v10 = vmax.f32 %v889_v54, 0.0  ;;  %v538_v11 = vadd.f32 %v2379_v3, %v2783_v6  ;;  %v892_v12 = vadd.f32 %v2421_v5, %v2783_v6  ;;  %v529_v13 = vpop.f32.mrb[31].mxu0  ;;  %v883_v14 = vpop.f32.mrb[31].mxu1 }
 0x129   : > { %v569_v15 = vmax.f32 %v527_v0, 0.0  ;;  %v923_v16 = vmax.f32 %v881_v2, 0.0  ;;  %v530_v17 = vadd.f32 %v2783_v6, %v529_v13  ;;  %v884_v18 = vadd.f32 %v2783_v6, %v883_v14 }
 0x12a   : > { %v2905_v19 = vmax.f32 %v571_v7, %v925_v10  ;;  %v572_v21 = vmax.f32 %v538_v11, 0.0  ;;  %v926_v24 = vmax.f32 %v892_v12, 0.0 }
 0x12b   : > { %v2907_v25 = vmax.f32 %v569_v15, %v923_v16  ;;  %v570_v31 = vmax.f32 %v530_v17, 0.0  ;;  %v924_v32 = vmax.f32 %v884_v18, 0.0 }
 0x12c   : > { %v2909_v37 = vmax.f32 %v572_v21, %v926_v24 }
 0x12d   : > { %v2911_v38 = vmax.f32 %v570_v31, %v924_v32  ;;  %v2434_v39 = vpop.f32.mrb[32].mxu0  ;;  %v2476_v40 = vpop.f32.mrb[32].mxu1 }
 0x12e   : > { %v1163_v41 = vadd.f32 %v2434_v39, %v2783_v6  ;;  %v1549_v43 = vadd.f32 %v2476_v40, %v2783_v6  ;;  %v1154_v44 = vpop.f32.mrb[33].mxu0  ;;  %v1540_v46 = vpop.f32.mrb[33].mxu1 }
 0x12f   : > { %v1155_v47 = vadd.f32 %v2783_v6, %v1154_v44  ;;  %v1541_v50 = vadd.f32 %v2783_v6, %v1540_v46  ;;  %v2435_v51 = vpop.f32.mrb[34].mxu0  ;;  %v2477_v53 = vpop.f32.mrb[34].mxu1 }
 0x130   : > { %v1283_v54 = vmax.f32 %v1163_v41, 0.0  ;;  %v1669_v57 = vmax.f32 %v1549_v43, 0.0  ;;  %v1166_v59 = vadd.f32 %v2435_v51, %v2783_v6  ;;  %v1552_v0 = vadd.f32 %v2477_v53, %v2783_v6  ;;  %v1157_v2 = vpop.f32.mrb[35].mxu0  ;;  %v1543_v3 = vpop.f32.mrb[35].mxu1 }
 0x131   : > { %v1281_v5 = vmax.f32 %v1155_v47, 0.0  ;;  %v1667_v7 = vmax.f32 %v1541_v50, 0.0  ;;  %v1158_v10 = vadd.f32 %v2783_v6, %v1157_v2  ;;  %v1544_v11 = vadd.f32 %v2783_v6, %v1543_v3 }
 0x132   : > { %v1315_v12 = vmax.f32 %v2793_v27, %v1283_v54  ;;  %v1284_v13 = vmax.f32 %v1166_v59, 0.0  ;;  %v1670_v18 = vmax.f32 %v1552_v0, 0.0 }
 0x133   : > { %v1313_v14 = vmax.f32 %v2795_v30, %v1281_v5  ;;  %v1282_v15 = vmax.f32 %v1158_v10, 0.0  ;;  %v1668_v27 = vmax.f32 %v1544_v11, 0.0 }
 0x134   : > { %v1701_v16 = vmax.f32 %v1315_v12, %v1669_v57  ;;  %v1316_v17 = vmax.f32 %v2797_v33, %v1284_v13 }
 0x135   : > { %v1699_v21 = vmax.f32 %v1313_v14, %v1667_v7  ;;  %v1314_v24 = vmax.f32 %v2799_v34, %v1282_v15  ;;  %v2438_v31 = vpop.f32.mrb[36].mxu0  ;;  %v2480_v32 = vpop.f32.mrb[36].mxu1 }
 0x136   : > { %v2224_v39 = vpack.c.bf16 %v1701_v16, %v1701_v16  ;;  %v1702_v30 = vmax.f32 %v1316_v17, %v1670_v18  ;;  %v1179_v40 = vadd.f32 %v2438_v31, %v2783_v6  ;;  %v1565_v33 = vadd.f32 %v2480_v32, %v2783_v6  ;;  %v1170_v41 = vpop.f32.mrb[37].mxu0  ;;  %v1556_v43 = vpop.f32.mrb[37].mxu1 }
 0x137   : > { %v2222_v44 = vpack.c.bf16 %v1699_v21, %v1699_v21  ;;  %v1700_v46 = vmax.f32 %v1314_v24, %v1668_v27  ;;  %v1171_v47 = vadd.f32 %v2783_v6, %v1170_v41  ;;  %v1557_v34 = vadd.f32 %v2783_v6, %v1556_v43  ;;  %v2439_v50 = vpop.f32.mrb[38].mxu0  ;;  %v2481_v51 = vpop.f32.mrb[38].mxu1 }
 0x138   : > { %1862 = vst.msk [vmem:[%s2928_s6 + $0x8] sm:$0xf] %vm1859_vm2, %v2224_v39  ;;  %v2225_v53 = vpack.c.bf16 %v1702_v30, %v1702_v30  ;;  %v1287_v54 = vmax.f32 %v1179_v40, 0.0  ;;  %v1673_v57 = vmax.f32 %v1565_v33, 0.0  ;;  %v1182_v59 = vadd.f32 %v2439_v50, %v2783_v6  ;;  %v1173_v0 = vpop.f32.mrb[39].mxu0  ;;  %v1559_v2 = vpop.f32.mrb[39].mxu1 }
 0x139   : > { %1860 = vst.msk [vmem:[%s2928_s6] sm:$0xf] %vm1859_vm2, %v2222_v44  ;;  %v2223_v3 = vpack.c.bf16 %v1700_v46, %v1700_v46  ;;  %v1285_v5 = vmax.f32 %v1171_v47, 0.0  ;;  %v1671_v7 = vmax.f32 %v1557_v34, 0.0  ;;  %v1568_v10 = vadd.f32 %v2481_v51, %v2783_v6 }
 0x13a   : > { %1863 = vst.msk [vmem:[%s2928_s6 + $0xc] sm:$0xf] %vm1859_vm2, %v2225_v53  ;;  %v1319_v11 = vmax.f32 %v2809_v55, %v1287_v54  ;;  %v1288_v12 = vmax.f32 %v1182_v59, 0.0  ;;  %v1174_v13 = vadd.f32 %v2783_v6, %v1173_v0  ;;  %v1560_v14 = vadd.f32 %v2783_v6, %v1559_v2 }
 0x13b   : > { %1861 = vst.msk [vmem:[%s2928_s6 + $0x4] sm:$0xf] %vm1859_vm2, %v2223_v3  ;;  %v1317_v15 = vmax.f32 %v2811_v58, %v1285_v5  ;;  %v1674_v18 = vmax.f32 %v1568_v10, 0.0 }
 0x13c   : > { %v1705_v16 = vmax.f32 %v1319_v11, %v1673_v57  ;;  %v1320_v17 = vmax.f32 %v2813_v61, %v1288_v12  ;;  %v1286_v21 = vmax.f32 %v1174_v13, 0.0  ;;  %v1672_v27 = vmax.f32 %v1560_v14, 0.0 }
 0x13d   : > { %v1703_v24 = vmax.f32 %v1317_v15, %v1671_v7  ;;  %v2442_v31 = vpop.f32.mrb[40].mxu0  ;;  %v2484_v32 = vpop.f32.mrb[40].mxu1 }
 0x13e   : > { %v2228_v55 = vpack.c.bf16 %v1705_v16, %v1705_v16  ;;  %v1706_v39 = vmax.f32 %v1320_v17, %v1674_v18  ;;  %v1318_v30 = vmax.f32 %v2815_v62, %v1286_v21  ;;  %v1195_v40 = vadd.f32 %v2442_v31, %v2783_v6  ;;  %v1186_v33 = vpop.f32.mrb[41].mxu0  ;;  %v1572_v41 = vpop.f32.mrb[41].mxu1 }
 0x13f   : > { %v2226_v58 = vpack.c.bf16 %v1703_v24, %v1703_v24  ;;  %v1581_v43 = vadd.f32 %v2484_v32, %v2783_v6  ;;  %v1187_v61 = vadd.f32 %v2783_v6, %v1186_v33  ;;  %v1573_v44 = vadd.f32 %v2783_v6, %v1572_v41  ;;  %v2443_v46 = vpop.f32.mrb[42].mxu0  ;;  %v2485_v47 = vpop.f32.mrb[42].mxu1 }
 0x140   : > { %1866 = vst.msk [vmem:[%s2928_s6 + $0x18] sm:$0xf] %vm1859_vm2, %v2228_v55  ;;  %v2229_v34 = vpack.c.bf16 %v1706_v39, %v1706_v39  ;;  %v1704_v50 = vmax.f32 %v1318_v30, %v1672_v27  ;;  %v1291_v62 = vmax.f32 %v1195_v40, 0.0  ;;  %v1198_v51 = vadd.f32 %v2443_v46, %v2783_v6  ;;  %v1189_v53 = vpop.f32.mrb[43].mxu0  ;;  %v1575_v54 = vpop.f32.mrb[43].mxu1 }
 0x141   : > { %1864 = vst.msk [vmem:[%s2928_s6 + $0x10] sm:$0xf] %vm1859_vm2, %v2226_v58  ;;  %v1677_v57 = vmax.f32 %v1581_v43, 0.0  ;;  %v1289_v59 = vmax.f32 %v1187_v61, 0.0  ;;  %v1675_v0 = vmax.f32 %v1573_v44, 0.0  ;;  %v1584_v2 = vadd.f32 %v2485_v47, %v2783_v6 }
 0x142   : > { %1867 = vst.msk [vmem:[%s2928_s6 + $0x1c] sm:$0xf] %vm1859_vm2, %v2229_v34  ;;  %v2227_v3 = vpack.c.bf16 %v1704_v50, %v1704_v50  ;;  %v1323_v5 = vmax.f32 %v2825_v20, %v1291_v62  ;;  %v1292_v7 = vmax.f32 %v1198_v51, 0.0  ;;  %v1190_v10 = vadd.f32 %v2783_v6, %v1189_v53 }
 0x143   : > { %v1321_v11 = vmax.f32 %v2827_v23, %v1289_v59  ;;  %v1576_v12 = vadd.f32 %v2783_v6, %v1575_v54  ;;  %v1678_v15 = vmax.f32 %v1584_v2, 0.0 }
 0x144   : > { %1865 = vst.msk [vmem:[%s2928_s6 + $0x14] sm:$0xf] %vm1859_vm2, %v2227_v3  ;;  %v1709_v13 = vmax.f32 %v1323_v5, %v1677_v57  ;;  %v1324_v14 = vmax.f32 %v2829_v26, %v1292_v7  ;;  %v1290_v16 = vmax.f32 %v1190_v10, 0.0 }
 0x145   : > { %v1707_v17 = vmax.f32 %v1321_v11, %v1675_v0  ;;  %v1676_v18 = vmax.f32 %v1576_v12, 0.0  ;;  %v2446_v21 = vpop.f32.mrb[44].mxu0  ;;  %v2488_v24 = vpop.f32.mrb[44].mxu1 }
 0x146   : > { %v2232_v20 = vpack.c.bf16 %v1709_v13, %v1709_v13  ;;  %v1710_v27 = vmax.f32 %v1324_v14, %v1678_v15  ;;  %v1322_v31 = vmax.f32 %v2831_v28, %v1290_v16  ;;  %v1211_v23 = vadd.f32 %v2446_v21, %v2783_v6  ;;  %v1202_v32 = vpop.f32.mrb[45].mxu0  ;;  %v1588_v55 = vpop.f32.mrb[45].mxu1 }
 0x147   : > { %v2230_v39 = vpack.c.bf16 %v1707_v17, %v1707_v17  ;;  %v1597_v30 = vadd.f32 %v2488_v24, %v2783_v6  ;;  %v1203_v26 = vadd.f32 %v2783_v6, %v1202_v32  ;;  %v1589_v40 = vadd.f32 %v2783_v6, %v1588_v55  ;;  %v2447_v33 = vpop.f32.mrb[46].mxu0  ;;  %v2489_v41 = vpop.f32.mrb[46].mxu1 }
 0x148   : > { %1870 = vst.msk [vmem:[%s2928_s6 + $0x28] sm:$0xf] %vm1859_vm2, %v2232_v20  ;;  %v2233_v58 = vpack.c.bf16 %v1710_v27, %v1710_v27  ;;  %v1708_v43 = vmax.f32 %v1322_v31, %v1676_v18  ;;  %v1295_v28 = vmax.f32 %v1211_v23, 0.0  ;;  %v1214_v61 = vadd.f32 %v2447_v33, %v2783_v6  ;;  %v1205_v44 = vpop.f32.mrb[47].mxu0  ;;  %v1591_v46 = vpop.f32.mrb[47].mxu1 }
 0x149   : > { %1868 = vst.msk [vmem:[%s2928_s6 + $0x20] sm:$0xf] %vm1859_vm2, %v2230_v39  ;;  %v1681_v47 = vmax.f32 %v1597_v30, 0.0  ;;  %v1293_v34 = vmax.f32 %v1203_v26, 0.0  ;;  %v1679_v50 = vmax.f32 %v1589_v40, 0.0  ;;  %v1600_v62 = vadd.f32 %v2489_v41, %v2783_v6 }
 0x14a   : > { %1871 = vst.msk [vmem:[%s2928_s6 + $0x2c] sm:$0xf] %vm1859_vm2, %v2233_v58  ;;  %v2231_v51 = vpack.c.bf16 %v1708_v43, %v1708_v43  ;;  %v1327_v53 = vmax.f32 %v2841_v52, %v1295_v28  ;;  %v1296_v54 = vmax.f32 %v1214_v61, 0.0  ;;  %v1206_v57 = vadd.f32 %v2783_v6, %v1205_v44 }
 0x14b   : > { %v1325_v59 = vmax.f32 %v2843_v56, %v1293_v34  ;;  %v1592_v0 = vadd.f32 %v2783_v6, %v1591_v46  ;;  %v1682_v5 = vmax.f32 %v1600_v62, 0.0 }
 0x14c   : > { %1869 = vst.msk [vmem:[%s2928_s6 + $0x24] sm:$0xf] %vm1859_vm2, %v2231_v51  ;;  %v1713_v2 = vmax.f32 %v1327_v53, %v1681_v47  ;;  %v1328_v3 = vmax.f32 %v2845_v60, %v1296_v54  ;;  %v1294_v7 = vmax.f32 %v1206_v57, 0.0 }
 0x14d   : > { %v1711_v10 = vmax.f32 %v1325_v59, %v1679_v50  ;;  %v1680_v11 = vmax.f32 %v1592_v0, 0.0  ;;  %v2450_v12 = vpop.f32.mrb[48].mxu0  ;;  %v2492_v13 = vpop.f32.mrb[48].mxu1 }
 0x14e   : > { %v2236_v52 = vpack.c.bf16 %v1713_v2, %v1713_v2  ;;  %v1714_v14 = vmax.f32 %v1328_v3, %v1682_v5  ;;  %v1326_v15 = vmax.f32 %v2847_v63, %v1294_v7  ;;  %v1227_v56 = vadd.f32 %v2450_v12, %v2783_v6  ;;  %v1218_v16 = vpop.f32.mrb[49].mxu0  ;;  %v1604_v17 = vpop.f32.mrb[49].mxu1 }
 0x14f   : > { %v2234_v18 = vpack.c.bf16 %v1711_v10, %v1711_v10  ;;  %v1613_v21 = vadd.f32 %v2492_v13, %v2783_v6  ;;  %v1219_v60 = vadd.f32 %v2783_v6, %v1218_v16  ;;  %v1605_v24 = vadd.f32 %v2783_v6, %v1604_v17  ;;  %v2451_v20 = vpop.f32.mrb[50].mxu0  ;;  %v2493_v27 = vpop.f32.mrb[50].mxu1 }
 0x150   : > { %1874 = vst.msk [vmem:[%s2928_s6 + $0x38] sm:$0xf] %vm1859_vm2, %v2236_v52  ;;  %v2237_v31 = vpack.c.bf16 %v1714_v14, %v1714_v14  ;;  %v1712_v23 = vmax.f32 %v1326_v15, %v1680_v11  ;;  %v1299_v63 = vmax.f32 %v1227_v56, 0.0  ;;  %v1230_v32 = vadd.f32 %v2451_v20, %v2783_v6  ;;  %v1221_v55 = vpop.f32.mrb[51].mxu0  ;;  %v1607_v39 = vpop.f32.mrb[51].mxu1 }
 0x151   : > { %1872 = vst.msk [vmem:[%s2928_s6 + $0x30] sm:$0xf] %vm1859_vm2, %v2234_v18  ;;  %v1685_v30 = vmax.f32 %v1613_v21, 0.0  ;;  %v1297_v26 = vmax.f32 %v1219_v60, 0.0  ;;  %v1683_v40 = vmax.f32 %v1605_v24, 0.0  ;;  %v1616_v33 = vadd.f32 %v2493_v27, %v2783_v6 }
 0x152   : > { %1875 = vst.msk [vmem:[%s2928_s6 + $0x3c] sm:$0xf] %vm1859_vm2, %v2237_v31  ;;  %v2235_v41 = vpack.c.bf16 %v1712_v23, %v1712_v23  ;;  %v1331_v58 = vmax.f32 %v2857_v22, %v1299_v63  ;;  %v1300_v43 = vmax.f32 %v1230_v32, 0.0  ;;  %v1222_v28 = vadd.f32 %v2783_v6, %v1221_v55 }
 0x153   : > { %v1329_v61 = vmax.f32 %v2859_v29, %v1297_v26  ;;  %v1608_v44 = vadd.f32 %v2783_v6, %v1607_v39  ;;  %v1686_v34 = vmax.f32 %v1616_v33, 0.0 }
 0x154   : > { %1873 = vst.msk [vmem:[%s2928_s6 + $0x34] sm:$0xf] %vm1859_vm2, %v2235_v41  ;;  %v1717_v46 = vmax.f32 %v1331_v58, %v1685_v30  ;;  %v1332_v47 = vmax.f32 %v2861_v35, %v1300_v43  ;;  %v1298_v50 = vmax.f32 %v1222_v28, 0.0 }
 0x155   : > { %v1715_v62 = vmax.f32 %v1329_v61, %v1683_v40  ;;  %v1684_v51 = vmax.f32 %v1608_v44, 0.0  ;;  %v2454_v53 = vpop.f32.mrb[52].mxu0  ;;  %v2496_v54 = vpop.f32.mrb[52].mxu1 }
 0x156   : > { %v2240_v22 = vpack.c.bf16 %v1717_v46, %v1717_v46  ;;  %v1718_v57 = vmax.f32 %v1332_v47, %v1686_v34  ;;  %v1330_v59 = vmax.f32 %v2863_v36, %v1298_v50  ;;  %v1243_v29 = vadd.f32 %v2454_v53, %v2783_v6  ;;  %v1234_v0 = vpop.f32.mrb[53].mxu0  ;;  %v1620_v2 = vpop.f32.mrb[53].mxu1 }
 0x157   : > { %v2238_v3 = vpack.c.bf16 %v1715_v62, %v1715_v62  ;;  %v1629_v5 = vadd.f32 %v2496_v54, %v2783_v6  ;;  %v1235_v35 = vadd.f32 %v2783_v6, %v1234_v0  ;;  %v1621_v7 = vadd.f32 %v2783_v6, %v1620_v2  ;;  %v2455_v10 = vpop.f32.mrb[54].mxu0  ;;  %v2497_v11 = vpop.f32.mrb[54].mxu1 }
 0x158   : > { %1878 = vst.msk [vmem:[%s2928_s6 + $0x48] sm:$0xf] %vm1859_vm2, %v2240_v22  ;;  %v2241_v12 = vpack.c.bf16 %v1718_v57, %v1718_v57  ;;  %v1716_v13 = vmax.f32 %v1330_v59, %v1684_v51  ;;  %v1303_v36 = vmax.f32 %v1243_v29, 0.0  ;;  %v1246_v52 = vadd.f32 %v2455_v10, %v2783_v6  ;;  %v1237_v14 = vpop.f32.mrb[55].mxu0  ;;  %v1623_v15 = vpop.f32.mrb[55].mxu1 }
 0x159   : > { %1876 = vst.msk [vmem:[%s2928_s6 + $0x40] sm:$0xf] %vm1859_vm2, %v2238_v3  ;;  %v1689_v56 = vmax.f32 %v1629_v5, 0.0  ;;  %v1301_v16 = vmax.f32 %v1235_v35, 0.0  ;;  %v1687_v17 = vmax.f32 %v1621_v7, 0.0  ;;  %v1632_v18 = vadd.f32 %v2497_v11, %v2783_v6 }
 0x15a   : > { %1879 = vst.msk [vmem:[%s2928_s6 + $0x4c] sm:$0xf] %vm1859_vm2, %v2241_v12  ;;  %v2239_v21 = vpack.c.bf16 %v1716_v13, %v1716_v13  ;;  %v1335_v60 = vmax.f32 %v2873_v1, %v1303_v36  ;;  %v1304_v24 = vmax.f32 %v1246_v52, 0.0  ;;  %v1238_v20 = vadd.f32 %v2783_v6, %v1237_v14 }
 0x15b   : > { %v1333_v27 = vmax.f32 %v2875_v4, %v1301_v16  ;;  %v1624_v31 = vadd.f32 %v2783_v6, %v1623_v15  ;;  %v1690_v32 = vmax.f32 %v1632_v18, 0.0 }
 0x15c   : > { %1877 = vst.msk [vmem:[%s2928_s6 + $0x44] sm:$0xf] %vm1859_vm2, %v2239_v21  ;;  %v1721_v23 = vmax.f32 %v1335_v60, %v1689_v56  ;;  %v1336_v63 = vmax.f32 %v2877_v8, %v1304_v24  ;;  %v1302_v55 = vmax.f32 %v1238_v20, 0.0 }
 0x15d   : > { %v1719_v39 = vmax.f32 %v1333_v27, %v1687_v17  ;;  %v1688_v30 = vmax.f32 %v1624_v31, 0.0  ;;  %v2458_v26 = vpop.f32.mrb[56].mxu0  ;;  %v2500_v40 = vpop.f32.mrb[56].mxu1 }
 0x15e   : > { %v2244_v1 = vpack.c.bf16 %v1721_v23, %v1721_v23  ;;  %v1722_v33 = vmax.f32 %v1336_v63, %v1690_v32  ;;  %v1334_v41 = vmax.f32 %v2879_v9, %v1302_v55  ;;  %v1259_v4 = vadd.f32 %v2458_v26, %v2783_v6  ;;  %v1250_v58 = vpop.f32.mrb[57].mxu0  ;;  %v1636_v43 = vpop.f32.mrb[57].mxu1  ;;  %v2587_v23 = vld [vmem:[%s3083_s2] ss:$0 sm:$0xff] }
 0x15f   : > { %v2242_v28 = vpack.c.bf16 %v1719_v39, %v1719_v39  ;;  %v1645_v61 = vadd.f32 %v2500_v40, %v2783_v6  ;;  %v1251_v8 = vadd.f32 %v2783_v6, %v1250_v58  ;;  %v1637_v44 = vadd.f32 %v2783_v6, %v1636_v43  ;;  %v2459_v46 = vpop.f32.mrb[58].mxu0  ;;  %v2501_v47 = vpop.f32.mrb[58].mxu1 }
 0x160   : > { %1882 = vst.msk [vmem:[%s2928_s6 + $0x58] sm:$0xf] %vm1859_vm2, %v2244_v1  ;;  %v2245_v34 = vpack.c.bf16 %v1722_v33, %v1722_v33  ;;  %v1720_v50 = vmax.f32 %v1334_v41, %v1688_v30  ;;  %v1307_v9 = vmax.f32 %v1259_v4, 0.0  ;;  %v1262_v62 = vadd.f32 %v2459_v46, %v2783_v6  ;;  %v1253_v51 = vpop.f32.mrb[59].mxu0  ;;  %v1639_v53 = vpop.f32.mrb[59].mxu1 }
 0x161   : > { %1880 = vst.msk [vmem:[%s2928_s6 + $0x50] sm:$0xf] %vm1859_vm2, %v2242_v28  ;;  %v1693_v54 = vmax.f32 %v1645_v61, 0.0  ;;  %v1305_v22 = vmax.f32 %v1251_v8, 0.0  ;;  %v1691_v57 = vmax.f32 %v1637_v44, 0.0  ;;  %v1648_v59 = vadd.f32 %v2501_v47, %v2783_v6 }
 0x162   : > { %1883 = vst.msk [vmem:[%s2928_s6 + $0x5c] sm:$0xf] %vm1859_vm2, %v2245_v34  ;;  %v2243_v29 = vpack.c.bf16 %v1720_v50, %v1720_v50  ;;  %v1339_v0 = vmax.f32 %v2889_v42, %v1307_v9  ;;  %v1308_v2 = vmax.f32 %v1262_v62, 0.0  ;;  %v1254_v3 = vadd.f32 %v2783_v6, %v1253_v51 }
 0x163   : > { %v1337_v5 = vmax.f32 %v2891_v45, %v1305_v22  ;;  %v1640_v35 = vadd.f32 %v2783_v6, %v1639_v53  ;;  %v1694_v11 = vmax.f32 %v1648_v59, 0.0 }
 0x164   : > { %1881 = vst.msk [vmem:[%s2928_s6 + $0x54] sm:$0xf] %vm1859_vm2, %v2243_v29  ;;  %v1725_v7 = vmax.f32 %v1339_v0, %v1693_v54  ;;  %v1340_v10 = vmax.f32 %v2893_v48, %v1308_v2  ;;  %v1306_v12 = vmax.f32 %v1254_v3, 0.0 }
 0x165   : > { %v1723_v13 = vmax.f32 %v1337_v5, %v1691_v57  ;;  %v1692_v36 = vmax.f32 %v1640_v35, 0.0  ;;  %v2462_v52 = vpop.f32.mrb[60].mxu0  ;;  %v2504_v14 = vpop.f32.mrb[60].mxu1 }
 0x166   : > { %v2248_v42 = vpack.c.bf16 %v1725_v7, %v1725_v7  ;;  %v1726_v15 = vmax.f32 %v1340_v10, %v1694_v11  ;;  %v1338_v56 = vmax.f32 %v2895_v49, %v1306_v12  ;;  %v1275_v45 = vadd.f32 %v2462_v52, %v2783_v6  ;;  %v1266_v16 = vpop.f32.mrb[61].mxu0  ;;  %v1652_v17 = vpop.f32.mrb[61].mxu1 }
 0x167   : > { %v2246_v18 = vpack.c.bf16 %v1723_v13, %v1723_v13  ;;  %v1661_v21 = vadd.f32 %v2504_v14, %v2783_v6  ;;  %v1267_v48 = vadd.f32 %v2783_v6, %v1266_v16  ;;  %v1653_v60 = vadd.f32 %v2783_v6, %v1652_v17  ;;  %v2463_v24 = vpop.f32.mrb[62].mxu0  ;;  %v2505_v20 = vpop.f32.mrb[62].mxu1 }
 0x168   : > { %1886 = vst.msk [vmem:[%s2928_s6 + $0x68] sm:$0xf] %vm1859_vm2, %v2248_v42  ;;  %v2249_v27 = vpack.c.bf16 %v1726_v15, %v1726_v15  ;;  %v1724_v31 = vmax.f32 %v1338_v56, %v1692_v36  ;;  %v1311_v49 = vmax.f32 %v1275_v45, 0.0  ;;  %v1278_v63 = vadd.f32 %v2587_v23, %v2463_v24  ;;  %v1269_v32 = vpop.f32.mrb[63].mxu0  ;;  %v1655_v55 = vpop.f32.mrb[63].mxu1 }
 0x169   : > { %1884 = vst.msk [vmem:[%s2928_s6 + $0x60] sm:$0xf] %vm1859_vm2, %v2246_v18  ;;  %v1697_v39 = vmax.f32 %v1661_v21, 0.0  ;;  %v1309_v6 = vmax.f32 %v1267_v48, 0.0  ;;  %v1695_v30 = vmax.f32 %v1653_v60, 0.0  ;;  %v1664_v26 = vadd.f32 %v2587_v23, %v2505_v20 }
 0x16a   : > { %1887 = vst.msk [vmem:[%s2928_s6 + $0x6c] sm:$0xf] %vm1859_vm2, %v2249_v27  ;;  %v2247_v40 = vpack.c.bf16 %v1724_v31, %v1724_v31  ;;  %v1343_v1 = vmax.f32 %v2905_v19, %v1311_v49  ;;  %v1312_v33 = vmax.f32 %v1278_v63, 0.0  ;;  %v1270_v41 = vadd.f32 %v2587_v23, %v1269_v32 }
 0x16b   : > { %v1341_v4 = vmax.f32 %v2907_v25, %v1309_v6  ;;  %v1656_v58 = vadd.f32 %v2587_v23, %v1655_v55  ;;  %v1698_v61 = vmax.f32 %v1664_v26, 0.0 }
 0x16c   : > { %1885 = vst.msk [vmem:[%s2928_s6 + $0x64] sm:$0xf] %vm1859_vm2, %v2247_v40  ;;  %v1729_v43 = vmax.f32 %v1343_v1, %v1697_v39  ;;  %v1344_v28 = vmax.f32 %v2909_v37, %v1312_v33  ;;  %v1310_v8 = vmax.f32 %v1270_v41, 0.0 }
 0x16d   : > { %v1727_v44 = vmax.f32 %v1341_v4, %v1695_v30  ;;  %v1696_v34 = vmax.f32 %v1656_v58, 0.0 }
 0x16e   : > { %v2252_v46 = vpack.c.bf16 %v1729_v43, %v1729_v43  ;;  %v1730_v47 = vmax.f32 %v1344_v28, %v1698_v61  ;;  %v1342_v19 = vmax.f32 %v2911_v38, %v1310_v8 }
 0x16f   : > { %v2250_v50 = vpack.c.bf16 %v1727_v44, %v1727_v44 }
 0x170   : > { %1890 = vst.msk [vmem:[%s2928_s6 + $0x78] sm:$0xf] %vm1859_vm2, %v2252_v46  ;;  %v2253_v25 = vpack.c.bf16 %v1730_v47, %v1730_v47  ;;  %v1728_v9 = vmax.f32 %v1342_v19, %v1696_v34 }
 0x171   : > { %1888 = vst.msk [vmem:[%s2928_s6 + $0x70] sm:$0xf] %vm1859_vm2, %v2250_v50 }
 0x172   : > { %1891 = vst.msk [vmem:[%s2928_s6 + $0x7c] sm:$0xf] %vm1859_vm2, %v2253_v25  ;;  %v2251_v62 = vpack.c.bf16 %v1728_v9, %v1728_v9 }
 0x174   : > { %1889 = vst.msk [vmem:[%s2928_s6 + $0x74] sm:$0xf] %vm1859_vm2, %v2251_v62 }
 0x175 PF: > { %s13_s12 = sadd.s32 1, %s2594_s12  }
 0x176   : > { %p10_p4 = scmp.ge.s32.totalorder %s13_s12, 4  }
 0x178   :  { %12 = sbr.rel (!%p10_p4) target bundleno = 1 (0x1), region = 65 }

// kernel: forward.5
= control target key start
LH: loop header
LB: loop body
LE: loop exit
PB: predicated region body
PF: predicated region fallthrough
CT: control target
= control target key end

     0   :  { %v553_v28 = vlaneseq  ;;  %v3977_v36 = vmov 1966171168   ;;  %s4868_s0 = inlined_call_operand.vmem [shape: bf16[2,4096], index: 0, kind: input, shape index: {}]   ;;  %s4869_s1 = inlined_call_operand.vmem [shape: bf16[4096,32], index: 1, kind: input, shape index: {}]   ;;  %s4870_s2 = inlined_call_operand.vmem [shape: f32[1,32], index: 2, kind: input, shape index: {}]   ;;  %s4871_s3 = inlined_call_operand.vmem [shape: f32[32,10], index: 3, kind: input, shape index: {}]   ;;  %s4872_s4 = inlined_call_operand.vmem [shape: f32[1,10], index: 4, kind: input, shape index: {}]   ;;  %s4873_s5 = inlined_call_operand.hbm [shape: f32[2,10], index: 5, kind: output, shape index: {}]  }
   0x1   :  { %v3693_v0 = vld [vmem:[%s4869_s1 + $0x40] sm:$0xff]   ;;  %v3697_v4 = vld [vmem:[%s4869_s1 + $0x48] sm:$0xff]   ;;  %v3701_v8 = vld [vmem:[%s4869_s1 + $0x50] sm:$0xff]   ;;  %v551_v37 = vunpack.c.l.s4 %v3977_v36 }
   0x2   :  { %v3694_v1 = vld [vmem:[%s4869_s1 + $0xc0] sm:$0xff]   ;;  %3314 = vmatprep.subr.bf16.mxu0 %v3693_v0  ;;  %v3698_v5 = vld [vmem:[%s4869_s1 + $0xc8] sm:$0xff]   ;;  %v3702_v9 = vld [vmem:[%s4869_s1 + $0xd0] sm:$0xff]   ;;  %v554_v33 = vshrl.u32 %v553_v28, 7 }
   0x3   :  { %v3695_v2 = vld [vmem:[%s4869_s1] sm:$0xff]   ;;  %3336 = vmatprep.subr.bf16.mxu1 %v3694_v1  ;;  %v3699_v6 = vld [vmem:[%s4869_s1 + $0x8] sm:$0xff]   ;;  %v3703_v10 = vld [vmem:[%s4869_s1 + $0x10] sm:$0xff]   ;;  %v552_v40 = vunpack.c.0.s8 %v551_v37 }
   0x4   :  { %v3696_v3 = vld [vmem:[%s4869_s1 + $0x80] sm:$0xff]   ;;  %3315 = vmatpush3.bf16.msra.mxu0 %v3695_v2  ;;  %v3700_v7 = vld [vmem:[%s4869_s1 + $0x88] sm:$0xff]   ;;  %v3704_v11 = vld [vmem:[%s4869_s1 + $0x90] sm:$0xff]  }
   0x5   :  { %3337 = vmatpush3.bf16.msra.mxu1 %v3696_v3  ;;  %3316 = vmatprep.subr.bf16.mxu0 %v3697_v4  ;;  %v3705_v12 = vld [vmem:[%s4869_s1 + $0x58] sm:$0xff]   ;;  %v3709_v16 = vld [vmem:[%s4869_s1 + $0x60] sm:$0xff]   ;;  %v3713_v20 = vld [vmem:[%s4869_s1 + $0x68] sm:$0xff]   ;;  %v4117_v41 = vsub.s32 %v552_v40, %v554_v33 }
   0x6   :  { %3338 = vmatprep.subr.bf16.mxu1 %v3698_v5  ;;  %v3706_v13 = vld [vmem:[%s4869_s1 + $0xd8] sm:$0xff]   ;;  %v3710_v17 = vld [vmem:[%s4869_s1 + $0xe0] sm:$0xff]   ;;  %v3714_v21 = vld [vmem:[%s4869_s1 + $0xe8] sm:$0xff]  }
   0x7   :  { %v3707_v14 = vld [vmem:[%s4869_s1 + $0x18] sm:$0xff]   ;;  %v3711_v18 = vld [vmem:[%s4869_s1 + $0x20] sm:$0xff]   ;;  %v3715_v22 = vld [vmem:[%s4869_s1 + $0x28] sm:$0xff]  }
   0x8   :  { %3317 = vmatpush3.bf16.msra.mxu0 %v3699_v6  ;;  %v3708_v15 = vld [vmem:[%s4869_s1 + $0x98] sm:$0xff]   ;;  %v3712_v19 = vld [vmem:[%s4869_s1 + $0xa0] sm:$0xff]   ;;  %v3716_v23 = vld [vmem:[%s4869_s1 + $0xa8] sm:$0xff]  }
   0x9   :  { %3339 = vmatpush3.bf16.msra.mxu1 %v3700_v7  ;;  %3318 = vmatprep.subr.bf16.mxu0 %v3701_v8  ;;  %v3717_v24 = vld [vmem:[%s4869_s1 + $0x70] sm:$0xff]   ;;  %v3721_v29 = vld [vmem:[%s4869_s1 + $0x78] sm:$0xff]   ;;  %v22_v34 = vld [vmem:[%s4868_s0] sm:$0xff] }
   0xa   :  { %3340 = vmatprep.subr.bf16.mxu1 %v3702_v9  ;;  %v3718_v25 = vld [vmem:[%s4869_s1 + $0xf0] sm:$0xff]   ;;  %v3722_v30 = vld [vmem:[%s4869_s1 + $0xf8] sm:$0xff]   ;;  %v3726_v35 = vld [vmem:[%s4869_s1 + $0x140] sm:$0xff]   ;;  %v549_v39 = vcombine.high %v22_v34, %v22_v34  ;;  %v556_v42 = vrot.slane %v22_v34, %v4117_v41 }
   0xb   :  { %v3719_v26 = vld [vmem:[%s4869_s1 + $0x30] sm:$0xff]   ;;  %v3723_v31 = vld [vmem:[%s4869_s1 + $0x38] sm:$0xff]   ;;  %v3727_v38 = vld [vmem:[%s4869_s1 + $0x1c0] sm:$0xff]  }
   0xc   :  { %3319 = vmatpush3.bf16.msra.mxu0 %v3703_v10  ;;  %v3720_v27 = vld [vmem:[%s4869_s1 + $0xb0] sm:$0xff]   ;;  %v3724_v32 = vld [vmem:[%s4869_s1 + $0xb8] sm:$0xff]   ;;  %v4121_v43 = vrot.slane %v549_v39, %v4117_v41  ;;  %v564_v44 = vcombine.high %v556_v42, %v556_v42  ;;  %v572_v45 = vrot.slane %v556_v42, %v4117_v41  ;;  %v3728_v47 = vld [vmem:[%s4869_s1 + $0x100] sm:$0xff]  }
   0xd   :  { %3341 = vmatpush3.bf16.msra.mxu1 %v3704_v11  ;;  %3320 = vmatprep.subr.bf16.mxu0 %v3705_v12  ;;  %v3729_v49 = vld [vmem:[%s4869_s1 + $0x180] sm:$0xff]   ;;  %v3730_v52 = vld [vmem:[%s4869_s1 + $0x148] sm:$0xff]   ;;  %v3734_v58 = vld [vmem:[%s4869_s1 + $0x150] sm:$0xff]  }
   0xe   :  { %3342 = vmatprep.subr.bf16.mxu1 %v3706_v13  ;;  %v565_v46 = vcombine.high %v4121_v43, %v4121_v43  ;;  %v586_v48 = vrot.slane %v564_v44, %v4117_v41  ;;  %v594_v51 = vcombine.high %v572_v45, %v572_v45  ;;  %v3731_v54 = vld [vmem:[%s4869_s1 + $0x1c8] sm:$0xff]   ;;  %v3735_v59 = vld [vmem:[%s4869_s1 + $0x1d0] sm:$0xff]   ;;  %v3738_v62 = vld [vmem:[%s4869_s1 + $0x158] sm:$0xff]  }
   0xf   :  { %v3732_v55 = vld [vmem:[%s4869_s1 + $0x108] sm:$0xff]   ;;  %v3736_v60 = vld [vmem:[%s4869_s1 + $0x110] sm:$0xff]   ;;  %v3739_v63 = vld [vmem:[%s4869_s1 + $0x1d8] sm:$0xff]  }
  0x10   :  { %3321 = vmatpush3.bf16.msra.mxu0 %v3707_v14  ;;  %v593_v50 = vrot.slane %v565_v46, %v4117_v41  ;;  %2345 = vmatprep.mubr.bf16.mxu0 %v586_v48  ;;  %v596_v53 = vcombine.high %v586_v48, %v586_v48  ;;  %v3733_v57 = vld [vmem:[%s4869_s1 + $0x188] sm:$0xff]   ;;  %v3737_v61 = vld [vmem:[%s4869_s1 + $0x190] sm:$0xff]   ;;  %v3740_v0 = vld [vmem:[%s4869_s1 + $0x118] sm:$0xff]  }
  0x11   :  { %3343 = vmatpush3.bf16.msra.mxu1 %v3708_v15  ;;  %3322 = vmatprep.subr.bf16.mxu0 %v3709_v16  ;;  %v3741_v1 = vld [vmem:[%s4869_s1 + $0x198] sm:$0xff]   ;;  %v3742_v2 = vld [vmem:[%s4869_s1 + $0x160] sm:$0xff]   ;;  %v3746_v6 = vld [vmem:[%s4869_s1 + $0x168] sm:$0xff]  }
  0x12   :  { %3344 = vmatprep.subr.bf16.mxu1 %v3710_v17  ;;  %v597_v56 = vcombine.high %v593_v50, %v593_v50  ;;  %2385 = vmatprep.mubr.bf16.mxu1 %v596_v53  ;;  %v3743_v3 = vld [vmem:[%s4869_s1 + $0x1e0] sm:$0xff]   ;;  %v3747_v7 = vld [vmem:[%s4869_s1 + $0x1e8] sm:$0xff]   ;;  %v3750_v10 = vld [vmem:[%s4869_s1 + $0x170] sm:$0xff]  }
  0x13   :  { %v3744_v4 = vld [vmem:[%s4869_s1 + $0x120] sm:$0xff]   ;;  %v3748_v8 = vld [vmem:[%s4869_s1 + $0x128] sm:$0xff]   ;;  %v3751_v11 = vld [vmem:[%s4869_s1 + $0x1f0] sm:$0xff]  }
  0x14   :  { %3323 = vmatpush3.bf16.msra.mxu0 %v3711_v18  ;;  %v3745_v5 = vld [vmem:[%s4869_s1 + $0x1a0] sm:$0xff]   ;;  %v3749_v9 = vld [vmem:[%s4869_s1 + $0x1a8] sm:$0xff]   ;;  %v3752_v12 = vld [vmem:[%s4869_s1 + $0x130] sm:$0xff]   ;;  %v579_v18 = vrot.slane %v4121_v43, %v4117_v41 }
  0x15   :  { %3345 = vmatpush3.bf16.msra.mxu1 %v3712_v19  ;;  %3324 = vmatprep.subr.bf16.mxu0 %v3713_v20  ;;  %v3753_v13 = vld [vmem:[%s4869_s1 + $0x1b0] sm:$0xff]   ;;  %v3754_v14 = vld [vmem:[%s4869_s1 + $0x178] sm:$0xff]   ;;  %v3758_v19 = vld [vmem:[%s4869_s1 + $0x240] sm:$0xff]  }
  0x16   :  { %3346 = vmatprep.subr.bf16.mxu1 %v3714_v21  ;;  %v3755_v15 = vld [vmem:[%s4869_s1 + $0x1f8] sm:$0xff]   ;;  %v3759_v20 = vld [vmem:[%s4869_s1 + $0x2c0] sm:$0xff]   ;;  %v3766_v28 = vld [vmem:[%s4869_s1 + $0x250] sm:$0xff]  }
  0x17   :  { %v3756_v16 = vld [vmem:[%s4869_s1 + $0x138] sm:$0xff]   ;;  %v3760_v21 = vld [vmem:[%s4869_s1 + $0x200] sm:$0xff]   ;;  %v3778_v40 = vld [vmem:[%s4869_s1 + $0x268] sm:$0xff]  }
  0x18   :  { %3325 = vmatpush3.bf16.msra.mxu0 %v3715_v22  ;;  %v3757_v17 = vld [vmem:[%s4869_s1 + $0x1b8] sm:$0xff]   ;;  %v3761_v22 = vld [vmem:[%s4869_s1 + $0x280] sm:$0xff]   ;;  %v3779_v42 = vld [vmem:[%s4869_s1 + $0x2e8] sm:$0xff]  }
  0x19   :  { %3347 = vmatpush3.bf16.msra.mxu1 %v3716_v23  ;;  %3326 = vmatprep.subr.bf16.mxu0 %v3717_v24  ;;  %v595_v23 = vcombine.high %v579_v18, %v579_v18  ;;  %v3762_v24 = vld [vmem:[%s4869_s1 + $0x248] sm:$0xff]   ;;  %v3771_v33 = vld [vmem:[%s4869_s1 + $0x2d8] sm:$0xff]   ;;  %v3774_v36 = vld [vmem:[%s4869_s1 + $0x260] sm:$0xff]  }
  0x1a   :  { %3348 = vmatprep.subr.bf16.mxu1 %v3718_v25  ;;  %v3763_v25 = vld [vmem:[%s4869_s1 + $0x2c8] sm:$0xff]   ;;  %v3772_v34 = vld [vmem:[%s4869_s1 + $0x218] sm:$0xff]   ;;  %v3775_v37 = vld [vmem:[%s4869_s1 + $0x2e0] sm:$0xff]  }
  0x1b   :  { %v3777_v39 = vld [vmem:[%s4869_s1 + $0x2a0] sm:$0xff]   ;;  %v3780_v43 = vld [vmem:[%s4869_s1 + $0x228] sm:$0xff]  }
  0x1c   :  { %3327 = vmatpush3.bf16.msra.mxu0 %v3719_v26  ;;  %v3764_v26 = vld [vmem:[%s4869_s1 + $0x208] sm:$0xff]  }
  0x1d   :  { %3349 = vmatpush3.bf16.msra.mxu1 %v3720_v27  ;;  %3328 = vmatprep.subr.bf16.mxu0 %v3721_v29  ;;  %v3765_v27 = vld [vmem:[%s4869_s1 + $0x288] sm:$0xff]   ;;  %v3767_v29 = vld [vmem:[%s4869_s1 + $0x2d0] sm:$0xff]  }
  0x1e   :  { %3350 = vmatprep.subr.bf16.mxu1 %v3722_v30  ;;  %v3768_v30 = vld [vmem:[%s4869_s1 + $0x210] sm:$0xff]   ;;  %v3781_v44 = vld [vmem:[%s4869_s1 + $0x2a8] sm:$0xff]  }
  0x1f   :  { %v23_v46 = vld [vmem:[%s4868_s0 + $0x8] sm:$0xff] }
  0x20   :  { %3329 = vmatpush3.bf16.msra.mxu0 %v3723_v31  ;;  %v3769_v31 = vld [vmem:[%s4869_s1 + $0x290] sm:$0xff]   ;;  %v605_v48 = vrot.slane %v23_v46, %v4117_v41 }
  0x21   :  { %3351 = vmatpush3.bf16.msra.mxu1 %v3724_v32  ;;  %3358 = vmatprep.subr.bf16.mxu0 %v3726_v35  ;;  %v3770_v32 = vld [vmem:[%s4869_s1 + $0x258] sm:$0xff]  }
  0x22   :  { %3380 = vmatprep.subr.bf16.mxu1 %v3727_v38  ;;  %v3773_v35 = vld [vmem:[%s4869_s1 + $0x298] sm:$0xff]   ;;  %v3776_v38 = vld [vmem:[%s4869_s1 + $0x220] sm:$0xff]  }
  0x23   :  { %2346 = vmatmul.mubr.bf16.vlgmr.msra.gmra.mrb[0].mxu0 %v572_v45  ;;  %v3782_v45 = vld [vmem:[%s4869_s1 + $0x270] sm:$0xff]  }
  0x24   :  { %3359 = vmatpush3.bf16.msra.mxu0 %v3728_v47  ;;  %2386 = vmatmul.mubr.bf16.vlgmr.msra.gmra.mrb[0].mxu1 %v594_v51  ;;  %v3783_v47 = vld [vmem:[%s4869_s1 + $0x2f0] sm:$0xff]  }
  0x25   :  { %3360 = vmatprep.subr.bf16.mxu0 %v3730_v52  ;;  %3381 = vmatpush3.bf16.msra.mxu1 %v3729_v49  ;;  %v598_v49 = vcombine.high %v23_v46, %v23_v46  ;;  %v3785_v51 = vld [vmem:[%s4869_s1 + $0x2b0] sm:$0xff]   ;;  %v613_v52 = vcombine.high %v605_v48, %v605_v48 }
  0x26   :  { %2425 = vmatprep.mubr.bf16.mxu0 %v593_v50  ;;  %3382 = vmatprep.subr.bf16.mxu1 %v3731_v54  ;;  %v3784_v50 = vld [vmem:[%s4869_s1 + $0x230] sm:$0xff]   ;;  %v3786_v54 = vld [vmem:[%s4869_s1 + $0x278] sm:$0xff]  }
  0x27   :  { %2465 = vmatprep.mubr.bf16.mxu1 %v597_v56  ;;  %v4309_v53 = vrot.slane %v598_v49, %v4117_v41  ;;  %v635_v56 = vrot.slane %v613_v52, %v4117_v41  ;;  %v3833_v46 = vld [vmem:[%s4869_s1 + $0x410] sm:$0xff]   ;;  %v3836_v49 = vld [vmem:[%s4869_s1 + $0x4d8] sm:$0xff]   ;;  %v3839_v52 = vld [vmem:[%s4869_s1 + $0x460] sm:$0xff]  }
  0x28   :  { %3361 = vmatpush3.bf16.msra.mxu0 %v3732_v55  ;;  %v3787_v55 = vld [vmem:[%s4869_s1 + $0x2f8] sm:$0xff]  }
  0x29   :  { %3362 = vmatprep.subr.bf16.mxu0 %v3734_v58  ;;  %3383 = vmatpush3.bf16.msra.mxu1 %v3733_v57  ;;  %v614_v57 = vcombine.high %v4309_v53, %v4309_v53  ;;  %v3788_v58 = vld [vmem:[%s4869_s1 + $0x238] sm:$0xff]  }
  0x2a   :  { %3384 = vmatprep.subr.bf16.mxu1 %v3735_v59  ;;  %v3789_v59 = vld [vmem:[%s4869_s1 + $0x2b8] sm:$0xff]  }
  0x2c   :  { %3363 = vmatpush3.bf16.msra.mxu0 %v3736_v60  ;;  %v645_v60 = vcombine.high %v635_v56, %v635_v56 }
  0x2d   :  { %3364 = vmatprep.subr.bf16.mxu0 %v3738_v62  ;;  %3385 = vmatpush3.bf16.msra.mxu1 %v3737_v61  ;;  %v621_v61 = vrot.slane %v605_v48, %v4117_v41  ;;  %v3790_v62 = vld [vmem:[%s4869_s1 + $0x340] sm:$0xff]   ;;  %v3835_v48 = vld [vmem:[%s4869_s1 + $0x458] sm:$0xff]  }
  0x2e   :  { %3386 = vmatprep.subr.bf16.mxu1 %v3739_v63  ;;  %v3791_v63 = vld [vmem:[%s4869_s1 + $0x3c0] sm:$0xff]  }
  0x30   :  { %3365 = vmatpush3.bf16.msra.mxu0 %v3740_v0  ;;  %v642_v0 = vrot.slane %v614_v57, %v4117_v41  ;;  %v3844_v57 = vld [vmem:[%s4869_s1 + $0x4e8] sm:$0xff]  }
  0x31   :  { %3366 = vmatprep.subr.bf16.mxu0 %v3742_v2  ;;  %3387 = vmatpush3.bf16.msra.mxu1 %v3741_v1  ;;  %v3792_v1 = vld [vmem:[%s4869_s1 + $0x300] sm:$0xff]  }
  0x32   :  { %3388 = vmatprep.subr.bf16.mxu1 %v3743_v3  ;;  %v3793_v2 = vld [vmem:[%s4869_s1 + $0x380] sm:$0xff]   ;;  %v643_v3 = vcombine.high %v621_v61, %v621_v61 }
  0x34   :  { %3367 = vmatpush3.bf16.msra.mxu0 %v3744_v4  ;;  %v3794_v4 = vld [vmem:[%s4869_s1 + $0x348] sm:$0xff]  }
  0x35   :  { %3368 = vmatprep.subr.bf16.mxu0 %v3746_v6  ;;  %3389 = vmatpush3.bf16.msra.mxu1 %v3745_v5  ;;  %v3795_v5 = vld [vmem:[%s4869_s1 + $0x3c8] sm:$0xff]   ;;  %v646_v6 = vcombine.high %v642_v0, %v642_v0 }
  0x36   :  { %3390 = vmatprep.subr.bf16.mxu1 %v3747_v7  ;;  %v3796_v7 = vld [vmem:[%s4869_s1 + $0x308] sm:$0xff]  }
  0x38   :  { %3369 = vmatpush3.bf16.msra.mxu0 %v3748_v8  ;;  %v3797_v8 = vld [vmem:[%s4869_s1 + $0x388] sm:$0xff]  }
  0x39   :  { %3370 = vmatprep.subr.bf16.mxu0 %v3750_v10  ;;  %3391 = vmatpush3.bf16.msra.mxu1 %v3749_v9  ;;  %v3798_v9 = vld [vmem:[%s4869_s1 + $0x350] sm:$0xff]  }
  0x3a   :  { %3392 = vmatprep.subr.bf16.mxu1 %v3751_v11  ;;  %v3799_v10 = vld [vmem:[%s4869_s1 + $0x3d0] sm:$0xff]  }
  0x3b   :  { %v3800_v11 = vld [vmem:[%s4869_s1 + $0x310] sm:$0xff]  }
  0x3c   :  { %3371 = vmatpush3.bf16.msra.mxu0 %v3752_v12  ;;  %v3801_v12 = vld [vmem:[%s4869_s1 + $0x390] sm:$0xff]  }
  0x3d   :  { %3372 = vmatprep.subr.bf16.mxu0 %v3754_v14  ;;  %3393 = vmatpush3.bf16.msra.mxu1 %v3753_v13  ;;  %v3802_v13 = vld [vmem:[%s4869_s1 + $0x358] sm:$0xff]  }
  0x3e   :  { %3394 = vmatprep.subr.bf16.mxu1 %v3755_v15  ;;  %v3803_v14 = vld [vmem:[%s4869_s1 + $0x3d8] sm:$0xff]  }
  0x3f   :  { %v3804_v15 = vld [vmem:[%s4869_s1 + $0x318] sm:$0xff]  }
  0x40   :  { %3373 = vmatpush3.bf16.msra.mxu0 %v3756_v16  ;;  %v3805_v16 = vld [vmem:[%s4869_s1 + $0x398] sm:$0xff]  }
  0x41   :  { %3402 = vmatprep.subr.bf16.mxu0 %v3758_v19  ;;  %3395 = vmatpush3.bf16.msra.mxu1 %v3757_v17  ;;  %v3806_v17 = vld [vmem:[%s4869_s1 + $0x360] sm:$0xff]  }
  0x42   :  { %3424 = vmatprep.subr.bf16.mxu1 %v3759_v20  ;;  %v3808_v19 = vld [vmem:[%s4869_s1 + $0x320] sm:$0xff]  }
  0x43   :  { %2426 = vmatmul.mubr.bf16.vlgmr.msra.gmra.mrb[4].mxu0 %v579_v18  ;;  %v3807_v18 = vld [vmem:[%s4869_s1 + $0x3e0] sm:$0xff]  }
  0x44   :  { %3403 = vmatpush3.bf16.msra.mxu0 %v3760_v21  ;;  %2466 = vmatmul.mubr.bf16.vlgmr.msra.gmra.mrb[4].mxu1 %v595_v23  ;;  %v3809_v20 = vld [vmem:[%s4869_s1 + $0x3a0] sm:$0xff]   ;;  %v3810_v21 = vld [vmem:[%s4869_s1 + $0x368] sm:$0xff]  }
  0x45   :  { %3404 = vmatprep.subr.bf16.mxu0 %v3762_v24  ;;  %3425 = vmatpush3.bf16.msra.mxu1 %v3761_v22  ;;  %v3811_v22 = vld [vmem:[%s4869_s1 + $0x3e8] sm:$0xff]  }
  0x46   :  { %3426 = vmatprep.subr.bf16.mxu1 %v3763_v25  ;;  %2505 = vmatprep.mubr.bf16.mxu0 %v635_v56  ;;  %v3812_v23 = vld [vmem:[%s4869_s1 + $0x328] sm:$0xff]   ;;  %v3814_v25 = vld [vmem:[%s4869_s1 + $0x370] sm:$0xff]  }
  0x47   :  { %2545 = vmatprep.mubr.bf16.mxu1 %v645_v60  ;;  %v3813_v24 = vld [vmem:[%s4869_s1 + $0x3a8] sm:$0xff]   ;;  %v3847_v60 = vld [vmem:[%s4869_s1 + $0x470] sm:$0xff]  }
  0x48   :  { %3405 = vmatpush3.bf16.msra.mxu0 %v3764_v26  ;;  %v3815_v26 = vld [vmem:[%s4869_s1 + $0x3f0] sm:$0xff]   ;;  %v3843_v56 = vld [vmem:[%s4869_s1 + $0x468] sm:$0xff]  }
  0x49   :  { %3406 = vmatprep.subr.bf16.mxu0 %v3766_v28  ;;  %3427 = vmatpush3.bf16.msra.mxu1 %v3765_v27  ;;  %v3816_v27 = vld [vmem:[%s4869_s1 + $0x330] sm:$0xff]  }
  0x4a   :  { %3428 = vmatprep.subr.bf16.mxu1 %v3767_v29  ;;  %v3817_v28 = vld [vmem:[%s4869_s1 + $0x3b0] sm:$0xff]   ;;  %v3818_v29 = vld [vmem:[%s4869_s1 + $0x378] sm:$0xff]  }
  0x4c   :  { %3407 = vmatpush3.bf16.msra.mxu0 %v3768_v30  ;;  %v3819_v30 = vld [vmem:[%s4869_s1 + $0x3f8] sm:$0xff]  }
  0x4d   :  { %3408 = vmatprep.subr.bf16.mxu0 %v3770_v32  ;;  %3429 = vmatpush3.bf16.msra.mxu1 %v3769_v31  ;;  %v3820_v31 = vld [vmem:[%s4869_s1 + $0x338] sm:$0xff]  }
  0x4e   :  { %3430 = vmatprep.subr.bf16.mxu1 %v3771_v33  ;;  %v3821_v32 = vld [vmem:[%s4869_s1 + $0x3b8] sm:$0xff]   ;;  %v628_v33 = vrot.slane %v4309_v53, %v4117_v41  ;;  %v3840_v53 = vld [vmem:[%s4869_s1 + $0x4e0] sm:$0xff]  }
  0x50   :  { %3409 = vmatpush3.bf16.msra.mxu0 %v3772_v34  ;;  %v3823_v34 = vld [vmem:[%s4869_s1 + $0x440] sm:$0xff]  }
  0x51   :  { %3410 = vmatprep.subr.bf16.mxu0 %v3774_v36  ;;  %3431 = vmatpush3.bf16.msra.mxu1 %v3773_v35  ;;  %v3824_v35 = vld [vmem:[%s4869_s1 + $0x4c0] sm:$0xff]  }
  0x52   :  { %3432 = vmatprep.subr.bf16.mxu1 %v3775_v37  ;;  %v3825_v36 = vld [vmem:[%s4869_s1 + $0x400] sm:$0xff]  }
  0x53   :  { %v3826_v37 = vld [vmem:[%s4869_s1 + $0x480] sm:$0xff]  }
  0x54   :  { %3411 = vmatpush3.bf16.msra.mxu0 %v3776_v38  ;;  %v644_v38 = vcombine.high %v628_v33, %v628_v33 }
  0x55   :  { %3412 = vmatprep.subr.bf16.mxu0 %v3778_v40  ;;  %3433 = vmatpush3.bf16.msra.mxu1 %v3777_v39  ;;  %v3827_v39 = vld [vmem:[%s4869_s1 + $0x448] sm:$0xff]  }
  0x56   :  { %3434 = vmatprep.subr.bf16.mxu1 %v3779_v42  ;;  %v3828_v40 = vld [vmem:[%s4869_s1 + $0x4c8] sm:$0xff]  }
  0x57   :  { %v3829_v42 = vld [vmem:[%s4869_s1 + $0x408] sm:$0xff]  }
  0x58   :  { %3413 = vmatpush3.bf16.msra.mxu0 %v3780_v43  ;;  %v3830_v43 = vld [vmem:[%s4869_s1 + $0x488] sm:$0xff]  }
  0x59   :  { %3414 = vmatprep.subr.bf16.mxu0 %v3782_v45  ;;  %3435 = vmatpush3.bf16.msra.mxu1 %v3781_v44  ;;  %v3831_v44 = vld [vmem:[%s4869_s1 + $0x450] sm:$0xff]  }
  0x5a   :  { %3436 = vmatprep.subr.bf16.mxu1 %v3783_v47  ;;  %v3832_v45 = vld [vmem:[%s4869_s1 + $0x4d0] sm:$0xff]  }
  0x5b   :  { %v3834_v47 = vld [vmem:[%s4869_s1 + $0x490] sm:$0xff]  }
  0x5c   :  { %3415 = vmatpush3.bf16.msra.mxu0 %v3784_v50  ;;  %v3837_v50 = vld [vmem:[%s4869_s1 + $0x418] sm:$0xff]  }
  0x5d   :  { %3416 = vmatprep.subr.bf16.mxu0 %v3786_v54  ;;  %3437 = vmatpush3.bf16.msra.mxu1 %v3785_v51  ;;  %v3838_v51 = vld [vmem:[%s4869_s1 + $0x498] sm:$0xff]   ;;  %v3841_v54 = vld [vmem:[%s4869_s1 + $0x420] sm:$0xff]  }
  0x5e   :  { %3438 = vmatprep.subr.bf16.mxu1 %v3787_v55  ;;  %v3842_v55 = vld [vmem:[%s4869_s1 + $0x4a0] sm:$0xff]  }
  0x60   :  { %3417 = vmatpush3.bf16.msra.mxu0 %v3788_v58  ;;  %v3845_v58 = vld [vmem:[%s4869_s1 + $0x428] sm:$0xff]  }
  0x61   :  { %3446 = vmatprep.subr.bf16.mxu0 %v3790_v62  ;;  %3439 = vmatpush3.bf16.msra.mxu1 %v3789_v59  ;;  %v3846_v59 = vld [vmem:[%s4869_s1 + $0x4a8] sm:$0xff]   ;;  %v3848_v62 = vld [vmem:[%s4869_s1 + $0x4f0] sm:$0xff]  }
  0x62   :  { %3468 = vmatprep.subr.bf16.mxu1 %v3791_v63 }
  0x63   :  { %2506 = vmatmul.mubr.bf16.vlgmr.msra.gmra.mrb[8].mxu0 %v621_v61  ;;  %v24_v61 = vld [vmem:[%s4868_s0 + $0x10] sm:$0xff] }
  0x64   :  { %3447 = vmatpush3.bf16.msra.mxu0 %v3792_v1  ;;  %2585 = vmatprep.mubr.bf16.mxu0 %v642_v0  ;;  %v654_v63 = vrot.slane %v24_v61, %v4117_v41  ;;  %v647_v0 = vcombine.high %v24_v61, %v24_v61  ;;  %v3849_v1 = vld [vmem:[%s4869_s1 + $0x430] sm:$0xff]  }
  0x65   :  { %2546 = vmatmul.mubr.bf16.vlgmr.msra.gmra.mrb[8].mxu1 %v643_v3  ;;  %3448 = vmatprep.subr.bf16.mxu0 %v3794_v4  ;;  %v3898_v61 = vld [vmem:[%s4869_s1 + $0x610] sm:$0xff]  }
  0x66   :  { %3469 = vmatpush3.bf16.msra.mxu1 %v3793_v2  ;;  %2625 = vmatprep.mubr.bf16.mxu1 %v646_v6  ;;  %v3850_v2 = vld [vmem:[%s4869_s1 + $0x4b0] sm:$0xff]   ;;  %v662_v3 = vcombine.high %v654_v63, %v654_v63  ;;  %v4515_v4 = vrot.slane %v647_v0, %v4117_v41  ;;  %v3852_v6 = vld [vmem:[%s4869_s1 + $0x4f8] sm:$0xff]  }
  0x67   :  { %3470 = vmatprep.subr.bf16.mxu1 %v3795_v5  ;;  %v3851_v5 = vld [vmem:[%s4869_s1 + $0x478] sm:$0xff]  }
  0x68   :  { %3449 = vmatpush3.bf16.msra.mxu0 %v3796_v7  ;;  %v684_v7 = vrot.slane %v662_v3, %v4117_v41  ;;  %v3901_v0 = vld [vmem:[%s4869_s1 + $0x6d8] sm:$0xff]   ;;  %v3904_v3 = vld [vmem:[%s4869_s1 + $0x660] sm:$0xff]  }
  0x69   :  { %3450 = vmatprep.subr.bf16.mxu0 %v3798_v9  ;;  %v3853_v9 = vld [vmem:[%s4869_s1 + $0x438] sm:$0xff]  }
  0x6a   :  { %3471 = vmatpush3.bf16.msra.mxu1 %v3797_v8  ;;  %v663_v8 = vcombine.high %v4515_v4, %v4515_v4 }
  0x6b   :  { %3472 = vmatprep.subr.bf16.mxu1 %v3799_v10  ;;  %v3854_v10 = vld [vmem:[%s4869_s1 + $0x4b8] sm:$0xff]  }
  0x6c   :  { %3451 = vmatpush3.bf16.msra.mxu0 %v3800_v11  ;;  %v694_v11 = vcombine.high %v684_v7, %v684_v7 }
  0x6d   :  { %3452 = vmatprep.subr.bf16.mxu0 %v3802_v13  ;;  %v3855_v13 = vld [vmem:[%s4869_s1 + $0x540] sm:$0xff]  }
  0x6e   :  { %3473 = vmatpush3.bf16.msra.mxu1 %v3801_v12  ;;  %v670_v12 = vrot.slane %v654_v63, %v4117_v41  ;;  %v3900_v63 = vld [vmem:[%s4869_s1 + $0x658] sm:$0xff]  }
  0x6f   :  { %3474 = vmatprep.subr.bf16.mxu1 %v3803_v14  ;;  %v3856_v14 = vld [vmem:[%s4869_s1 + $0x5c0] sm:$0xff]  }
  0x70   :  { %3453 = vmatpush3.bf16.msra.mxu0 %v3804_v15  ;;  %v691_v15 = vrot.slane %v663_v8, %v4117_v41  ;;  %v3909_v8 = vld [vmem:[%s4869_s1 + $0x6e8] sm:$0xff]  }
  0x71   :  { %3454 = vmatprep.subr.bf16.mxu0 %v3806_v17  ;;  %v3858_v17 = vld [vmem:[%s4869_s1 + $0x580] sm:$0xff]  }
  0x72   :  { %3475 = vmatpush3.bf16.msra.mxu1 %v3805_v16  ;;  %v3857_v16 = vld [vmem:[%s4869_s1 + $0x500] sm:$0xff]  }
  0x73   :  { %3476 = vmatprep.subr.bf16.mxu1 %v3807_v18  ;;  %v692_v18 = vcombine.high %v670_v12, %v670_v12 }
  0x74   :  { %3455 = vmatpush3.bf16.msra.mxu0 %v3808_v19  ;;  %v3859_v19 = vld [vmem:[%s4869_s1 + $0x548] sm:$0xff]  }
  0x75   :  { %3456 = vmatprep.subr.bf16.mxu0 %v3810_v21  ;;  %v695_v21 = vcombine.high %v691_v15, %v691_v15 }
  0x76   :  { %3477 = vmatpush3.bf16.msra.mxu1 %v3809_v20  ;;  %v3860_v20 = vld [vmem:[%s4869_s1 + $0x5c8] sm:$0xff]  }
  0x77   :  { %3478 = vmatprep.subr.bf16.mxu1 %v3811_v22  ;;  %v3861_v22 = vld [vmem:[%s4869_s1 + $0x508] sm:$0xff]  }
  0x78   :  { %3457 = vmatpush3.bf16.msra.mxu0 %v3812_v23  ;;  %v3862_v23 = vld [vmem:[%s4869_s1 + $0x588] sm:$0xff]  }
  0x79   :  { %3458 = vmatprep.subr.bf16.mxu0 %v3814_v25  ;;  %v3864_v25 = vld [vmem:[%s4869_s1 + $0x5d0] sm:$0xff]  }
  0x7a   :  { %3479 = vmatpush3.bf16.msra.mxu1 %v3813_v24  ;;  %v3863_v24 = vld [vmem:[%s4869_s1 + $0x550] sm:$0xff]  }
  0x7b   :  { %3480 = vmatprep.subr.bf16.mxu1 %v3815_v26  ;;  %v3865_v26 = vld [vmem:[%s4869_s1 + $0x510] sm:$0xff]  }
  0x7c   :  { %3459 = vmatpush3.bf16.msra.mxu0 %v3816_v27  ;;  %v3866_v27 = vld [vmem:[%s4869_s1 + $0x590] sm:$0xff]  }
  0x7d   :  { %3460 = vmatprep.subr.bf16.mxu0 %v3818_v29  ;;  %v3868_v29 = vld [vmem:[%s4869_s1 + $0x5d8] sm:$0xff]  }
  0x7e   :  { %3481 = vmatpush3.bf16.msra.mxu1 %v3817_v28  ;;  %v3867_v28 = vld [vmem:[%s4869_s1 + $0x558] sm:$0xff]  }
  0x7f   :  { %3482 = vmatprep.subr.bf16.mxu1 %v3819_v30  ;;  %v3869_v30 = vld [vmem:[%s4869_s1 + $0x518] sm:$0xff]  }
  0x80   :  { %3461 = vmatpush3.bf16.msra.mxu0 %v3820_v31  ;;  %v3870_v31 = vld [vmem:[%s4869_s1 + $0x598] sm:$0xff]  }
  0x81   :  { %3490 = vmatprep.subr.bf16.mxu0 %v3823_v34  ;;  %v3873_v34 = vld [vmem:[%s4869_s1 + $0x520] sm:$0xff]  }
  0x82   :  { %3483 = vmatpush3.bf16.msra.mxu1 %v3821_v32  ;;  %v3871_v32 = vld [vmem:[%s4869_s1 + $0x560] sm:$0xff]  }
  0x83   :  { %2586 = vmatmul.mubr.bf16.vlgmr.msra.gmra.mrb[12].mxu0 %v628_v33  ;;  %3512 = vmatprep.subr.bf16.mxu1 %v3824_v35  ;;  %v3872_v33 = vld [vmem:[%s4869_s1 + $0x5e0] sm:$0xff]  }
  0x84   :  { %3491 = vmatpush3.bf16.msra.mxu0 %v3825_v36  ;;  %2665 = vmatprep.mubr.bf16.mxu0 %v684_v7  ;;  %v3874_v35 = vld [vmem:[%s4869_s1 + $0x5a0] sm:$0xff]   ;;  %v3875_v36 = vld [vmem:[%s4869_s1 + $0x568] sm:$0xff]  }
  0x85   :  { %2626 = vmatmul.mubr.bf16.vlgmr.msra.gmra.mrb[12].mxu1 %v644_v38  ;;  %3492 = vmatprep.subr.bf16.mxu0 %v3827_v39  ;;  %v3877_v38 = vld [vmem:[%s4869_s1 + $0x528] sm:$0xff]  }
  0x86   :  { %3513 = vmatpush3.bf16.msra.mxu1 %v3826_v37  ;;  %2705 = vmatprep.mubr.bf16.mxu1 %v694_v11  ;;  %v3876_v37 = vld [vmem:[%s4869_s1 + $0x5e8] sm:$0xff]   ;;  %v3912_v11 = vld [vmem:[%s4869_s1 + $0x670] sm:$0xff]  }
  0x87   :  { %3514 = vmatprep.subr.bf16.mxu1 %v3828_v40  ;;  %v3878_v39 = vld [vmem:[%s4869_s1 + $0x5a8] sm:$0xff]   ;;  %v3879_v40 = vld [vmem:[%s4869_s1 + $0x570] sm:$0xff]  }
  0x88   :  { %3493 = vmatpush3.bf16.msra.mxu0 %v3829_v42  ;;  %v3880_v42 = vld [vmem:[%s4869_s1 + $0x5f0] sm:$0xff]   ;;  %v3908_v7 = vld [vmem:[%s4869_s1 + $0x668] sm:$0xff]  }
  0x89   :  { %3494 = vmatprep.subr.bf16.mxu0 %v3831_v44  ;;  %v3882_v44 = vld [vmem:[%s4869_s1 + $0x5b0] sm:$0xff]  }
  0x8a   :  { %3515 = vmatpush3.bf16.msra.mxu1 %v3830_v43  ;;  %v3881_v43 = vld [vmem:[%s4869_s1 + $0x530] sm:$0xff]  }
  0x8b   :  { %3516 = vmatprep.subr.bf16.mxu1 %v3832_v45  ;;  %v3883_v45 = vld [vmem:[%s4869_s1 + $0x578] sm:$0xff]  }
  0x8c   :  { %3495 = vmatpush3.bf16.msra.mxu0 %v3833_v46  ;;  %v3884_v46 = vld [vmem:[%s4869_s1 + $0x5f8] sm:$0xff]  }
  0x8d   :  { %3496 = vmatprep.subr.bf16.mxu0 %v3835_v48  ;;  %v3886_v48 = vld [vmem:[%s4869_s1 + $0x5b8] sm:$0xff]  }
  0x8e   :  { %3517 = vmatpush3.bf16.msra.mxu1 %v3834_v47  ;;  %v3885_v47 = vld [vmem:[%s4869_s1 + $0x538] sm:$0xff]  }
  0x8f   :  { %3518 = vmatprep.subr.bf16.mxu1 %v3836_v49  ;;  %v677_v49 = vrot.slane %v4515_v4, %v4117_v41  ;;  %v3905_v4 = vld [vmem:[%s4869_s1 + $0x6e0] sm:$0xff]  }
  0x90   :  { %3497 = vmatpush3.bf16.msra.mxu0 %v3837_v50  ;;  %v3888_v50 = vld [vmem:[%s4869_s1 + $0x640] sm:$0xff]  }
  0x91   :  { %3498 = vmatprep.subr.bf16.mxu0 %v3839_v52  ;;  %v3890_v52 = vld [vmem:[%s4869_s1 + $0x600] sm:$0xff]  }
  0x92   :  { %3519 = vmatpush3.bf16.msra.mxu1 %v3838_v51  ;;  %v3889_v51 = vld [vmem:[%s4869_s1 + $0x6c0] sm:$0xff]  }
  0x93   :  { %3520 = vmatprep.subr.bf16.mxu1 %v3840_v53  ;;  %v3891_v53 = vld [vmem:[%s4869_s1 + $0x680] sm:$0xff]  }
  0x94   :  { %3499 = vmatpush3.bf16.msra.mxu0 %v3841_v54  ;;  %v693_v54 = vcombine.high %v677_v49, %v677_v49 }
  0x95   :  { %3500 = vmatprep.subr.bf16.mxu0 %v3843_v56  ;;  %v3893_v56 = vld [vmem:[%s4869_s1 + $0x6c8] sm:$0xff]  }
  0x96   :  { %3521 = vmatpush3.bf16.msra.mxu1 %v3842_v55  ;;  %v3892_v55 = vld [vmem:[%s4869_s1 + $0x648] sm:$0xff]  }
  0x97   :  { %3522 = vmatprep.subr.bf16.mxu1 %v3844_v57  ;;  %v3894_v57 = vld [vmem:[%s4869_s1 + $0x608] sm:$0xff]  }
  0x98   :  { %3501 = vmatpush3.bf16.msra.mxu0 %v3845_v58  ;;  %v3895_v58 = vld [vmem:[%s4869_s1 + $0x688] sm:$0xff]  }
  0x99   :  { %3502 = vmatprep.subr.bf16.mxu0 %v3847_v60  ;;  %v3897_v60 = vld [vmem:[%s4869_s1 + $0x6d0] sm:$0xff]  }
  0x9a   :  { %3523 = vmatpush3.bf16.msra.mxu1 %v3846_v59  ;;  %v3896_v59 = vld [vmem:[%s4869_s1 + $0x650] sm:$0xff]  }
  0x9b   :  { %3524 = vmatprep.subr.bf16.mxu1 %v3848_v62  ;;  %v3899_v62 = vld [vmem:[%s4869_s1 + $0x690] sm:$0xff]  }
  0x9c   :  { %3503 = vmatpush3.bf16.msra.mxu0 %v3849_v1  ;;  %v3902_v1 = vld [vmem:[%s4869_s1 + $0x618] sm:$0xff]  }
  0x9d   :  { %3504 = vmatprep.subr.bf16.mxu0 %v3851_v5  ;;  %v3906_v5 = vld [vmem:[%s4869_s1 + $0x620] sm:$0xff]  }
  0x9e   :  { %3525 = vmatpush3.bf16.msra.mxu1 %v3850_v2  ;;  %v3903_v2 = vld [vmem:[%s4869_s1 + $0x698] sm:$0xff]  }
  0x9f   :  { %3526 = vmatprep.subr.bf16.mxu1 %v3852_v6  ;;  %v3907_v6 = vld [vmem:[%s4869_s1 + $0x6a0] sm:$0xff]  }
  0xa0   :  { %3505 = vmatpush3.bf16.msra.mxu0 %v3853_v9  ;;  %v3910_v9 = vld [vmem:[%s4869_s1 + $0x628] sm:$0xff]  }
  0xa1   :  { %3534 = vmatprep.subr.bf16.mxu0 %v3855_v13  ;;  %v3913_v13 = vld [vmem:[%s4869_s1 + $0x6f0] sm:$0xff]  }
  0xa2   :  { %3527 = vmatpush3.bf16.msra.mxu1 %v3854_v10  ;;  %v3911_v10 = vld [vmem:[%s4869_s1 + $0x6a8] sm:$0xff]  }
  0xa3   :  { %2666 = vmatmul.mubr.bf16.vlgmr.msra.gmra.mrb[16].mxu0 %v670_v12  ;;  %3556 = vmatprep.subr.bf16.mxu1 %v3856_v14  ;;  %v25_v12 = vld [vmem:[%s4868_s0 + $0x18] sm:$0xff] }
  0xa4   :  { %3535 = vmatpush3.bf16.msra.mxu0 %v3857_v16  ;;  %2745 = vmatprep.mubr.bf16.mxu0 %v691_v15  ;;  %v703_v14 = vrot.slane %v25_v12, %v4117_v41  ;;  %v696_v15 = vcombine.high %v25_v12, %v25_v12  ;;  %v3914_v16 = vld [vmem:[%s4869_s1 + $0x630] sm:$0xff]  }
  0xa5   :  { %2706 = vmatmul.mubr.bf16.vlgmr.msra.gmra.mrb[16].mxu1 %v692_v18  ;;  %3536 = vmatprep.subr.bf16.mxu0 %v3859_v19 }
  0xa6   :  { %3557 = vmatpush3.bf16.msra.mxu1 %v3858_v17  ;;  %2785 = vmatprep.mubr.bf16.mxu1 %v695_v21  ;;  %v3916_v17 = vld [vmem:[%s4869_s1 + $0x678] sm:$0xff]   ;;  %v711_v18 = vcombine.high %v703_v14, %v703_v14  ;;  %v4721_v19 = vrot.slane %v696_v15, %v4117_v41 }
  0xa7   :  { %3558 = vmatprep.subr.bf16.mxu1 %v3860_v20  ;;  %v3915_v20 = vld [vmem:[%s4869_s1 + $0x6b0] sm:$0xff]   ;;  %v3917_v21 = vld [vmem:[%s4869_s1 + $0x6f8] sm:$0xff]  }
  0xa8   :  { %3537 = vmatpush3.bf16.msra.mxu0 %v3861_v22  ;;  %v733_v22 = vrot.slane %v711_v18, %v4117_v41 }
  0xa9   :  { %3538 = vmatprep.subr.bf16.mxu0 %v3863_v24  ;;  %v3918_v24 = vld [vmem:[%s4869_s1 + $0x638] sm:$0xff]  }
  0xaa   :  { %3559 = vmatpush3.bf16.msra.mxu1 %v3862_v23  ;;  %v712_v23 = vcombine.high %v4721_v19, %v4721_v19 }
  0xab   :  { %3560 = vmatprep.subr.bf16.mxu1 %v3864_v25  ;;  %v743_v25 = vcombine.high %v733_v22, %v733_v22 }
  0xac   :  { %3539 = vmatpush3.bf16.msra.mxu0 %v3865_v26  ;;  %v719_v26 = vrot.slane %v703_v14, %v4117_v41 }
  0xad   :  { %3540 = vmatprep.subr.bf16.mxu0 %v3867_v28  ;;  %v3919_v28 = vld [vmem:[%s4869_s1 + $0x6b8] sm:$0xff]  }
  0xae   :  { %3561 = vmatpush3.bf16.msra.mxu1 %v3866_v27  ;;  %v3920_v27 = vld [vmem:[%s4869_s1 + $0x740] sm:$0xff]  }
  0xaf   :  { %3562 = vmatprep.subr.bf16.mxu1 %v3868_v29  ;;  %v740_v29 = vrot.slane %v712_v23, %v4117_v41 }
  0xb0   :  { %3541 = vmatpush3.bf16.msra.mxu0 %v3869_v30  ;;  %v3921_v30 = vld [vmem:[%s4869_s1 + $0x7c0] sm:$0xff]  }
  0xb1   :  { %3542 = vmatprep.subr.bf16.mxu0 %v3871_v32  ;;  %v741_v32 = vcombine.high %v719_v26, %v719_v26 }
  0xb2   :  { %3563 = vmatpush3.bf16.msra.mxu1 %v3870_v31  ;;  %v3922_v31 = vld [vmem:[%s4869_s1 + $0x700] sm:$0xff]  }
  0xb3   :  { %3564 = vmatprep.subr.bf16.mxu1 %v3872_v33  ;;  %v3924_v33 = vld [vmem:[%s4869_s1 + $0x748] sm:$0xff]  }
  0xb4   :  { %3543 = vmatpush3.bf16.msra.mxu0 %v3873_v34  ;;  %v3923_v34 = vld [vmem:[%s4869_s1 + $0x780] sm:$0xff]  }
  0xb5   :  { %3544 = vmatprep.subr.bf16.mxu0 %v3875_v36  ;;  %v3925_v36 = vld [vmem:[%s4869_s1 + $0x7c8] sm:$0xff]  }
  0xb6   :  { %3565 = vmatpush3.bf16.msra.mxu1 %v3874_v35  ;;  %v744_v35 = vcombine.high %v740_v29, %v740_v29 }
  0xb7   :  { %3566 = vmatprep.subr.bf16.mxu1 %v3876_v37  ;;  %v3926_v37 = vld [vmem:[%s4869_s1 + $0x708] sm:$0xff]  }
  0xb8   :  { %3545 = vmatpush3.bf16.msra.mxu0 %v3877_v38  ;;  %v3928_v38 = vld [vmem:[%s4869_s1 + $0x750] sm:$0xff]  }
  0xb9   :  { %3546 = vmatprep.subr.bf16.mxu0 %v3879_v40  ;;  %v3929_v40 = vld [vmem:[%s4869_s1 + $0x7d0] sm:$0xff]  }
  0xba   :  { %3567 = vmatpush3.bf16.msra.mxu1 %v3878_v39  ;;  %v3927_v39 = vld [vmem:[%s4869_s1 + $0x788] sm:$0xff]  }
  0xbb   :  { %3568 = vmatprep.subr.bf16.mxu1 %v3880_v42  ;;  %v3930_v42 = vld [vmem:[%s4869_s1 + $0x710] sm:$0xff]  }
  0xbc   :  { %3547 = vmatpush3.bf16.msra.mxu0 %v3881_v43  ;;  %v3932_v43 = vld [vmem:[%s4869_s1 + $0x758] sm:$0xff]  }
  0xbd   :  { %3548 = vmatprep.subr.bf16.mxu0 %v3883_v45  ;;  %v3933_v45 = vld [vmem:[%s4869_s1 + $0x7d8] sm:$0xff]  }
  0xbe   :  { %3569 = vmatpush3.bf16.msra.mxu1 %v3882_v44  ;;  %v3931_v44 = vld [vmem:[%s4869_s1 + $0x790] sm:$0xff]  }
  0xbf   :  { %3570 = vmatprep.subr.bf16.mxu1 %v3884_v46  ;;  %v3934_v46 = vld [vmem:[%s4869_s1 + $0x718] sm:$0xff]  }
  0xc0   :  { %3549 = vmatpush3.bf16.msra.mxu0 %v3885_v47  ;;  %v3936_v47 = vld [vmem:[%s4869_s1 + $0x760] sm:$0xff]  }
  0xc1   :  { %3578 = vmatprep.subr.bf16.mxu0 %v3888_v50  ;;  %v3938_v50 = vld [vmem:[%s4869_s1 + $0x720] sm:$0xff]  }
  0xc2   :  { %3571 = vmatpush3.bf16.msra.mxu1 %v3886_v48  ;;  %v3935_v48 = vld [vmem:[%s4869_s1 + $0x798] sm:$0xff]  }
  0xc3   :  { %2746 = vmatmul.mubr.bf16.vlgmr.msra.gmra.mrb[20].mxu0 %v677_v49  ;;  %3600 = vmatprep.subr.bf16.mxu1 %v3889_v51  ;;  %v3937_v49 = vld [vmem:[%s4869_s1 + $0x7e0] sm:$0xff]   ;;  %v3940_v51 = vld [vmem:[%s4869_s1 + $0x768] sm:$0xff]  }
  0xc4   :  { %3579 = vmatpush3.bf16.msra.mxu0 %v3890_v52  ;;  %2825 = vmatprep.mubr.bf16.mxu0 %v733_v22  ;;  %v3939_v52 = vld [vmem:[%s4869_s1 + $0x7a0] sm:$0xff]  }
  0xc5   :  { %2786 = vmatmul.mubr.bf16.vlgmr.msra.gmra.mrb[20].mxu1 %v693_v54  ;;  %3580 = vmatprep.subr.bf16.mxu0 %v3892_v55  ;;  %v3942_v54 = vld [vmem:[%s4869_s1 + $0x728] sm:$0xff]   ;;  %v3944_v55 = vld [vmem:[%s4869_s1 + $0x770] sm:$0xff]  }
  0xc6   :  { %3601 = vmatpush3.bf16.msra.mxu1 %v3891_v53  ;;  %2865 = vmatprep.mubr.bf16.mxu1 %v743_v25  ;;  %v3941_v53 = vld [vmem:[%s4869_s1 + $0x7e8] sm:$0xff]  }
  0xc7   :  { %3602 = vmatprep.subr.bf16.mxu1 %v3893_v56 }
  0xc8   :  { %3581 = vmatpush3.bf16.msra.mxu0 %v3894_v57  ;;  %v3943_v57 = vld [vmem:[%s4869_s1 + $0x7a8] sm:$0xff]  }
  0xc9   :  { %3582 = vmatprep.subr.bf16.mxu0 %v3896_v59 }
  0xca   :  { %3603 = vmatpush3.bf16.msra.mxu1 %v3895_v58 }
  0xcb   :  { %3604 = vmatprep.subr.bf16.mxu1 %v3897_v60 }
  0xcc   :  { %3583 = vmatpush3.bf16.msra.mxu0 %v3898_v61 }
  0xcd   :  { %3584 = vmatprep.subr.bf16.mxu0 %v3900_v63 }
  0xce   :  { %3605 = vmatpush3.bf16.msra.mxu1 %v3899_v62 }
  0xcf   :  { %3606 = vmatprep.subr.bf16.mxu1 %v3901_v0 }
  0xd0   :  { %3585 = vmatpush3.bf16.msra.mxu0 %v3902_v1 }
  0xd1   :  { %3586 = vmatprep.subr.bf16.mxu0 %v3904_v3 }
  0xd2   :  { %3607 = vmatpush3.bf16.msra.mxu1 %v3903_v2 }
  0xd3   :  { %3608 = vmatprep.subr.bf16.mxu1 %v3905_v4 }
  0xd4   :  { %3587 = vmatpush3.bf16.msra.mxu0 %v3906_v5 }
  0xd5   :  { %3588 = vmatprep.subr.bf16.mxu0 %v3908_v7 }
  0xd6   :  { %3609 = vmatpush3.bf16.msra.mxu1 %v3907_v6 }
  0xd7   :  { %3610 = vmatprep.subr.bf16.mxu1 %v3909_v8 }
  0xd8   :  { %3589 = vmatpush3.bf16.msra.mxu0 %v3910_v9 }
  0xd9   :  { %3590 = vmatprep.subr.bf16.mxu0 %v3912_v11 }
  0xda   :  { %3611 = vmatpush3.bf16.msra.mxu1 %v3911_v10 }
  0xdb   :  { %3612 = vmatprep.subr.bf16.mxu1 %v3913_v13 }
  0xdc   :  { %3591 = vmatpush3.bf16.msra.mxu0 %v3914_v16 }
  0xdd   :  { %3592 = vmatprep.subr.bf16.mxu0 %v3916_v17 }
  0xde   :  { %3613 = vmatpush3.bf16.msra.mxu1 %v3915_v20 }
  0xdf   :  { %3614 = vmatprep.subr.bf16.mxu1 %v3917_v21 }
  0xe0   :  { %3593 = vmatpush3.bf16.msra.mxu0 %v3918_v24 }
  0xe1   :  { %3622 = vmatprep.subr.bf16.mxu0 %v3920_v27 }
  0xe2   :  { %3615 = vmatpush3.bf16.msra.mxu1 %v3919_v28 }
  0xe3   :  { %2826 = vmatmul.mubr.bf16.vlgmr.msra.gmra.mrb[24].mxu0 %v719_v26  ;;  %3644 = vmatprep.subr.bf16.mxu1 %v3921_v30 }
  0xe4   :  { %3623 = vmatpush3.bf16.msra.mxu0 %v3922_v31  ;;  %2905 = vmatprep.mubr.bf16.mxu0 %v740_v29 }
  0xe5   :  { %2866 = vmatmul.mubr.bf16.vlgmr.msra.gmra.mrb[24].mxu1 %v741_v32  ;;  %3624 = vmatprep.subr.bf16.mxu0 %v3924_v33 }
  0xe6   :  { %3645 = vmatpush3.bf16.msra.mxu1 %v3923_v34  ;;  %2945 = vmatprep.mubr.bf16.mxu1 %v744_v35 }
  0xe7   :  { %3646 = vmatprep.subr.bf16.mxu1 %v3925_v36 }
  0xe8   :  { %3625 = vmatpush3.bf16.msra.mxu0 %v3926_v37 }
  0xe9   :  { %3626 = vmatprep.subr.bf16.mxu0 %v3928_v38 }
  0xea   :  { %3647 = vmatpush3.bf16.msra.mxu1 %v3927_v39 }
  0xeb   :  { %3648 = vmatprep.subr.bf16.mxu1 %v3929_v40 }
  0xec   :  { %3627 = vmatpush3.bf16.msra.mxu0 %v3930_v42 }
  0xed   :  { %3628 = vmatprep.subr.bf16.mxu0 %v3932_v43 }
  0xee   :  { %3649 = vmatpush3.bf16.msra.mxu1 %v3931_v44 }
  0xef   :  { %3650 = vmatprep.subr.bf16.mxu1 %v3933_v45 }
  0xf0   :  { %3629 = vmatpush3.bf16.msra.mxu0 %v3934_v46 }
  0xf1   :  { %3630 = vmatprep.subr.bf16.mxu0 %v3936_v47 }
  0xf2   :  { %3651 = vmatpush3.bf16.msra.mxu1 %v3935_v48 }
  0xf3   :  { %3652 = vmatprep.subr.bf16.mxu1 %v3937_v49 }
  0xf4   :  { %3631 = vmatpush3.bf16.msra.mxu0 %v3938_v50 }
  0xf5   :  { %3632 = vmatprep.subr.bf16.mxu0 %v3940_v51 }
  0xf6   :  { %3653 = vmatpush3.bf16.msra.mxu1 %v3939_v52  ;;  %v3330_v56 = vpop.f32.mrb[0].mxu0 }
  0xf7   :  { %10 = vsyncpa [#allocation3], 0  ;;  %v3055_v58 = vld [vmem:[%s4870_s2] ss:$0 sm:$0xff]  ;;  %v3331_v59 = vpop.f32.mrb[1].mxu0  ;;  %3654 = vmatprep.subr.bf16.mxu1 %v3941_v53  ;;  %v3945_v60 = vld [vmem:[%s4869_s1 + $0x7f0] sm:$0xff]   ;;  %v726_v12 = vrot.slane %v4721_v19, %v4117_v41 }
  0xf8   :  { %v3352_v61 = vpop.f32.mrb[0].mxu1  ;;  %v3332_v62 = vadd.f32 %v3331_v59, %v3330_v56  ;;  %v3333_v63 = vpop.f32.mrb[2].mxu0  ;;  %3633 = vmatpush3.bf16.msra.mxu0 %v3942_v54  ;;  %v3946_v0 = vld [vmem:[%s4869_s1 + $0x730] sm:$0xff]   ;;  %v3948_v3 = vld [vmem:[%s4869_s1 + $0x778] sm:$0xff]   ;;  %v2954_v44 = vld [vmem:[%s4871_s3] sm:$0xff]  ;;  %v3978_v52 = vmov 0.0|0.0  }
  0xf9   :  { %v3353_v1 = vpop.f32.mrb[1].mxu1  ;;  %v3334_v2 = vpop.f32.mrb[3].mxu0  ;;  %3634 = vmatprep.subr.bf16.mxu0 %v3944_v55  ;;  %v3947_v7 = vld [vmem:[%s4869_s1 + $0x7b0] sm:$0xff]   ;;  %v3949_v9 = vld [vmem:[%s4869_s1 + $0x7f8] sm:$0xff]   ;;  %v742_v14 = vcombine.high %v726_v12, %v726_v12  ;;  %v2955_v45 = vld [vmem:[%s4871_s3 + $0x8] sm:$0xff]  ;;  %vm3979_vm0 = vmmov 0  }
  0xfa   :  { %v2348_v4 = vadd.f32 %v3332_v62, %v3055_v58  ;;  %v3354_v5 = vadd.f32 %v3353_v1, %v3352_v61  ;;  %v3355_v6 = vpop.f32.mrb[2].mxu1  ;;  %3655 = vmatpush3.bf16.msra.mxu1 %v3943_v57  ;;  %v3950_v11 = vld [vmem:[%s4869_s1 + $0x738] sm:$0xff]   ;;  %v3683_v48 = vpack.c.bf16 %v2955_v45, %v2954_v44  ;;  %v2956_v55 = vld [vmem:[%s4871_s3 + $0x10] sm:$0xff]  ;;  %v3980_v58 = vmov 0.0   ;;  %v3312_v44 = vld [vmem:[%s4872_s4] ss:$0 sm:$0xff] }
  0xfb   :  { %v3356_v8 = vpop.f32.mrb[3].mxu1  ;;  %3656 = vmatprep.subr.bf16.mxu1 %v3945_v60  ;;  %v3951_v13 = vld [vmem:[%s4869_s1 + $0x7b8] sm:$0xff]   ;;  %vm2965_vm1 = vcmask 261120   ;;  %s3981_s18 = smov [#allocation2]   ;;  %vm3039_vm2 = vcmask 74752  }
  0xfc   :  { %v2388_v10 = vadd.f32 %v3354_v5, %v2348_v4  ;;  %3635 = vmatpush3.bf16.msra.mxu0 %v3946_v0  ;;  %v2957_v56 = vld [vmem:[%s4871_s3 + $0x18] sm:$0xff]  ;;  %s3047_s19 = sshll.u32 %s3981_s18, 4  ;;  %s3048_s19 = int_to_ptr.vmem [resolvable:$true] %s3047_s19 }
  0xfd   :  { %3636 = vmatprep.subr.bf16.mxu0 %v3948_v3  ;;  %v3686_v57 = vpack.c.bf16 %v2957_v56, %v2956_v55  ;;  %s3953_s20 = scalar_lea.vmem %s3048_s19, 32  ;;  %p3958_p1 = scmp.lt.s32.totalorder %s3048_s19, %s3048_s19 }
  0xfe   :  { %3657 = vmatpush3.bf16.msra.mxu1 %v3947_v7  ;;  %p3954_p0 = scmp.ne.s32.totalorder %s3048_s19, %s3953_s20  ;;  %p3959_p2 = scmp.lt.s32.totalorder %s3953_s20, %s3953_s20 }
  0xff   :  { %3658 = vmatprep.subr.bf16.mxu1 %v3949_v9 }
 0x100   :  { %3637 = vmatpush3.bf16.msra.mxu0 %v3950_v11  ;;  %p3960_p3 = por %p3959_p2, %p3958_p1 }
 0x101   :  { %3682 = vmatprep.subr.bf16.mxu0 %v3978_v52 }
 0x102   :  { %3659 = vmatpush3.bf16.msra.mxu1 %v3951_v13  ;;  %p3961_p4 = pnand %p3960_p3, %p3954_p0 }
 0x103   :  { %2906 = vmatmul.mubr.bf16.vlgmr.msra.gmra.mrb[28].mxu0 %v726_v12 }
 0x104   :  { %3684 = vmatpush3.bf16.msra.mxu0 %v3683_v48  ;;  %3679 = vmatprep.mubr.msk.f32.mxu0 %vm3979_vm0, %v3980_v58 }
 0x105   :  { %2946 = vmatmul.mubr.bf16.vlgmr.msra.gmra.mrb[28].mxu1 %v742_v14  ;;  %3685 = vmatprep.subr.bf16.mxu0 %v3978_v52 }
 0x108   :  { %3687 = vmatpush3.bf16.msra.mxu0 %v3686_v57 }
 0x116   :  { %v3374_v15 = vpop.f32.mrb[4].mxu0 }
 0x117   :  { %v3375_v16 = vpop.f32.mrb[5].mxu0  ;;  %v3396_v17 = vpop.f32.mrb[4].mxu1 }
 0x118   :  { %v3376_v18 = vadd.f32 %v3375_v16, %v3374_v15  ;;  %v3377_v20 = vpop.f32.mrb[6].mxu0  ;;  %v3397_v21 = vpop.f32.mrb[5].mxu1 }
 0x119   :  { %v3378_v22 = vpop.f32.mrb[7].mxu0  ;;  %v3398_v41 = vadd.f32 %v3397_v21, %v3396_v17  ;;  %v3399_v19 = vpop.f32.mrb[6].mxu1 }
 0x11a   :  { %v2428_v23 = vadd.f32 %v3376_v18, %v2388_v10  ;;  %v3400_v24 = vpop.f32.mrb[7].mxu1 }
 0x11c   :  { %v2468_v25 = vadd.f32 %v3398_v41, %v2428_v23 }
 0x136   :  { %v3418_v26 = vpop.f32.mrb[8].mxu0 }
 0x137   :  { %v3419_v27 = vpop.f32.mrb[9].mxu0 }
 0x138   :  { %v3440_v28 = vpop.f32.mrb[8].mxu1  ;;  %v3420_v29 = vadd.f32 %v3419_v27, %v3418_v26  ;;  %v3421_v30 = vpop.f32.mrb[10].mxu0 }
 0x139   :  { %v3441_v31 = vpop.f32.mrb[9].mxu1  ;;  %v3422_v32 = vpop.f32.mrb[11].mxu0 }
 0x13a   :  { %v2508_v33 = vadd.f32 %v3420_v29, %v2468_v25  ;;  %v3442_v34 = vadd.f32 %v3441_v31, %v3440_v28  ;;  %v3443_v35 = vpop.f32.mrb[10].mxu1 }
 0x13b   :  { %v3444_v36 = vpop.f32.mrb[11].mxu1 }
 0x13c   :  { %v2548_v37 = vadd.f32 %v3442_v34, %v2508_v33 }
 0x156   :  { %v3462_v38 = vpop.f32.mrb[12].mxu0 }
 0x157   :  { %v3463_v39 = vpop.f32.mrb[13].mxu0 }
 0x158   :  { %v3484_v40 = vpop.f32.mrb[12].mxu1  ;;  %v3464_v42 = vadd.f32 %v3463_v39, %v3462_v38  ;;  %v3465_v43 = vpop.f32.mrb[14].mxu0 }
 0x159   :  { %v3485_v46 = vpop.f32.mrb[13].mxu1  ;;  %v3466_v47 = vpop.f32.mrb[15].mxu0 }
 0x15a   :  { %v2588_v49 = vadd.f32 %v3464_v42, %v2548_v37  ;;  %v3486_v50 = vadd.f32 %v3485_v46, %v3484_v40  ;;  %v3487_v51 = vpop.f32.mrb[14].mxu1 }
 0x15b   :  { %v3488_v53 = vpop.f32.mrb[15].mxu1 }
 0x15c   :  { %v2628_v54 = vadd.f32 %v3486_v50, %v2588_v49 }
 0x176   :  { %v3506_v59 = vpop.f32.mrb[16].mxu0 }
 0x177   :  { %v3507_v60 = vpop.f32.mrb[17].mxu0 }
 0x178   :  { %v3528_v61 = vpop.f32.mrb[16].mxu1  ;;  %v3508_v62 = vadd.f32 %v3507_v60, %v3506_v59  ;;  %v3509_v63 = vpop.f32.mrb[18].mxu0 }
 0x179   :  { %v3529_v0 = vpop.f32.mrb[17].mxu1  ;;  %v3510_v1 = vpop.f32.mrb[19].mxu0 }
 0x17a   :  { %v2668_v2 = vadd.f32 %v3508_v62, %v2628_v54  ;;  %v3530_v3 = vadd.f32 %v3529_v0, %v3528_v61  ;;  %v3531_v4 = vpop.f32.mrb[18].mxu1 }
 0x17b   :  { %v3532_v5 = vpop.f32.mrb[19].mxu1 }
 0x17c   :  { %v2708_v6 = vadd.f32 %v3530_v3, %v2668_v2 }
 0x196   :  { %v3550_v7 = vpop.f32.mrb[20].mxu0 }
 0x197   :  { %v3551_v8 = vpop.f32.mrb[21].mxu0 }
 0x198   :  { %v3572_v9 = vpop.f32.mrb[20].mxu1  ;;  %v3552_v10 = vadd.f32 %v3551_v8, %v3550_v7  ;;  %v3553_v11 = vpop.f32.mrb[22].mxu0 }
 0x199   :  { %v3573_v12 = vpop.f32.mrb[21].mxu1  ;;  %v3554_v13 = vpop.f32.mrb[23].mxu0 }
 0x19a   :  { %v2748_v14 = vadd.f32 %v3552_v10, %v2708_v6  ;;  %v3574_v15 = vadd.f32 %v3573_v12, %v3572_v9  ;;  %v3575_v16 = vpop.f32.mrb[22].mxu1 }
 0x19b   :  { %v3576_v17 = vpop.f32.mrb[23].mxu1 }
 0x19c   :  { %v2788_v18 = vadd.f32 %v3574_v15, %v2748_v14 }
 0x1b6   :  { %v3594_v20 = vpop.f32.mrb[24].mxu0 }
 0x1b7   :  { %v3595_v21 = vpop.f32.mrb[25].mxu0 }
 0x1b8   :  { %v3616_v22 = vpop.f32.mrb[24].mxu1  ;;  %v3596_v23 = vadd.f32 %v3595_v21, %v3594_v20  ;;  %v3597_v41 = vpop.f32.mrb[26].mxu0 }
 0x1b9   :  { %v3617_v19 = vpop.f32.mrb[25].mxu1  ;;  %v3598_v24 = vpop.f32.mrb[27].mxu0 }
 0x1ba   :  { %v2828_v25 = vadd.f32 %v3596_v23, %v2788_v18  ;;  %v3618_v26 = vadd.f32 %v3617_v19, %v3616_v22  ;;  %v3619_v27 = vpop.f32.mrb[26].mxu1 }
 0x1bb   :  { %v3620_v28 = vpop.f32.mrb[27].mxu1 }
 0x1bc   :  { %v2868_v29 = vadd.f32 %v3618_v26, %v2828_v25 }
 0x1d6   :  { %v3638_v30 = vpop.f32.mrb[28].mxu0 }
 0x1d7   :  { %v3639_v31 = vpop.f32.mrb[29].mxu0 }
 0x1d8   :  { %v3660_v32 = vpop.f32.mrb[28].mxu1  ;;  %v3640_v33 = vadd.f32 %v3639_v31, %v3638_v30  ;;  %v3641_v34 = vpop.f32.mrb[30].mxu0 }
 0x1d9   :  { %v3661_v35 = vpop.f32.mrb[29].mxu1  ;;  %v3642_v36 = vpop.f32.mrb[31].mxu0 }
 0x1da   :  { %v2908_v37 = vadd.f32 %v3640_v33, %v2868_v29  ;;  %v3662_v38 = vadd.f32 %v3661_v35, %v3660_v32  ;;  %v3663_v39 = vpop.f32.mrb[30].mxu1 }
 0x1db   :  { %v3664_v40 = vpop.f32.mrb[31].mxu1 }
 0x1dc   :  { %v2948_v42 = vadd.f32 %v3662_v38, %v2908_v37 }
 0x1de   :  { %v2953_v43 = vmax.f32 %v2948_v42, 0.0 }
 0x1e0   :  { %3680 = vmatmul.mubr.msk.f32.vlgmr.msra.gmra.mrb[32].mxu0 %vm2965_vm1, %v2953_v43 }
 0x2b3   :  { %v3035_v45 = vpop.f32.mrb[32].mxu0 }
 0x2b4   :  { %v3036_v46 = vadd.f32 %v3312_v44, %v3035_v45  ;;  %v3681_v47 = vpop.f32.mrb[33].mxu0 }
 0x2b6   :  { %3040 = vst.msk [vmem:[#allocation2] sm:$0x3] %vm3039_vm2, %v3036_v46 }
 0x2b7   :  { %3964 = shalt.err (!%p3961_p4)
}
 0x2b8   :  { %s3965_s23 = scalar_lea.hbm %s4873_s5, 32 }
 0x2b9   :  { %p3966_p5 = scmp.ne.s32.totalorder %s4873_s5, %s3965_s23  ;;  %p3969_p6 = scmp.lt.u32.totalorder %s3965_s23, %s4873_s5 }
 0x2bb   :  { %p3971_p7 = pnand %p3969_p6, %p3966_p5 }
 0x2bd   :  { %3974 = shalt.err (!%p3971_p7)
}
 0x2be   :  { %3050 = dma.vmem_to_hbm [thread:$0]  %s3048_s19, 32, %s4873_s5, [#allocation3]  }
 0x2bf   :  { %3975 = dma.done.wait [#allocation3], 32  }
 0x2c0   :  { %3976 = vsyncadd [#allocation3], 4294967264 }
 0x2c1   :  { %3054 = vsyncpa [#allocation3], 1 }

</bundles_post_ra>
